<compile_context>
chip_gen: v5e
topology: v5e:2x2
jax: 0.10.0
libtpu: 0.0.40
codegen_flags: <defaults>
</compile_context>

<pallas_src>
import functools

import jax
import jax.numpy as jnp
import numpy as np
from jax import lax
from jax.experimental import pallas as pl
from jax.experimental.pallas import tpu as pltpu

EPS = 1e-5
LANES = 128
TQ_MAX = 512          # flat output rows per grid step (multiple of 8)


def _round_up(x, m):
    return ((x + m - 1) // m) * m


def _vmem_limit_bytes():
    # Generation-aware VMEM budget: ~75% of physical capacity
    # (~48 MiB on v7x's 64 MiB, ~96-100 MiB on v5e/v6e's 128 MiB).
    try:
        cap = pltpu.get_tpu_info().vmem_capacity_bytes
    except Exception:
        cap = 64 * 1024 * 1024
    return min(int(cap * 3 // 4), 100 * 1024 * 1024)


def _build_padded_sample(x_ref, pad_ref, *, h_in, w_in, wp, padding):
    """Build the zero-padded, spatially flattened sample in a VMEM scratch.

    x_ref:   [1, H*W, C]  unpadded NHWC sample (bf16), spatially flattened.
    pad_ref: [R_pad, C]   f32 scratch; rows (r+p)*WP + p .. + W-1 receive row r
                          of x, everything else stays zero (the conv halo).
    """
    pad_ref[...] = jnp.zeros_like(pad_ref)
    if padding == 0:
        pad_ref[pl.ds(0, h_in * w_in), :] = x_ref[0].astype(pad_ref.dtype)
        return
    # Static-offset row copies (H is a trace-time constant).
    for r in range(h_in):
        dst = (r + padding) * wp + padding
        pad_ref[pl.ds(dst, w_in), :] = (
            x_ref[0, pl.ds(r * w_in, w_in), :].astype(pad_ref.dtype))


def _conv_tile(pad_ref, w_ref, lhs_ref, base, *, kh, kw, wp, c, tq):
    """One [TQ, OCp] f32 conv tile via a single deep MXU matmul.

    Assembles the im2col lhs [TQ, KH*KW*C] from KH*KW shifted slices of the
    padded sample (static lane offsets in a small VMEM scratch) and issues one
    jnp.dot against the [KH*KW*C, OCp] weight slab: no f32 accumulator
    read-modify-writes, contraction depth = KH*KW*C.
    """
    for i in range(kh):
        for j in range(kw):
            k = i * kw + j
            lhs_ref[:, k * c:(k + 1) * c] = pad_ref[pl.ds(base + i * wp + j, tq), :]
    return jnp.dot(lhs_ref[...].astype(jnp.bfloat16), w_ref[...],
                   preferred_element_type=jnp.float32)


def _stats_kernel(mask_ref, x_ref, w_ref, shift_ref, sum_ref, sq_ref,
                  pad_ref, lhs_ref, *, kh, kw, wp, c, tq, h_in, w_in, padding):
    """Pass 1: per-sample partial sum / sum-of-squares of (y - shift)."""
    t = pl.program_id(1)

    @pl.when(t == 0)
    def _():
        sum_ref[...] = jnp.zeros_like(sum_ref)
        sq_ref[...] = jnp.zeros_like(sq_ref)
        _build_padded_sample(x_ref, pad_ref, h_in=h_in, w_in=w_in, wp=wp,
                             padding=padding)

    base = pl.multiple_of(t * tq, 8)
    y = _conv_tile(pad_ref, w_ref, lhs_ref, base, kh=kh, kw=kw, wp=wp, c=c, tq=tq)
    # Shifted sums (shift ~= per-channel conv-output mean) avoid most of the
    # E[y^2]-E[y]^2 cancellation; the mask zeroes flat rows that are not real
    # output pixels (pad columns / trailing rows / stride skips).
    ys = (y - shift_ref[...]) * mask_ref[...]
    sum_ref[...] += jnp.sum(ys, axis=0)[None, None, :]
    sq_ref[...] += jnp.sum(ys * ys, axis=0)[None, None, :]


def _norm_kernel(x_ref, w_ref, scale_ref, shift_ref, o_ref,
                 pad_ref, lhs_ref, *, kh, kw, wp, c, tq, h_in, w_in, padding):
    """Pass 2: recompute the conv tile and apply the folded BN affine."""
    t = pl.program_id(1)

    @pl.when(t == 0)
    def _():
        _build_padded_sample(x_ref, pad_ref, h_in=h_in, w_in=w_in, wp=wp,
                             padding=padding)

    base = pl.multiple_of(t * tq, 8)
    y = _conv_tile(pad_ref, w_ref, lhs_ref, base, kh=kh, kw=kw, wp=wp, c=c, tq=tq)
    o_ref[0] = (y * scale_ref[...] + shift_ref[...]).astype(o_ref.dtype)


@functools.partial(jax.jit, static_argnames=("stride", "padding"))
def conv_bn_forward(x, conv_w, gamma, beta, *, stride, padding):
    """x: [N, C, H, W] (NCHW, like PyTorch). conv_w: [OC, C, KH, KW]."""
    n, c, h, w = x.shape
    oc, _, kh, kw = conv_w.shape
    hp, wp = h + 2 * padding, w + 2 * padding
    oh = (hp - kh) // stride + 1
    ow = (wp - kw) // stride + 1
    ocp = _round_up(oc, LANES)                     # lane-dense output channels
    kkc = kh * kw * c
    valid_cols = (ow - 1) * stride + 1
    q_rows = (oh - 1) * stride * wp + valid_cols   # span of flat conv rows

    tq = min(TQ_MAX, _round_up(q_rows, 8))
    num_tiles = (q_rows + tq - 1) // tq
    rows_stored = num_tiles * tq
    r_pad = _round_up(max(rows_stored + (kh - 1) * wp + kw - 1, hp * wp), 8)

    # NHWC, spatially flattened, bf16 (half the input DMA).  Zero padding is
    # applied inside the kernel; f32 accumulation preserves BN accuracy.
    # TODO(synk): the NCHW->NHWC transpose + bf16 cast is still one wrapper-side
    # XLA pass over x; fully fusing it would need per-channel gather DMA.
    xflat = jnp.transpose(x, (0, 2, 3, 1)).reshape(n, h * w, c).astype(jnp.bfloat16)

    # Conv weight [OC, C, KH, KW] -> [KH*KW*C, OCp] slab (column order matches
    # the im2col lhs: (kh, kw, c)); OC zero-padded to a multiple of 128 lanes.
    w_slab = jnp.transpose(conv_w, (2, 3, 1, 0)).reshape(kkc, oc)
    w_slab = jnp.pad(w_slab, ((0, 0), (0, ocp - oc))).astype(jnp.bfloat16)

    # Validity mask over the flat conv rows (1.0 for real output pixels).
    q = jnp.arange(rows_stored, dtype=jnp.int32)
    col, row = q % wp, q // wp
    valid = (q < q_rows) & (col < valid_cols)
    if stride > 1:
        # TODO(synk): stride>1 still computes (and masks away) ~stride^2 extra
        # positions; a strided-row variant would recover that compute.
        valid &= (col % stride == 0) & (row % stride == 0)
    mask = valid.astype(jnp.float32)[:, None]

    # Per-channel shift estimate (~ conv-output mean) for cancellation-safe
    # statistics: shift[oc] = sum_{c,i,j} w[oc,c,i,j] * mean(x[:, c]).
    mean_x = jnp.mean(x.astype(jnp.float32), axis=(0, 2, 3))
    shift_est = jnp.sum(conv_w.astype(jnp.float32), axis=(2, 3)) @ mean_x
    shift_est = jnp.pad(shift_est, (0, ocp - oc)).reshape(1, ocp)

    vmem_limit = _vmem_limit_bytes()
    kern_args = dict(kh=kh, kw=kw, wp=wp, c=c, tq=tq,
                     h_in=h, w_in=w, padding=padding)

    mask_spec = pl.BlockSpec((tq, 1), lambda i, t: (t, 0))
    x_spec = pl.BlockSpec((1, h * w, c), lambda i, t: (i, 0, 0))
    w_spec = pl.BlockSpec((kkc, ocp), lambda i, t: (0, 0))
    vec_spec = pl.BlockSpec((1, ocp), lambda i, t: (0, 0))
    scratch = [pltpu.VMEM((r_pad, c), jnp.float32),   # padded sample (halo)
               pltpu.VMEM((tq, kkc), jnp.float32)]    # per-tile im2col lhs

    # ---- pass 1: per-sample partial sum / sum-of-squares of (y - shift) ----
    part_sum, part_sq = pl.pallas_call(
        functools.partial(_stats_kernel, **kern_args),
        out_shape=(jax.ShapeDtypeStruct((n, 1, ocp), jnp.float32),
                   jax.ShapeDtypeStruct((n, 1, ocp), jnp.float32)),
        grid_spec=pltpu.PrefetchScalarGridSpec(
            num_scalar_prefetch=0,
            grid=(n, num_tiles),
            in_specs=[mask_spec, x_spec, w_spec, vec_spec],
            out_specs=[pl.BlockSpec((1, 1, ocp), lambda i, t: (i, 0, 0)),
                       pl.BlockSpec((1, 1, ocp), lambda i, t: (i, 0, 0))],
            scratch_shapes=scratch),
        compiler_params=pltpu.CompilerParams(
            # samples are independent -> parallel (2-TC split on v7x);
            # the tile axis carries the per-sample accumulators -> arbitrary.
            dimension_semantics=("parallel", "arbitrary"),
            vmem_limit_bytes=vmem_limit),
    )(mask, xflat, w_slab, shift_est)

    # ---- fold BN into per-channel scale/shift (tiny [1, OCp] f32 math) ----
    m_total = float(n * oh * ow)
    s1 = jnp.sum(part_sum, axis=0) / m_total          # E[y - shift]
    s2 = jnp.sum(part_sq, axis=0) / m_total           # E[(y - shift)^2]
    var = jnp.maximum(s2 - s1 * s1, 0.0)
    mean = shift_est + s1
    inv_std = lax.rsqrt(var + EPS)
    g_pad = jnp.pad(gamma.astype(jnp.float32), (0, ocp - oc)).reshape(1, ocp)
    b_pad = jnp.pad(beta.astype(jnp.float32), (0, ocp - oc)).reshape(1, ocp)
    scale = g_pad * inv_std
    shift2 = b_pad - mean * scale

    # ---- pass 2: recompute conv tile + y*scale + shift, lane-dense store ----
    # TODO(synk): for large C (compute-bound) on v7x it is better to write the
    # bf16 conv result in pass 1 and make this a pure affine epilogue; the
    # recompute is the right trade for small-C / memory-bound shapes (v5e/v6e).
    out_flat = pl.pallas_call(
        functools.partial(_norm_kernel, **kern_args),
        out_shape=jax.ShapeDtypeStruct((n, rows_stored, ocp), jnp.float32),
        grid_spec=pltpu.PrefetchScalarGridSpec(
            num_scalar_prefetch=0,
            grid=(n, num_tiles),
            in_specs=[x_spec, w_spec, vec_spec, vec_spec],
            out_specs=pl.BlockSpec((1, tq, ocp), lambda i, t: (i, t, 0)),
            scratch_shapes=scratch),
        compiler_params=pltpu.CompilerParams(
            # the tile axis must stay "arbitrary": tiles of one sample reuse
            # the padded-sample scratch built at t == 0.
            dimension_semantics=("parallel", "arbitrary"),
            vmem_limit_bytes=vmem_limit),
    )(xflat, w_slab, scale, shift2)

    # Extract valid output pixels (single fused relayout) and return NCHW.
    oh_rows = (oh - 1) * stride + 1
    need = oh_rows * wp
    if need > rows_stored:
        out_flat = jnp.pad(out_flat, ((0, 0), (0, need - rows_stored), (0, 0)))
    out_g = out_flat[:, :need, :].reshape(n, oh_rows, wp, ocp)
    out_nhwc = out_g[:, ::stride, :valid_cols:stride, :oc]    # [N, OH, OW, OC]
    return jnp.transpose(out_nhwc, (0, 3, 1, 2))


def _reference(x, conv_w, gamma, beta, *, stride, padding, conv_dtype=jnp.float32):
    y = lax.conv_general_dilated(
        x.astype(conv_dtype), conv_w.astype(conv_dtype),
        window_strides=(stride, stride),
        padding=[(padding, padding), (padding, padding)],
        dimension_numbers=("NCHW", "OIHW", "NCHW"),
        preferred_element_type=jnp.float32)
    mean = jnp.mean(y, axis=(0, 2, 3), keepdims=True)
    var = jnp.mean((y - mean) ** 2, axis=(0, 2, 3), keepdims=True)
    g = gamma.astype(jnp.float32).reshape(1, -1, 1, 1)
    b = beta.astype(jnp.float32).reshape(1, -1, 1, 1)
    return g * (y - mean) * lax.rsqrt(var + EPS) + b


if __name__ == "__main__":
    # Small shapes consistent with ConvBN: N=2, C=4, H=W=16, OC=8, k=3, s=1, p=1.
    N, C, H, W = 2, 4, 16, 16
    OC, KH, KW = 8, 3, 3
    STRIDE, PAD = 1, 1

    key = jax.random.PRNGKey(0)
    kx, kwt, kg, kb = jax.random.split(key, 4)
    x = jax.random.normal(kx, (N, C, H, W), dtype=jnp.float32)
    conv_w = 0.1 * jax.random.normal(kwt, (OC, C, KH, KW), dtype=jnp.float32)
    gamma = 1.0 + 0.1 * jax.random.normal(kg, (OC,), dtype=jnp.float32)
    beta = 0.1 * jax.random.normal(kb, (OC,), dtype=jnp.float32)

    out = conv_bn_forward(x, conv_w, gamma, beta, stride=STRIDE, padding=PAD)
    out = jax.block_until_ready(out)
    assert out.shape == (N, OC, H, W)

    # Precision-matched reference (bf16 matmul inputs, f32 accumulation): tight check.
    ref_bf16 = _reference(x, conv_w, gamma, beta, stride=STRIDE, padding=PAD,
                          conv_dtype=jnp.bfloat16)
    np.testing.assert_allclose(np.asarray(out), np.asarray(ref_bf16),
                               rtol=2e-3, atol=2e-3)

    # Full-f32 reference: looser check bounding the bf16-matmul quantization error.
    ref_f32 = _reference(x, conv_w, gamma, beta, stride=STRIDE, padding=PAD,
                         conv_dtype=jnp.float32)
    np.testing.assert_allclose(np.asarray(out), np.asarray(ref_f32),
                               rtol=5e-2, atol=5e-2)

    print("KERNEL_OK")
</pallas_src>

<mosaic_0001>
module attributes {stable_mosaic.version = 11 : i64} {
  func.func @_stats_kernel(%arg0: i32, %arg1: i32, %arg2: memref<288x1xf32, #tpu.memory_space<vmem>>, %arg3: memref<1x256x4xbf16, #tpu.memory_space<vmem>>, %arg4: memref<36x128xbf16, #tpu.memory_space<vmem>>, %arg5: memref<1x128xf32, #tpu.memory_space<vmem>>, %arg6: memref<1x1x128xf32, #tpu.memory_space<vmem>>, %arg7: memref<1x1x128xf32, #tpu.memory_space<vmem>>, %arg8: memref<328x4xf32, #tpu.memory_space<vmem>>, %arg9: memref<288x36xf32, #tpu.memory_space<vmem>>) attributes {dimension_semantics = [#tpu.dimension_semantics<parallel>, #tpu.dimension_semantics<arbitrary>], iteration_bounds = array<i64: 2, 1>, scalar_prefetch = 0 : i64, scratch_operands = 2 : i64, tpu.core_type = #tpu.core_type<tc>, window_params = [{transform_indices = @transform_0, window_bounds = array<i64: 288, 1>}, {transform_indices = @transform_1, window_bounds = array<i64: 1, 256, 4>}, {pipeline_mode = #tpu.pipeline_mode<synchronous>, transform_indices = @transform_2, window_bounds = array<i64: 36, 128>}, {pipeline_mode = #tpu.pipeline_mode<synchronous>, transform_indices = @transform_3, window_bounds = array<i64: 1, 128>}, {transform_indices = @transform_4, window_bounds = array<i64: 1, 1, 128>}, {transform_indices = @transform_5, window_bounds = array<i64: 1, 1, 128>}]} {
    %c0_i32 = arith.constant 0 : i32
    %0 = arith.cmpi eq, %arg1, %c0_i32 : i32
    %1 = arith.extui %0 : i1 to i32
    %c0_i32_0 = arith.constant 0 : i32
    %2 = arith.cmpi ne, %1, %c0_i32_0 : i32
    scf.if %2 {
      %cst_55 = arith.constant 0.000000e+00 : f32
      %71 = vector.broadcast %cst_55 : f32 to vector<1x1x128xf32>
      %c0_56 = arith.constant 0 : index
      %c0_57 = arith.constant 0 : index
      %c0_58 = arith.constant 0 : index
      %72 = vector.load %arg6[%c0_56, %c0_57, %c0_58] : memref<1x1x128xf32, #tpu.memory_space<vmem>>, vector<1x1x128xf32>
      tpu.vector_store %arg6[%c0_56, %c0_57, %c0_58], %71 {strides = array<i32>} : memref<1x1x128xf32, #tpu.memory_space<vmem>>, vector<1x1x128xf32>,
      %cst_59 = arith.constant 0.000000e+00 : f32
      %73 = vector.broadcast %cst_59 : f32 to vector<1x1x128xf32>
      %c0_60 = arith.constant 0 : index
      %c0_61 = arith.constant 0 : index
      %c0_62 = arith.constant 0 : index
      %74 = vector.load %arg7[%c0_60, %c0_61, %c0_62] : memref<1x1x128xf32, #tpu.memory_space<vmem>>, vector<1x1x128xf32>
      tpu.vector_store %arg7[%c0_60, %c0_61, %c0_62], %73 {strides = array<i32>} : memref<1x1x128xf32, #tpu.memory_space<vmem>>, vector<1x1x128xf32>,
      %cst_63 = arith.constant 0.000000e+00 : f32
      %75 = vector.broadcast %cst_63 : f32 to vector<328x4xf32>
      %c0_64 = arith.constant 0 : index
      %c0_65 = arith.constant 0 : index
      %76 = vector.load %arg8[%c0_64, %c0_65] : memref<328x4xf32, #tpu.memory_space<vmem>>, vector<328x4xf32>
      tpu.vector_store %arg8[%c0_64, %c0_65], %75 {strides = array<i32>} : memref<328x4xf32, #tpu.memory_space<vmem>>, vector<328x4xf32>,
      %c0_66 = arith.constant 0 : index
      %c0_67 = arith.constant 0 : index
      %c0_68 = arith.constant 0 : index
      %77 = vector.load %arg3[%c0_66, %c0_67, %c0_68] : memref<1x256x4xbf16, #tpu.memory_space<vmem>>, vector<1x16x4xbf16>
      %78 = vector.shape_cast %77 : vector<1x16x4xbf16> to vector<16x4xbf16>
      %79 = arith.extf %78 : vector<16x4xbf16> to vector<16x4xf32>
      %c19 = arith.constant 19 : index
      %c0_69 = arith.constant 0 : index
      %80 = vector.load %arg8[%c19, %c0_69] : memref<328x4xf32, #tpu.memory_space<vmem>>, vector<16x4xf32>
      tpu.vector_store %arg8[%c19, %c0_69], %79 {strides = array<i32>} : memref<328x4xf32, #tpu.memory_space<vmem>>, vector<16x4xf32>,
      %c0_70 = arith.constant 0 : index
      %c16_71 = arith.constant 16 : index
      %c0_72 = arith.constant 0 : index
      %81 = vector.load %arg3[%c0_70, %c16_71, %c0_72] : memref<1x256x4xbf16, #tpu.memory_space<vmem>>, vector<1x16x4xbf16>
      %82 = vector.shape_cast %81 : vector<1x16x4xbf16> to vector<16x4xbf16>
      %83 = arith.extf %82 : vector<16x4xbf16> to vector<16x4xf32>
      %c37 = arith.constant 37 : index
      %c0_73 = arith.constant 0 : index
      %84 = vector.load %arg8[%c37, %c0_73] : memref<328x4xf32, #tpu.memory_space<vmem>>, vector<16x4xf32>
      tpu.vector_store %arg8[%c37, %c0_73], %83 {strides = array<i32>} : memref<328x4xf32, #tpu.memory_space<vmem>>, vector<16x4xf32>,
      %c0_74 = arith.constant 0 : index
      %c32_75 = arith.constant 32 : index
      %c0_76 = arith.constant 0 : index
      %85 = vector.load %arg3[%c0_74, %c32_75, %c0_76] : memref<1x256x4xbf16, #tpu.memory_space<vmem>>, vector<1x16x4xbf16>
      %86 = vector.shape_cast %85 : vector<1x16x4xbf16> to vector<16x4xbf16>
      %87 = arith.extf %86 : vector<16x4xbf16> to vector<16x4xf32>
      %c55 = arith.constant 55 : index
      %c0_77 = arith.constant 0 : index
      %88 = vector.load %arg8[%c55, %c0_77] : memref<328x4xf32, #tpu.memory_space<vmem>>, vector<16x4xf32>
      tpu.vector_store %arg8[%c55, %c0_77], %87 {strides = array<i32>} : memref<328x4xf32, #tpu.memory_space<vmem>>, vector<16x4xf32>,
      %c0_78 = arith.constant 0 : index
      %c48 = arith.constant 48 : index
      %c0_79 = arith.constant 0 : index
      %89 = vector.load %arg3[%c0_78, %c48, %c0_79] : memref<1x256x4xbf16, #tpu.memory_space<vmem>>, vector<1x16x4xbf16>
      %90 = vector.shape_cast %89 : vector<1x16x4xbf16> to vector<16x4xbf16>
      %91 = arith.extf %90 : vector<16x4xbf16> to vector<16x4xf32>
      %c73 = arith.constant 73 : index
      %c0_80 = arith.constant 0 : index
      %92 = vector.load %arg8[%c73, %c0_80] : memref<328x4xf32, #tpu.memory_space<vmem>>, vector<16x4xf32>
      tpu.vector_store %arg8[%c73, %c0_80], %91 {strides = array<i32>} : memref<328x4xf32, #tpu.memory_space<vmem>>, vector<16x4xf32>,
      %c0_81 = arith.constant 0 : index
      %c64 = arith.constant 64 : index
      %c0_82 = arith.constant 0 : index
      %93 = vector.load %arg3[%c0_81, %c64, %c0_82] : memref<1x256x4xbf16, #tpu.memory_space<vmem>>, vector<1x16x4xbf16>
      %94 = vector.shape_cast %93 : vector<1x16x4xbf16> to vector<16x4xbf16>
      %95 = arith.extf %94 : vector<16x4xbf16> to vector<16x4xf32>
      %c91 = arith.constant 91 : index
      %c0_83 = arith.constant 0 : index
      %96 = vector.load %arg8[%c91, %c0_83] : memref<328x4xf32, #tpu.memory_space<vmem>>, vector<16x4xf32>
      tpu.vector_store %arg8[%c91, %c0_83], %95 {strides = array<i32>} : memref<328x4xf32, #tpu.memory_space<vmem>>, vector<16x4xf32>,
      %c0_84 = arith.constant 0 : index
      %c80 = arith.constant 80 : index
      %c0_85 = arith.constant 0 : index
      %97 = vector.load %arg3[%c0_84, %c80, %c0_85] : memref<1x256x4xbf16, #tpu.memory_space<vmem>>, vector<1x16x4xbf16>
      %98 = vector.shape_cast %97 : vector<1x16x4xbf16> to vector<16x4xbf16>
      %99 = arith.extf %98 : vector<16x4xbf16> to vector<16x4xf32>
      %c109 = arith.constant 109 : index
      %c0_86 = arith.constant 0 : index
      %100 = vector.load %arg8[%c109, %c0_86] : memref<328x4xf32, #tpu.memory_space<vmem>>, vector<16x4xf32>
      tpu.vector_store %arg8[%c109, %c0_86], %99 {strides = array<i32>} : memref<328x4xf32, #tpu.memory_space<vmem>>, vector<16x4xf32>,
      %c0_87 = arith.constant 0 : index
      %c96 = arith.constant 96 : index
      %c0_88 = arith.constant 0 : index
      %101 = vector.load %arg3[%c0_87, %c96, %c0_88] : memref<1x256x4xbf16, #tpu.memory_space<vmem>>, vector<1x16x4xbf16>
      %102 = vector.shape_cast %101 : vector<1x16x4xbf16> to vector<16x4xbf16>
      %103 = arith.extf %102 : vector<16x4xbf16> to vector<16x4xf32>
      %c127 = arith.constant 127 : index
      %c0_89 = arith.constant 0 : index
      %104 = vector.load %arg8[%c127, %c0_89] : memref<328x4xf32, #tpu.memory_space<vmem>>, vector<16x4xf32>
      tpu.vector_store %arg8[%c127, %c0_89], %103 {strides = array<i32>} : memref<328x4xf32, #tpu.memory_space<vmem>>, vector<16x4xf32>,
      %c0_90 = arith.constant 0 : index
      %c112 = arith.constant 112 : index
      %c0_91 = arith.constant 0 : index
      %105 = vector.load %arg3[%c0_90, %c112, %c0_91] : memref<1x256x4xbf16, #tpu.memory_space<vmem>>, vector<1x16x4xbf16>
      %106 = vector.shape_cast %105 : vector<1x16x4xbf16> to vector<16x4xbf16>
      %107 = arith.extf %106 : vector<16x4xbf16> to vector<16x4xf32>
      %c145 = arith.constant 145 : index
      %c0_92 = arith.constant 0 : index
      %108 = vector.load %arg8[%c145, %c0_92] : memref<328x4xf32, #tpu.memory_space<vmem>>, vector<16x4xf32>
      tpu.vector_store %arg8[%c145, %c0_92], %107 {strides = array<i32>} : memref<328x4xf32, #tpu.memory_space<vmem>>, vector<16x4xf32>,
      %c0_93 = arith.constant 0 : index
      %c128 = arith.constant 128 : index
      %c0_94 = arith.constant 0 : index
      %109 = vector.load %arg3[%c0_93, %c128, %c0_94] : memref<1x256x4xbf16, #tpu.memory_space<vmem>>, vector<1x16x4xbf16>
      %110 = vector.shape_cast %109 : vector<1x16x4xbf16> to vector<16x4xbf16>
      %111 = arith.extf %110 : vector<16x4xbf16> to vector<16x4xf32>
      %c163 = arith.constant 163 : index
      %c0_95 = arith.constant 0 : index
      %112 = vector.load %arg8[%c163, %c0_95] : memref<328x4xf32, #tpu.memory_space<vmem>>, vector<16x4xf32>
      tpu.vector_store %arg8[%c163, %c0_95], %111 {strides = array<i32>} : memref<328x4xf32, #tpu.memory_space<vmem>>, vector<16x4xf32>,
      %c0_96 = arith.constant 0 : index
      %c144 = arith.constant 144 : index
      %c0_97 = arith.constant 0 : index
      %113 = vector.load %arg3[%c0_96, %c144, %c0_97] : memref<1x256x4xbf16, #tpu.memory_space<vmem>>, vector<1x16x4xbf16>
      %114 = vector.shape_cast %113 : vector<1x16x4xbf16> to vector<16x4xbf16>
      %115 = arith.extf %114 : vector<16x4xbf16> to vector<16x4xf32>
      %c181 = arith.constant 181 : index
      %c0_98 = arith.constant 0 : index
      %116 = vector.load %arg8[%c181, %c0_98] : memref<328x4xf32, #tpu.memory_space<vmem>>, vector<16x4xf32>
      tpu.vector_store %arg8[%c181, %c0_98], %115 {strides = array<i32>} : memref<328x4xf32, #tpu.memory_space<vmem>>, vector<16x4xf32>,
      %c0_99 = arith.constant 0 : index
      %c160 = arith.constant 160 : index
      %c0_100 = arith.constant 0 : index
      %117 = vector.load %arg3[%c0_99, %c160, %c0_100] : memref<1x256x4xbf16, #tpu.memory_space<vmem>>, vector<1x16x4xbf16>
      %118 = vector.shape_cast %117 : vector<1x16x4xbf16> to vector<16x4xbf16>
      %119 = arith.extf %118 : vector<16x4xbf16> to vector<16x4xf32>
      %c199 = arith.constant 199 : index
      %c0_101 = arith.constant 0 : index
      %120 = vector.load %arg8[%c199, %c0_101] : memref<328x4xf32, #tpu.memory_space<vmem>>, vector<16x4xf32>
      tpu.vector_store %arg8[%c199, %c0_101], %119 {strides = array<i32>} : memref<328x4xf32, #tpu.memory_space<vmem>>, vector<16x4xf32>,
      %c0_102 = arith.constant 0 : index
      %c176 = arith.constant 176 : index
      %c0_103 = arith.constant 0 : index
      %121 = vector.load %arg3[%c0_102, %c176, %c0_103] : memref<1x256x4xbf16, #tpu.memory_space<vmem>>, vector<1x16x4xbf16>
      %122 = vector.shape_cast %121 : vector<1x16x4xbf16> to vector<16x4xbf16>
      %123 = arith.extf %122 : vector<16x4xbf16> to vector<16x4xf32>
      %c217 = arith.constant 217 : index
      %c0_104 = arith.constant 0 : index
      %124 = vector.load %arg8[%c217, %c0_104] : memref<328x4xf32, #tpu.memory_space<vmem>>, vector<16x4xf32>
      tpu.vector_store %arg8[%c217, %c0_104], %123 {strides = array<i32>} : memref<328x4xf32, #tpu.memory_space<vmem>>, vector<16x4xf32>,
      %c0_105 = arith.constant 0 : index
      %c192 = arith.constant 192 : index
      %c0_106 = arith.constant 0 : index
      %125 = vector.load %arg3[%c0_105, %c192, %c0_106] : memref<1x256x4xbf16, #tpu.memory_space<vmem>>, vector<1x16x4xbf16>
      %126 = vector.shape_cast %125 : vector<1x16x4xbf16> to vector<16x4xbf16>
      %127 = arith.extf %126 : vector<16x4xbf16> to vector<16x4xf32>
      %c235 = arith.constant 235 : index
      %c0_107 = arith.constant 0 : index
      %128 = vector.load %arg8[%c235, %c0_107] : memref<328x4xf32, #tpu.memory_space<vmem>>, vector<16x4xf32>
      tpu.vector_store %arg8[%c235, %c0_107], %127 {strides = array<i32>} : memref<328x4xf32, #tpu.memory_space<vmem>>, vector<16x4xf32>,
      %c0_108 = arith.constant 0 : index
      %c208 = arith.constant 208 : index
      %c0_109 = arith.constant 0 : index
      %129 = vector.load %arg3[%c0_108, %c208, %c0_109] : memref<1x256x4xbf16, #tpu.memory_space<vmem>>, vector<1x16x4xbf16>
      %130 = vector.shape_cast %129 : vector<1x16x4xbf16> to vector<16x4xbf16>
      %131 = arith.extf %130 : vector<16x4xbf16> to vector<16x4xf32>
      %c253 = arith.constant 253 : index
      %c0_110 = arith.constant 0 : index
      %132 = vector.load %arg8[%c253, %c0_110] : memref<328x4xf32, #tpu.memory_space<vmem>>, vector<16x4xf32>
      tpu.vector_store %arg8[%c253, %c0_110], %131 {strides = array<i32>} : memref<328x4xf32, #tpu.memory_space<vmem>>, vector<16x4xf32>,
      %c0_111 = arith.constant 0 : index
      %c224 = arith.constant 224 : index
      %c0_112 = arith.constant 0 : index
      %133 = vector.load %arg3[%c0_111, %c224, %c0_112] : memref<1x256x4xbf16, #tpu.memory_space<vmem>>, vector<1x16x4xbf16>
      %134 = vector.shape_cast %133 : vector<1x16x4xbf16> to vector<16x4xbf16>
      %135 = arith.extf %134 : vector<16x4xbf16> to vector<16x4xf32>
      %c271 = arith.constant 271 : index
      %c0_113 = arith.constant 0 : index
      %136 = vector.load %arg8[%c271, %c0_113] : memref<328x4xf32, #tpu.memory_space<vmem>>, vector<16x4xf32>
      tpu.vector_store %arg8[%c271, %c0_113], %135 {strides = array<i32>} : memref<328x4xf32, #tpu.memory_space<vmem>>, vector<16x4xf32>,
      %c0_114 = arith.constant 0 : index
      %c240 = arith.constant 240 : index
      %c0_115 = arith.constant 0 : index
      %137 = vector.load %arg3[%c0_114, %c240, %c0_115] : memref<1x256x4xbf16, #tpu.memory_space<vmem>>, vector<1x16x4xbf16>
      %138 = vector.shape_cast %137 : vector<1x16x4xbf16> to vector<16x4xbf16>
      %139 = arith.extf %138 : vector<16x4xbf16> to vector<16x4xf32>
      %c289 = arith.constant 289 : index
      %c0_116 = arith.constant 0 : index
      %140 = vector.load %arg8[%c289, %c0_116] : memref<328x4xf32, #tpu.memory_space<vmem>>, vector<16x4xf32>
      tpu.vector_store %arg8[%c289, %c0_116], %139 {strides = array<i32>} : memref<328x4xf32, #tpu.memory_space<vmem>>, vector<16x4xf32>,
    } else {
    }
    %c288_i32 = arith.constant 288 : i32
    %3 = arith.muli %arg1, %c288_i32 : i32
    %4 = tpu.assume_multiple %3, 8 : i32
    %c0_i32_1 = arith.constant 0 : i32
    %5 = arith.addi %4, %c0_i32_1 : i32
    %c0_i32_2 = arith.constant 0 : i32
    %6 = arith.addi %5, %c0_i32_2 : i32
    %7 = arith.index_cast %6 : i32 to index
    %c0 = arith.constant 0 : index
    %8 = vector.load %arg8[%7, %c0] : memref<328x4xf32, #tpu.memory_space<vmem>>, vector<288x4xf32>
    %c0_3 = arith.constant 0 : index
    %c0_4 = arith.constant 0 : index
    %9 = vector.load %arg9[%c0_3, %c0_4] : memref<288x36xf32, #tpu.memory_space<vmem>>, vector<288x4xf32>
    tpu.vector_store %arg9[%c0_3, %c0_4], %8 {strides = array<i32>} : memref<288x36xf32, #tpu.memory_space<vmem>>, vector<288x4xf32>,
    %c0_i32_5 = arith.constant 0 : i32
    %10 = arith.addi %4, %c0_i32_5 : i32
    %c1_i32 = arith.constant 1 : i32
    %11 = arith.addi %10, %c1_i32 : i32
    %12 = arith.index_cast %11 : i32 to index
    %c0_6 = arith.constant 0 : index
    %13 = vector.load %arg8[%12, %c0_6] : memref<328x4xf32, #tpu.memory_space<vmem>>, vector<288x4xf32>
    %c0_7 = arith.constant 0 : index
    %c4 = arith.constant 4 : index
    %14 = vector.load %arg9[%c0_7, %c4] : memref<288x36xf32, #tpu.memory_space<vmem>>, vector<288x4xf32>
    tpu.vector_store %arg9[%c0_7, %c4], %13 {strides = array<i32>} : memref<288x36xf32, #tpu.memory_space<vmem>>, vector<288x4xf32>,
    %c0_i32_8 = arith.constant 0 : i32
    %15 = arith.addi %4, %c0_i32_8 : i32
    %c2_i32 = arith.constant 2 : i32
    %16 = arith.addi %15, %c2_i32 : i32
    %17 = arith.index_cast %16 : i32 to index
    %c0_9 = arith.constant 0 : index
    %18 = vector.load %arg8[%17, %c0_9] : memref<328x4xf32, #tpu.memory_space<vmem>>, vector<288x4xf32>
    %c0_10 = arith.constant 0 : index
    %c8 = arith.constant 8 : index
    %19 = vector.load %arg9[%c0_10, %c8] : memref<288x36xf32, #tpu.memory_space<vmem>>, vector<288x4xf32>
    tpu.vector_store %arg9[%c0_10, %c8], %18 {strides = array<i32>} : memref<288x36xf32, #tpu.memory_space<vmem>>, vector<288x4xf32>,
    %c18_i32 = arith.constant 18 : i32
    %20 = arith.addi %4, %c18_i32 : i32
    %c0_i32_11 = arith.constant 0 : i32
    %21 = arith.addi %20, %c0_i32_11 : i32
    %22 = arith.index_cast %21 : i32 to index
    %c0_12 = arith.constant 0 : index
    %23 = vector.load %arg8[%22, %c0_12] : memref<328x4xf32, #tpu.memory_space<vmem>>, vector<288x4xf32>
    %c0_13 = arith.constant 0 : index
    %c12 = arith.constant 12 : index
    %24 = vector.load %arg9[%c0_13, %c12] : memref<288x36xf32, #tpu.memory_space<vmem>>, vector<288x4xf32>
    tpu.vector_store %arg9[%c0_13, %c12], %23 {strides = array<i32>} : memref<288x36xf32, #tpu.memory_space<vmem>>, vector<288x4xf32>,
    %c18_i32_14 = arith.constant 18 : i32
    %25 = arith.addi %4, %c18_i32_14 : i32
    %c1_i32_15 = arith.constant 1 : i32
    %26 = arith.addi %25, %c1_i32_15 : i32
    %27 = arith.index_cast %26 : i32 to index
    %c0_16 = arith.constant 0 : index
    %28 = vector.load %arg8[%27, %c0_16] : memref<328x4xf32, #tpu.memory_space<vmem>>, vector<288x4xf32>
    %c0_17 = arith.constant 0 : index
    %c16 = arith.constant 16 : index
    %29 = vector.load %arg9[%c0_17, %c16] : memref<288x36xf32, #tpu.memory_space<vmem>>, vector<288x4xf32>
    tpu.vector_store %arg9[%c0_17, %c16], %28 {strides = array<i32>} : memref<288x36xf32, #tpu.memory_space<vmem>>, vector<288x4xf32>,
    %c18_i32_18 = arith.constant 18 : i32
    %30 = arith.addi %4, %c18_i32_18 : i32
    %c2_i32_19 = arith.constant 2 : i32
    %31 = arith.addi %30, %c2_i32_19 : i32
    %32 = arith.index_cast %31 : i32 to index
    %c0_20 = arith.constant 0 : index
    %33 = vector.load %arg8[%32, %c0_20] : memref<328x4xf32, #tpu.memory_space<vmem>>, vector<288x4xf32>
    %c0_21 = arith.constant 0 : index
    %c20 = arith.constant 20 : index
    %34 = vector.load %arg9[%c0_21, %c20] : memref<288x36xf32, #tpu.memory_space<vmem>>, vector<288x4xf32>
    tpu.vector_store %arg9[%c0_21, %c20], %33 {strides = array<i32>} : memref<288x36xf32, #tpu.memory_space<vmem>>, vector<288x4xf32>,
    %c36_i32 = arith.constant 36 : i32
    %35 = arith.addi %4, %c36_i32 : i32
    %c0_i32_22 = arith.constant 0 : i32
    %36 = arith.addi %35, %c0_i32_22 : i32
    %37 = arith.index_cast %36 : i32 to index
    %c0_23 = arith.constant 0 : index
    %38 = vector.load %arg8[%37, %c0_23] : memref<328x4xf32, #tpu.memory_space<vmem>>, vector<288x4xf32>
    %c0_24 = arith.constant 0 : index
    %c24 = arith.constant 24 : index
    %39 = vector.load %arg9[%c0_24, %c24] : memref<288x36xf32, #tpu.memory_space<vmem>>, vector<288x4xf32>
    tpu.vector_store %arg9[%c0_24, %c24], %38 {strides = array<i32>} : memref<288x36xf32, #tpu.memory_space<vmem>>, vector<288x4xf32>,
    %c36_i32_25 = arith.constant 36 : i32
    %40 = arith.addi %4, %c36_i32_25 : i32
    %c1_i32_26 = arith.constant 1 : i32
    %41 = arith.addi %40, %c1_i32_26 : i32
    %42 = arith.index_cast %41 : i32 to index
    %c0_27 = arith.constant 0 : index
    %43 = vector.load %arg8[%42, %c0_27] : memref<328x4xf32, #tpu.memory_space<vmem>>, vector<288x4xf32>
    %c0_28 = arith.constant 0 : index
    %c28 = arith.constant 28 : index
    %44 = vector.load %arg9[%c0_28, %c28] : memref<288x36xf32, #tpu.memory_space<vmem>>, vector<288x4xf32>
    tpu.vector_store %arg9[%c0_28, %c28], %43 {strides = array<i32>} : memref<288x36xf32, #tpu.memory_space<vmem>>, vector<288x4xf32>,
    %c36_i32_29 = arith.constant 36 : i32
    %45 = arith.addi %4, %c36_i32_29 : i32
    %c2_i32_30 = arith.constant 2 : i32
    %46 = arith.addi %45, %c2_i32_30 : i32
    %47 = arith.index_cast %46 : i32 to index
    %c0_31 = arith.constant 0 : index
    %48 = vector.load %arg8[%47, %c0_31] : memref<328x4xf32, #tpu.memory_space<vmem>>, vector<288x4xf32>
    %c0_32 = arith.constant 0 : index
    %c32 = arith.constant 32 : index
    %49 = vector.load %arg9[%c0_32, %c32] : memref<288x36xf32, #tpu.memory_space<vmem>>, vector<288x4xf32>
    tpu.vector_store %arg9[%c0_32, %c32], %48 {strides = array<i32>} : memref<288x36xf32, #tpu.memory_space<vmem>>, vector<288x4xf32>,
    %c0_33 = arith.constant 0 : index
    %c0_34 = arith.constant 0 : index
    %50 = vector.load %arg9[%c0_33, %c0_34] : memref<288x36xf32, #tpu.memory_space<vmem>>, vector<288x36xf32>
    %51 = arith.truncf %50 : vector<288x36xf32> to vector<288x36xbf16>
    %c0_35 = arith.constant 0 : index
    %c0_36 = arith.constant 0 : index
    %52 = vector.load %arg4[%c0_35, %c0_36] : memref<36x128xbf16, #tpu.memory_space<vmem>>, vector<36x128xbf16>
    %cst = arith.constant dense<0.000000e+00> : vector<288x128xf32>
    %53 = tpu.matmul %51, %52, %cst {dimension_numbers = #tpu.dot_dimension_numbers<[1], [0], [0], [1], [0, 0, 1, 1], [], []>} : vector<288x36xbf16>, vector<36x128xbf16>, vector<288x128xf32> -> vector<288x128xf32>
    %c0_37 = arith.constant 0 : index
    %c0_38 = arith.constant 0 : index
    %54 = vector.load %arg5[%c0_37, %c0_38] : memref<1x128xf32, #tpu.memory_space<vmem>>, vector<1x128xf32>
    %55 = vector.broadcast %54 : vector<1x128xf32> to vector<288x128xf32>
    %56 = arith.subf %53, %55 : vector<288x128xf32>
    %c0_39 = arith.constant 0 : index
    %c0_40 = arith.constant 0 : index
    %57 = vector.load %arg2[%c0_39, %c0_40] : memref<288x1xf32, #tpu.memory_space<vmem>>, vector<288x1xf32>
    %58 = vector.broadcast %57 : vector<288x1xf32> to vector<288x128xf32>
    %59 = arith.mulf %56, %58 : vector<288x128xf32>
    %c0_41 = arith.constant 0 : index
    %c0_42 = arith.constant 0 : index
    %c0_43 = arith.constant 0 : index
    %60 = vector.load %arg6[%c0_41, %c0_42, %c0_43] : memref<1x1x128xf32, #tpu.memory_space<vmem>>, vector<1x1x128xf32>
    %cst_44 = arith.constant dense<0.000000e+00> : vector<128xf32>
    %61 = vector.multi_reduction <add>, %59, %cst_44 [0] : vector<288x128xf32> to vector<128xf32>
    %62 = vector.shape_cast %61 : vector<128xf32> to vector<1x1x128xf32>
    %63 = arith.addf %60, %62 : vector<1x1x128xf32>
    %c0_45 = arith.constant 0 : index
    %c0_46 = arith.constant 0 : index
    %c0_47 = arith.constant 0 : index
    %64 = vector.load %arg6[%c0_45, %c0_46, %c0_47] : memref<1x1x128xf32, #tpu.memory_space<vmem>>, vector<1x1x128xf32>
    tpu.vector_store %arg6[%c0_45, %c0_46, %c0_47], %63 {strides = array<i32>} : memref<1x1x128xf32, #tpu.memory_space<vmem>>, vector<1x1x128xf32>,
    %c0_48 = arith.constant 0 : index
    %c0_49 = arith.constant 0 : index
    %c0_50 = arith.constant 0 : index
    %65 = vector.load %arg7[%c0_48, %c0_49, %c0_50] : memref<1x1x128xf32, #tpu.memory_space<vmem>>, vector<1x1x128xf32>
    %66 = arith.mulf %59, %59 : vector<288x128xf32>
    %cst_51 = arith.constant dense<0.000000e+00> : vector<128xf32>
    %67 = vector.multi_reduction <add>, %66, %cst_51 [0] : vector<288x128xf32> to vector<128xf32>
    %68 = vector.shape_cast %67 : vector<128xf32> to vector<1x1x128xf32>
    %69 = arith.addf %65, %68 : vector<1x1x128xf32>
    %c0_52 = arith.constant 0 : index
    %c0_53 = arith.constant 0 : index
    %c0_54 = arith.constant 0 : index
    %70 = vector.load %arg7[%c0_52, %c0_53, %c0_54] : memref<1x1x128xf32, #tpu.memory_space<vmem>>, vector<1x1x128xf32>
    tpu.vector_store %arg7[%c0_52, %c0_53, %c0_54], %69 {strides = array<i32>} : memref<1x1x128xf32, #tpu.memory_space<vmem>>, vector<1x1x128xf32>,
    return
  }
  func.func @transform_0(%arg0: i32, %arg1: i32) -> (i32, i32) {
    %c0_i32 = arith.constant 0 : i32
    %c0_i32_0 = arith.constant 0 : i32
    return %arg1, %c0_i32 : i32, i32
  }
  func.func @transform_1(%arg0: i32, %arg1: i32) -> (i32, i32, i32) {
    %c0_i32 = arith.constant 0 : i32
    %c0_i32_0 = arith.constant 0 : i32
    %c0_i32_1 = arith.constant 0 : i32
    return %arg0, %c0_i32, %c0_i32_0 : i32, i32, i32
  }
  func.func @transform_2(%arg0: i32, %arg1: i32) -> (i32, i32) {
    %c0_i32 = arith.constant 0 : i32
    %c0_i32_0 = arith.constant 0 : i32
    %c0_i32_1 = arith.constant 0 : i32
    return %c0_i32, %c0_i32_0 : i32, i32
  }
  func.func @transform_3(%arg0: i32, %arg1: i32) -> (i32, i32) {
    %c0_i32 = arith.constant 0 : i32
    %c0_i32_0 = arith.constant 0 : i32
    %c0_i32_1 = arith.constant 0 : i32
    return %c0_i32, %c0_i32_0 : i32, i32
  }
  func.func @transform_4(%arg0: i32, %arg1: i32) -> (i32, i32, i32) {
    %c0_i32 = arith.constant 0 : i32
    %c0_i32_0 = arith.constant 0 : i32
    %c0_i32_1 = arith.constant 0 : i32
    return %arg0, %c0_i32, %c0_i32_0 : i32, i32, i32
  }
  func.func @transform_5(%arg0: i32, %arg1: i32) -> (i32, i32, i32) {
    %c0_i32 = arith.constant 0 : i32
    %c0_i32_0 = arith.constant 0 : i32
    %c0_i32_1 = arith.constant 0 : i32
    return %arg0, %c0_i32, %c0_i32_0 : i32, i32, i32
  }
}

module attributes {stable_mosaic.version = 11 : i64} {
  func.func @_norm_kernel(%arg0: i32, %arg1: i32, %arg2: memref<1x256x4xbf16, #tpu.memory_space<vmem>>, %arg3: memref<36x128xbf16, #tpu.memory_space<vmem>>, %arg4: memref<1x128xf32, #tpu.memory_space<vmem>>, %arg5: memref<1x128xf32, #tpu.memory_space<vmem>>, %arg6: memref<1x288x128xf32, #tpu.memory_space<vmem>>, %arg7: memref<328x4xf32, #tpu.memory_space<vmem>>, %arg8: memref<288x36xf32, #tpu.memory_space<vmem>>) attributes {dimension_semantics = [#tpu.dimension_semantics<parallel>, #tpu.dimension_semantics<arbitrary>], iteration_bounds = array<i64: 2, 1>, scalar_prefetch = 0 : i64, scratch_operands = 2 : i64, tpu.core_type = #tpu.core_type<tc>, window_params = [{transform_indices = @transform_0, window_bounds = array<i64: 1, 256, 4>}, {pipeline_mode = #tpu.pipeline_mode<synchronous>, transform_indices = @transform_1, window_bounds = array<i64: 36, 128>}, {pipeline_mode = #tpu.pipeline_mode<synchronous>, transform_indices = @transform_2, window_bounds = array<i64: 1, 128>}, {pipeline_mode = #tpu.pipeline_mode<synchronous>, transform_indices = @transform_3, window_bounds = array<i64: 1, 128>}, {transform_indices = @transform_4, window_bounds = array<i64: 1, 288, 128>}]} {
    %c0_i32 = arith.constant 0 : i32
    %0 = arith.cmpi eq, %arg1, %c0_i32 : i32
    %1 = arith.extui %0 : i1 to i32
    %c0_i32_0 = arith.constant 0 : i32
    %2 = arith.cmpi ne, %1, %c0_i32_0 : i32
    scf.if %2 {
      %cst_44 = arith.constant 0.000000e+00 : f32
      %63 = vector.broadcast %cst_44 : f32 to vector<328x4xf32>
      %c0_45 = arith.constant 0 : index
      %c0_46 = arith.constant 0 : index
      %64 = vector.load %arg7[%c0_45, %c0_46] : memref<328x4xf32, #tpu.memory_space<vmem>>, vector<328x4xf32>
      tpu.vector_store %arg7[%c0_45, %c0_46], %63 {strides = array<i32>} : memref<328x4xf32, #tpu.memory_space<vmem>>, vector<328x4xf32>,
      %c0_47 = arith.constant 0 : index
      %c0_48 = arith.constant 0 : index
      %c0_49 = arith.constant 0 : index
      %65 = vector.load %arg2[%c0_47, %c0_48, %c0_49] : memref<1x256x4xbf16, #tpu.memory_space<vmem>>, vector<1x16x4xbf16>
      %66 = vector.shape_cast %65 : vector<1x16x4xbf16> to vector<16x4xbf16>
      %67 = arith.extf %66 : vector<16x4xbf16> to vector<16x4xf32>
      %c19 = arith.constant 19 : index
      %c0_50 = arith.constant 0 : index
      %68 = vector.load %arg7[%c19, %c0_50] : memref<328x4xf32, #tpu.memory_space<vmem>>, vector<16x4xf32>
      tpu.vector_store %arg7[%c19, %c0_50], %67 {strides = array<i32>} : memref<328x4xf32, #tpu.memory_space<vmem>>, vector<16x4xf32>,
      %c0_51 = arith.constant 0 : index
      %c16_52 = arith.constant 16 : index
      %c0_53 = arith.constant 0 : index
      %69 = vector.load %arg2[%c0_51, %c16_52, %c0_53] : memref<1x256x4xbf16, #tpu.memory_space<vmem>>, vector<1x16x4xbf16>
      %70 = vector.shape_cast %69 : vector<1x16x4xbf16> to vector<16x4xbf16>
      %71 = arith.extf %70 : vector<16x4xbf16> to vector<16x4xf32>
      %c37 = arith.constant 37 : index
      %c0_54 = arith.constant 0 : index
      %72 = vector.load %arg7[%c37, %c0_54] : memref<328x4xf32, #tpu.memory_space<vmem>>, vector<16x4xf32>
      tpu.vector_store %arg7[%c37, %c0_54], %71 {strides = array<i32>} : memref<328x4xf32, #tpu.memory_space<vmem>>, vector<16x4xf32>,
      %c0_55 = arith.constant 0 : index
      %c32_56 = arith.constant 32 : index
      %c0_57 = arith.constant 0 : index
      %73 = vector.load %arg2[%c0_55, %c32_56, %c0_57] : memref<1x256x4xbf16, #tpu.memory_space<vmem>>, vector<1x16x4xbf16>
      %74 = vector.shape_cast %73 : vector<1x16x4xbf16> to vector<16x4xbf16>
      %75 = arith.extf %74 : vector<16x4xbf16> to vector<16x4xf32>
      %c55 = arith.constant 55 : index
      %c0_58 = arith.constant 0 : index
      %76 = vector.load %arg7[%c55, %c0_58] : memref<328x4xf32, #tpu.memory_space<vmem>>, vector<16x4xf32>
      tpu.vector_store %arg7[%c55, %c0_58], %75 {strides = array<i32>} : memref<328x4xf32, #tpu.memory_space<vmem>>, vector<16x4xf32>,
      %c0_59 = arith.constant 0 : index
      %c48 = arith.constant 48 : index
      %c0_60 = arith.constant 0 : index
      %77 = vector.load %arg2[%c0_59, %c48, %c0_60] : memref<1x256x4xbf16, #tpu.memory_space<vmem>>, vector<1x16x4xbf16>
      %78 = vector.shape_cast %77 : vector<1x16x4xbf16> to vector<16x4xbf16>
      %79 = arith.extf %78 : vector<16x4xbf16> to vector<16x4xf32>
      %c73 = arith.constant 73 : index
      %c0_61 = arith.constant 0 : index
      %80 = vector.load %arg7[%c73, %c0_61] : memref<328x4xf32, #tpu.memory_space<vmem>>, vector<16x4xf32>
      tpu.vector_store %arg7[%c73, %c0_61], %79 {strides = array<i32>} : memref<328x4xf32, #tpu.memory_space<vmem>>, vector<16x4xf32>,
      %c0_62 = arith.constant 0 : index
      %c64 = arith.constant 64 : index
      %c0_63 = arith.constant 0 : index
      %81 = vector.load %arg2[%c0_62, %c64, %c0_63] : memref<1x256x4xbf16, #tpu.memory_space<vmem>>, vector<1x16x4xbf16>
      %82 = vector.shape_cast %81 : vector<1x16x4xbf16> to vector<16x4xbf16>
      %83 = arith.extf %82 : vector<16x4xbf16> to vector<16x4xf32>
      %c91 = arith.constant 91 : index
      %c0_64 = arith.constant 0 : index
      %84 = vector.load %arg7[%c91, %c0_64] : memref<328x4xf32, #tpu.memory_space<vmem>>, vector<16x4xf32>
      tpu.vector_store %arg7[%c91, %c0_64], %83 {strides = array<i32>} : memref<328x4xf32, #tpu.memory_space<vmem>>, vector<16x4xf32>,
      %c0_65 = arith.constant 0 : index
      %c80 = arith.constant 80 : index
      %c0_66 = arith.constant 0 : index
      %85 = vector.load %arg2[%c0_65, %c80, %c0_66] : memref<1x256x4xbf16, #tpu.memory_space<vmem>>, vector<1x16x4xbf16>
      %86 = vector.shape_cast %85 : vector<1x16x4xbf16> to vector<16x4xbf16>
      %87 = arith.extf %86 : vector<16x4xbf16> to vector<16x4xf32>
      %c109 = arith.constant 109 : index
      %c0_67 = arith.constant 0 : index
      %88 = vector.load %arg7[%c109, %c0_67] : memref<328x4xf32, #tpu.memory_space<vmem>>, vector<16x4xf32>
      tpu.vector_store %arg7[%c109, %c0_67], %87 {strides = array<i32>} : memref<328x4xf32, #tpu.memory_space<vmem>>, vector<16x4xf32>,
      %c0_68 = arith.constant 0 : index
      %c96 = arith.constant 96 : index
      %c0_69 = arith.constant 0 : index
      %89 = vector.load %arg2[%c0_68, %c96, %c0_69] : memref<1x256x4xbf16, #tpu.memory_space<vmem>>, vector<1x16x4xbf16>
      %90 = vector.shape_cast %89 : vector<1x16x4xbf16> to vector<16x4xbf16>
      %91 = arith.extf %90 : vector<16x4xbf16> to vector<16x4xf32>
      %c127 = arith.constant 127 : index
      %c0_70 = arith.constant 0 : index
      %92 = vector.load %arg7[%c127, %c0_70] : memref<328x4xf32, #tpu.memory_space<vmem>>, vector<16x4xf32>
      tpu.vector_store %arg7[%c127, %c0_70], %91 {strides = array<i32>} : memref<328x4xf32, #tpu.memory_space<vmem>>, vector<16x4xf32>,
      %c0_71 = arith.constant 0 : index
      %c112 = arith.constant 112 : index
      %c0_72 = arith.constant 0 : index
      %93 = vector.load %arg2[%c0_71, %c112, %c0_72] : memref<1x256x4xbf16, #tpu.memory_space<vmem>>, vector<1x16x4xbf16>
      %94 = vector.shape_cast %93 : vector<1x16x4xbf16> to vector<16x4xbf16>
      %95 = arith.extf %94 : vector<16x4xbf16> to vector<16x4xf32>
      %c145 = arith.constant 145 : index
      %c0_73 = arith.constant 0 : index
      %96 = vector.load %arg7[%c145, %c0_73] : memref<328x4xf32, #tpu.memory_space<vmem>>, vector<16x4xf32>
      tpu.vector_store %arg7[%c145, %c0_73], %95 {strides = array<i32>} : memref<328x4xf32, #tpu.memory_space<vmem>>, vector<16x4xf32>,
      %c0_74 = arith.constant 0 : index
      %c128 = arith.constant 128 : index
      %c0_75 = arith.constant 0 : index
      %97 = vector.load %arg2[%c0_74, %c128, %c0_75] : memref<1x256x4xbf16, #tpu.memory_space<vmem>>, vector<1x16x4xbf16>
      %98 = vector.shape_cast %97 : vector<1x16x4xbf16> to vector<16x4xbf16>
      %99 = arith.extf %98 : vector<16x4xbf16> to vector<16x4xf32>
      %c163 = arith.constant 163 : index
      %c0_76 = arith.constant 0 : index
      %100 = vector.load %arg7[%c163, %c0_76] : memref<328x4xf32, #tpu.memory_space<vmem>>, vector<16x4xf32>
      tpu.vector_store %arg7[%c163, %c0_76], %99 {strides = array<i32>} : memref<328x4xf32, #tpu.memory_space<vmem>>, vector<16x4xf32>,
      %c0_77 = arith.constant 0 : index
      %c144 = arith.constant 144 : index
      %c0_78 = arith.constant 0 : index
      %101 = vector.load %arg2[%c0_77, %c144, %c0_78] : memref<1x256x4xbf16, #tpu.memory_space<vmem>>, vector<1x16x4xbf16>
      %102 = vector.shape_cast %101 : vector<1x16x4xbf16> to vector<16x4xbf16>
      %103 = arith.extf %102 : vector<16x4xbf16> to vector<16x4xf32>
      %c181 = arith.constant 181 : index
      %c0_79 = arith.constant 0 : index
      %104 = vector.load %arg7[%c181, %c0_79] : memref<328x4xf32, #tpu.memory_space<vmem>>, vector<16x4xf32>
      tpu.vector_store %arg7[%c181, %c0_79], %103 {strides = array<i32>} : memref<328x4xf32, #tpu.memory_space<vmem>>, vector<16x4xf32>,
      %c0_80 = arith.constant 0 : index
      %c160 = arith.constant 160 : index
      %c0_81 = arith.constant 0 : index
      %105 = vector.load %arg2[%c0_80, %c160, %c0_81] : memref<1x256x4xbf16, #tpu.memory_space<vmem>>, vector<1x16x4xbf16>
      %106 = vector.shape_cast %105 : vector<1x16x4xbf16> to vector<16x4xbf16>
      %107 = arith.extf %106 : vector<16x4xbf16> to vector<16x4xf32>
      %c199 = arith.constant 199 : index
      %c0_82 = arith.constant 0 : index
      %108 = vector.load %arg7[%c199, %c0_82] : memref<328x4xf32, #tpu.memory_space<vmem>>, vector<16x4xf32>
      tpu.vector_store %arg7[%c199, %c0_82], %107 {strides = array<i32>} : memref<328x4xf32, #tpu.memory_space<vmem>>, vector<16x4xf32>,
      %c0_83 = arith.constant 0 : index
      %c176 = arith.constant 176 : index
      %c0_84 = arith.constant 0 : index
      %109 = vector.load %arg2[%c0_83, %c176, %c0_84] : memref<1x256x4xbf16, #tpu.memory_space<vmem>>, vector<1x16x4xbf16>
      %110 = vector.shape_cast %109 : vector<1x16x4xbf16> to vector<16x4xbf16>
      %111 = arith.extf %110 : vector<16x4xbf16> to vector<16x4xf32>
      %c217 = arith.constant 217 : index
      %c0_85 = arith.constant 0 : index
      %112 = vector.load %arg7[%c217, %c0_85] : memref<328x4xf32, #tpu.memory_space<vmem>>, vector<16x4xf32>
      tpu.vector_store %arg7[%c217, %c0_85], %111 {strides = array<i32>} : memref<328x4xf32, #tpu.memory_space<vmem>>, vector<16x4xf32>,
      %c0_86 = arith.constant 0 : index
      %c192 = arith.constant 192 : index
      %c0_87 = arith.constant 0 : index
      %113 = vector.load %arg2[%c0_86, %c192, %c0_87] : memref<1x256x4xbf16, #tpu.memory_space<vmem>>, vector<1x16x4xbf16>
      %114 = vector.shape_cast %113 : vector<1x16x4xbf16> to vector<16x4xbf16>
      %115 = arith.extf %114 : vector<16x4xbf16> to vector<16x4xf32>
      %c235 = arith.constant 235 : index
      %c0_88 = arith.constant 0 : index
      %116 = vector.load %arg7[%c235, %c0_88] : memref<328x4xf32, #tpu.memory_space<vmem>>, vector<16x4xf32>
      tpu.vector_store %arg7[%c235, %c0_88], %115 {strides = array<i32>} : memref<328x4xf32, #tpu.memory_space<vmem>>, vector<16x4xf32>,
      %c0_89 = arith.constant 0 : index
      %c208 = arith.constant 208 : index
      %c0_90 = arith.constant 0 : index
      %117 = vector.load %arg2[%c0_89, %c208, %c0_90] : memref<1x256x4xbf16, #tpu.memory_space<vmem>>, vector<1x16x4xbf16>
      %118 = vector.shape_cast %117 : vector<1x16x4xbf16> to vector<16x4xbf16>
      %119 = arith.extf %118 : vector<16x4xbf16> to vector<16x4xf32>
      %c253 = arith.constant 253 : index
      %c0_91 = arith.constant 0 : index
      %120 = vector.load %arg7[%c253, %c0_91] : memref<328x4xf32, #tpu.memory_space<vmem>>, vector<16x4xf32>
      tpu.vector_store %arg7[%c253, %c0_91], %119 {strides = array<i32>} : memref<328x4xf32, #tpu.memory_space<vmem>>, vector<16x4xf32>,
      %c0_92 = arith.constant 0 : index
      %c224 = arith.constant 224 : index
      %c0_93 = arith.constant 0 : index
      %121 = vector.load %arg2[%c0_92, %c224, %c0_93] : memref<1x256x4xbf16, #tpu.memory_space<vmem>>, vector<1x16x4xbf16>
      %122 = vector.shape_cast %121 : vector<1x16x4xbf16> to vector<16x4xbf16>
      %123 = arith.extf %122 : vector<16x4xbf16> to vector<16x4xf32>
      %c271 = arith.constant 271 : index
      %c0_94 = arith.constant 0 : index
      %124 = vector.load %arg7[%c271, %c0_94] : memref<328x4xf32, #tpu.memory_space<vmem>>, vector<16x4xf32>
      tpu.vector_store %arg7[%c271, %c0_94], %123 {strides = array<i32>} : memref<328x4xf32, #tpu.memory_space<vmem>>, vector<16x4xf32>,
      %c0_95 = arith.constant 0 : index
      %c240 = arith.constant 240 : index
      %c0_96 = arith.constant 0 : index
      %125 = vector.load %arg2[%c0_95, %c240, %c0_96] : memref<1x256x4xbf16, #tpu.memory_space<vmem>>, vector<1x16x4xbf16>
      %126 = vector.shape_cast %125 : vector<1x16x4xbf16> to vector<16x4xbf16>
      %127 = arith.extf %126 : vector<16x4xbf16> to vector<16x4xf32>
      %c289 = arith.constant 289 : index
      %c0_97 = arith.constant 0 : index
      %128 = vector.load %arg7[%c289, %c0_97] : memref<328x4xf32, #tpu.memory_space<vmem>>, vector<16x4xf32>
      tpu.vector_store %arg7[%c289, %c0_97], %127 {strides = array<i32>} : memref<328x4xf32, #tpu.memory_space<vmem>>, vector<16x4xf32>,
    } else {
    }
    %c288_i32 = arith.constant 288 : i32
    %3 = arith.muli %arg1, %c288_i32 : i32
    %4 = tpu.assume_multiple %3, 8 : i32
    %c0_i32_1 = arith.constant 0 : i32
    %5 = arith.addi %4, %c0_i32_1 : i32
    %c0_i32_2 = arith.constant 0 : i32
    %6 = arith.addi %5, %c0_i32_2 : i32
    %7 = arith.index_cast %6 : i32 to index
    %c0 = arith.constant 0 : index
    %8 = vector.load %arg7[%7, %c0] : memref<328x4xf32, #tpu.memory_space<vmem>>, vector<288x4xf32>
    %c0_3 = arith.constant 0 : index
    %c0_4 = arith.constant 0 : index
    %9 = vector.load %arg8[%c0_3, %c0_4] : memref<288x36xf32, #tpu.memory_space<vmem>>, vector<288x4xf32>
    tpu.vector_store %arg8[%c0_3, %c0_4], %8 {strides = array<i32>} : memref<288x36xf32, #tpu.memory_space<vmem>>, vector<288x4xf32>,
    %c0_i32_5 = arith.constant 0 : i32
    %10 = arith.addi %4, %c0_i32_5 : i32
    %c1_i32 = arith.constant 1 : i32
    %11 = arith.addi %10, %c1_i32 : i32
    %12 = arith.index_cast %11 : i32 to index
    %c0_6 = arith.constant 0 : index
    %13 = vector.load %arg7[%12, %c0_6] : memref<328x4xf32, #tpu.memory_space<vmem>>, vector<288x4xf32>
    %c0_7 = arith.constant 0 : index
    %c4 = arith.constant 4 : index
    %14 = vector.load %arg8[%c0_7, %c4] : memref<288x36xf32, #tpu.memory_space<vmem>>, vector<288x4xf32>
    tpu.vector_store %arg8[%c0_7, %c4], %13 {strides = array<i32>} : memref<288x36xf32, #tpu.memory_space<vmem>>, vector<288x4xf32>,
    %c0_i32_8 = arith.constant 0 : i32
    %15 = arith.addi %4, %c0_i32_8 : i32
    %c2_i32 = arith.constant 2 : i32
    %16 = arith.addi %15, %c2_i32 : i32
    %17 = arith.index_cast %16 : i32 to index
    %c0_9 = arith.constant 0 : index
    %18 = vector.load %arg7[%17, %c0_9] : memref<328x4xf32, #tpu.memory_space<vmem>>, vector<288x4xf32>
    %c0_10 = arith.constant 0 : index
    %c8 = arith.constant 8 : index
    %19 = vector.load %arg8[%c0_10, %c8] : memref<288x36xf32, #tpu.memory_space<vmem>>, vector<288x4xf32>
    tpu.vector_store %arg8[%c0_10, %c8], %18 {strides = array<i32>} : memref<288x36xf32, #tpu.memory_space<vmem>>, vector<288x4xf32>,
    %c18_i32 = arith.constant 18 : i32
    %20 = arith.addi %4, %c18_i32 : i32
    %c0_i32_11 = arith.constant 0 : i32
    %21 = arith.addi %20, %c0_i32_11 : i32
    %22 = arith.index_cast %21 : i32 to index
    %c0_12 = arith.constant 0 : index
    %23 = vector.load %arg7[%22, %c0_12] : memref<328x4xf32, #tpu.memory_space<vmem>>, vector<288x4xf32>
    %c0_13 = arith.constant 0 : index
    %c12 = arith.constant 12 : index
    %24 = vector.load %arg8[%c0_13, %c12] : memref<288x36xf32, #tpu.memory_space<vmem>>, vector<288x4xf32>
    tpu.vector_store %arg8[%c0_13, %c12], %23 {strides = array<i32>} : memref<288x36xf32, #tpu.memory_space<vmem>>, vector<288x4xf32>,
    %c18_i32_14 = arith.constant 18 : i32
    %25 = arith.addi %4, %c18_i32_14 : i32
    %c1_i32_15 = arith.constant 1 : i32
    %26 = arith.addi %25, %c1_i32_15 : i32
    %27 = arith.index_cast %26 : i32 to index
    %c0_16 = arith.constant 0 : index
    %28 = vector.load %arg7[%27, %c0_16] : memref<328x4xf32, #tpu.memory_space<vmem>>, vector<288x4xf32>
    %c0_17 = arith.constant 0 : index
    %c16 = arith.constant 16 : index
    %29 = vector.load %arg8[%c0_17, %c16] : memref<288x36xf32, #tpu.memory_space<vmem>>, vector<288x4xf32>
    tpu.vector_store %arg8[%c0_17, %c16], %28 {strides = array<i32>} : memref<288x36xf32, #tpu.memory_space<vmem>>, vector<288x4xf32>,
    %c18_i32_18 = arith.constant 18 : i32
    %30 = arith.addi %4, %c18_i32_18 : i32
    %c2_i32_19 = arith.constant 2 : i32
    %31 = arith.addi %30, %c2_i32_19 : i32
    %32 = arith.index_cast %31 : i32 to index
    %c0_20 = arith.constant 0 : index
    %33 = vector.load %arg7[%32, %c0_20] : memref<328x4xf32, #tpu.memory_space<vmem>>, vector<288x4xf32>
    %c0_21 = arith.constant 0 : index
    %c20 = arith.constant 20 : index
    %34 = vector.load %arg8[%c0_21, %c20] : memref<288x36xf32, #tpu.memory_space<vmem>>, vector<288x4xf32>
    tpu.vector_store %arg8[%c0_21, %c20], %33 {strides = array<i32>} : memref<288x36xf32, #tpu.memory_space<vmem>>, vector<288x4xf32>,
    %c36_i32 = arith.constant 36 : i32
    %35 = arith.addi %4, %c36_i32 : i32
    %c0_i32_22 = arith.constant 0 : i32
    %36 = arith.addi %35, %c0_i32_22 : i32
    %37 = arith.index_cast %36 : i32 to index
    %c0_23 = arith.constant 0 : index
    %38 = vector.load %arg7[%37, %c0_23] : memref<328x4xf32, #tpu.memory_space<vmem>>, vector<288x4xf32>
    %c0_24 = arith.constant 0 : index
    %c24 = arith.constant 24 : index
    %39 = vector.load %arg8[%c0_24, %c24] : memref<288x36xf32, #tpu.memory_space<vmem>>, vector<288x4xf32>
    tpu.vector_store %arg8[%c0_24, %c24], %38 {strides = array<i32>} : memref<288x36xf32, #tpu.memory_space<vmem>>, vector<288x4xf32>,
    %c36_i32_25 = arith.constant 36 : i32
    %40 = arith.addi %4, %c36_i32_25 : i32
    %c1_i32_26 = arith.constant 1 : i32
    %41 = arith.addi %40, %c1_i32_26 : i32
    %42 = arith.index_cast %41 : i32 to index
    %c0_27 = arith.constant 0 : index
    %43 = vector.load %arg7[%42, %c0_27] : memref<328x4xf32, #tpu.memory_space<vmem>>, vector<288x4xf32>
    %c0_28 = arith.constant 0 : index
    %c28 = arith.constant 28 : index
    %44 = vector.load %arg8[%c0_28, %c28] : memref<288x36xf32, #tpu.memory_space<vmem>>, vector<288x4xf32>
    tpu.vector_store %arg8[%c0_28, %c28], %43 {strides = array<i32>} : memref<288x36xf32, #tpu.memory_space<vmem>>, vector<288x4xf32>,
    %c36_i32_29 = arith.constant 36 : i32
    %45 = arith.addi %4, %c36_i32_29 : i32
    %c2_i32_30 = arith.constant 2 : i32
    %46 = arith.addi %45, %c2_i32_30 : i32
    %47 = arith.index_cast %46 : i32 to index
    %c0_31 = arith.constant 0 : index
    %48 = vector.load %arg7[%47, %c0_31] : memref<328x4xf32, #tpu.memory_space<vmem>>, vector<288x4xf32>
    %c0_32 = arith.constant 0 : index
    %c32 = arith.constant 32 : index
    %49 = vector.load %arg8[%c0_32, %c32] : memref<288x36xf32, #tpu.memory_space<vmem>>, vector<288x4xf32>
    tpu.vector_store %arg8[%c0_32, %c32], %48 {strides = array<i32>} : memref<288x36xf32, #tpu.memory_space<vmem>>, vector<288x4xf32>,
    %c0_33 = arith.constant 0 : index
    %c0_34 = arith.constant 0 : index
    %50 = vector.load %arg8[%c0_33, %c0_34] : memref<288x36xf32, #tpu.memory_space<vmem>>, vector<288x36xf32>
    %51 = arith.truncf %50 : vector<288x36xf32> to vector<288x36xbf16>
    %c0_35 = arith.constant 0 : index
    %c0_36 = arith.constant 0 : index
    %52 = vector.load %arg3[%c0_35, %c0_36] : memref<36x128xbf16, #tpu.memory_space<vmem>>, vector<36x128xbf16>
    %cst = arith.constant dense<0.000000e+00> : vector<288x128xf32>
    %53 = tpu.matmul %51, %52, %cst {dimension_numbers = #tpu.dot_dimension_numbers<[1], [0], [0], [1], [0, 0, 1, 1], [], []>} : vector<288x36xbf16>, vector<36x128xbf16>, vector<288x128xf32> -> vector<288x128xf32>
    %c0_37 = arith.constant 0 : index
    %c0_38 = arith.constant 0 : index
    %54 = vector.load %arg4[%c0_37, %c0_38] : memref<1x128xf32, #tpu.memory_space<vmem>>, vector<1x128xf32>
    %55 = vector.broadcast %54 : vector<1x128xf32> to vector<288x128xf32>
    %56 = arith.mulf %53, %55 : vector<288x128xf32>
    %c0_39 = arith.constant 0 : index
    %c0_40 = arith.constant 0 : index
    %57 = vector.load %arg5[%c0_39, %c0_40] : memref<1x128xf32, #tpu.memory_space<vmem>>, vector<1x128xf32>
    %58 = vector.broadcast %57 : vector<1x128xf32> to vector<288x128xf32>
    %59 = arith.addf %56, %58 : vector<288x128xf32>
    %c0_41 = arith.constant 0 : index
    %c0_42 = arith.constant 0 : index
    %c0_43 = arith.constant 0 : index
    %60 = vector.load %arg6[%c0_41, %c0_42, %c0_43] : memref<1x288x128xf32, #tpu.memory_space<vmem>>, vector<1x288x128xf32>
    %61 = vector.shape_cast %60 : vector<1x288x128xf32> to vector<288x128xf32>
    %62 = vector.shape_cast %59 : vector<288x128xf32> to vector<1x288x128xf32>
    tpu.vector_store %arg6[%c0_41, %c0_42, %c0_43], %62 {strides = array<i32>} : memref<1x288x128xf32, #tpu.memory_space<vmem>>, vector<1x288x128xf32>,
    return
  }
  func.func @transform_0(%arg0: i32, %arg1: i32) -> (i32, i32, i32) {
    %c0_i32 = arith.constant 0 : i32
    %c0_i32_0 = arith.constant 0 : i32
    %c0_i32_1 = arith.constant 0 : i32
    return %arg0, %c0_i32, %c0_i32_0 : i32, i32, i32
  }
  func.func @transform_1(%arg0: i32, %arg1: i32) -> (i32, i32) {
    %c0_i32 = arith.constant 0 : i32
    %c0_i32_0 = arith.constant 0 : i32
    %c0_i32_1 = arith.constant 0 : i32
    return %c0_i32, %c0_i32_0 : i32, i32
  }
  func.func @transform_2(%arg0: i32, %arg1: i32) -> (i32, i32) {
    %c0_i32 = arith.constant 0 : i32
    %c0_i32_0 = arith.constant 0 : i32
    %c0_i32_1 = arith.constant 0 : i32
    return %c0_i32, %c0_i32_0 : i32, i32
  }
  func.func @transform_3(%arg0: i32, %arg1: i32) -> (i32, i32) {
    %c0_i32 = arith.constant 0 : i32
    %c0_i32_0 = arith.constant 0 : i32
    %c0_i32_1 = arith.constant 0 : i32
    return %c0_i32, %c0_i32_0 : i32, i32
  }
  func.func @transform_4(%arg0: i32, %arg1: i32) -> (i32, i32, i32) {
    %c0_i32 = arith.constant 0 : i32
    %c0_i32_0 = arith.constant 0 : i32
    return %arg0, %arg1, %c0_i32 : i32, i32, i32
  }
}

</mosaic_0001>

<bundles_post_ra>
// kernel: conv_bn_forward.2
= control target key start
LH: loop header
LB: loop body
LE: loop exit
PB: predicated region body
PF: predicated region fallthrough
CT: control target
= control target key end

     0   :  { %s3523_s18 = smov 0   ;;  %s3525_s19 = smov 0   ;;  %s4863_s0 = inlined_call_operand.vmem [shape: f32[288,1], index: 0, kind: input, shape index: {}]   ;;  %s4864_s1 = inlined_call_operand.vmem [shape: bf16[2,256,4], index: 1, kind: input, shape index: {}]   ;;  %s4865_s2 = inlined_call_operand.vmem [shape: bf16[36,128], index: 2, kind: input, shape index: {}]   ;;  %s4866_s3 = inlined_call_operand.vmem [shape: f32[1,128], index: 3, kind: input, shape index: {}]   ;;  %s4867_s4 = inlined_call_operand.vmem [shape: f32[2,1,128], index: 4, kind: output, shape index: {0}]   ;;  %s4868_s5 = inlined_call_operand.vmem [shape: f32[2,1,128], index: 5, kind: output, shape index: {1}]  }
   0x1   :  { %s3527_s20 = smov 0  }
   0x2 LB: > { %s28_s21 = sadd.s32 1, %s3477_s19  ;;  %p3011_p0 = scmp.ge.s32.totalorder %s3481_s20, 1  ;;  %s3481_s20 = sphi %s3527_s20, %s16_s20   ;;  %s3477_s19 = sphi %s3525_s19, %s4870_s19   ;;  %s3473_s18 = sphi %s3523_s18, %s4869_s18  }
   0x3   : > { %p30_p1 = scmp.ge.s32.totalorder %s28_s21, 2  ;;  %p213_p2 = scmp.lt.s32.totalorder %s3481_s20, 3 }
   0x5   : > { %s4872_s21 = smov (%p30_p1, %s28_s21), 0  ;;  %p214_p3 = pnand %p3011_p0, %p213_p2 }
   0x6   : > { %s3484_s22 = smov (!%p214_p3), 4   ;;  %p253_p4 = scmp.lt.s32.totalorder (!%p214_p3), %s3473_s18, 1 }
   0x7   : > { %217 = sbr.rel (%p214_p3) target bundleno = 1132 (0x46c), region = 36  ;;  %s3485_s27 = smov (!%p214_p3), 8  }
   0x8   : > { %s3486_s28 = smov (!%p214_p3), 12   ;;  %s3487_s29 = smov (!%p214_p3), 16  }
   0x9   : > { %s3488_s30 = smov (!%p214_p3), 20   ;;  %s3489_s6 = smov (!%p214_p3), 24  }
   0xa   : > { %s3490_s7 = smov (!%p214_p3), 28   ;;  %s3491_s8 = smov (!%p214_p3), 32  }
   0xc   : > { %vm271_vm0 = vcmask 31744   ;;  %v3483_v0 = vmov 0.0   ;;  %s4874_s18 = smov (!%p253_p4, %s3473_s18), 1  ;;  %vm666_vm1 = vcmask 64544   ;;  %vm885_vm2 = vcmask 97344  }
   0xd   : > { %272 = vst.msk [vmem:[#allocation2] sm:$0xff] %vm271_vm0, %v3483_v0  ;;  %s3330_s23 = sshll.u32 %s4874_s18, 7  ;;  %vm1104_vm3 = vcmask 130144   ;;  %vm1323_vm4 = vcmask 162944   ;;  %vm1542_vm5 = vcmask 195744   ;;  %vm1761_vm6 = vcmask 228544  }
   0xe   : > { %273 = vst.msk [vmem:[#allocation2 + $0x8] sm:$0xff] %vm271_vm0, %v3483_v0  ;;  %s3617_s26 = scalar_lea.vmem %s4864_s1, %s3330_s23  ;;  %vm1980_vm7 = vcmask 261344   ;;  %vm2365_vm8 = vcmask 1041408   ;;  %vm2199_vm9 = vcmask 294144   ;;  %vm2310_vm10 = vcmask 293888  }
   0xf   : > { %274 = vst.msk [vmem:[#allocation2 + $0x10] sm:$0xff] %vm271_vm0, %v3483_v0  ;;  %v3334_v3 = vld [vmem:[%s3617_s26] sm:$0xff]   ;;  %v3397_v4 = vld [vmem:[%s3617_s26 + $0x8] sm:$0xff]   ;;  %v3398_v5 = vld [vmem:[%s3617_s26 + $0x10] sm:$0xff]  }
  0x10   : > { %275 = vst.msk [vmem:[#allocation2 + $0x18] sm:$0xff] %vm271_vm0, %v3483_v0  ;;  %v3335_v6 = vunpack.c.l.bf16 %v3334_v3  ;;  %v3340_v7 = vunpack.c.h.bf16 %v3397_v4  ;;  %v3343_v8 = vunpack.c.l.bf16 %v3398_v5  ;;  %v3399_v9 = vld [vmem:[%s3617_s26 + $0x18] sm:$0xff]   ;;  %v3336_v10 = vunpack.c.h.bf16 %v3334_v3  ;;  %v3400_v12 = vld [vmem:[%s3617_s26 + $0x20] sm:$0xff]   ;;  %v3401_v16 = vld [vmem:[%s3617_s26 + $0x28] sm:$0xff]  }
  0x11   : > { %276 = vst.msk [vmem:[#allocation2 + $0x20] sm:$0xff] %vm271_vm0, %v3483_v0  ;;  %v3339_v11 = vunpack.c.l.bf16 %v3397_v4  ;;  %v3347_v13 = vunpack.c.l.bf16 %v3399_v9  ;;  %v3344_v14 = vunpack.c.h.bf16 %v3398_v5  ;;  %v3351_v15 = vunpack.c.l.bf16 %v3400_v12  ;;  %v3402_v18 = vld [vmem:[%s3617_s26 + $0x30] sm:$0xff]   ;;  %v3403_v21 = vld [vmem:[%s3617_s26 + $0x38] sm:$0xff]   ;;  %v3404_v30 = vld [vmem:[%s3617_s26 + $0x40] sm:$0xff]  }
  0x12   : > { %277 = vst.msk [vmem:[#allocation2 + $0x28] sm:$0xff] %vm271_vm0, %v3483_v0  ;;  %v3352_v17 = vunpack.c.h.bf16 %v3400_v12  ;;  %v3348_v19 = vunpack.c.h.bf16 %v3399_v9  ;;  %v3356_v20 = vunpack.c.h.bf16 %v3401_v16  ;;  %v3359_v23 = vunpack.c.l.bf16 %v3402_v18  ;;  %v3405_v37 = vld [vmem:[%s3617_s26 + $0x48] sm:$0xff]   ;;  %v3406_v38 = vld [vmem:[%s3617_s26 + $0x50] sm:$0xff]   ;;  %v3407_v45 = vld [vmem:[%s3617_s26 + $0x58] sm:$0xff]  }
  0x13   : > { %278 = vst.msk [vmem:[#allocation2 + $0x30] sm:$0xff] %vm271_vm0, %v3483_v0  ;;  %v3355_v24 = vunpack.c.l.bf16 %v3401_v16  ;;  %v3363_v26 = vunpack.c.l.bf16 %v3403_v21  ;;  %v3360_v27 = vunpack.c.h.bf16 %v3402_v18  ;;  %v3367_v31 = vunpack.c.l.bf16 %v3404_v30  ;;  %v3408_v51 = vld [vmem:[%s3617_s26 + $0x60] sm:$0xff]   ;;  %v3409_v58 = vld [vmem:[%s3617_s26 + $0x68] sm:$0xff]   ;;  %v3410_v59 = vld [vmem:[%s3617_s26 + $0x70] sm:$0xff]  }
  0x14   : > { %279 = vst.msk [vmem:[#allocation2 + $0x38] sm:$0xff] %vm271_vm0, %v3483_v0  ;;  %v3368_v32 = vunpack.c.h.bf16 %v3404_v30  ;;  %v3364_v33 = vunpack.c.h.bf16 %v3403_v21  ;;  %v3372_v39 = vunpack.c.h.bf16 %v3405_v37  ;;  %v3375_v40 = vunpack.c.l.bf16 %v3406_v38 }
  0x15   : > { %v3014_v1 = vld [vmem:[#allocation2 + $0x1] sm:$0xff]  ;;  %280 = vst.msk [vmem:[#allocation2 + $0x40] sm:$0xff] %vm271_vm0, %v3483_v0  ;;  %v3371_v41 = vunpack.c.l.bf16 %v3405_v37  ;;  %v3379_v46 = vunpack.c.l.bf16 %v3407_v45  ;;  %v3376_v47 = vunpack.c.h.bf16 %v3406_v38  ;;  %v3383_v52 = vunpack.c.l.bf16 %v3408_v51 }
  0x16   : > { %558 = vrot.lane.b32.xlu0 %v3014_v1, %s3484_s22  ;;  %281 = vst.msk [vmem:[#allocation2 + $0x48] sm:$0xff] %vm271_vm0, %v3483_v0  ;;  %v3015_v2 = vld [vmem:[#allocation2 + $0x9] sm:$0xff]  ;;  %v3384_v53 = vunpack.c.h.bf16 %v3408_v51  ;;  %v3380_v54 = vunpack.c.h.bf16 %v3407_v45  ;;  %v3388_v60 = vunpack.c.h.bf16 %v3409_v58  ;;  %v3391_v61 = vunpack.c.l.bf16 %v3410_v59 }
  0x17   : > { %282 = vst.msk [vmem:[#allocation2 + $0x50] sm:$0xff] %vm271_vm0, %v3483_v0  ;;  %v3387_v62 = vunpack.c.l.bf16 %v3409_v58  ;;  %v3392_v3 = vunpack.c.h.bf16 %v3410_v59  ;;  %v412_v21 = vld [vmem:[#allocation2 + $0x8] sm:$0xff] }
  0x18   : > { %283 = vst.msk [vmem:[#allocation2 + $0x58] sm:$0xff] %vm271_vm0, %v3483_v0 }
  0x19   : > { %284 = vst.msk [vmem:[#allocation2 + $0x60] sm:$0xff] %vm271_vm0, %v3483_v0 }
  0x1a   : > { %285 = vst.msk [vmem:[#allocation2 + $0x68] sm:$0xff] %vm271_vm0, %v3483_v0 }
  0x1b   : > { %286 = vst.msk [vmem:[#allocation2 + $0x70] sm:$0xff] %vm271_vm0, %v3483_v0 }
  0x1c   : > { %287 = vst.msk [vmem:[#allocation2 + $0x78] sm:$0xff] %vm271_vm0, %v3483_v0 }
  0x1d   : > { %288 = vst.msk [vmem:[#allocation2 + $0x80] sm:$0xff] %vm271_vm0, %v3483_v0 }
  0x1e   : > { %289 = vst.msk [vmem:[#allocation2 + $0x88] sm:$0xff] %vm271_vm0, %v3483_v0  ;;  %560 = vrot.lane.b32.xlu0 %v3015_v2, %s3484_s22 }
  0x1f   : > { %290 = vst.msk [vmem:[#allocation2 + $0x90] sm:$0xff] %vm271_vm0, %v3483_v0 }
  0x20   : > { %291 = vst.msk [vmem:[#allocation2 + $0x98] sm:$0xff] %vm271_vm0, %v3483_v0 }
  0x21   : > { %292 = vst.msk [vmem:[#allocation2 + $0xa0] sm:$0xff] %vm271_vm0, %v3483_v0 }
  0x22   : > { %293 = vst.msk [vmem:[#allocation2 + $0xa8] sm:$0xff] %vm271_vm0, %v3483_v0 }
  0x23   : > { %294 = vst.msk [vmem:[#allocation2 + $0xb0] sm:$0xff] %vm271_vm0, %v3483_v0 }
  0x24   : > { %295 = vst.msk [vmem:[#allocation2 + $0xb8] sm:$0xff] %vm271_vm0, %v3483_v0 }
  0x25   : > { %296 = vst.msk [vmem:[#allocation2 + $0xc0] sm:$0xff] %vm271_vm0, %v3483_v0 }
  0x26   : > { %297 = vst.msk [vmem:[#allocation2 + $0xc8] sm:$0xff] %vm271_vm0, %v3483_v0 }
  0x27   : > { %298 = vst.msk [vmem:[#allocation2 + $0xd0] sm:$0xff] %vm271_vm0, %v3483_v0 }
  0x28   : > { %299 = vst.msk [vmem:[#allocation2 + $0xd8] sm:$0xff] %vm271_vm0, %v3483_v0 }
  0x29   : > { %300 = vst.msk [vmem:[#allocation2 + $0xe0] sm:$0xff] %vm271_vm0, %v3483_v0 }
  0x2a   : > { %301 = vst.msk [vmem:[#allocation2 + $0xe8] sm:$0xff] %vm271_vm0, %v3483_v0 }
  0x2b   : > { %302 = vst.msk [vmem:[#allocation2 + $0xf0] sm:$0xff] %vm271_vm0, %v3483_v0 }
  0x2c   : > { %303 = vst.msk [vmem:[#allocation2 + $0xf8] sm:$0xff] %vm271_vm0, %v3483_v0 }
  0x2d   : > { %304 = vst.msk [vmem:[#allocation2 + $0x100] sm:$0xff] %vm271_vm0, %v3483_v0 }
  0x2e   : > { %305 = vst.msk [vmem:[#allocation2 + $0x108] sm:$0xff] %vm271_vm0, %v3483_v0 }
  0x2f   : > { %306 = vst.msk [vmem:[#allocation2 + $0x110] sm:$0xff] %vm271_vm0, %v3483_v0 }
  0x30   : > { %307 = vst.msk [vmem:[#allocation2 + $0x118] sm:$0xff] %vm271_vm0, %v3483_v0 }
  0x31   : > { %308 = vst.msk [vmem:[#allocation2 + $0x120] sm:$0xff] %vm271_vm0, %v3483_v0 }
  0x32   : > { %309 = vst.msk [vmem:[#allocation2 + $0x128] sm:$0xff] %vm271_vm0, %v3483_v0 }
  0x33   : > { %310 = vst.msk [vmem:[#allocation2 + $0x130] sm:$0xff] %vm271_vm0, %v3483_v0 }
  0x34   : > { %311 = vst.msk [vmem:[#allocation2 + $0x138] sm:$0xff] %vm271_vm0, %v3483_v0 }
  0x35   : > { %312 = vst.msk [vmem:[#allocation2 + $0x140] sm:$0xff] %vm271_vm0, %v3483_v0 }
  0x36   : > { %317 = vst.msk [vmem:[#allocation2 + $0x13] sm:$0xff] %vm271_vm0, %v3335_v6 }
  0x37   : > { %324 = vst.msk [vmem:[#allocation2 + $0x2d] sm:$0xff] %vm271_vm0, %v3340_v7 }
  0x38   : > { %329 = vst.msk [vmem:[#allocation2 + $0x37] sm:$0xff] %vm271_vm0, %v3343_v8 }
  0x39   : > { %318 = vst.msk [vmem:[#allocation2 + $0x1b] sm:$0xff] %vm271_vm0, %v3336_v10 }
  0x3a   : > { %323 = vst.msk [vmem:[#allocation2 + $0x25] sm:$0xff] %vm271_vm0, %v3339_v11 }
  0x3b   : > { %335 = vst.msk [vmem:[#allocation2 + $0x49] sm:$0xff] %vm271_vm0, %v3347_v13 }
  0x3c   : > { %330 = vst.msk [vmem:[#allocation2 + $0x3f] sm:$0xff] %vm271_vm0, %v3344_v14 }
  0x3d   : > { %v3016_v22 = vld [vmem:[#allocation2 + $0x11] sm:$0xff]  ;;  %341 = vst.msk [vmem:[#allocation2 + $0x5b] sm:$0xff] %vm271_vm0, %v3351_v15  ;;  %v411_v15 = vld [vmem:[#allocation2] sm:$0xff] }
  0x3e   : > { %562 = vrot.lane.b32.xlu1 %v3016_v22, %s3484_s22  ;;  %342 = vst.msk [vmem:[#allocation2 + $0x63] sm:$0xff] %vm271_vm0, %v3352_v17  ;;  %v3736_v37 = vld [vmem:[#allocation2 + $0x12] sm:$0xff] }
  0x3f   : > { %v3020_v25 = vld [vmem:[#allocation2 + $0x31] sm:$0xff]  ;;  %336 = vst.msk [vmem:[#allocation2 + $0x51] sm:$0xff] %vm271_vm0, %v3348_v19 }
  0x40   : > { %570 = vrot.lane.b32.xlu0 %v3020_v25, %s3484_s22  ;;  %348 = vst.msk [vmem:[#allocation2 + $0x75] sm:$0xff] %vm271_vm0, %v3356_v20  ;;  %v3017_v29 = vld [vmem:[#allocation2 + $0x19] sm:$0xff]  ;;  %v3050_v20 = vld [vmem:[#allocation2 + $0x2] sm:$0xff] }
  0x41   : > { %v3018_v28 = vld [vmem:[#allocation2 + $0x21] sm:$0xff]  ;;  %353 = vst.msk [vmem:[#allocation2 + $0x7f] sm:$0xff] %vm271_vm0, %v3359_v23  ;;  %v3019_v35 = vld [vmem:[#allocation2 + $0x29] sm:$0xff]  ;;  %v414_v30 = vld [vmem:[#allocation2 + $0x18] sm:$0xff] }
  0x42   : > { %566 = vrot.lane.b32.xlu2 %v3018_v28, %s3484_s22  ;;  %347 = vst.msk [vmem:[#allocation2 + $0x6d] sm:$0xff] %vm271_vm0, %v3355_v24  ;;  %v3023_v34 = vld [vmem:[#allocation2 + $0x49] sm:$0xff]  ;;  %v415_v11 = vld [vmem:[#allocation2 + $0x20] sm:$0xff] }
  0x43   : > { %359 = vst.msk [vmem:[#allocation2 + $0x91] sm:$0xff] %vm271_vm0, %v3363_v26  ;;  %v3021_v36 = vld [vmem:[#allocation2 + $0x39] sm:$0xff]  ;;  %v3022_v43 = vld [vmem:[#allocation2 + $0x41] sm:$0xff]  ;;  %v413_v23 = vld [vmem:[#allocation2 + $0x10] sm:$0xff] }
  0x44   : > { %354 = vst.msk [vmem:[#allocation2 + $0x87] sm:$0xff] %vm271_vm0, %v3360_v27  ;;  %v3025_v49 = vld [vmem:[#allocation2 + $0x59] sm:$0xff]  ;;  %v416_v16 = vld [vmem:[#allocation2 + $0x28] sm:$0xff]  ;;  %v417_v28 = vld [vmem:[#allocation2 + $0x30] sm:$0xff] }
  0x45   : > { %365 = vst.msk [vmem:[#allocation2 + $0xa3] sm:$0xff] %vm271_vm0, %v3367_v31  ;;  %v3026_v42 = vld [vmem:[#allocation2 + $0x61] sm:$0xff] }
  0x46   : > { %564 = vrot.lane.b32.xlu1 %v3017_v29, %s3484_s22  ;;  %366 = vst.msk [vmem:[#allocation2 + $0xab] sm:$0xff] %vm271_vm0, %v3368_v32  ;;  %v3024_v44 = vld [vmem:[#allocation2 + $0x51] sm:$0xff]  ;;  %v419_v25 = vld [vmem:[#allocation2 + $0x40] sm:$0xff] }
  0x47   : > { %360 = vst.msk [vmem:[#allocation2 + $0x99] sm:$0xff] %vm271_vm0, %v3364_v33  ;;  %v3723_v27 = vld [vmem:[#allocation2 + $0x1a] sm:$0xff]  ;;  %v3051_v32 = vld [vmem:[#allocation2 + $0xa] sm:$0xff]  ;;  %v3768_v51 = vld [vmem:[#allocation2 + $0x42] sm:$0xff] }
  0x48   : > { %576 = vrot.lane.b32.xlu0 %v3023_v34, %s3484_s22  ;;  %372 = vst.msk [vmem:[#allocation2 + $0xbd] sm:$0xff] %vm271_vm0, %v3372_v39  ;;  %v3029_v48 = vld [vmem:[#allocation2 + $0x79] sm:$0xff]  ;;  %v3745_v39 = vld [vmem:[#allocation2 + $0x22] sm:$0xff] }
  0x49   : > { %377 = vst.msk [vmem:[#allocation2 + $0xc7] sm:$0xff] %vm271_vm0, %v3375_v40  ;;  %v3027_v50 = vld [vmem:[#allocation2 + $0x69] sm:$0xff]  ;;  %v3028_v56 = vld [vmem:[#allocation2 + $0x71] sm:$0xff] }
  0x4a   : > { %568 = vrot.lane.b32.xlu2 %v3019_v35, %s3484_s22  ;;  %371 = vst.msk [vmem:[#allocation2 + $0xb5] sm:$0xff] %vm271_vm0, %v3371_v41  ;;  %v3032_v55 = vld [vmem:[#allocation2 + $0x91] sm:$0xff]  ;;  %v420_v35 = vld [vmem:[#allocation2 + $0x48] sm:$0xff] }
  0x4b   : > { %383 = vst.msk [vmem:[#allocation2 + $0xd9] sm:$0xff] %vm271_vm0, %v3379_v46  ;;  %v3030_v57 = vld [vmem:[#allocation2 + $0x81] sm:$0xff]  ;;  %v3031_v1 = vld [vmem:[#allocation2 + $0x89] sm:$0xff]  ;;  %v422_v31 = vld [vmem:[#allocation2 + $0x58] sm:$0xff] }
  0x4c   : > { %378 = vst.msk [vmem:[#allocation2 + $0xcf] sm:$0xff] %vm271_vm0, %v3376_v47  ;;  %v3034_v5 = vld [vmem:[#allocation2 + $0xa1] sm:$0xff]  ;;  %v3733_v34 = vld [vmem:[#allocation2 + $0x32] sm:$0xff]  ;;  %v3748_v41 = vld [vmem:[#allocation2 + $0x4a] sm:$0xff] }
  0x4d   : > { %389 = vst.msk [vmem:[#allocation2 + $0xeb] sm:$0xff] %vm271_vm0, %v3383_v52  ;;  %v3035_v63 = vld [vmem:[#allocation2 + $0xa9] sm:$0xff]  ;;  %v3761_v46 = vld [vmem:[#allocation2 + $0x3a] sm:$0xff] }
  0x4e   : > { %572 = vrot.lane.b32.xlu1 %v3021_v36, %s3484_s22  ;;  %390 = vst.msk [vmem:[#allocation2 + $0xf3] sm:$0xff] %vm271_vm0, %v3384_v53  ;;  %v3033_v2 = vld [vmem:[#allocation2 + $0x99] sm:$0xff]  ;;  %v425_v38 = vld [vmem:[#allocation2 + $0x70] sm:$0xff]  ;;  %v428_v45 = vld [vmem:[#allocation2 + $0x88] sm:$0xff] }
  0x4f   : > { %384 = vst.msk [vmem:[#allocation2 + $0xe1] sm:$0xff] %vm271_vm0, %v3380_v54  ;;  %v418_v36 = vld [vmem:[#allocation2 + $0x38] sm:$0xff]  ;;  %v431_v53 = vld [vmem:[#allocation2 + $0xa0] sm:$0xff]  ;;  %v429_v58 = vld [vmem:[#allocation2 + $0x90] sm:$0xff] }
  0x50   : > { %582 = vrot.lane.b32.xlu0 %v3026_v42, %s3484_s22  ;;  %396 = vst.msk [vmem:[#allocation2 + $0x105] sm:$0xff] %vm271_vm0, %v3388_v60  ;;  %v3038_v4 = vld [vmem:[#allocation2 + $0xc1] sm:$0xff] }
  0x51   : > { %401 = vst.msk [vmem:[#allocation2 + $0x10f] sm:$0xff] %vm271_vm0, %v3391_v61  ;;  %v3036_v6 = vld [vmem:[#allocation2 + $0xb1] sm:$0xff]  ;;  %v3037_v8 = vld [vmem:[#allocation2 + $0xb9] sm:$0xff] }
  0x52   : > { %574 = vrot.lane.b32.xlu2 %v3022_v43, %s3484_s22  ;;  %395 = vst.msk [vmem:[#allocation2 + $0xfd] sm:$0xff] %vm271_vm0, %v3387_v62  ;;  %v3041_v7 = vld [vmem:[#allocation2 + $0xd9] sm:$0xff]  ;;  %v421_v43 = vld [vmem:[#allocation2 + $0x50] sm:$0xff] }
  0x53   : > { %402 = vst.msk [vmem:[#allocation2 + $0x117] sm:$0xff] %vm271_vm0, %v3392_v3  ;;  %v3039_v9 = vld [vmem:[#allocation2 + $0xc9] sm:$0xff]  ;;  %v3040_v12 = vld [vmem:[#allocation2 + $0xd1] sm:$0xff]  ;;  %v423_v42 = vld [vmem:[#allocation2 + $0x60] sm:$0xff] }
  0x54   : > { %452 = vst.msk [vmem:[#allocation3 + $0x20] sm:$0xff] %vm271_vm0, %v415_v11  ;;  %v3043_v17 = vld [vmem:[#allocation2 + $0xe9] sm:$0xff]  ;;  %v427_v59 = vld [vmem:[#allocation2 + $0x80] sm:$0xff]  ;;  %v434_v62 = vld [vmem:[#allocation2 + $0xb8] sm:$0xff] }
  0x55   : > { %v3044_v10 = vld [vmem:[#allocation2 + $0xf1] sm:$0xff]  ;;  %448 = vst.msk [vmem:[#allocation3] sm:$0xff] %vm271_vm0, %v411_v15  ;;  %v3786_v60 = vld [vmem:[#allocation2 + $0x5a] sm:$0xff] }
  0x56   : > { %578 = vrot.lane.b32.xlu1 %v3024_v44, %s3484_s22  ;;  %v3042_v13 = vld [vmem:[#allocation2 + $0xe1] sm:$0xff]  ;;  %453 = vst.msk [vmem:[#allocation3 + $0x28] sm:$0xff] %vm271_vm0, %v416_v16  ;;  %v3752_v44 = vld [vmem:[#allocation2 + $0x2a] sm:$0xff]  ;;  %v3800_v3 = vld [vmem:[#allocation2 + $0x92] sm:$0xff] }
  0x57   : > { %449 = vst.msk [vmem:[#allocation3 + $0x8] sm:$0xff] %vm271_vm0, %v412_v21  ;;  %v3822_v15 = vld [vmem:[#allocation2 + $0x8a] sm:$0xff]  ;;  %v3836_v21 = vld [vmem:[#allocation2 + $0xc2] sm:$0xff] }
  0x58   : > { %588 = vrot.lane.b32.xlu0 %v3029_v48, %s3484_s22  ;;  %v3047_v14 = vld [vmem:[#allocation2 + $0x109] sm:$0xff]  ;;  %450 = vst.msk [vmem:[#allocation3 + $0x10] sm:$0xff] %vm271_vm0, %v413_v23 }
  0x59   : > { %v3045_v19 = vld [vmem:[#allocation2 + $0xf9] sm:$0xff]  ;;  %v3046_v22 = vld [vmem:[#allocation2 + $0x101] sm:$0xff]  ;;  %456 = vst.msk [vmem:[#allocation3 + $0x40] sm:$0xff] %vm271_vm0, %v419_v25 }
  0x5a   : > { %580 = vrot.lane.b32.xlu2 %v3025_v49, %s3484_s22  ;;  %v3048_v26 = vld [vmem:[#allocation2 + $0x111] sm:$0xff]  ;;  %v3049_v29 = vld [vmem:[#allocation2 + $0x119] sm:$0xff]  ;;  %454 = vst.msk [vmem:[#allocation3 + $0x30] sm:$0xff] %vm271_vm0, %v417_v28  ;;  %v3764_v48 = vld [vmem:[#allocation2 + $0x62] sm:$0xff] }
  0x5b   : > { %451 = vst.msk [vmem:[#allocation3 + $0x18] sm:$0xff] %vm271_vm0, %v414_v30  ;;  %v426_v49 = vld [vmem:[#allocation2 + $0x78] sm:$0xff]  ;;  %v436_v23 = vld [vmem:[#allocation2 + $0xc8] sm:$0xff] }
  0x5c   : > { %459 = vst.msk [vmem:[#allocation3 + $0x58] sm:$0xff] %vm271_vm0, %v422_v31  ;;  %v3854_v31 = vld [vmem:[#allocation2 + $0xda] sm:$0xff] }
  0x5d   : > { %457 = vst.msk [vmem:[#allocation3 + $0x48] sm:$0xff] %vm271_vm0, %v420_v35  ;;  %v3858_v35 = vld [vmem:[#allocation2 + $0xba] sm:$0xff] }
  0x5e   : > { %584 = vrot.lane.b32.xlu1 %v3027_v50, %s3484_s22  ;;  %455 = vst.msk [vmem:[#allocation3 + $0x38] sm:$0xff] %vm271_vm0, %v418_v36  ;;  %v424_v50 = vld [vmem:[#allocation2 + $0x68] sm:$0xff]  ;;  %v3862_v36 = vld [vmem:[%s3617_s26 + $0x78] sm:$0xff]  }
  0x5f   : > { %462 = vst.msk [vmem:[#allocation3 + $0x70] sm:$0xff] %vm271_vm0, %v425_v38 }
  0x60   : > { %594 = vrot.lane.b32.xlu0 %v3032_v55, %s3484_s22  ;;  %460 = vst.msk [vmem:[#allocation3 + $0x60] sm:$0xff] %vm271_vm0, %v423_v42  ;;  %v3778_v55 = vld [vmem:[#allocation2 + $0x52] sm:$0xff] }
  0x61   : > { %458 = vst.msk [vmem:[#allocation3 + $0x50] sm:$0xff] %vm271_vm0, %v421_v43  ;;  %v446_v42 = vld [vmem:[#allocation2 + $0x118] sm:$0xff] }
  0x62   : > { %586 = vrot.lane.b32.xlu2 %v3028_v56, %s3484_s22  ;;  %465 = vst.msk [vmem:[#allocation3 + $0x88] sm:$0xff] %vm271_vm0, %v428_v45  ;;  %v3872_v45 = vld [vmem:[#allocation2 + $0xca] sm:$0xff] }
  0x63   : > { %463 = vst.msk [vmem:[#allocation3 + $0x78] sm:$0xff] %vm271_vm0, %v426_v49  ;;  %v3877_v49 = vld [vmem:[#allocation2 + $0xf2] sm:$0xff] }
  0x64   : > { %461 = vst.msk [vmem:[#allocation3 + $0x68] sm:$0xff] %vm271_vm0, %v424_v50  ;;  %v444_v50 = vld [vmem:[#allocation2 + $0x108] sm:$0xff] }
  0x65   : > { %468 = vst.msk [vmem:[#allocation3 + $0xa0] sm:$0xff] %vm271_vm0, %v431_v53  ;;  %v3881_v53 = vld [vmem:[#allocation2 + $0xd2] sm:$0xff] }
  0x66   : > { %590 = vrot.lane.b32.xlu1 %v3030_v57, %s3484_s22  ;;  %v3782_v57 = vld [vmem:[#allocation2 + $0x7a] sm:$0xff]  ;;  %466 = vst.msk [vmem:[#allocation3 + $0x90] sm:$0xff] %vm271_vm0, %v429_v58  ;;  %v3890_v58 = vld [vmem:[#allocation2 + $0xe2] sm:$0xff] }
  0x67   : > { %464 = vst.msk [vmem:[#allocation3 + $0x80] sm:$0xff] %vm271_vm0, %v427_v59 }
  0x68   : > { %600 = vrot.lane.b32.xlu0 %v3035_v63, %s3484_s22  ;;  %471 = vst.msk [vmem:[#allocation3 + $0xb8] sm:$0xff] %vm271_vm0, %v434_v62  ;;  %v445_v62 = vld [vmem:[#allocation2 + $0x110] sm:$0xff] }
  0x69   : > { %473 = vst.msk [vmem:[#allocation3 + $0xc8] sm:$0xff] %vm271_vm0, %v436_v23 }
  0x6a   : > { %592 = vrot.lane.b32.xlu2 %v3031_v1, %s3484_s22  ;;  %v3796_v1 = vld [vmem:[#allocation2 + $0x6a] sm:$0xff]  ;;  %483 = vst.msk [vmem:[#allocation3 + $0x118] sm:$0xff] %vm271_vm0, %v446_v42 }
  0x6b   : > { %481 = vst.msk [vmem:[#allocation3 + $0x108] sm:$0xff] %vm271_vm0, %v444_v50  ;;  %v3123_v50 = vld [vmem:[#allocation2 + $0x1b] sm:$0xff] }
  0x6c   : > { %482 = vst.msk [vmem:[#allocation3 + $0x110] sm:$0xff] %vm271_vm0, %v445_v62  ;;  %v3131_v62 = vld [vmem:[#allocation2 + $0x5b] sm:$0xff] }
  0x6e   : > { %596 = vrot.lane.b32.xlu1 %v3033_v2, %s3484_s22 }
  0x70   : > { %606 = vrot.lane.b32.xlu0 %v3038_v4, %s3484_s22  ;;  %v432_v4 = vld [vmem:[#allocation2 + $0xa8] sm:$0xff] }
  0x71   : > { %469 = vst.msk [vmem:[#allocation3 + $0xa8] sm:$0xff] %vm271_vm0, %v432_v4 }
  0x72   : > { %598 = vrot.lane.b32.xlu2 %v3034_v5, %s3484_s22  ;;  %v430_v5 = vld [vmem:[#allocation2 + $0x98] sm:$0xff] }
  0x73   : > { %467 = vst.msk [vmem:[#allocation3 + $0x98] sm:$0xff] %vm271_vm0, %v430_v5  ;;  %v3906_v5 = vld [vmem:[#allocation2 + $0xfa] sm:$0xff] }
  0x76   : > { %602 = vrot.lane.b32.xlu1 %v3036_v6, %s3484_s22  ;;  %v3804_v6 = vld [vmem:[#allocation2 + $0x72] sm:$0xff] }
  0x78   : > { %612 = vrot.lane.b32.xlu0 %v3041_v7, %s3484_s22 }
  0x7a   : > { %604 = vrot.lane.b32.xlu2 %v3037_v8, %s3484_s22  ;;  %v437_v8 = vld [vmem:[#allocation2 + $0xd0] sm:$0xff] }
  0x7b   : > { %474 = vst.msk [vmem:[#allocation3 + $0xd0] sm:$0xff] %vm271_vm0, %v437_v8  ;;  %v3912_v8 = vld [vmem:[#allocation2 + $0x102] sm:$0xff] }
  0x7e   : > { %608 = vrot.lane.b32.xlu1 %v3039_v9, %s3484_s22 }
  0x80   : > { %618 = vrot.lane.b32.xlu0 %v3044_v10, %s3484_s22  ;;  %v3814_v10 = vld [vmem:[#allocation2 + $0x82] sm:$0xff] }
  0x82   : > { %610 = vrot.lane.b32.xlu2 %v3040_v12, %s3484_s22  ;;  %v3818_v12 = vld [vmem:[#allocation2 + $0xaa] sm:$0xff] }
  0x86   : > { %614 = vrot.lane.b32.xlu1 %v3042_v13, %s3484_s22  ;;  %v435_v13 = vld [vmem:[#allocation2 + $0xc0] sm:$0xff] }
  0x87   : > { %472 = vst.msk [vmem:[#allocation3 + $0xc0] sm:$0xff] %vm271_vm0, %v435_v13  ;;  %v3919_v13 = vld [vmem:[#allocation2 + $0x112] sm:$0xff] }
  0x88   : > { %624 = vrot.lane.b32.xlu0 %v3047_v14, %s3484_s22  ;;  %v559_v18 = vpop.permute.xlu0 %558  ;;  %v433_v14 = vld [vmem:[#allocation2 + $0xb0] sm:$0xff] }
  0x89   : > { %667 = vst.msk [vmem:[#allocation3] sm:$0xff] %vm666_vm1, %v559_v18 }
  0x8a   : > { %616 = vrot.lane.b32.xlu2 %v3043_v17, %s3484_s22  ;;  %470 = vst.msk [vmem:[#allocation3 + $0xb0] sm:$0xff] %vm271_vm0, %v433_v14  ;;  %v440_v17 = vld [vmem:[#allocation2 + $0xe8] sm:$0xff] }
  0x8b   : > { %477 = vst.msk [vmem:[#allocation3 + $0xe8] sm:$0xff] %vm271_vm0, %v440_v17 }
  0x8e   : > { %620 = vrot.lane.b32.xlu1 %v3045_v19, %s3484_s22  ;;  %v3832_v19 = vld [vmem:[#allocation2 + $0x9a] sm:$0xff] }
  0x90   : > { %777 = vrot.lane.b32.xlu0 %v3050_v20, %s3485_s27  ;;  %v561_v24 = vpop.permute.xlu0 %560 }
  0x91   : > { %668 = vst.msk [vmem:[#allocation3 + $0x8] sm:$0xff] %vm666_vm1, %v561_v24  ;;  %v3840_v24 = vld [vmem:[#allocation2 + $0xa2] sm:$0xff] }
  0x92   : > { %622 = vrot.lane.b32.xlu2 %v3046_v22, %s3484_s22  ;;  %v438_v22 = vld [vmem:[#allocation2 + $0xd8] sm:$0xff] }
  0x93   : > { %475 = vst.msk [vmem:[#allocation3 + $0xd8] sm:$0xff] %vm271_vm0, %v438_v22 }
  0x96   : > { %626 = vrot.lane.b32.xlu1 %v3048_v26, %s3484_s22  ;;  %v443_v26 = vld [vmem:[#allocation2 + $0x100] sm:$0xff] }
  0x97   : > { %480 = vst.msk [vmem:[#allocation3 + $0x100] sm:$0xff] %vm271_vm0, %v443_v26 }
  0x98   : > { %783 = vrot.lane.b32.xlu0 %v3723_v27, %s3485_s27 }
  0x9a   : > { %628 = vrot.lane.b32.xlu2 %v3049_v29, %s3484_s22  ;;  %v3850_v29 = vld [vmem:[#allocation2 + $0xb2] sm:$0xff] }
  0x9c   : > { %v567_v33 = vpop.permute.xlu2 %566 }
  0x9d   : > { %671 = vst.msk [vmem:[#allocation3 + $0x20] sm:$0xff] %vm666_vm1, %v567_v33  ;;  %v439_v33 = vld [vmem:[#allocation2 + $0xe0] sm:$0xff] }
  0x9e   : > { %779 = vrot.lane.b32.xlu1 %v3051_v32, %s3485_s27  ;;  %v441_v32 = vld [vmem:[#allocation2 + $0xf0] sm:$0xff]  ;;  %476 = vst.msk [vmem:[#allocation3 + $0xe0] sm:$0xff] %vm271_vm0, %v439_v33 }
  0x9f   : > { %478 = vst.msk [vmem:[#allocation3 + $0xf0] sm:$0xff] %vm271_vm0, %v441_v32 }
  0xa0   : > { %789 = vrot.lane.b32.xlu0 %v3733_v34, %s3485_s27 }
  0xa2   : > { %781 = vrot.lane.b32.xlu2 %v3736_v37, %s3485_s27 }
  0xa4   : > { %v569_v40 = vpop.permute.xlu2 %568 }
  0xa5   : > { %672 = vst.msk [vmem:[#allocation3 + $0x28] sm:$0xff] %vm666_vm1, %v569_v40  ;;  %v3395_v40 = vunpack.c.l.bf16 %v3862_v36 }
  0xa6   : > { %785 = vrot.lane.b32.xlu1 %v3745_v39, %s3485_s27 }
  0xa7   : > { %407 = vst.msk [vmem:[#allocation2 + $0x121] sm:$0xff] %vm271_vm0, %v3395_v40 }
  0xa8   : > { %795 = vrot.lane.b32.xlu0 %v3748_v41, %s3485_s27 }
  0xaa   : > { %787 = vrot.lane.b32.xlu2 %v3752_v44, %s3485_s27 }
  0xac   : > { %v575_v47 = vpop.permute.xlu2 %574 }
  0xad   : > { %675 = vst.msk [vmem:[#allocation3 + $0x40] sm:$0xff] %vm666_vm1, %v575_v47 }
  0xae   : > { %791 = vrot.lane.b32.xlu1 %v3761_v46, %s3485_s27 }
  0xb0   : > { %v563_v52 = vpop.permute.xlu1 %562  ;;  %801 = vrot.lane.b32.xlu0 %v3764_v48, %s3485_s27 }
  0xb1   : > { %669 = vst.msk [vmem:[#allocation3 + $0x10] sm:$0xff] %vm666_vm1, %v563_v52  ;;  %v442_v52 = vld [vmem:[#allocation2 + $0xf8] sm:$0xff] }
  0xb2   : > { %v571_v54 = vpop.permute.xlu0 %570  ;;  %793 = vrot.lane.b32.xlu2 %v3768_v51, %s3485_s27  ;;  %479 = vst.msk [vmem:[#allocation3 + $0xf8] sm:$0xff] %vm271_vm0, %v442_v52 }
  0xb3   : > { %673 = vst.msk [vmem:[#allocation3 + $0x30] sm:$0xff] %vm666_vm1, %v571_v54 }
  0xb4   : > { %v581_v56 = vpop.permute.xlu2 %580 }
  0xb5   : > { %678 = vst.msk [vmem:[#allocation3 + $0x58] sm:$0xff] %vm666_vm1, %v581_v56 }
  0xb6   : > { %797 = vrot.lane.b32.xlu1 %v3778_v55, %s3485_s27 }
  0xb8   : > { %v565_v61 = vpop.permute.xlu1 %564  ;;  %807 = vrot.lane.b32.xlu0 %v3782_v57, %s3485_s27 }
  0xb9   : > { %670 = vst.msk [vmem:[#allocation3 + $0x18] sm:$0xff] %vm666_vm1, %v565_v61  ;;  %v3894_v61 = vld [vmem:[#allocation2 + $0x10a] sm:$0xff] }
  0xba   : > { %v577_v63 = vpop.permute.xlu0 %576  ;;  %799 = vrot.lane.b32.xlu2 %v3786_v60, %s3485_s27 }
  0xbb   : > { %676 = vst.msk [vmem:[#allocation3 + $0x48] sm:$0xff] %vm666_vm1, %v577_v63  ;;  %v3898_v63 = vld [vmem:[#allocation2 + $0xea] sm:$0xff] }
  0xbc   : > { %v587_v2 = vpop.permute.xlu2 %586 }
  0xbd   : > { %681 = vst.msk [vmem:[#allocation3 + $0x70] sm:$0xff] %vm666_vm1, %v587_v2 }
  0xbe   : > { %803 = vrot.lane.b32.xlu1 %v3796_v1, %s3485_s27 }
  0xc0   : > { %v573_v7 = vpop.permute.xlu1 %572  ;;  %813 = vrot.lane.b32.xlu0 %v3800_v3, %s3485_s27 }
  0xc1   : > { %674 = vst.msk [vmem:[#allocation3 + $0x38] sm:$0xff] %vm666_vm1, %v573_v7 }
  0xc2   : > { %v583_v9 = vpop.permute.xlu0 %582  ;;  %805 = vrot.lane.b32.xlu2 %v3804_v6, %s3485_s27 }
  0xc3   : > { %679 = vst.msk [vmem:[#allocation3 + $0x60] sm:$0xff] %vm666_vm1, %v583_v9 }
  0xc4   : > { %v593_v11 = vpop.permute.xlu2 %592 }
  0xc5   : > { %684 = vst.msk [vmem:[#allocation3 + $0x88] sm:$0xff] %vm666_vm1, %v593_v11 }
  0xc6   : > { %809 = vrot.lane.b32.xlu1 %v3814_v10, %s3485_s27 }
  0xc8   : > { %v579_v16 = vpop.permute.xlu1 %578  ;;  %819 = vrot.lane.b32.xlu0 %v3818_v12, %s3485_s27 }
  0xc9   : > { %677 = vst.msk [vmem:[#allocation3 + $0x50] sm:$0xff] %vm666_vm1, %v579_v16  ;;  %v3925_v16 = vld [vmem:[#allocation2 + $0x11a] sm:$0xff] }
  0xca   : > { %v589_v18 = vpop.permute.xlu0 %588  ;;  %811 = vrot.lane.b32.xlu2 %v3822_v15, %s3485_s27 }
  0xcb   : > { %682 = vst.msk [vmem:[#allocation3 + $0x78] sm:$0xff] %vm666_vm1, %v589_v18 }
  0xcc   : > { %v599_v20 = vpop.permute.xlu2 %598 }
  0xcd   : > { %687 = vst.msk [vmem:[#allocation3 + $0xa0] sm:$0xff] %vm666_vm1, %v599_v20 }
  0xce   : > { %815 = vrot.lane.b32.xlu1 %v3832_v19, %s3485_s27 }
  0xd0   : > { %v585_v25 = vpop.permute.xlu1 %584  ;;  %825 = vrot.lane.b32.xlu0 %v3836_v21, %s3485_s27 }
  0xd1   : > { %680 = vst.msk [vmem:[#allocation3 + $0x68] sm:$0xff] %vm666_vm1, %v585_v25 }
  0xd2   : > { %v595_v28 = vpop.permute.xlu0 %594  ;;  %817 = vrot.lane.b32.xlu2 %v3840_v24, %s3485_s27 }
  0xd3   : > { %685 = vst.msk [vmem:[#allocation3 + $0x90] sm:$0xff] %vm666_vm1, %v595_v28 }
  0xd4   : > { %v605_v30 = vpop.permute.xlu2 %604 }
  0xd5   : > { %690 = vst.msk [vmem:[#allocation3 + $0xb8] sm:$0xff] %vm666_vm1, %v605_v30 }
  0xd6   : > { %821 = vrot.lane.b32.xlu1 %v3850_v29, %s3485_s27 }
  0xd8   : > { %v591_v38 = vpop.permute.xlu1 %590  ;;  %831 = vrot.lane.b32.xlu0 %v3854_v31, %s3485_s27 }
  0xd9   : > { %683 = vst.msk [vmem:[#allocation3 + $0x80] sm:$0xff] %vm666_vm1, %v591_v38 }
  0xda   : > { %v601_v43 = vpop.permute.xlu0 %600  ;;  %823 = vrot.lane.b32.xlu2 %v3858_v35, %s3485_s27 }
  0xdb   : > { %688 = vst.msk [vmem:[#allocation3 + $0xa8] sm:$0xff] %vm666_vm1, %v601_v43  ;;  %v3125_v43 = vld [vmem:[#allocation2 + $0x2b] sm:$0xff] }
  0xdc   : > { %v611_v47 = vpop.permute.xlu2 %610 }
  0xdd   : > { %693 = vst.msk [vmem:[#allocation3 + $0xd0] sm:$0xff] %vm666_vm1, %v611_v47 }
  0xde   : > { %827 = vrot.lane.b32.xlu1 %v3872_v45, %s3485_s27 }
  0xe0   : > { %v597_v54 = vpop.permute.xlu1 %596  ;;  %837 = vrot.lane.b32.xlu0 %v3877_v49, %s3485_s27 }
  0xe1   : > { %686 = vst.msk [vmem:[#allocation3 + $0x98] sm:$0xff] %vm666_vm1, %v597_v54  ;;  %v3124_v54 = vld [vmem:[#allocation2 + $0x23] sm:$0xff] }
  0xe2   : > { %v607_v56 = vpop.permute.xlu0 %606  ;;  %829 = vrot.lane.b32.xlu2 %v3881_v53, %s3485_s27 }
  0xe3   : > { %691 = vst.msk [vmem:[#allocation3 + $0xc0] sm:$0xff] %vm666_vm1, %v607_v56 }
  0xe4   : > { %v617_v59 = vpop.permute.xlu2 %616 }
  0xe5   : > { %696 = vst.msk [vmem:[#allocation3 + $0xe8] sm:$0xff] %vm666_vm1, %v617_v59  ;;  %v3126_v59 = vld [vmem:[#allocation2 + $0x33] sm:$0xff] }
  0xe6   : > { %833 = vrot.lane.b32.xlu1 %v3890_v58, %s3485_s27 }
  0xe8   : > { %v603_v2 = vpop.permute.xlu1 %602  ;;  %843 = vrot.lane.b32.xlu0 %v3894_v61, %s3485_s27 }
  0xe9   : > { %689 = vst.msk [vmem:[#allocation3 + $0xb0] sm:$0xff] %vm666_vm1, %v603_v2 }
  0xea   : > { %v613_v4 = vpop.permute.xlu0 %612  ;;  %835 = vrot.lane.b32.xlu2 %v3898_v63, %s3485_s27 }
  0xeb   : > { %694 = vst.msk [vmem:[#allocation3 + $0xd8] sm:$0xff] %vm666_vm1, %v613_v4 }
  0xec   : > { %v623_v7 = vpop.permute.xlu2 %622 }
  0xed   : > { %699 = vst.msk [vmem:[#allocation3 + $0x100] sm:$0xff] %vm666_vm1, %v623_v7 }
  0xee   : > { %839 = vrot.lane.b32.xlu1 %v3906_v5, %s3485_s27 }
  0xf0   : > { %v609_v9 = vpop.permute.xlu1 %608  ;;  %996 = vrot.lane.b32.xlu0 %v3736_v37, %s3486_s28 }
  0xf1   : > { %692 = vst.msk [vmem:[#allocation3 + $0xc8] sm:$0xff] %vm666_vm1, %v609_v9  ;;  %v3130_v9 = vld [vmem:[#allocation2 + $0x53] sm:$0xff] }
  0xf2   : > { %v619_v11 = vpop.permute.xlu0 %618  ;;  %841 = vrot.lane.b32.xlu2 %v3912_v8, %s3485_s27 }
  0xf3   : > { %697 = vst.msk [vmem:[#allocation3 + $0xf0] sm:$0xff] %vm666_vm1, %v619_v11 }
  0xf4   : > { %v629_v14 = vpop.permute.xlu2 %628 }
  0xf5   : > { %702 = vst.msk [vmem:[#allocation3 + $0x118] sm:$0xff] %vm666_vm1, %v629_v14  ;;  %v3132_v14 = vld [vmem:[#allocation2 + $0x63] sm:$0xff] }
  0xf6   : > { %845 = vrot.lane.b32.xlu1 %v3919_v13, %s3485_s27 }
  0xf8   : > { %v615_v17 = vpop.permute.xlu1 %614  ;;  %1002 = vrot.lane.b32.xlu0 %v3752_v44, %s3486_s28 }
  0xf9   : > { %695 = vst.msk [vmem:[#allocation3 + $0xe0] sm:$0xff] %vm666_vm1, %v615_v17  ;;  %v3137_v17 = vld [vmem:[#allocation2 + $0x8b] sm:$0xff] }
  0xfa   : > { %v625_v37 = vpop.permute.xlu0 %624  ;;  %847 = vrot.lane.b32.xlu2 %v3925_v16, %s3485_s27 }
  0xfb   : > { %700 = vst.msk [vmem:[#allocation3 + $0x108] sm:$0xff] %vm666_vm1, %v625_v37  ;;  %v3133_v37 = vld [vmem:[#allocation2 + $0x6b] sm:$0xff] }
  0xfc   : > { %v782_v18 = vpop.permute.xlu2 %781 }
  0xfd   : > { %888 = vst.msk [vmem:[#allocation3 + $0x10] sm:$0xff] %vm885_vm2, %v782_v18 }
  0xfe   : > { %998 = vrot.lane.b32.xlu1 %v3723_v27, %s3486_s28 }
 0x100   : > { %v621_v20 = vpop.permute.xlu1 %620  ;;  %1008 = vrot.lane.b32.xlu0 %v3768_v51, %s3486_s28 }
 0x101   : > { %698 = vst.msk [vmem:[#allocation3 + $0xf8] sm:$0xff] %vm666_vm1, %v621_v20 }
 0x102   : > { %v778_v44 = vpop.permute.xlu0 %777  ;;  %1000 = vrot.lane.b32.xlu2 %v3745_v39, %s3486_s28 }
 0x103   : > { %886 = vst.msk [vmem:[#allocation3] sm:$0xff] %vm885_vm2, %v778_v44  ;;  %v3135_v44 = vld [vmem:[#allocation2 + $0x7b] sm:$0xff] }
 0x104   : > { %v788_v22 = vpop.permute.xlu2 %787 }
 0x105   : > { %891 = vst.msk [vmem:[#allocation3 + $0x28] sm:$0xff] %vm885_vm2, %v788_v22 }
 0x106   : > { %1004 = vrot.lane.b32.xlu1 %v3733_v34, %s3486_s28 }
 0x108   : > { %v627_v23 = vpop.permute.xlu1 %626  ;;  %1014 = vrot.lane.b32.xlu0 %v3786_v60, %s3486_s28 }
 0x109   : > { %701 = vst.msk [vmem:[#allocation3 + $0x110] sm:$0xff] %vm666_vm1, %v627_v23  ;;  %v3140_v23 = vld [vmem:[#allocation2 + $0xa3] sm:$0xff] }
 0x10a   : > { %v784_v27 = vpop.permute.xlu0 %783  ;;  %1006 = vrot.lane.b32.xlu2 %v3761_v46, %s3486_s28 }
 0x10b   : > { %889 = vst.msk [vmem:[#allocation3 + $0x18] sm:$0xff] %vm885_vm2, %v784_v27  ;;  %v3136_v27 = vld [vmem:[#allocation2 + $0x83] sm:$0xff] }
 0x10c   : > { %v794_v39 = vpop.permute.xlu2 %793 }
 0x10d   : > { %894 = vst.msk [vmem:[#allocation3 + $0x40] sm:$0xff] %vm885_vm2, %v794_v39 }
 0x10e   : > { %1010 = vrot.lane.b32.xlu1 %v3748_v41, %s3486_s28 }
 0x110   : > { %v780_v51 = vpop.permute.xlu1 %779  ;;  %1020 = vrot.lane.b32.xlu0 %v3804_v6, %s3486_s28 }
 0x111   : > { %887 = vst.msk [vmem:[#allocation3 + $0x8] sm:$0xff] %vm885_vm2, %v780_v51 }
 0x112   : > { %v790_v34 = vpop.permute.xlu0 %789  ;;  %1012 = vrot.lane.b32.xlu2 %v3778_v55, %s3486_s28 }
 0x113   : > { %892 = vst.msk [vmem:[#allocation3 + $0x30] sm:$0xff] %vm885_vm2, %v790_v34  ;;  %v3138_v34 = vld [vmem:[#allocation2 + $0x93] sm:$0xff] }
 0x114   : > { %v800_v46 = vpop.permute.xlu2 %799 }
 0x115   : > { %897 = vst.msk [vmem:[#allocation3 + $0x58] sm:$0xff] %vm885_vm2, %v800_v46 }
 0x116   : > { %1016 = vrot.lane.b32.xlu1 %v3764_v48, %s3486_s28 }
 0x118   : > { %v786_v60 = vpop.permute.xlu1 %785  ;;  %1026 = vrot.lane.b32.xlu0 %v3822_v15, %s3486_s28 }
 0x119   : > { %890 = vst.msk [vmem:[#allocation3 + $0x20] sm:$0xff] %vm885_vm2, %v786_v60  ;;  %v3143_v60 = vld [vmem:[#allocation2 + $0xbb] sm:$0xff] }
 0x11a   : > { %v796_v41 = vpop.permute.xlu0 %795  ;;  %1018 = vrot.lane.b32.xlu2 %v3796_v1, %s3486_s28 }
 0x11b   : > { %895 = vst.msk [vmem:[#allocation3 + $0x48] sm:$0xff] %vm885_vm2, %v796_v41  ;;  %v3139_v41 = vld [vmem:[#allocation2 + $0x9b] sm:$0xff] }
 0x11c   : > { %v806_v55 = vpop.permute.xlu2 %805 }
 0x11d   : > { %900 = vst.msk [vmem:[#allocation3 + $0x70] sm:$0xff] %vm885_vm2, %v806_v55 }
 0x11e   : > { %1022 = vrot.lane.b32.xlu1 %v3782_v57, %s3486_s28 }
 0x120   : > { %v792_v6 = vpop.permute.xlu1 %791  ;;  %1032 = vrot.lane.b32.xlu0 %v3840_v24, %s3486_s28  ;;  %v3396_v24 = vunpack.c.h.bf16 %v3862_v36 }
 0x121   : > { %893 = vst.msk [vmem:[#allocation3 + $0x38] sm:$0xff] %vm885_vm2, %v792_v6 }
 0x122   : > { %v802_v48 = vpop.permute.xlu0 %801  ;;  %1024 = vrot.lane.b32.xlu2 %v3814_v10, %s3486_s28  ;;  %408 = vst.msk [vmem:[#allocation2 + $0x129] sm:$0xff] %vm271_vm0, %v3396_v24 }
 0x123   : > { %898 = vst.msk [vmem:[#allocation3 + $0x60] sm:$0xff] %vm885_vm2, %v802_v48  ;;  %v3141_v48 = vld [vmem:[#allocation2 + $0xab] sm:$0xff] }
 0x124   : > { %v812_v1 = vpop.permute.xlu2 %811 }
 0x125   : > { %903 = vst.msk [vmem:[#allocation3 + $0x88] sm:$0xff] %vm885_vm2, %v812_v1 }
 0x126   : > { %1028 = vrot.lane.b32.xlu1 %v3800_v3, %s3486_s28 }
 0x128   : > { %v798_v15 = vpop.permute.xlu1 %797  ;;  %1038 = vrot.lane.b32.xlu0 %v3858_v35, %s3486_s28  ;;  %v3122_v35 = vld [vmem:[#allocation2 + $0x13] sm:$0xff] }
 0x129   : > { %896 = vst.msk [vmem:[#allocation3 + $0x50] sm:$0xff] %vm885_vm2, %v798_v15  ;;  %v3120_v40 = vld [vmem:[#allocation2 + $0x122] sm:$0xff]  ;;  %v3146_v15 = vld [vmem:[#allocation2 + $0xd3] sm:$0xff] }
 0x12a   : > { %v808_v57 = vpop.permute.xlu0 %807  ;;  %1030 = vrot.lane.b32.xlu2 %v3832_v19, %s3486_s28 }
 0x12b   : > { %901 = vst.msk [vmem:[#allocation3 + $0x78] sm:$0xff] %vm885_vm2, %v808_v57  ;;  %v3142_v57 = vld [vmem:[#allocation2 + $0xb3] sm:$0xff] }
 0x12c   : > { %v818_v10 = vpop.permute.xlu2 %817 }
 0x12d   : > { %906 = vst.msk [vmem:[#allocation3 + $0xa0] sm:$0xff] %vm885_vm2, %v818_v10 }
 0x12e   : > { %1034 = vrot.lane.b32.xlu1 %v3818_v12, %s3486_s28 }
 0x130   : > { %v804_v3 = vpop.permute.xlu1 %803  ;;  %1044 = vrot.lane.b32.xlu0 %v3881_v53, %s3486_s28  ;;  %v3128_v53 = vld [vmem:[#allocation2 + $0x43] sm:$0xff] }
 0x131   : > { %899 = vst.msk [vmem:[#allocation3 + $0x68] sm:$0xff] %vm885_vm2, %v804_v3  ;;  %v3144_v3 = vld [vmem:[#allocation2 + $0xc3] sm:$0xff] }
 0x132   : > { %v814_v25 = vpop.permute.xlu0 %813  ;;  %1036 = vrot.lane.b32.xlu2 %v3850_v29, %s3486_s28 }
 0x133   : > { %904 = vst.msk [vmem:[#allocation3 + $0x90] sm:$0xff] %vm885_vm2, %v814_v25 }
 0x134   : > { %v824_v19 = vpop.permute.xlu2 %823 }
 0x135   : > { %909 = vst.msk [vmem:[#allocation3 + $0xb8] sm:$0xff] %vm885_vm2, %v824_v19  ;;  %v3149_v19 = vld [vmem:[#allocation2 + $0xeb] sm:$0xff] }
 0x136   : > { %1040 = vrot.lane.b32.xlu1 %v3836_v21, %s3486_s28 }
 0x138   : > { %v810_v12 = vpop.permute.xlu1 %809  ;;  %1050 = vrot.lane.b32.xlu0 %v3898_v63, %s3486_s28  ;;  %v3127_v63 = vld [vmem:[#allocation2 + $0x3b] sm:$0xff] }
 0x139   : > { %902 = vst.msk [vmem:[#allocation3 + $0x80] sm:$0xff] %vm885_vm2, %v810_v12  ;;  %v3145_v12 = vld [vmem:[#allocation2 + $0xcb] sm:$0xff] }
 0x13a   : > { %v820_v26 = vpop.permute.xlu0 %819  ;;  %1042 = vrot.lane.b32.xlu2 %v3872_v45, %s3486_s28  ;;  %v3121_v45 = vld [vmem:[#allocation2 + $0x12a] sm:$0xff] }
 0x13b   : > { %907 = vst.msk [vmem:[#allocation3 + $0xa8] sm:$0xff] %vm885_vm2, %v820_v26 }
 0x13c   : > { %v830_v28 = vpop.permute.xlu2 %829 }
 0x13d   : > { %912 = vst.msk [vmem:[#allocation3 + $0xd0] sm:$0xff] %vm885_vm2, %v830_v28 }
 0x13e   : > { %1046 = vrot.lane.b32.xlu1 %v3854_v31, %s3486_s28 }
 0x140   : > { %v816_v29 = vpop.permute.xlu1 %815  ;;  %1056 = vrot.lane.b32.xlu0 %v3912_v8, %s3486_s28  ;;  %v3134_v8 = vld [vmem:[#allocation2 + $0x73] sm:$0xff] }
 0x141   : > { %905 = vst.msk [vmem:[#allocation3 + $0x98] sm:$0xff] %vm885_vm2, %v816_v29  ;;  %v3147_v29 = vld [vmem:[#allocation2 + $0xdb] sm:$0xff] }
 0x142   : > { %v826_v21 = vpop.permute.xlu0 %825  ;;  %1048 = vrot.lane.b32.xlu2 %v3890_v58, %s3486_s28 }
 0x143   : > { %910 = vst.msk [vmem:[#allocation3 + $0xc0] sm:$0xff] %vm885_vm2, %v826_v21 }
 0x144   : > { %v836_v30 = vpop.permute.xlu2 %835 }
 0x145   : > { %915 = vst.msk [vmem:[#allocation3 + $0xe8] sm:$0xff] %vm885_vm2, %v836_v30  ;;  %v3152_v30 = vld [vmem:[#allocation2 + $0x103] sm:$0xff] }
 0x146   : > { %1052 = vrot.lane.b32.xlu1 %v3877_v49, %s3486_s28 }
 0x148   : > { %v822_v32 = vpop.permute.xlu1 %821  ;;  %1062 = vrot.lane.b32.xlu0 %v3925_v16, %s3486_s28 }
 0x149   : > { %908 = vst.msk [vmem:[#allocation3 + $0xb0] sm:$0xff] %vm885_vm2, %v822_v32  ;;  %v3148_v32 = vld [vmem:[#allocation2 + $0xe3] sm:$0xff] }
 0x14a   : > { %v832_v31 = vpop.permute.xlu0 %831  ;;  %1054 = vrot.lane.b32.xlu2 %v3906_v5, %s3486_s28  ;;  %v3129_v5 = vld [vmem:[#allocation2 + $0x4b] sm:$0xff] }
 0x14b   : > { %913 = vst.msk [vmem:[#allocation3 + $0xd8] sm:$0xff] %vm885_vm2, %v832_v31 }
 0x14c   : > { %v842_v33 = vpop.permute.xlu2 %841 }
 0x14d   : > { %918 = vst.msk [vmem:[#allocation3 + $0x100] sm:$0xff] %vm885_vm2, %v842_v33 }
 0x14e   : > { %1058 = vrot.lane.b32.xlu1 %v3894_v61, %s3486_s28 }
 0x150   : > { %v828_v36 = vpop.permute.xlu1 %827  ;;  %1215 = vrot.lane.b32.xlu0 %v3122_v35, %s3487_s29  ;;  %v3150_v35 = vld [vmem:[#allocation2 + $0xf3] sm:$0xff] }
 0x151   : > { %911 = vst.msk [vmem:[#allocation3 + $0xc8] sm:$0xff] %vm885_vm2, %v828_v36 }
 0x152   : > { %v838_v38 = vpop.permute.xlu0 %837  ;;  %1060 = vrot.lane.b32.xlu2 %v3919_v13, %s3486_s28 }
 0x153   : > { %916 = vst.msk [vmem:[#allocation3 + $0xf0] sm:$0xff] %vm885_vm2, %v838_v38  ;;  %v3155_v38 = vld [vmem:[#allocation2 + $0x11b] sm:$0xff] }
 0x154   : > { %v848_v42 = vpop.permute.xlu2 %847 }
 0x155   : > { %921 = vst.msk [vmem:[#allocation3 + $0x118] sm:$0xff] %vm885_vm2, %v848_v42 }
 0x156   : > { %1064 = vrot.lane.b32.xlu1 %v3120_v40, %s3486_s28  ;;  %v3151_v40 = vld [vmem:[#allocation2 + $0xfb] sm:$0xff] }
 0x158   : > { %v834_v47 = vpop.permute.xlu1 %833  ;;  %1221 = vrot.lane.b32.xlu0 %v3125_v43, %s3487_s29 }
 0x159   : > { %914 = vst.msk [vmem:[#allocation3 + $0xe0] sm:$0xff] %vm885_vm2, %v834_v47 }
 0x15a   : > { %v844_v49 = vpop.permute.xlu0 %843  ;;  %1066 = vrot.lane.b32.xlu2 %v3121_v45, %s3486_s28  ;;  %v3153_v45 = vld [vmem:[#allocation2 + $0x10b] sm:$0xff] }
 0x15b   : > { %919 = vst.msk [vmem:[#allocation3 + $0x108] sm:$0xff] %vm885_vm2, %v844_v49  ;;  %v3158_v49 = vld [vmem:[#allocation2 + $0x14] sm:$0xff] }
 0x15c   : > { %v1001_v52 = vpop.permute.xlu2 %1000 }
 0x15d   : > { %1107 = vst.msk [vmem:[#allocation3 + $0x10] sm:$0xff] %vm1104_vm3, %v1001_v52 }
 0x15e   : > { %1217 = vrot.lane.b32.xlu1 %v3123_v50, %s3487_s29  ;;  %v3154_v50 = vld [vmem:[#allocation2 + $0x113] sm:$0xff] }
 0x160   : > { %v840_v56 = vpop.permute.xlu1 %839  ;;  %1227 = vrot.lane.b32.xlu0 %v3128_v53, %s3487_s29 }
 0x161   : > { %917 = vst.msk [vmem:[#allocation3 + $0xf8] sm:$0xff] %vm885_vm2, %v840_v56 }
 0x162   : > { %v997_v58 = vpop.permute.xlu0 %996  ;;  %1219 = vrot.lane.b32.xlu2 %v3124_v54, %s3487_s29  ;;  %v3156_v54 = vld [vmem:[#allocation2 + $0x123] sm:$0xff] }
 0x163   : > { %1105 = vst.msk [vmem:[#allocation3] sm:$0xff] %vm1104_vm3, %v997_v58  ;;  %v4106_v58 = vld [vmem:[#allocation2 + $0x2c] sm:$0xff] }
 0x164   : > { %v1007_v61 = vpop.permute.xlu2 %1006 }
 0x165   : > { %1110 = vst.msk [vmem:[#allocation3 + $0x28] sm:$0xff] %vm1104_vm3, %v1007_v61 }
 0x166   : > { %1223 = vrot.lane.b32.xlu1 %v3126_v59, %s3487_s29  ;;  %v3157_v59 = vld [vmem:[#allocation2 + $0x12b] sm:$0xff] }
 0x168   : > { %v846_v2 = vpop.permute.xlu1 %845  ;;  %1233 = vrot.lane.b32.xlu0 %v3131_v62, %s3487_s29 }
 0x169   : > { %920 = vst.msk [vmem:[#allocation3 + $0x110] sm:$0xff] %vm885_vm2, %v846_v2 }
 0x16a   : > { %v1003_v4 = vpop.permute.xlu0 %1002  ;;  %1225 = vrot.lane.b32.xlu2 %v3127_v63, %s3487_s29  ;;  %v3159_v63 = vld [vmem:[#allocation2 + $0x1c] sm:$0xff] }
 0x16b   : > { %1108 = vst.msk [vmem:[#allocation3 + $0x18] sm:$0xff] %vm1104_vm3, %v1003_v4  ;;  %v4115_v4 = vld [vmem:[#allocation2 + $0x44] sm:$0xff] }
 0x16c   : > { %v1013_v7 = vpop.permute.xlu2 %1012 }
 0x16d   : > { %1113 = vst.msk [vmem:[#allocation3 + $0x40] sm:$0xff] %vm1104_vm3, %v1013_v7 }
 0x16e   : > { %1229 = vrot.lane.b32.xlu1 %v3129_v5, %s3487_s29  ;;  %v4118_v5 = vld [vmem:[#allocation2 + $0x24] sm:$0xff] }
 0x170   : > { %v999_v11 = vpop.permute.xlu1 %998  ;;  %1239 = vrot.lane.b32.xlu0 %v3134_v8, %s3487_s29 }
 0x171   : > { %1106 = vst.msk [vmem:[#allocation3 + $0x8] sm:$0xff] %vm1104_vm3, %v999_v11 }
 0x172   : > { %v1009_v13 = vpop.permute.xlu0 %1008  ;;  %1231 = vrot.lane.b32.xlu2 %v3130_v9, %s3487_s29  ;;  %v4125_v9 = vld [vmem:[#allocation2 + $0x34] sm:$0xff] }
 0x173   : > { %1111 = vst.msk [vmem:[#allocation3 + $0x30] sm:$0xff] %vm1104_vm3, %v1009_v13  ;;  %v4129_v13 = vld [vmem:[#allocation2 + $0x5c] sm:$0xff] }
 0x174   : > { %v1019_v16 = vpop.permute.xlu2 %1018 }
 0x175   : > { %1116 = vst.msk [vmem:[#allocation3 + $0x58] sm:$0xff] %vm1104_vm3, %v1019_v16 }
 0x176   : > { %1235 = vrot.lane.b32.xlu1 %v3132_v14, %s3487_s29  ;;  %v4133_v14 = vld [vmem:[#allocation2 + $0x3c] sm:$0xff] }
 0x178   : > { %v1005_v18 = vpop.permute.xlu1 %1004  ;;  %1245 = vrot.lane.b32.xlu0 %v3137_v17, %s3487_s29 }
 0x179   : > { %1109 = vst.msk [vmem:[#allocation3 + $0x20] sm:$0xff] %vm1104_vm3, %v1005_v18 }
 0x17a   : > { %v1015_v20 = vpop.permute.xlu0 %1014  ;;  %1237 = vrot.lane.b32.xlu2 %v3133_v37, %s3487_s29  ;;  %v4140_v37 = vld [vmem:[#allocation2 + $0x4c] sm:$0xff] }
 0x17b   : > { %1114 = vst.msk [vmem:[#allocation3 + $0x48] sm:$0xff] %vm1104_vm3, %v1015_v20  ;;  %v4144_v20 = vld [vmem:[#allocation2 + $0x74] sm:$0xff] }
 0x17c   : > { %v1025_v22 = vpop.permute.xlu2 %1024 }
 0x17d   : > { %1119 = vst.msk [vmem:[#allocation3 + $0x70] sm:$0xff] %vm1104_vm3, %v1025_v22 }
 0x17e   : > { %1241 = vrot.lane.b32.xlu1 %v3135_v44, %s3487_s29  ;;  %v4148_v44 = vld [vmem:[#allocation2 + $0x54] sm:$0xff] }
 0x180   : > { %v1011_v39 = vpop.permute.xlu1 %1010  ;;  %1251 = vrot.lane.b32.xlu0 %v3140_v23, %s3487_s29 }
 0x181   : > { %1112 = vst.msk [vmem:[#allocation3 + $0x38] sm:$0xff] %vm1104_vm3, %v1011_v39 }
 0x182   : > { %v1021_v51 = vpop.permute.xlu0 %1020  ;;  %1243 = vrot.lane.b32.xlu2 %v3136_v27, %s3487_s29  ;;  %v4155_v27 = vld [vmem:[#allocation2 + $0x64] sm:$0xff] }
 0x183   : > { %1117 = vst.msk [vmem:[#allocation3 + $0x60] sm:$0xff] %vm1104_vm3, %v1021_v51  ;;  %v4159_v51 = vld [vmem:[#allocation2 + $0x8c] sm:$0xff] }
 0x184   : > { %v1031_v46 = vpop.permute.xlu2 %1030 }
 0x185   : > { %1122 = vst.msk [vmem:[#allocation3 + $0x88] sm:$0xff] %vm1104_vm3, %v1031_v46 }
 0x186   : > { %1247 = vrot.lane.b32.xlu1 %v3138_v34, %s3487_s29  ;;  %v4163_v34 = vld [vmem:[#allocation2 + $0x6c] sm:$0xff] }
 0x188   : > { %v1017_v55 = vpop.permute.xlu1 %1016  ;;  %1257 = vrot.lane.b32.xlu0 %v3143_v60, %s3487_s29 }
 0x189   : > { %1115 = vst.msk [vmem:[#allocation3 + $0x50] sm:$0xff] %vm1104_vm3, %v1017_v55 }
 0x18a   : > { %v1027_v6 = vpop.permute.xlu0 %1026  ;;  %1249 = vrot.lane.b32.xlu2 %v3139_v41, %s3487_s29  ;;  %v4170_v41 = vld [vmem:[#allocation2 + $0x7c] sm:$0xff] }
 0x18b   : > { %1120 = vst.msk [vmem:[#allocation3 + $0x78] sm:$0xff] %vm1104_vm3, %v1027_v6  ;;  %v4174_v6 = vld [vmem:[#allocation2 + $0xa4] sm:$0xff] }
 0x18c   : > { %v1037_v1 = vpop.permute.xlu2 %1036 }
 0x18d   : > { %1125 = vst.msk [vmem:[#allocation3 + $0xa0] sm:$0xff] %vm1104_vm3, %v1037_v1 }
 0x18e   : > { %1253 = vrot.lane.b32.xlu1 %v3141_v48, %s3487_s29  ;;  %v4178_v48 = vld [vmem:[#allocation2 + $0x84] sm:$0xff] }
 0x190   : > { %v1023_v10 = vpop.permute.xlu1 %1022  ;;  %1263 = vrot.lane.b32.xlu0 %v3146_v15, %s3487_s29 }
 0x191   : > { %1118 = vst.msk [vmem:[#allocation3 + $0x68] sm:$0xff] %vm1104_vm3, %v1023_v10 }
 0x192   : > { %v1033_v24 = vpop.permute.xlu0 %1032  ;;  %1255 = vrot.lane.b32.xlu2 %v3142_v57, %s3487_s29  ;;  %v4185_v57 = vld [vmem:[#allocation2 + $0x94] sm:$0xff] }
 0x193   : > { %1123 = vst.msk [vmem:[#allocation3 + $0x90] sm:$0xff] %vm1104_vm3, %v1033_v24  ;;  %v4189_v24 = vld [vmem:[#allocation2 + $0xbc] sm:$0xff] }
 0x194   : > { %v1043_v25 = vpop.permute.xlu2 %1042 }
 0x195   : > { %1128 = vst.msk [vmem:[#allocation3 + $0xb8] sm:$0xff] %vm1104_vm3, %v1043_v25 }
 0x196   : > { %1259 = vrot.lane.b32.xlu1 %v3144_v3, %s3487_s29  ;;  %v4193_v3 = vld [vmem:[#allocation2 + $0x9c] sm:$0xff] }
 0x198   : > { %v1029_v26 = vpop.permute.xlu1 %1028  ;;  %1269 = vrot.lane.b32.xlu0 %v3149_v19, %s3487_s29 }
 0x199   : > { %1121 = vst.msk [vmem:[#allocation3 + $0x80] sm:$0xff] %vm1104_vm3, %v1029_v26 }
 0x19a   : > { %v1039_v28 = vpop.permute.xlu0 %1038  ;;  %1261 = vrot.lane.b32.xlu2 %v3145_v12, %s3487_s29  ;;  %v4200_v12 = vld [vmem:[#allocation2 + $0xac] sm:$0xff] }
 0x19b   : > { %1126 = vst.msk [vmem:[#allocation3 + $0xa8] sm:$0xff] %vm1104_vm3, %v1039_v28  ;;  %v4204_v28 = vld [vmem:[#allocation2 + $0xd4] sm:$0xff] }
 0x19c   : > { %v1049_v21 = vpop.permute.xlu2 %1048 }
 0x19d   : > { %1131 = vst.msk [vmem:[#allocation3 + $0xd0] sm:$0xff] %vm1104_vm3, %v1049_v21 }
 0x19e   : > { %1265 = vrot.lane.b32.xlu1 %v3147_v29, %s3487_s29  ;;  %v4208_v29 = vld [vmem:[#allocation2 + $0xb4] sm:$0xff] }
 0x1a0   : > { %v1035_v31 = vpop.permute.xlu1 %1034  ;;  %1275 = vrot.lane.b32.xlu0 %v3152_v30, %s3487_s29 }
 0x1a1   : > { %1124 = vst.msk [vmem:[#allocation3 + $0x98] sm:$0xff] %vm1104_vm3, %v1035_v31 }
 0x1a2   : > { %v1045_v33 = vpop.permute.xlu0 %1044  ;;  %1267 = vrot.lane.b32.xlu2 %v3148_v32, %s3487_s29  ;;  %v4215_v32 = vld [vmem:[#allocation2 + $0xc4] sm:$0xff] }
 0x1a3   : > { %1129 = vst.msk [vmem:[#allocation3 + $0xc0] sm:$0xff] %vm1104_vm3, %v1045_v33  ;;  %v4219_v33 = vld [vmem:[#allocation2 + $0xec] sm:$0xff] }
 0x1a4   : > { %v1055_v36 = vpop.permute.xlu2 %1054 }
 0x1a5   : > { %1134 = vst.msk [vmem:[#allocation3 + $0xe8] sm:$0xff] %vm1104_vm3, %v1055_v36 }
 0x1a6   : > { %1271 = vrot.lane.b32.xlu1 %v3150_v35, %s3487_s29  ;;  %v4223_v35 = vld [vmem:[#allocation2 + $0xcc] sm:$0xff] }
 0x1a8   : > { %v1041_v42 = vpop.permute.xlu1 %1040  ;;  %1281 = vrot.lane.b32.xlu0 %v3155_v38, %s3487_s29 }
 0x1a9   : > { %1127 = vst.msk [vmem:[#allocation3 + $0xb0] sm:$0xff] %vm1104_vm3, %v1041_v42 }
 0x1aa   : > { %v1051_v43 = vpop.permute.xlu0 %1050  ;;  %1273 = vrot.lane.b32.xlu2 %v3151_v40, %s3487_s29  ;;  %v4230_v40 = vld [vmem:[#allocation2 + $0xdc] sm:$0xff] }
 0x1ab   : > { %1132 = vst.msk [vmem:[#allocation3 + $0xd8] sm:$0xff] %vm1104_vm3, %v1051_v43  ;;  %v4234_v43 = vld [vmem:[#allocation2 + $0x104] sm:$0xff] }
 0x1ac   : > { %v1061_v47 = vpop.permute.xlu2 %1060 }
 0x1ad   : > { %1137 = vst.msk [vmem:[#allocation3 + $0x100] sm:$0xff] %vm1104_vm3, %v1061_v47 }
 0x1ae   : > { %1277 = vrot.lane.b32.xlu1 %v3153_v45, %s3487_s29  ;;  %v4238_v45 = vld [vmem:[#allocation2 + $0xe4] sm:$0xff] }
 0x1b0   : > { %v1047_v52 = vpop.permute.xlu1 %1046  ;;  %1434 = vrot.lane.b32.xlu0 %v3158_v49, %s3488_s30 }
 0x1b1   : > { %1130 = vst.msk [vmem:[#allocation3 + $0xc8] sm:$0xff] %vm1104_vm3, %v1047_v52 }
 0x1b2   : > { %v1057_v53 = vpop.permute.xlu0 %1056  ;;  %1279 = vrot.lane.b32.xlu2 %v3154_v50, %s3487_s29  ;;  %v4245_v50 = vld [vmem:[#allocation2 + $0xf4] sm:$0xff] }
 0x1b3   : > { %1135 = vst.msk [vmem:[#allocation3 + $0xf0] sm:$0xff] %vm1104_vm3, %v1057_v53  ;;  %v4249_v53 = vld [vmem:[#allocation2 + $0x11c] sm:$0xff] }
 0x1b4   : > { %v1067_v56 = vpop.permute.xlu2 %1066 }
 0x1b5   : > { %1140 = vst.msk [vmem:[#allocation3 + $0x118] sm:$0xff] %vm1104_vm3, %v1067_v56 }
 0x1b6   : > { %1283 = vrot.lane.b32.xlu1 %v3156_v54, %s3487_s29  ;;  %v4253_v54 = vld [vmem:[#allocation2 + $0xfc] sm:$0xff] }
 0x1b8   : > { %v1053_v61 = vpop.permute.xlu1 %1052  ;;  %1440 = vrot.lane.b32.xlu0 %v4106_v58, %s3488_s30 }
 0x1b9   : > { %1133 = vst.msk [vmem:[#allocation3 + $0xe0] sm:$0xff] %vm1104_vm3, %v1053_v61  ;;  %v4260_v61 = vld [vmem:[#allocation2 + $0x10c] sm:$0xff] }
 0x1ba   : > { %v1063_v62 = vpop.permute.xlu0 %1062  ;;  %1285 = vrot.lane.b32.xlu2 %v3157_v59, %s3487_s29 }
 0x1bb   : > { %1138 = vst.msk [vmem:[#allocation3 + $0x108] sm:$0xff] %vm1104_vm3, %v1063_v62 }
 0x1bc   : > { %v1220_v2 = vpop.permute.xlu2 %1219 }
 0x1bd   : > { %1326 = vst.msk [vmem:[#allocation3 + $0x10] sm:$0xff] %vm1323_vm4, %v1220_v2 }
 0x1be   : > { %1436 = vrot.lane.b32.xlu1 %v3159_v63, %s3488_s30  ;;  %v4266_v63 = vld [vmem:[#allocation2 + $0x114] sm:$0xff] }
 0x1c0   : > { %v1059_v7 = vpop.permute.xlu1 %1058  ;;  %1446 = vrot.lane.b32.xlu0 %v4115_v4, %s3488_s30 }
 0x1c1   : > { %1136 = vst.msk [vmem:[#allocation3 + $0xf8] sm:$0xff] %vm1104_vm3, %v1059_v7 }
 0x1c2   : > { %v1216_v8 = vpop.permute.xlu0 %1215  ;;  %1438 = vrot.lane.b32.xlu2 %v4118_v5, %s3488_s30 }
 0x1c3   : > { %1324 = vst.msk [vmem:[#allocation3] sm:$0xff] %vm1323_vm4, %v1216_v8  ;;  %v4273_v8 = vld [vmem:[#allocation2 + $0x124] sm:$0xff] }
 0x1c4   : > { %v1226_v11 = vpop.permute.xlu2 %1225 }
 0x1c5   : > { %1329 = vst.msk [vmem:[#allocation3 + $0x28] sm:$0xff] %vm1323_vm4, %v1226_v11 }
 0x1c6   : > { %1442 = vrot.lane.b32.xlu1 %v4125_v9, %s3488_s30 }
 0x1c8   : > { %v1065_v16 = vpop.permute.xlu1 %1064  ;;  %1452 = vrot.lane.b32.xlu0 %v4129_v13, %s3488_s30 }
 0x1c9   : > { %1139 = vst.msk [vmem:[#allocation3 + $0x110] sm:$0xff] %vm1104_vm3, %v1065_v16  ;;  %v4279_v16 = vld [vmem:[#allocation2 + $0x12c] sm:$0xff] }
 0x1ca   : > { %v1222_v17 = vpop.permute.xlu0 %1221  ;;  %1444 = vrot.lane.b32.xlu2 %v4133_v14, %s3488_s30 }
 0x1cb   : > { %1327 = vst.msk [vmem:[#allocation3 + $0x18] sm:$0xff] %vm1323_vm4, %v1222_v17 }
 0x1cc   : > { %v1232_v18 = vpop.permute.xlu2 %1231 }
 0x1cd   : > { %1332 = vst.msk [vmem:[#allocation3 + $0x40] sm:$0xff] %vm1323_vm4, %v1232_v18 }
 0x1ce   : > { %1448 = vrot.lane.b32.xlu1 %v4140_v37, %s3488_s30 }
 0x1d0   : > { %v1218_v22 = vpop.permute.xlu1 %1217  ;;  %1458 = vrot.lane.b32.xlu0 %v4144_v20, %s3488_s30 }
 0x1d1   : > { %1325 = vst.msk [vmem:[#allocation3 + $0x8] sm:$0xff] %vm1323_vm4, %v1218_v22 }
 0x1d2   : > { %v1228_v23 = vpop.permute.xlu0 %1227  ;;  %1450 = vrot.lane.b32.xlu2 %v4148_v44, %s3488_s30 }
 0x1d3   : > { %1330 = vst.msk [vmem:[#allocation3 + $0x30] sm:$0xff] %vm1323_vm4, %v1228_v23 }
 0x1d4   : > { %v1238_v39 = vpop.permute.xlu2 %1237 }
 0x1d5   : > { %1335 = vst.msk [vmem:[#allocation3 + $0x58] sm:$0xff] %vm1323_vm4, %v1238_v39 }
 0x1d6   : > { %1454 = vrot.lane.b32.xlu1 %v4155_v27, %s3488_s30 }
 0x1d8   : > { %v1224_v46 = vpop.permute.xlu1 %1223  ;;  %1464 = vrot.lane.b32.xlu0 %v4159_v51, %s3488_s30 }
 0x1d9   : > { %1328 = vst.msk [vmem:[#allocation3 + $0x20] sm:$0xff] %vm1323_vm4, %v1224_v46 }
 0x1da   : > { %v1234_v60 = vpop.permute.xlu0 %1233  ;;  %1456 = vrot.lane.b32.xlu2 %v4163_v34, %s3488_s30 }
 0x1db   : > { %1333 = vst.msk [vmem:[#allocation3 + $0x48] sm:$0xff] %vm1323_vm4, %v1234_v60 }
 0x1dc   : > { %v1244_v55 = vpop.permute.xlu2 %1243 }
 0x1dd   : > { %1338 = vst.msk [vmem:[#allocation3 + $0x70] sm:$0xff] %vm1323_vm4, %v1244_v55 }
 0x1de   : > { %1460 = vrot.lane.b32.xlu1 %v4170_v41, %s3488_s30 }
 0x1e0   : > { %v1230_v1 = vpop.permute.xlu1 %1229  ;;  %1470 = vrot.lane.b32.xlu0 %v4174_v6, %s3488_s30 }
 0x1e1   : > { %1331 = vst.msk [vmem:[#allocation3 + $0x38] sm:$0xff] %vm1323_vm4, %v1230_v1 }
 0x1e2   : > { %v1240_v15 = vpop.permute.xlu0 %1239  ;;  %1462 = vrot.lane.b32.xlu2 %v4178_v48, %s3488_s30 }
 0x1e3   : > { %1336 = vst.msk [vmem:[#allocation3 + $0x60] sm:$0xff] %vm1323_vm4, %v1240_v15 }
 0x1e4   : > { %v1250_v10 = vpop.permute.xlu2 %1249 }
 0x1e5   : > { %1341 = vst.msk [vmem:[#allocation3 + $0x88] sm:$0xff] %vm1323_vm4, %v1250_v10 }
 0x1e6   : > { %1466 = vrot.lane.b32.xlu1 %v4185_v57, %s3488_s30 }
 0x1e8   : > { %v1236_v25 = vpop.permute.xlu1 %1235  ;;  %1476 = vrot.lane.b32.xlu0 %v4189_v24, %s3488_s30 }
 0x1e9   : > { %1334 = vst.msk [vmem:[#allocation3 + $0x50] sm:$0xff] %vm1323_vm4, %v1236_v25 }
 0x1ea   : > { %v1246_v19 = vpop.permute.xlu0 %1245  ;;  %1468 = vrot.lane.b32.xlu2 %v4193_v3, %s3488_s30 }
 0x1eb   : > { %1339 = vst.msk [vmem:[#allocation3 + $0x78] sm:$0xff] %vm1323_vm4, %v1246_v19 }
 0x1ec   : > { %v1256_v26 = vpop.permute.xlu2 %1255 }
 0x1ed   : > { %1344 = vst.msk [vmem:[#allocation3 + $0xa0] sm:$0xff] %vm1323_vm4, %v1256_v26 }
 0x1ee   : > { %1472 = vrot.lane.b32.xlu1 %v4200_v12, %s3488_s30 }
 0x1f0   : > { %v1242_v21 = vpop.permute.xlu1 %1241  ;;  %1482 = vrot.lane.b32.xlu0 %v4204_v28, %s3488_s30 }
 0x1f1   : > { %1337 = vst.msk [vmem:[#allocation3 + $0x68] sm:$0xff] %vm1323_vm4, %v1242_v21 }
 0x1f2   : > { %v1252_v30 = vpop.permute.xlu0 %1251  ;;  %1474 = vrot.lane.b32.xlu2 %v4208_v29, %s3488_s30 }
 0x1f3   : > { %1342 = vst.msk [vmem:[#allocation3 + $0x90] sm:$0xff] %vm1323_vm4, %v1252_v30  ;;  %v3228_v30 = vld [vmem:[#allocation2 + $0x134] sm:$0xff] }
 0x1f4   : > { %v1262_v31 = vpop.permute.xlu2 %1261 }
 0x1f5   : > { %1347 = vst.msk [vmem:[#allocation3 + $0xb8] sm:$0xff] %vm1323_vm4, %v1262_v31  ;;  %v3233_v31 = vld [vmem:[#allocation2 + $0x3d] sm:$0xff] }
 0x1f6   : > { %1478 = vrot.lane.b32.xlu1 %v4215_v32, %s3488_s30 }
 0x1f8   : > { %v1248_v36 = vpop.permute.xlu1 %1247  ;;  %1488 = vrot.lane.b32.xlu0 %v4219_v33, %s3488_s30 }
 0x1f9   : > { %1340 = vst.msk [vmem:[#allocation3 + $0x80] sm:$0xff] %vm1323_vm4, %v1248_v36 }
 0x1fa   : > { %v1258_v38 = vpop.permute.xlu0 %1257  ;;  %1480 = vrot.lane.b32.xlu2 %v4223_v35, %s3488_s30 }
 0x1fb   : > { %1345 = vst.msk [vmem:[#allocation3 + $0xa8] sm:$0xff] %vm1323_vm4, %v1258_v38  ;;  %v3231_v38 = vld [vmem:[#allocation2 + $0x2d] sm:$0xff] }
 0x1fc   : > { %v1268_v42 = vpop.permute.xlu2 %1267 }
 0x1fd   : > { %1350 = vst.msk [vmem:[#allocation3 + $0xd0] sm:$0xff] %vm1323_vm4, %v1268_v42  ;;  %v3236_v42 = vld [vmem:[#allocation2 + $0x55] sm:$0xff] }
 0x1fe   : > { %1484 = vrot.lane.b32.xlu1 %v4230_v40, %s3488_s30 }
 0x200   : > { %v1254_v47 = vpop.permute.xlu1 %1253  ;;  %1494 = vrot.lane.b32.xlu0 %v4234_v43, %s3488_s30 }
 0x201   : > { %1343 = vst.msk [vmem:[#allocation3 + $0x98] sm:$0xff] %vm1323_vm4, %v1254_v47 }
 0x202   : > { %v1264_v49 = vpop.permute.xlu0 %1263  ;;  %1486 = vrot.lane.b32.xlu2 %v4238_v45, %s3488_s30 }
 0x203   : > { %1348 = vst.msk [vmem:[#allocation3 + $0xc0] sm:$0xff] %vm1323_vm4, %v1264_v49  ;;  %v3234_v49 = vld [vmem:[#allocation2 + $0x45] sm:$0xff] }
 0x204   : > { %v1274_v52 = vpop.permute.xlu2 %1273 }
 0x205   : > { %1353 = vst.msk [vmem:[#allocation3 + $0xe8] sm:$0xff] %vm1323_vm4, %v1274_v52  ;;  %v3239_v52 = vld [vmem:[#allocation2 + $0x6d] sm:$0xff] }
 0x206   : > { %1490 = vrot.lane.b32.xlu1 %v4245_v50, %s3488_s30 }
 0x208   : > { %v1260_v56 = vpop.permute.xlu1 %1259  ;;  %1500 = vrot.lane.b32.xlu0 %v4249_v53, %s3488_s30 }
 0x209   : > { %1346 = vst.msk [vmem:[#allocation3 + $0xb0] sm:$0xff] %vm1323_vm4, %v1260_v56 }
 0x20a   : > { %v1270_v59 = vpop.permute.xlu0 %1269  ;;  %1492 = vrot.lane.b32.xlu2 %v4253_v54, %s3488_s30 }
 0x20b   : > { %1351 = vst.msk [vmem:[#allocation3 + $0xd8] sm:$0xff] %vm1323_vm4, %v1270_v59  ;;  %v3237_v59 = vld [vmem:[#allocation2 + $0x5d] sm:$0xff] }
 0x20c   : > { %v1280_v62 = vpop.permute.xlu2 %1279 }
 0x20d   : > { %1356 = vst.msk [vmem:[#allocation3 + $0x100] sm:$0xff] %vm1323_vm4, %v1280_v62  ;;  %v3242_v62 = vld [vmem:[#allocation2 + $0x85] sm:$0xff] }
 0x20e   : > { %1496 = vrot.lane.b32.xlu1 %v4260_v61, %s3488_s30 }
 0x210   : > { %v1266_v2 = vpop.permute.xlu1 %1265  ;;  %1653 = vrot.lane.b32.xlu0 %v4118_v5, %s3489_s6 }
 0x211   : > { %1349 = vst.msk [vmem:[#allocation3 + $0xc8] sm:$0xff] %vm1323_vm4, %v1266_v2 }
 0x212   : > { %v1276_v7 = vpop.permute.xlu0 %1275  ;;  %1498 = vrot.lane.b32.xlu2 %v4266_v63, %s3488_s30 }
 0x213   : > { %1354 = vst.msk [vmem:[#allocation3 + $0xf0] sm:$0xff] %vm1323_vm4, %v1276_v7 }
 0x214   : > { %v1286_v11 = vpop.permute.xlu2 %1285 }
 0x215   : > { %1359 = vst.msk [vmem:[#allocation3 + $0x118] sm:$0xff] %vm1323_vm4, %v1286_v11 }
 0x216   : > { %1502 = vrot.lane.b32.xlu1 %v4273_v8, %s3488_s30 }
 0x218   : > { %v1272_v17 = vpop.permute.xlu1 %1271  ;;  %1659 = vrot.lane.b32.xlu0 %v4133_v14, %s3489_s6 }
 0x219   : > { %1352 = vst.msk [vmem:[#allocation3 + $0xe0] sm:$0xff] %vm1323_vm4, %v1272_v17  ;;  %v3241_v17 = vld [vmem:[#allocation2 + $0x7d] sm:$0xff] }
 0x21a   : > { %v1282_v5 = vpop.permute.xlu0 %1281  ;;  %1504 = vrot.lane.b32.xlu2 %v4279_v16, %s3488_s30  ;;  %s4710_s30 = scalar_lea.vmem %s4867_s4, %s4874_s18 }
 0x21b   : > { %1357 = vst.msk [vmem:[#allocation3 + $0x108] sm:$0xff] %vm1323_vm4, %v1282_v5 }
 0x21c   : > { %v1439_v18 = vpop.permute.xlu2 %1438  ;;  %269 = vst [vmem:[%s4710_s30] sm:$0x1] %v3483_v0 }
 0x21d   : > { %1545 = vst.msk [vmem:[#allocation3 + $0x10] sm:$0xff] %vm1542_vm5, %v1439_v18 }
 0x21e   : > { %1655 = vrot.lane.b32.xlu1 %v4106_v58, %s3489_s6 }
 0x220   : > { %v1278_v22 = vpop.permute.xlu1 %1277  ;;  %1665 = vrot.lane.b32.xlu0 %v4148_v44, %s3489_s6 }
 0x221   : > { %1355 = vst.msk [vmem:[#allocation3 + $0xf8] sm:$0xff] %vm1323_vm4, %v1278_v22  ;;  %v3243_v22 = vld [vmem:[#allocation2 + $0x8d] sm:$0xff] }
 0x222   : > { %v1435_v14 = vpop.permute.xlu0 %1434  ;;  %1657 = vrot.lane.b32.xlu2 %v4125_v9, %s3489_s6 }
 0x223   : > { %1543 = vst.msk [vmem:[#allocation3] sm:$0xff] %vm1542_vm5, %v1435_v14 }
 0x224   : > { %v1445_v23 = vpop.permute.xlu2 %1444 }
 0x225   : > { %1548 = vst.msk [vmem:[#allocation3 + $0x28] sm:$0xff] %vm1542_vm5, %v1445_v23  ;;  %v3248_v23 = vld [vmem:[#allocation2 + $0xb5] sm:$0xff] }
 0x226   : > { %1661 = vrot.lane.b32.xlu1 %v4115_v4, %s3489_s6 }
 0x228   : > { %v1284_v39 = vpop.permute.xlu1 %1283  ;;  %1671 = vrot.lane.b32.xlu0 %v4163_v34, %s3489_s6 }
 0x229   : > { %1358 = vst.msk [vmem:[#allocation3 + $0x110] sm:$0xff] %vm1323_vm4, %v1284_v39  ;;  %v3244_v39 = vld [vmem:[#allocation2 + $0x95] sm:$0xff] }
 0x22a   : > { %v1441_v58 = vpop.permute.xlu0 %1440  ;;  %1663 = vrot.lane.b32.xlu2 %v4140_v37, %s3489_s6 }
 0x22b   : > { %1546 = vst.msk [vmem:[#allocation3 + $0x18] sm:$0xff] %vm1542_vm5, %v1441_v58 }
 0x22c   : > { %v1451_v9 = vpop.permute.xlu2 %1450 }
 0x22d   : > { %1551 = vst.msk [vmem:[#allocation3 + $0x40] sm:$0xff] %vm1542_vm5, %v1451_v9 }
 0x22e   : > { %1667 = vrot.lane.b32.xlu1 %v4129_v13, %s3489_s6 }
 0x230   : > { %v1437_v44 = vpop.permute.xlu1 %1436  ;;  %1677 = vrot.lane.b32.xlu0 %v4178_v48, %s3489_s6 }
 0x231   : > { %1544 = vst.msk [vmem:[#allocation3 + $0x8] sm:$0xff] %vm1542_vm5, %v1437_v44  ;;  %v3246_v44 = vld [vmem:[#allocation2 + $0xa5] sm:$0xff] }
 0x232   : > { %v1447_v4 = vpop.permute.xlu0 %1446  ;;  %1669 = vrot.lane.b32.xlu2 %v4155_v27, %s3489_s6 }
 0x233   : > { %1549 = vst.msk [vmem:[#allocation3 + $0x30] sm:$0xff] %vm1542_vm5, %v1447_v4 }
 0x234   : > { %v1457_v37 = vpop.permute.xlu2 %1456 }
 0x235   : > { %1554 = vst.msk [vmem:[#allocation3 + $0x58] sm:$0xff] %vm1542_vm5, %v1457_v37  ;;  %v3251_v37 = vld [vmem:[#allocation2 + $0xcd] sm:$0xff] }
 0x236   : > { %1673 = vrot.lane.b32.xlu1 %v4144_v20, %s3489_s6 }
 0x238   : > { %v1443_v34 = vpop.permute.xlu1 %1442  ;;  %1683 = vrot.lane.b32.xlu0 %v4193_v3, %s3489_s6 }
 0x239   : > { %1547 = vst.msk [vmem:[#allocation3 + $0x20] sm:$0xff] %vm1542_vm5, %v1443_v34  ;;  %v3247_v34 = vld [vmem:[#allocation2 + $0xad] sm:$0xff] }
 0x23a   : > { %v1453_v13 = vpop.permute.xlu0 %1452  ;;  %1675 = vrot.lane.b32.xlu2 %v4170_v41, %s3489_s6 }
 0x23b   : > { %1552 = vst.msk [vmem:[#allocation3 + $0x48] sm:$0xff] %vm1542_vm5, %v1453_v13 }
 0x23c   : > { %v1463_v27 = vpop.permute.xlu2 %1462 }
 0x23d   : > { %1557 = vst.msk [vmem:[#allocation3 + $0x70] sm:$0xff] %vm1542_vm5, %v1463_v27 }
 0x23e   : > { %1679 = vrot.lane.b32.xlu1 %v4159_v51, %s3489_s6 }
 0x240   : > { %v1449_v46 = vpop.permute.xlu1 %1448  ;;  %1689 = vrot.lane.b32.xlu0 %v4208_v29, %s3489_s6 }
 0x241   : > { %1550 = vst.msk [vmem:[#allocation3 + $0x38] sm:$0xff] %vm1542_vm5, %v1449_v46  ;;  %v3249_v46 = vld [vmem:[#allocation2 + $0xbd] sm:$0xff] }
 0x242   : > { %v1459_v20 = vpop.permute.xlu0 %1458  ;;  %1681 = vrot.lane.b32.xlu2 %v4185_v57, %s3489_s6 }
 0x243   : > { %1555 = vst.msk [vmem:[#allocation3 + $0x60] sm:$0xff] %vm1542_vm5, %v1459_v20 }
 0x244   : > { %v1469_v60 = vpop.permute.xlu2 %1468 }
 0x245   : > { %1560 = vst.msk [vmem:[#allocation3 + $0x88] sm:$0xff] %vm1542_vm5, %v1469_v60  ;;  %v3254_v60 = vld [vmem:[#allocation2 + $0xe5] sm:$0xff] }
 0x246   : > { %1685 = vrot.lane.b32.xlu1 %v4174_v6, %s3489_s6 }
 0x248   : > { %v1455_v41 = vpop.permute.xlu1 %1454  ;;  %1695 = vrot.lane.b32.xlu0 %v4223_v35, %s3489_s6 }
 0x249   : > { %1553 = vst.msk [vmem:[#allocation3 + $0x50] sm:$0xff] %vm1542_vm5, %v1455_v41  ;;  %v3250_v41 = vld [vmem:[#allocation2 + $0xc5] sm:$0xff] }
 0x24a   : > { %v1465_v51 = vpop.permute.xlu0 %1464  ;;  %1687 = vrot.lane.b32.xlu2 %v4200_v12, %s3489_s6 }
 0x24b   : > { %1558 = vst.msk [vmem:[#allocation3 + $0x78] sm:$0xff] %vm1542_vm5, %v1465_v51 }
 0x24c   : > { %v1475_v55 = vpop.permute.xlu2 %1474 }
 0x24d   : > { %1563 = vst.msk [vmem:[#allocation3 + $0xa0] sm:$0xff] %vm1542_vm5, %v1475_v55 }
 0x24e   : > { %1691 = vrot.lane.b32.xlu1 %v4189_v24, %s3489_s6 }
 0x250   : > { %v1461_v48 = vpop.permute.xlu1 %1460  ;;  %1701 = vrot.lane.b32.xlu0 %v4238_v45, %s3489_s6 }
 0x251   : > { %1556 = vst.msk [vmem:[#allocation3 + $0x68] sm:$0xff] %vm1542_vm5, %v1461_v48  ;;  %v3252_v48 = vld [vmem:[#allocation2 + $0xd5] sm:$0xff] }
 0x252   : > { %v1471_v6 = vpop.permute.xlu0 %1470  ;;  %1693 = vrot.lane.b32.xlu2 %v4215_v32, %s3489_s6 }
 0x253   : > { %1561 = vst.msk [vmem:[#allocation3 + $0x90] sm:$0xff] %vm1542_vm5, %v1471_v6 }
 0x254   : > { %v1481_v1 = vpop.permute.xlu2 %1480 }
 0x255   : > { %1566 = vst.msk [vmem:[#allocation3 + $0xb8] sm:$0xff] %vm1542_vm5, %v1481_v1  ;;  %v3257_v1 = vld [vmem:[#allocation2 + $0xfd] sm:$0xff] }
 0x256   : > { %1697 = vrot.lane.b32.xlu1 %v4204_v28, %s3489_s6  ;;  %v3230_v28 = vld [vmem:[#allocation2 + $0x25] sm:$0xff] }
 0x258   : > { %v1467_v15 = vpop.permute.xlu1 %1466  ;;  %1707 = vrot.lane.b32.xlu0 %v4253_v54, %s3489_s6 }
 0x259   : > { %1559 = vst.msk [vmem:[#allocation3 + $0x80] sm:$0xff] %vm1542_vm5, %v1467_v15  ;;  %v3253_v15 = vld [vmem:[#allocation2 + $0xdd] sm:$0xff] }
 0x25a   : > { %v1477_v57 = vpop.permute.xlu0 %1476  ;;  %1699 = vrot.lane.b32.xlu2 %v4230_v40, %s3489_s6 }
 0x25b   : > { %1564 = vst.msk [vmem:[#allocation3 + $0xa8] sm:$0xff] %vm1542_vm5, %v1477_v57 }
 0x25c   : > { %v1487_v10 = vpop.permute.xlu2 %1486 }
 0x25d   : > { %1569 = vst.msk [vmem:[#allocation3 + $0xd0] sm:$0xff] %vm1542_vm5, %v1487_v10 }
 0x25e   : > { %1703 = vrot.lane.b32.xlu1 %v4219_v33, %s3489_s6  ;;  %v3229_v33 = vld [vmem:[#allocation2 + $0x13c] sm:$0xff] }
 0x260   : > { %v1473_v24 = vpop.permute.xlu1 %1472  ;;  %1713 = vrot.lane.b32.xlu0 %v4266_v63, %s3489_s6  ;;  %v3238_v63 = vld [vmem:[#allocation2 + $0x65] sm:$0xff] }
 0x261   : > { %1562 = vst.msk [vmem:[#allocation3 + $0x98] sm:$0xff] %vm1542_vm5, %v1473_v24  ;;  %v3255_v24 = vld [vmem:[#allocation2 + $0xed] sm:$0xff] }
 0x262   : > { %v1483_v3 = vpop.permute.xlu0 %1482  ;;  %1705 = vrot.lane.b32.xlu2 %v4245_v50, %s3489_s6 }
 0x263   : > { %1567 = vst.msk [vmem:[#allocation3 + $0xc0] sm:$0xff] %vm1542_vm5, %v1483_v3 }
 0x264   : > { %v1493_v25 = vpop.permute.xlu2 %1492 }
 0x265   : > { %1572 = vst.msk [vmem:[#allocation3 + $0xe8] sm:$0xff] %vm1542_vm5, %v1493_v25  ;;  %v3260_v25 = vld [vmem:[#allocation2 + $0x115] sm:$0xff] }
 0x266   : > { %1709 = vrot.lane.b32.xlu1 %v4234_v43, %s3489_s6  ;;  %v3232_v43 = vld [vmem:[#allocation2 + $0x35] sm:$0xff] }
 0x268   : > { %v1479_v19 = vpop.permute.xlu1 %1478  ;;  %1719 = vrot.lane.b32.xlu0 %v4279_v16, %s3489_s6  ;;  %v3245_v16 = vld [vmem:[#allocation2 + $0x9d] sm:$0xff] }
 0x269   : > { %1565 = vst.msk [vmem:[#allocation3 + $0xb0] sm:$0xff] %vm1542_vm5, %v1479_v19  ;;  %v3256_v19 = vld [vmem:[#allocation2 + $0xf5] sm:$0xff] }
 0x26a   : > { %v1489_v12 = vpop.permute.xlu0 %1488  ;;  %1711 = vrot.lane.b32.xlu2 %v4260_v61, %s3489_s6 }
 0x26b   : > { %1570 = vst.msk [vmem:[#allocation3 + $0xd8] sm:$0xff] %vm1542_vm5, %v1489_v12 }
 0x26c   : > { %v1499_v26 = vpop.permute.xlu2 %1498 }
 0x26d   : > { %1575 = vst.msk [vmem:[#allocation3 + $0x100] sm:$0xff] %vm1542_vm5, %v1499_v26 }
 0x26e   : > { %1715 = vrot.lane.b32.xlu1 %v4249_v53, %s3489_s6  ;;  %v3235_v53 = vld [vmem:[#allocation2 + $0x4d] sm:$0xff] }
 0x270   : > { %v1485_v29 = vpop.permute.xlu1 %1484  ;;  %1872 = vrot.lane.b32.xlu0 %v3230_v28, %s3490_s7  ;;  %v3258_v28 = vld [vmem:[#allocation2 + $0x105] sm:$0xff] }
 0x271   : > { %1568 = vst.msk [vmem:[#allocation3 + $0xc8] sm:$0xff] %vm1542_vm5, %v1485_v29 }
 0x272   : > { %v1495_v21 = vpop.permute.xlu0 %1494  ;;  %1717 = vrot.lane.b32.xlu2 %v4273_v8, %s3489_s6  ;;  %v3240_v8 = vld [vmem:[#allocation2 + $0x75] sm:$0xff] }
 0x273   : > { %1573 = vst.msk [vmem:[#allocation3 + $0xf0] sm:$0xff] %vm1542_vm5, %v1495_v21  ;;  %v3263_v21 = vld [vmem:[#allocation2 + $0x12d] sm:$0xff] }
 0x274   : > { %v1505_v32 = vpop.permute.xlu2 %1504 }
 0x275   : > { %1578 = vst.msk [vmem:[#allocation3 + $0x118] sm:$0xff] %vm1542_vm5, %v1505_v32 }
 0x276   : > { %1721 = vrot.lane.b32.xlu1 %v3228_v30, %s3489_s6  ;;  %v3259_v30 = vld [vmem:[#allocation2 + $0x10d] sm:$0xff] }
 0x278   : > { %v1491_v35 = vpop.permute.xlu1 %1490  ;;  %1878 = vrot.lane.b32.xlu0 %v3233_v31, %s3490_s7 }
 0x279   : > { %1571 = vst.msk [vmem:[#allocation3 + $0xe0] sm:$0xff] %vm1542_vm5, %v1491_v35 }
 0x27a   : > { %v1501_v36 = vpop.permute.xlu0 %1500  ;;  %1723 = vrot.lane.b32.xlu2 %v3229_v33, %s3489_s6  ;;  %v3261_v33 = vld [vmem:[#allocation2 + $0x11d] sm:$0xff] }
 0x27b   : > { %1576 = vst.msk [vmem:[#allocation3 + $0x108] sm:$0xff] %vm1542_vm5, %v1501_v36  ;;  %v3266_v36 = vld [vmem:[#allocation2 + $0x26] sm:$0xff] }
 0x27c   : > { %v1658_v40 = vpop.permute.xlu2 %1657 }
 0x27d   : > { %1764 = vst.msk [vmem:[#allocation3 + $0x10] sm:$0xff] %vm1761_vm6, %v1658_v40 }
 0x27e   : > { %1874 = vrot.lane.b32.xlu1 %v3231_v38, %s3490_s7  ;;  %v3262_v38 = vld [vmem:[#allocation2 + $0x125] sm:$0xff] }
 0x280   : > { %v1497_v45 = vpop.permute.xlu1 %1496  ;;  %1884 = vrot.lane.b32.xlu0 %v3236_v42, %s3490_s7 }
 0x281   : > { %1574 = vst.msk [vmem:[#allocation3 + $0xf8] sm:$0xff] %vm1542_vm5, %v1497_v45 }
 0x282   : > { %v1654_v47 = vpop.permute.xlu0 %1653  ;;  %1876 = vrot.lane.b32.xlu2 %v3232_v43, %s3490_s7  ;;  %v3264_v43 = vld [vmem:[#allocation2 + $0x135] sm:$0xff] }
 0x283   : > { %1762 = vst.msk [vmem:[#allocation3] sm:$0xff] %vm1761_vm6, %v1654_v47  ;;  %v3269_v47 = vld [vmem:[#allocation2 + $0x3e] sm:$0xff] }
 0x284   : > { %v1664_v50 = vpop.permute.xlu2 %1663 }
 0x285   : > { %1767 = vst.msk [vmem:[#allocation3 + $0x28] sm:$0xff] %vm1761_vm6, %v1664_v50 }
 0x286   : > { %1880 = vrot.lane.b32.xlu1 %v3234_v49, %s3490_s7  ;;  %v3265_v49 = vld [vmem:[#allocation2 + $0x13d] sm:$0xff] }
 0x288   : > { %v1503_v54 = vpop.permute.xlu1 %1502  ;;  %1890 = vrot.lane.b32.xlu0 %v3239_v52, %s3490_s7 }
 0x289   : > { %1577 = vst.msk [vmem:[#allocation3 + $0x110] sm:$0xff] %vm1542_vm5, %v1503_v54 }
 0x28a   : > { %v1660_v56 = vpop.permute.xlu0 %1659  ;;  %1882 = vrot.lane.b32.xlu2 %v3235_v53, %s3490_s7  ;;  %v3267_v53 = vld [vmem:[#allocation2 + $0x2e] sm:$0xff] }
 0x28b   : > { %1765 = vst.msk [vmem:[#allocation3 + $0x18] sm:$0xff] %vm1761_vm6, %v1660_v56  ;;  %v3272_v56 = vld [vmem:[#allocation2 + $0x56] sm:$0xff] }
 0x28c   : > { %v1670_v61 = vpop.permute.xlu2 %1669 }
 0x28d   : > { %1770 = vst.msk [vmem:[#allocation3 + $0x40] sm:$0xff] %vm1761_vm6, %v1670_v61 }
 0x28e   : > { %1886 = vrot.lane.b32.xlu1 %v3237_v59, %s3490_s7  ;;  %v3268_v59 = vld [vmem:[#allocation2 + $0x36] sm:$0xff] }
 0x290   : > { %v1656_v2 = vpop.permute.xlu1 %1655  ;;  %1896 = vrot.lane.b32.xlu0 %v3242_v62, %s3490_s7 }
 0x291   : > { %1763 = vst.msk [vmem:[#allocation3 + $0x8] sm:$0xff] %vm1761_vm6, %v1656_v2 }
 0x292   : > { %v1666_v7 = vpop.permute.xlu0 %1665  ;;  %1888 = vrot.lane.b32.xlu2 %v3238_v63, %s3490_s7  ;;  %v3270_v63 = vld [vmem:[#allocation2 + $0x46] sm:$0xff] }
 0x293   : > { %1768 = vst.msk [vmem:[#allocation3 + $0x30] sm:$0xff] %vm1761_vm6, %v1666_v7  ;;  %v3277_v7 = vld [vmem:[#allocation2 + $0x7e] sm:$0xff] }
 0x294   : > { %v1676_v11 = vpop.permute.xlu2 %1675 }
 0x295   : > { %1773 = vst.msk [vmem:[#allocation3 + $0x58] sm:$0xff] %vm1761_vm6, %v1676_v11 }
 0x296   : > { %1892 = vrot.lane.b32.xlu1 %v3240_v8, %s3490_s7  ;;  %v3271_v8 = vld [vmem:[#allocation2 + $0x4e] sm:$0xff] }
 0x298   : > { %v1662_v5 = vpop.permute.xlu1 %1661  ;;  %1902 = vrot.lane.b32.xlu0 %v3245_v16, %s3490_s7 }
 0x299   : > { %1766 = vst.msk [vmem:[#allocation3 + $0x20] sm:$0xff] %vm1761_vm6, %v1662_v5 }
 0x29a   : > { %v1672_v18 = vpop.permute.xlu0 %1671  ;;  %1894 = vrot.lane.b32.xlu2 %v3241_v17, %s3490_s7  ;;  %v3273_v17 = vld [vmem:[#allocation2 + $0x5e] sm:$0xff] }
 0x29b   : > { %1771 = vst.msk [vmem:[#allocation3 + $0x48] sm:$0xff] %vm1761_vm6, %v1672_v18  ;;  %v3278_v18 = vld [vmem:[#allocation2 + $0x86] sm:$0xff] }
 0x29c   : > { %v1682_v14 = vpop.permute.xlu2 %1681 }
 0x29d   : > { %1776 = vst.msk [vmem:[#allocation3 + $0x70] sm:$0xff] %vm1761_vm6, %v1682_v14 }
 0x29e   : > { %1898 = vrot.lane.b32.xlu1 %v3243_v22, %s3490_s7  ;;  %v3276_v22 = vld [vmem:[#allocation2 + $0x76] sm:$0xff] }
 0x2a0   : > { %v1668_v58 = vpop.permute.xlu1 %1667  ;;  %1908 = vrot.lane.b32.xlu0 %v3248_v23, %s3490_s7 }
 0x2a1   : > { %1769 = vst.msk [vmem:[#allocation3 + $0x38] sm:$0xff] %vm1761_vm6, %v1668_v58 }
 0x2a2   : > { %v1678_v9 = vpop.permute.xlu0 %1677  ;;  %1900 = vrot.lane.b32.xlu2 %v3244_v39, %s3490_s7  ;;  %v3274_v39 = vld [vmem:[#allocation2 + $0x66] sm:$0xff] }
 0x2a3   : > { %1774 = vst.msk [vmem:[#allocation3 + $0x60] sm:$0xff] %vm1761_vm6, %v1678_v9  ;;  %v3279_v9 = vld [vmem:[#allocation2 + $0x8e] sm:$0xff] }
 0x2a4   : > { %v1688_v4 = vpop.permute.xlu2 %1687 }
 0x2a5   : > { %1779 = vst.msk [vmem:[#allocation3 + $0x88] sm:$0xff] %vm1761_vm6, %v1688_v4 }
 0x2a6   : > { %1904 = vrot.lane.b32.xlu1 %v3246_v44, %s3490_s7  ;;  %v3275_v44 = vld [vmem:[#allocation2 + $0x6e] sm:$0xff] }
 0x2a8   : > { %v1674_v13 = vpop.permute.xlu1 %1673  ;;  %1914 = vrot.lane.b32.xlu0 %v3251_v37, %s3490_s7 }
 0x2a9   : > { %1772 = vst.msk [vmem:[#allocation3 + $0x50] sm:$0xff] %vm1761_vm6, %v1674_v13 }
 0x2aa   : > { %v1684_v27 = vpop.permute.xlu0 %1683  ;;  %1906 = vrot.lane.b32.xlu2 %v3247_v34, %s3490_s7  ;;  %v3286_v34 = vld [vmem:[#allocation2 + $0xc6] sm:$0xff] }
 0x2ab   : > { %1777 = vst.msk [vmem:[#allocation3 + $0x78] sm:$0xff] %vm1761_vm6, %v1684_v27  ;;  %v3288_v27 = vld [vmem:[#allocation2 + $0xd6] sm:$0xff] }
 0x2ac   : > { %v1694_v20 = vpop.permute.xlu2 %1693 }
 0x2ad   : > { %1782 = vst.msk [vmem:[#allocation3 + $0xa0] sm:$0xff] %vm1761_vm6, %v1694_v20 }
 0x2ae   : > { %1910 = vrot.lane.b32.xlu1 %v3249_v46, %s3490_s7  ;;  %v3287_v46 = vld [vmem:[#allocation2 + $0xce] sm:$0xff] }
 0x2b0   : > { %v1680_v51 = vpop.permute.xlu1 %1679  ;;  %1920 = vrot.lane.b32.xlu0 %v3254_v60, %s3490_s7 }
 0x2b1   : > { %1775 = vst.msk [vmem:[#allocation3 + $0x68] sm:$0xff] %vm1761_vm6, %v1680_v51 }
 0x2b2   : > { %v1690_v55 = vpop.permute.xlu0 %1689  ;;  %1912 = vrot.lane.b32.xlu2 %v3250_v41, %s3490_s7  ;;  %v3280_v41 = vld [vmem:[#allocation2 + $0x96] sm:$0xff] }
 0x2b3   : > { %1780 = vst.msk [vmem:[#allocation3 + $0x90] sm:$0xff] %vm1761_vm6, %v1690_v55  ;;  %v3283_v55 = vld [vmem:[#allocation2 + $0xae] sm:$0xff] }
 0x2b4   : > { %v1700_v6 = vpop.permute.xlu2 %1699 }
 0x2b5   : > { %1785 = vst.msk [vmem:[#allocation3 + $0xb8] sm:$0xff] %vm1761_vm6, %v1700_v6 }
 0x2b6   : > { %1916 = vrot.lane.b32.xlu1 %v3252_v48, %s3490_s7  ;;  %v3281_v48 = vld [vmem:[#allocation2 + $0x9e] sm:$0xff] }
 0x2b8   : > { %v1686_v57 = vpop.permute.xlu1 %1685  ;;  %1926 = vrot.lane.b32.xlu0 %v3257_v1, %s3490_s7 }
 0x2b9   : > { %1778 = vst.msk [vmem:[#allocation3 + $0x80] sm:$0xff] %vm1761_vm6, %v1686_v57 }
 0x2ba   : > { %v1696_v10 = vpop.permute.xlu0 %1695  ;;  %1918 = vrot.lane.b32.xlu2 %v3253_v15, %s3490_s7  ;;  %v3289_v15 = vld [vmem:[#allocation2 + $0xde] sm:$0xff] }
 0x2bb   : > { %1783 = vst.msk [vmem:[#allocation3 + $0xa8] sm:$0xff] %vm1761_vm6, %v1696_v10  ;;  %v3291_v10 = vld [vmem:[#allocation2 + $0xee] sm:$0xff] }
 0x2bc   : > { %v1706_v3 = vpop.permute.xlu2 %1705 }
 0x2bd   : > { %1788 = vst.msk [vmem:[#allocation3 + $0xd0] sm:$0xff] %vm1761_vm6, %v1706_v3 }
 0x2be   : > { %1922 = vrot.lane.b32.xlu1 %v3255_v24, %s3490_s7  ;;  %v3282_v24 = vld [vmem:[#allocation2 + $0xa6] sm:$0xff] }
 0x2c0   : > { %v1692_v12 = vpop.permute.xlu1 %1691  ;;  %1932 = vrot.lane.b32.xlu0 %v3260_v25, %s3490_s7 }
 0x2c1   : > { %1781 = vst.msk [vmem:[#allocation3 + $0x98] sm:$0xff] %vm1761_vm6, %v1692_v12  ;;  %v3284_v12 = vld [vmem:[#allocation2 + $0xb6] sm:$0xff] }
 0x2c2   : > { %v1702_v26 = vpop.permute.xlu0 %1701  ;;  %1924 = vrot.lane.b32.xlu2 %v3256_v19, %s3490_s7  ;;  %v3492_v19 = vmov 0  }
 0x2c3   : > { %1786 = vst.msk [vmem:[#allocation3 + $0xc0] sm:$0xff] %vm1761_vm6, %v1702_v26  ;;  %3455 = vset.pattern.permute.xlu0 %v3492_v19  ;;  %3456 = vset.pattern.permute.xlu1 %v3492_v19 }
 0x2c4   : > { %v1712_v29 = vpop.permute.xlu2 %1711  ;;  %3457 = vset.pattern.permute.xlu2 %v3492_v19 }
 0x2c5   : > { %1791 = vst.msk [vmem:[#allocation3 + $0xe8] sm:$0xff] %vm1761_vm6, %v1712_v29  ;;  %v3290_v29 = vld [vmem:[#allocation2 + $0xe6] sm:$0xff] }
 0x2c6   : > { %1928 = vrot.lane.b32.xlu1 %v3258_v28, %s3490_s7  ;;  %v3296_v28 = vld [vmem:[#allocation2 + $0x116] sm:$0xff] }
 0x2c8   : > { %v1698_v32 = vpop.permute.xlu1 %1697  ;;  %1938 = vrot.lane.b32.xlu0 %v3263_v21, %s3490_s7 }
 0x2c9   : > { %1784 = vst.msk [vmem:[#allocation3 + $0xb0] sm:$0xff] %vm1761_vm6, %v1698_v32  ;;  %v3285_v32 = vld [vmem:[#allocation2 + $0xbe] sm:$0xff] }
 0x2ca   : > { %v1708_v31 = vpop.permute.xlu0 %1707  ;;  %1930 = vrot.lane.b32.xlu2 %v3259_v30, %s3490_s7 }
 0x2cb   : > { %1789 = vst.msk [vmem:[#allocation3 + $0xd8] sm:$0xff] %vm1761_vm6, %v1708_v31 }
 0x2cc   : > { %v1718_v35 = vpop.permute.xlu2 %1717 }
 0x2cd   : > { %1794 = vst.msk [vmem:[#allocation3 + $0x100] sm:$0xff] %vm1761_vm6, %v1718_v35  ;;  %v3292_v35 = vld [vmem:[#allocation2 + $0xf6] sm:$0xff] }
 0x2ce   : > { %1934 = vrot.lane.b32.xlu1 %v3261_v33, %s3490_s7  ;;  %v3294_v33 = vld [vmem:[#allocation2 + $0x106] sm:$0xff] }
 0x2d0   : > { %v1704_v40 = vpop.permute.xlu1 %1703  ;;  %2091 = vrot.lane.b32.xlu0 %v3266_v36, %s3491_s8 }
 0x2d1   : > { %1787 = vst.msk [vmem:[#allocation3 + $0xc8] sm:$0xff] %vm1761_vm6, %v1704_v40  ;;  %v3297_v40 = vld [vmem:[#allocation2 + $0x11e] sm:$0xff] }
 0x2d2   : > { %v1714_v42 = vpop.permute.xlu0 %1713  ;;  %1936 = vrot.lane.b32.xlu2 %v3262_v38, %s3490_s7 }
 0x2d3   : > { %1792 = vst.msk [vmem:[#allocation3 + $0xf0] sm:$0xff] %vm1761_vm6, %v1714_v42 }
 0x2d4   : > { %v1724_v45 = vpop.permute.xlu2 %1723 }
 0x2d5   : > { %1797 = vst.msk [vmem:[#allocation3 + $0x118] sm:$0xff] %vm1761_vm6, %v1724_v45  ;;  %v3293_v45 = vld [vmem:[#allocation2 + $0xfe] sm:$0xff] }
 0x2d6   : > { %1940 = vrot.lane.b32.xlu1 %v3264_v43, %s3490_s7  ;;  %v3299_v43 = vld [vmem:[#allocation2 + $0x12e] sm:$0xff] }
 0x2d8   : > { %v1710_v50 = vpop.permute.xlu1 %1709  ;;  %2097 = vrot.lane.b32.xlu0 %v3269_v47, %s3491_s8 }
 0x2d9   : > { %1790 = vst.msk [vmem:[#allocation3 + $0xe0] sm:$0xff] %vm1761_vm6, %v1710_v50  ;;  %v2294_v50 = vld [vmem:[%s4865_s2 + $0x10] sm:$0x3] }
 0x2da   : > { %v1720_v52 = vpop.permute.xlu0 %1719  ;;  %1942 = vrot.lane.b32.xlu2 %v3265_v49, %s3490_s7 }
 0x2db   : > { %1795 = vst.msk [vmem:[#allocation3 + $0x108] sm:$0xff] %vm1761_vm6, %v1720_v52  ;;  %v3295_v52 = vld [vmem:[#allocation2 + $0x10e] sm:$0xff] }
 0x2dc   : > { %v1877_v54 = vpop.permute.xlu2 %1876 }
 0x2dd   : > { %1983 = vst.msk [vmem:[#allocation3 + $0x10] sm:$0xff] %vm1980_vm7, %v1877_v54 }
 0x2de   : > { %2093 = vrot.lane.b32.xlu1 %v3267_v53, %s3491_s8  ;;  %v2304_v53 = vunpack.c.l.b16 %v2294_v50  ;;  %v2526_v50 = vld [vmem:[%s4863_s0 + $0x90] sm:$0xff] }
 0x2e0   : > { %v1716_v61 = vpop.permute.xlu1 %1715  ;;  %2103 = vrot.lane.b32.xlu0 %v3272_v56, %s3491_s8  ;;  %v2508_v56 = vld [vmem:[%s4863_s0] sm:$0xff] }
 0x2e1   : > { %1793 = vst.msk [vmem:[#allocation3 + $0xf8] sm:$0xff] %vm1761_vm6, %v1716_v61  ;;  %v3298_v61 = vld [vmem:[#allocation2 + $0x126] sm:$0xff] }
 0x2e2   : > { %v1873_v62 = vpop.permute.xlu0 %1872  ;;  %2095 = vrot.lane.b32.xlu2 %v3268_v59, %s3491_s8  ;;  %v2307_v59 = vpack.c.b16 %v2304_v53, %v2304_v53  ;;  %v2534_v53 = vld [vmem:[%s4863_s0 + $0xd0] sm:$0xff] }
 0x2e3   : > { %1981 = vst.msk [vmem:[#allocation3] sm:$0xff] %vm1980_vm7, %v1873_v62 }
 0x2e4   : > { %v1883_v2 = vpop.permute.xlu2 %1882  ;;  %v2367_v62 = vsel %vm2365_vm8, %v2307_v59, 0 }
 0x2e5   : > { %1986 = vst.msk [vmem:[#allocation3 + $0x28] sm:$0xff] %vm1980_vm7, %v1883_v2  ;;  %2374 = vmatpush.bf16.msra.mxu0 %v2367_v62  ;;  %v3332_v2 = vld [vmem:[%s4865_s2 + $0x8] sm:$0xff]  ;;  %3412 = vmatpush.bf16.msra.mxu1 %v2367_v62 }
 0x2e6   : > { %2099 = vrot.lane.b32.xlu1 %v3270_v63, %s3491_s8  ;;  %3413 = vmatpush.bf16.msra.mxu2 %v2367_v62 }
 0x2e7   : > { %3414 = vmatpush.bf16.msra.mxu3 %v2367_v62 }
 0x2e8   : > { %v1722_v11 = vpop.permute.xlu1 %1721  ;;  %2113 = vrot.lane.b32.xlu0 %v3277_v7, %s3491_s8 }
 0x2e9   : > { %1796 = vst.msk [vmem:[#allocation3 + $0x110] sm:$0xff] %vm1761_vm6, %v1722_v11  ;;  %2375 = vmatpush.bf16.msra.mxu0 %v3332_v2  ;;  %3415 = vmatpush.bf16.msra.mxu1 %v3332_v2 }
 0x2ea   : > { %v1879_v16 = vpop.permute.xlu0 %1878  ;;  %2101 = vrot.lane.b32.xlu2 %v3271_v8, %s3491_s8  ;;  %v3300_v8 = vld [vmem:[#allocation2 + $0x136] sm:$0xff]  ;;  %3416 = vmatpush.bf16.msra.mxu2 %v3332_v2 }
 0x2eb   : > { %1984 = vst.msk [vmem:[#allocation3 + $0x18] sm:$0xff] %vm1980_vm7, %v1879_v16  ;;  %v2513_v16 = vld [vmem:[%s4863_s0 + $0x28] sm:$0xff]  ;;  %3417 = vmatpush.bf16.msra.mxu3 %v3332_v2 }
 0x2ec   : > { %v1889_v5 = vpop.permute.xlu2 %1888 }
 0x2ed   : > { %1989 = vst.msk [vmem:[#allocation3 + $0x40] sm:$0xff] %vm1980_vm7, %v1889_v5  ;;  %v3301_v5 = vld [vmem:[#allocation2 + $0x13e] sm:$0xff] }
 0x2ee   : > { %2105 = vrot.lane.b32.xlu1 %v3273_v17, %s3491_s8  ;;  %v3331_v17 = vld [vmem:[%s4865_s2] sm:$0xff] }
 0x2ef   : > { %2376 = vmatpush.bf16.msra.mxu0 %v3331_v17  ;;  %3418 = vmatpush.bf16.msra.mxu1 %v3331_v17 }
 0x2f0   : > { %v1875_v14 = vpop.permute.xlu1 %1874  ;;  %2115 = vrot.lane.b32.xlu0 %v3278_v18, %s3491_s8  ;;  %3419 = vmatpush.bf16.msra.mxu2 %v3331_v17 }
 0x2f1   : > { %1982 = vst.msk [vmem:[#allocation3 + $0x8] sm:$0xff] %vm1980_vm7, %v1875_v14  ;;  %3420 = vmatpush.bf16.msra.mxu3 %v3331_v17  ;;  %v2509_v14 = vld [vmem:[%s4863_s0 + $0x8] sm:$0xff] }
 0x2f2   : > { %v1885_v23 = vpop.permute.xlu0 %1884  ;;  %2111 = vrot.lane.b32.xlu2 %v3276_v22, %s3491_s8 }
 0x2f3   : > { %1987 = vst.msk [vmem:[#allocation3 + $0x30] sm:$0xff] %vm1980_vm7, %v1885_v23 }
 0x2f4   : > { %v1895_v58 = vpop.permute.xlu2 %1894 }
 0x2f5   : > { %1992 = vst.msk [vmem:[#allocation3 + $0x58] sm:$0xff] %vm1980_vm7, %v1895_v58  ;;  %v2510_v58 = vld [vmem:[%s4863_s0 + $0x10] sm:$0xff] }
 0x2f6   : > { %2107 = vrot.lane.b32.xlu1 %v3274_v39, %s3491_s8  ;;  %v2516_v39 = vld [vmem:[%s4863_s0 + $0x40] sm:$0xff] }
 0x2f8   : > { %v1881_v4 = vpop.permute.xlu1 %1880  ;;  %2117 = vrot.lane.b32.xlu0 %v3279_v9, %s3491_s8 }
 0x2f9   : > { %1985 = vst.msk [vmem:[#allocation3 + $0x20] sm:$0xff] %vm1980_vm7, %v1881_v4  ;;  %v2511_v4 = vld [vmem:[%s4863_s0 + $0x18] sm:$0xff] }
 0x2fa   : > { %v1891_v37 = vpop.permute.xlu0 %1890  ;;  %2109 = vrot.lane.b32.xlu2 %v3275_v44, %s3491_s8 }
 0x2fb   : > { %1990 = vst.msk [vmem:[#allocation3 + $0x48] sm:$0xff] %vm1980_vm7, %v1891_v37 }
 0x2fc   : > { %v1901_v13 = vpop.permute.xlu2 %1900 }
 0x2fd   : > { %1995 = vst.msk [vmem:[#allocation3 + $0x70] sm:$0xff] %vm1980_vm7, %v1901_v13  ;;  %v2512_v13 = vld [vmem:[%s4863_s0 + $0x20] sm:$0xff] }
 0x2fe   : > { %2131 = vrot.lane.b32.xlu1 %v3286_v34, %s3491_s8  ;;  %v2519_v34 = vld [vmem:[%s4863_s0 + $0x58] sm:$0xff] }
 0x300   : > { %v1887_v20 = vpop.permute.xlu1 %1886  ;;  %2135 = vrot.lane.b32.xlu0 %v3288_v27, %s3491_s8 }
 0x301   : > { %1988 = vst.msk [vmem:[#allocation3 + $0x38] sm:$0xff] %vm1980_vm7, %v1887_v20  ;;  %v2514_v20 = vld [vmem:[%s4863_s0 + $0x30] sm:$0xff] }
 0x302   : > { %v1897_v60 = vpop.permute.xlu0 %1896  ;;  %2133 = vrot.lane.b32.xlu2 %v3287_v46, %s3491_s8 }
 0x303   : > { %1993 = vst.msk [vmem:[#allocation3 + $0x60] sm:$0xff] %vm1980_vm7, %v1897_v60 }
 0x304   : > { %v1907_v51 = vpop.permute.xlu2 %1906 }
 0x305   : > { %1998 = vst.msk [vmem:[#allocation3 + $0x88] sm:$0xff] %vm1980_vm7, %v1907_v51  ;;  %v2515_v51 = vld [vmem:[%s4863_s0 + $0x38] sm:$0xff] }
 0x306   : > { %2119 = vrot.lane.b32.xlu1 %v3280_v41, %s3491_s8  ;;  %v2522_v41 = vld [vmem:[%s4863_s0 + $0x70] sm:$0xff] }
 0x308   : > { %v1893_v6 = vpop.permute.xlu1 %1892  ;;  %2125 = vrot.lane.b32.xlu0 %v3283_v55, %s3491_s8 }
 0x309   : > { %1991 = vst.msk [vmem:[#allocation3 + $0x50] sm:$0xff] %vm1980_vm7, %v1893_v6  ;;  %v2517_v6 = vld [vmem:[%s4863_s0 + $0x48] sm:$0xff] }
 0x30a   : > { %v1903_v1 = vpop.permute.xlu0 %1902  ;;  %2121 = vrot.lane.b32.xlu2 %v3281_v48, %s3491_s8 }
 0x30b   : > { %1996 = vst.msk [vmem:[#allocation3 + $0x78] sm:$0xff] %vm1980_vm7, %v1903_v1 }
 0x30c   : > { %v1913_v57 = vpop.permute.xlu2 %1912 }
 0x30d   : > { %2001 = vst.msk [vmem:[#allocation3 + $0xa0] sm:$0xff] %vm1980_vm7, %v1913_v57  ;;  %v2518_v57 = vld [vmem:[%s4863_s0 + $0x50] sm:$0xff] }
 0x30e   : > { %2137 = vrot.lane.b32.xlu1 %v3289_v15, %s3491_s8  ;;  %v2525_v15 = vld [vmem:[%s4863_s0 + $0x88] sm:$0xff] }
 0x310   : > { %v1899_v3 = vpop.permute.xlu1 %1898  ;;  %2141 = vrot.lane.b32.xlu0 %v3291_v10, %s3491_s8 }
 0x311   : > { %1994 = vst.msk [vmem:[#allocation3 + $0x68] sm:$0xff] %vm1980_vm7, %v1899_v3 }
 0x312   : > { %v1909_v25 = vpop.permute.xlu0 %1908  ;;  %2123 = vrot.lane.b32.xlu2 %v3282_v24, %s3491_s8 }
 0x313   : > { %1999 = vst.msk [vmem:[#allocation3 + $0x90] sm:$0xff] %vm1980_vm7, %v1909_v25 }
 0x314   : > { %v1919_v26 = vpop.permute.xlu2 %1918 }
 0x315   : > { %2004 = vst.msk [vmem:[#allocation3 + $0xb8] sm:$0xff] %vm1980_vm7, %v1919_v26 }
 0x316   : > { %2127 = vrot.lane.b32.xlu1 %v3284_v12, %s3491_s8  ;;  %v2520_v12 = vld [vmem:[%s4863_s0 + $0x60] sm:$0xff] }
 0x318   : > { %v1905_v21 = vpop.permute.xlu1 %1904  ;;  %2151 = vrot.lane.b32.xlu0 %v3296_v28, %s3491_s8  ;;  %v2528_v28 = vld [vmem:[%s4863_s0 + $0xa0] sm:$0xff] }
 0x319   : > { %1997 = vst.msk [vmem:[#allocation3 + $0x80] sm:$0xff] %vm1980_vm7, %v1905_v21 }
 0x31a   : > { %v1915_v30 = vpop.permute.xlu0 %1914  ;;  %2139 = vrot.lane.b32.xlu2 %v3290_v29, %s3491_s8  ;;  %v2521_v29 = vld [vmem:[%s4863_s0 + $0x68] sm:$0xff] }
 0x31b   : > { %2002 = vst.msk [vmem:[#allocation3 + $0xa8] sm:$0xff] %vm1980_vm7, %v1915_v30 }
 0x31c   : > { %v1925_v31 = vpop.permute.xlu2 %1924 }
 0x31d   : > { %2007 = vst.msk [vmem:[#allocation3 + $0xd0] sm:$0xff] %vm1980_vm7, %v1925_v31 }
 0x31e   : > { %2129 = vrot.lane.b32.xlu1 %v3285_v32, %s3491_s8 }
 0x320   : > { %v1911_v36 = vpop.permute.xlu1 %1910  ;;  %2147 = vrot.lane.b32.xlu0 %v3294_v33, %s3491_s8  ;;  %v2523_v33 = vld [vmem:[%s4863_s0 + $0x78] sm:$0xff] }
 0x321   : > { %2000 = vst.msk [vmem:[#allocation3 + $0x98] sm:$0xff] %vm1980_vm7, %v1911_v36 }
 0x322   : > { %v1921_v38 = vpop.permute.xlu0 %1920  ;;  %2143 = vrot.lane.b32.xlu2 %v3292_v35, %s3491_s8 }
 0x323   : > { %2005 = vst.msk [vmem:[#allocation3 + $0xc0] sm:$0xff] %vm1980_vm7, %v1921_v38  ;;  %v2531_v38 = vld [vmem:[%s4863_s0 + $0xb8] sm:$0xff] }
 0x324   : > { %v1931_v42 = vpop.permute.xlu2 %1930 }
 0x325   : > { %2010 = vst.msk [vmem:[#allocation3 + $0xe8] sm:$0xff] %vm1980_vm7, %v1931_v42 }
 0x326   : > { %2153 = vrot.lane.b32.xlu1 %v3297_v40, %s3491_s8 }
 0x328   : > { %v1917_v47 = vpop.permute.xlu1 %1916  ;;  %2157 = vrot.lane.b32.xlu0 %v3299_v43, %s3491_s8  ;;  %v2524_v43 = vld [vmem:[%s4863_s0 + $0x80] sm:$0xff] }
 0x329   : > { %2003 = vst.msk [vmem:[#allocation3 + $0xb0] sm:$0xff] %vm1980_vm7, %v1917_v47 }
 0x32a   : > { %v1927_v49 = vpop.permute.xlu0 %1926  ;;  %2145 = vrot.lane.b32.xlu2 %v3293_v45, %s3491_s8 }
 0x32b   : > { %2008 = vst.msk [vmem:[#allocation3 + $0xd8] sm:$0xff] %vm1980_vm7, %v1927_v49 }
 0x32c   : > { %v1937_v54 = vpop.permute.xlu2 %1936 }
 0x32d   : > { %2013 = vst.msk [vmem:[#allocation3 + $0x100] sm:$0xff] %vm1980_vm7, %v1937_v54  ;;  %v2527_v54 = vld [vmem:[%s4863_s0 + $0x98] sm:$0xff] }
 0x32e   : > { %2149 = vrot.lane.b32.xlu1 %v3295_v52, %s3491_s8 }
 0x330   : > { %v1923_v63 = vpop.permute.xlu1 %1922  ;;  %2546 = vperm.xlu0 %3455, %v2508_v56  }
 0x331   : > { %2006 = vst.msk [vmem:[#allocation3 + $0xc8] sm:$0xff] %vm1980_vm7, %v1923_v63  ;;  %v2529_v63 = vld [vmem:[%s4863_s0 + $0xa8] sm:$0xff] }
 0x332   : > { %v1933_v7 = vpop.permute.xlu0 %1932  ;;  %2155 = vrot.lane.b32.xlu2 %v3298_v61, %s3491_s8 }
 0x333   : > { %2011 = vst.msk [vmem:[#allocation3 + $0xf0] sm:$0xff] %vm1980_vm7, %v1933_v7 }
 0x334   : > { %v1943_v11 = vpop.permute.xlu2 %1942 }
 0x335   : > { %2016 = vst.msk [vmem:[#allocation3 + $0x118] sm:$0xff] %vm1980_vm7, %v1943_v11 }
 0x336   : > { %2159 = vrot.lane.b32.xlu1 %v3300_v8, %s3491_s8  ;;  %v2537_v8 = vld [vmem:[%s4863_s0 + $0xe8] sm:$0xff] }
 0x338   : > { %v1929_v18 = vpop.permute.xlu1 %1928  ;;  %2571 = vperm.xlu0 %3455, %v2513_v16  }
 0x339   : > { %2009 = vst.msk [vmem:[#allocation3 + $0xe0] sm:$0xff] %vm1980_vm7, %v1929_v18 }
 0x33a   : > { %v1939_v22 = vpop.permute.xlu0 %1938  ;;  %2161 = vrot.lane.b32.xlu2 %v3301_v5, %s3491_s8  ;;  %v2530_v5 = vld [vmem:[%s4863_s0 + $0xb0] sm:$0xff]  ;;  %s4716_s8 = scalar_lea.vmem %s4868_s5, %s4874_s18 }
 0x33b   : > { %2014 = vst.msk [vmem:[#allocation3 + $0x108] sm:$0xff] %vm1980_vm7, %v1939_v22 }
 0x33c   : > { %v2096_v23 = vpop.permute.xlu2 %2095  ;;  %270 = vst [vmem:[%s4716_s8] sm:$0x1] %v3483_v0 }
 0x33d   : > { %2202 = vst.msk [vmem:[#allocation3 + $0x10] sm:$0xff] %vm2199_vm9, %v2096_v23 }
 0x33e   : > { %2551 = vperm.xlu1 %3456, %v2509_v14  }
 0x340   : > { %v1935_v9 = vpop.permute.xlu1 %1934  ;;  %2586 = vperm.xlu0 %3455, %v2516_v39  }
 0x341   : > { %2012 = vst.msk [vmem:[#allocation3 + $0xf8] sm:$0xff] %vm1980_vm7, %v1935_v9 }
 0x342   : > { %v2092_v44 = vpop.permute.xlu0 %2091  ;;  %2556 = vperm.xlu2 %3457, %v2510_v58   ;;  %v2532_v58 = vld [vmem:[%s4863_s0 + $0xc0] sm:$0xff] }
 0x343   : > { %2200 = vst.msk [vmem:[#allocation3] sm:$0xff] %vm2199_vm9, %v2092_v44  ;;  %v2540_v44 = vld [vmem:[%s4863_s0 + $0x100] sm:$0xff] }
 0x344   : > { %v2102_v37 = vpop.permute.xlu2 %2101  ;;  %v2238_v40 = vld [vmem:[#allocation3 + $0x10] sm:$0xff] }
 0x345   : > { %2205 = vst.msk [vmem:[#allocation3 + $0x28] sm:$0xff] %vm2199_vm9, %v2102_v37 }
 0x346   : > { %2561 = vperm.xlu1 %3456, %v2511_v4   ;;  %v2533_v4 = vld [vmem:[%s4863_s0 + $0xc8] sm:$0xff] }
 0x348   : > { %v1941_v27 = vpop.permute.xlu1 %1940  ;;  %2601 = vperm.xlu0 %3455, %v2519_v34  }
 0x349   : > { %2015 = vst.msk [vmem:[#allocation3 + $0x110] sm:$0xff] %vm1980_vm7, %v1941_v27 }
 0x34a   : > { %v2098_v46 = vpop.permute.xlu0 %2097  ;;  %2566 = vperm.xlu2 %3457, %v2512_v13   ;;  %v2236_v24 = vld [vmem:[#allocation3] sm:$0xff] }
 0x34b   : > { %2203 = vst.msk [vmem:[#allocation3 + $0x18] sm:$0xff] %vm2199_vm9, %v2098_v46  ;;  %v2535_v46 = vld [vmem:[%s4863_s0 + $0xd8] sm:$0xff] }
 0x34c   : > { %v2112_v60 = vpop.permute.xlu2 %2111  ;;  %v2241_v16 = vld [vmem:[#allocation3 + $0x28] sm:$0xff] }
 0x34d   : > { %2210 = vst.msk [vmem:[#allocation3 + $0x50] sm:$0xff] %vm2199_vm9, %v2112_v60 }
 0x34e   : > { %2576 = vperm.xlu1 %3456, %v2514_v20  }
 0x350   : > { %v2094_v55 = vpop.permute.xlu1 %2093  ;;  %2616 = vperm.xlu0 %3455, %v2522_v41   ;;  %v2543_v41 = vld [vmem:[%s4863_s0 + $0x118] sm:$0xff] }
 0x351   : > { %2201 = vst.msk [vmem:[#allocation3 + $0x8] sm:$0xff] %vm2199_vm9, %v2094_v55 }
 0x352   : > { %v2104_v48 = vpop.permute.xlu0 %2103  ;;  %2581 = vperm.xlu2 %3457, %v2515_v51   ;;  %v2239_v42 = vld [vmem:[#allocation3 + $0x18] sm:$0xff] }
 0x353   : > { %2206 = vst.msk [vmem:[#allocation3 + $0x30] sm:$0xff] %vm2199_vm9, %v2104_v48  ;;  %v2273_v47 = vpack.c.bf16 %v2239_v42, %v2238_v40  ;;  %v2536_v48 = vld [vmem:[%s4863_s0 + $0xe0] sm:$0xff]  ;;  %v2542_v40 = vld [vmem:[%s4863_s0 + $0x110] sm:$0xff] }
 0x354   : > { %v2110_v1 = vpop.permute.xlu2 %2109  ;;  %v2246_v30 = vld [vmem:[#allocation3 + $0x50] sm:$0xff] }
 0x355   : > { %2209 = vst.msk [vmem:[#allocation3 + $0x48] sm:$0xff] %vm2199_vm9, %v2110_v1 }
 0x356   : > { %2591 = vperm.xlu1 %3456, %v2517_v6  }
 0x358   : > { %v2100_v10 = vpop.permute.xlu1 %2099  ;;  %v2237_v3 = vld [vmem:[#allocation3 + $0x8] sm:$0xff]  ;;  %2631 = vperm.xlu0 %3455, %v2525_v15  }
 0x359   : > { %2204 = vst.msk [vmem:[#allocation3 + $0x20] sm:$0xff] %vm2199_vm9, %v2100_v10  ;;  %v2272_v25 = vpack.c.bf16 %v2237_v3, %v2236_v24  ;;  %v2538_v3 = vld [vmem:[%s4863_s0 + $0xf0] sm:$0xff] }
 0x35a   : > { %v2114_v19 = vpop.permute.xlu0 %2113  ;;  %2596 = vperm.xlu2 %3457, %v2518_v57   ;;  %v2242_v1 = vld [vmem:[#allocation3 + $0x30] sm:$0xff] }
 0x35b   : > { %3310 = vmatmul.msk.bf16.vlgmr.msra.gmra.mxu0 %vm2310_vm10, %v2272_v25  ;;  %2211 = vst.msk [vmem:[#allocation3 + $0x58] sm:$0xff] %vm2199_vm9, %v2114_v19  ;;  %v2539_v19 = vld [vmem:[%s4863_s0 + $0xf8] sm:$0xff] }
 0x35c   : > { %v2134_v26 = vpop.permute.xlu2 %2133 }
 0x35d   : > { %2221 = vst.msk [vmem:[#allocation3 + $0xa8] sm:$0xff] %vm2199_vm9, %v2134_v26 }
 0x35e   : > { %2606 = vperm.xlu1 %3456, %v2520_v12  }
 0x360   : > { %v2106_v21 = vpop.permute.xlu1 %2105  ;;  %2646 = vperm.xlu0 %3455, %v2528_v28   ;;  %v2240_v11 = vld [vmem:[#allocation3 + $0x20] sm:$0xff] }
 0x361   : > { %2207 = vst.msk [vmem:[#allocation3 + $0x38] sm:$0xff] %vm2199_vm9, %v2106_v21  ;;  %v2274_v14 = vpack.c.bf16 %v2241_v16, %v2240_v11  ;;  %v2541_v21 = vld [vmem:[%s4863_s0 + $0x108] sm:$0xff] }
 0x362   : > { %v2116_v32 = vpop.permute.xlu0 %2115  ;;  %2611 = vperm.xlu2 %3457, %v2521_v29   ;;  %v2247_v31 = vld [vmem:[#allocation3 + $0x58] sm:$0xff] }
 0x363   : > { %2212 = vst.msk [vmem:[#allocation3 + $0x60] sm:$0xff] %vm2199_vm9, %v2116_v32  ;;  %v2277_v35 = vpack.c.bf16 %v2247_v31, %v2246_v30 }
 0x364   : > { %v2122_v36 = vpop.permute.xlu2 %2121  ;;  %v2257_v17 = vld [vmem:[#allocation3 + $0xa8] sm:$0xff] }
 0x365   : > { %3315 = vmatmul.msk.bf16.vlgmr.msra.gmra.mxu1 %vm2310_vm10, %v2277_v35  ;;  %2215 = vst.msk [vmem:[#allocation3 + $0x78] sm:$0xff] %vm2199_vm9, %v2122_v36  ;;  %v2245_v36 = vld [vmem:[#allocation3 + $0x48] sm:$0xff] }
 0x366   : > { %2621 = vperm.xlu1 %3456, %v2523_v33  }
 0x368   : > { %v2108_v45 = vpop.permute.xlu1 %2107  ;;  %2661 = vperm.xlu0 %3455, %v2531_v38   ;;  %v2243_v51 = vld [vmem:[#allocation3 + $0x38] sm:$0xff] }
 0x369   : > { %2208 = vst.msk [vmem:[#allocation3 + $0x40] sm:$0xff] %vm2199_vm9, %v2108_v45  ;;  %v2275_v57 = vpack.c.bf16 %v2243_v51, %v2242_v1 }
 0x36a   : > { %v2118_v49 = vpop.permute.xlu0 %2117  ;;  %2626 = vperm.xlu2 %3457, %v2524_v43   ;;  %v2248_v61 = vld [vmem:[#allocation3 + $0x60] sm:$0xff] }
 0x36b   : > { %3311 = vmatmul.msk.bf16.gmra.mxu0 %vm2310_vm10, %v2273_v47  ;;  %2213 = vst.msk [vmem:[#allocation3 + $0x68] sm:$0xff] %vm2199_vm9, %v2118_v49 }
 0x36c   : > { %v2124_v52 = vpop.permute.xlu2 %2123  ;;  %v2251_v13 = vld [vmem:[#allocation3 + $0x78] sm:$0xff] }
 0x36d   : > { %2216 = vst.msk [vmem:[#allocation3 + $0x80] sm:$0xff] %vm2199_vm9, %v2124_v52 }
 0x36e   : > { %2636 = vperm.xlu1 %3456, %v2526_v50  }
 0x370   : > { %v2132_v56 = vpop.permute.xlu1 %2131  ;;  %2676 = vperm.xlu0 %3455, %v2534_v53   ;;  %v2244_v35 = vld [vmem:[#allocation3 + $0x40] sm:$0xff] }
 0x371   : > { %2220 = vst.msk [vmem:[#allocation3 + $0xa0] sm:$0xff] %vm2199_vm9, %v2132_v56  ;;  %v2276_v43 = vpack.c.bf16 %v2245_v36, %v2244_v35 }
 0x372   : > { %v2136_v59 = vpop.permute.xlu0 %2135  ;;  %2641 = vperm.xlu2 %3457, %v2527_v54   ;;  %v2249_v62 = vld [vmem:[#allocation3 + $0x68] sm:$0xff] }
 0x373   : > { %2222 = vst.msk [vmem:[#allocation3 + $0xb0] sm:$0xff] %vm2199_vm9, %v2136_v59  ;;  %v2278_v2 = vpack.c.bf16 %v2249_v62, %v2248_v61 }
 0x374   : > { %v2140_v7 = vpop.permute.xlu2 %2139  ;;  %v2252_v26 = vld [vmem:[#allocation3 + $0x80] sm:$0xff] }
 0x375   : > { %3316 = vmatmul.msk.bf16.gmra.mxu1 %vm2310_vm10, %v2278_v2  ;;  %2224 = vst.msk [vmem:[#allocation3 + $0xc0] sm:$0xff] %vm2199_vm9, %v2140_v7 }
 0x376   : > { %2651 = vperm.xlu1 %3456, %v2529_v63  }
 0x378   : > { %v2120_v18 = vpop.permute.xlu1 %2119  ;;  %v2256_v22 = vld [vmem:[#allocation3 + $0xa0] sm:$0xff]  ;;  %2691 = vperm.xlu0 %3455, %v2537_v8  }
 0x379   : > { %2214 = vst.msk [vmem:[#allocation3 + $0x70] sm:$0xff] %vm2199_vm9, %v2120_v18  ;;  %v2282_v23 = vpack.c.bf16 %v2257_v17, %v2256_v22 }
 0x37a   : > { %v2126_v39 = vpop.permute.xlu0 %2125  ;;  %2656 = vperm.xlu2 %3457, %v2530_v5   ;;  %v2258_v55 = vld [vmem:[#allocation3 + $0xb0] sm:$0xff] }
 0x37b   : > { %3312 = vmatmul.msk.bf16.gmra.mxu0 %vm2310_vm10, %v2274_v14  ;;  %3320 = vmatmul.msk.bf16.vlgmr.msra.gmra.mxu2 %vm2310_vm10, %v2282_v23  ;;  %2217 = vst.msk [vmem:[#allocation3 + $0x88] sm:$0xff] %vm2199_vm9, %v2126_v39 }
 0x37c   : > { %v2144_v9 = vpop.permute.xlu2 %2143  ;;  %v2260_v32 = vld [vmem:[#allocation3 + $0xc0] sm:$0xff] }
 0x37d   : > { %2226 = vst.msk [vmem:[#allocation3 + $0xd0] sm:$0xff] %vm2199_vm9, %v2144_v9 }
 0x37e   : > { %2666 = vperm.xlu1 %3456, %v2532_v58  }
 0x380   : > { %v2138_v37 = vpop.permute.xlu1 %2137  ;;  %2706 = vperm.xlu0 %3455, %v2540_v44   ;;  %v2250_v34 = vld [vmem:[#allocation3 + $0x70] sm:$0xff] }
 0x381   : > { %2223 = vst.msk [vmem:[#allocation3 + $0xb8] sm:$0xff] %vm2199_vm9, %v2138_v37  ;;  %v2279_v20 = vpack.c.bf16 %v2251_v13, %v2250_v34 }
 0x382   : > { %v2142_v27 = vpop.permute.xlu0 %2141  ;;  %2671 = vperm.xlu2 %3457, %v2533_v4   ;;  %v2253_v28 = vld [vmem:[#allocation3 + $0x88] sm:$0xff] }
 0x383   : > { %2225 = vst.msk [vmem:[#allocation3 + $0xc8] sm:$0xff] %vm2199_vm9, %v2142_v27  ;;  %v2280_v30 = vpack.c.bf16 %v2253_v28, %v2252_v26 }
 0x384   : > { %v2146_v60 = vpop.permute.xlu2 %2145  ;;  %v2262_v59 = vld [vmem:[#allocation3 + $0xd0] sm:$0xff] }
 0x385   : > { %3317 = vmatmul.msk.bf16.gmra.mxu1 %vm2310_vm10, %v2279_v20  ;;  %2227 = vst.msk [vmem:[#allocation3 + $0xd8] sm:$0xff] %vm2199_vm9, %v2146_v60 }
 0x386   : > { %2681 = vperm.xlu1 %3456, %v2535_v46  }
 0x388   : > { %v2128_v6 = vpop.permute.xlu1 %2127  ;;  %v2259_v15 = vld [vmem:[#allocation3 + $0xb8] sm:$0xff]  ;;  %2721 = vperm.xlu0 %3455, %v2543_v41  }
 0x389   : > { %2218 = vst.msk [vmem:[#allocation3 + $0x90] sm:$0xff] %vm2199_vm9, %v2128_v6  ;;  %v2283_v10 = vpack.c.bf16 %v2259_v15, %v2258_v55 }
 0x38a   : > { %v2152_v24 = vpop.permute.xlu0 %2151  ;;  %2686 = vperm.xlu2 %3457, %v2536_v48   ;;  %v2261_v31 = vld [vmem:[#allocation3 + $0xc8] sm:$0xff] }
 0x38b   : > { %3313 = vmatmul.msk.bf16.gmra.mxu0 %vm2310_vm10, %v2275_v57  ;;  %3321 = vmatmul.msk.bf16.gmra.mxu2 %vm2310_vm10, %v2283_v10  ;;  %2230 = vst.msk [vmem:[#allocation3 + $0xf0] sm:$0xff] %vm2199_vm9, %v2152_v24  ;;  %v2284_v38 = vpack.c.bf16 %v2261_v31, %v2260_v32 }
 0x38c   : > { %v2156_v25 = vpop.permute.xlu2 %2155  ;;  %v2263_v61 = vld [vmem:[#allocation3 + $0xd8] sm:$0xff] }
 0x38d   : > { %2232 = vst.msk [vmem:[#allocation3 + $0x100] sm:$0xff] %vm2199_vm9, %v2156_v25  ;;  %v2285_v63 = vpack.c.bf16 %v2263_v61, %v2262_v59 }
 0x38e   : > { %2696 = vperm.xlu1 %3456, %v2538_v3   ;;  %v4745_v3 = vld [vmem:[%s4866_s3] ss:$0 sm:$0xff] }
 0x390   : > { %v2130_v12 = vpop.permute.xlu1 %2129  ;;  %v2254_v54 = vld [vmem:[#allocation3 + $0x90] sm:$0xff] }
 0x391   : > { %2219 = vst.msk [vmem:[#allocation3 + $0x98] sm:$0xff] %vm2199_vm9, %v2130_v12 }
 0x392   : > { %v2148_v29 = vpop.permute.xlu0 %2147  ;;  %2701 = vperm.xlu2 %3457, %v2539_v19   ;;  %v2266_v47 = vld [vmem:[#allocation3 + $0xf0] sm:$0xff] }
 0x393   : > { %2228 = vst.msk [vmem:[#allocation3 + $0xe0] sm:$0xff] %vm2199_vm9, %v2148_v29 }
 0x394   : > { %v2162_v33 = vpop.permute.xlu2 %2161  ;;  %v2268_v2 = vld [vmem:[#allocation3 + $0x100] sm:$0xff] }
 0x395   : > { %3318 = vmatmul.msk.bf16.gmra.mxu1 %vm2310_vm10, %v2280_v30  ;;  %2235 = vst.msk [vmem:[#allocation3 + $0x118] sm:$0xff] %vm2199_vm9, %v2162_v33 }
 0x396   : > { %2711 = vperm.xlu1 %3456, %v2541_v21  }
 0x398   : > { %v2154_v42 = vpop.permute.xlu1 %2153  ;;  %v2255_v52 = vld [vmem:[#allocation3 + $0x98] sm:$0xff] }
 0x399   : > { %2231 = vst.msk [vmem:[#allocation3 + $0xf8] sm:$0xff] %vm2199_vm9, %v2154_v42  ;;  %v2281_v56 = vpack.c.bf16 %v2255_v52, %v2254_v54 }
 0x39a   : > { %v2158_v45 = vpop.permute.xlu0 %2157  ;;  %2716 = vperm.xlu2 %3457, %v2542_v40   ;;  %v2264_v11 = vld [vmem:[#allocation3 + $0xe0] sm:$0xff] }
 0x39b   : > { %3314 = vmatmul.msk.bf16.gmra.mxu0 %vm2310_vm10, %v2276_v43  ;;  %3322 = vmatmul.msk.bf16.gmra.mxu2 %vm2310_vm10, %v2284_v38  ;;  %2233 = vst.msk [vmem:[#allocation3 + $0x108] sm:$0xff] %vm2199_vm9, %v2158_v45 }
 0x39c   : > { %v2271_v18 = vld [vmem:[#allocation3 + $0x118] sm:$0xff]  ;;  %v2557_v9 = vpop.permute.xlu2 %2556 }
 0x3a0   : > { %v2150_v49 = vpop.permute.xlu1 %2149  ;;  %v2267_v50 = vld [vmem:[#allocation3 + $0xf8] sm:$0xff] }
 0x3a1   : > { %2229 = vst.msk [vmem:[#allocation3 + $0xe8] sm:$0xff] %vm2199_vm9, %v2150_v49  ;;  %v2287_v53 = vpack.c.bf16 %v2267_v50, %v2266_v47 }
 0x3a2   : > { %v2269_v7 = vld [vmem:[#allocation3 + $0x108] sm:$0xff]  ;;  %v2547_v44 = vpop.permute.xlu0 %2546 }
 0x3a3   : > { %3325 = vmatmul.msk.bf16.vlgmr.msra.gmra.mxu3 %vm2310_vm10, %v2287_v53  ;;  %v2288_v8 = vpack.c.bf16 %v2269_v7, %v2268_v2 }
 0x3a4   : > { %v2567_v13 = vpop.permute.xlu2 %2566 }
 0x3a5   : > { %3319 = vmatmul.msk.bf16.gmra.mxu1 %vm2310_vm10, %v2281_v56 }
 0x3a8   : > { %v2160_v62 = vpop.permute.xlu1 %2159  ;;  %v2265_v16 = vld [vmem:[#allocation3 + $0xe8] sm:$0xff] }
 0x3a9   : > { %2234 = vst.msk [vmem:[#allocation3 + $0x110] sm:$0xff] %vm2199_vm9, %v2160_v62  ;;  %v2286_v17 = vpack.c.bf16 %v2265_v16, %v2264_v11 }
 0x3aa   : > { %v2572_v27 = vpop.permute.xlu0 %2571 }
 0x3ab   : > { %3323 = vmatmul.msk.bf16.gmra.mxu2 %vm2310_vm10, %v2285_v63 }
 0x3ac   : > { %v2582_v41 = vpop.permute.xlu2 %2581 }
 0x3b0   : > { %v2270_v5 = vld [vmem:[#allocation3 + $0x110] sm:$0xff]  ;;  %v2552_v39 = vpop.permute.xlu1 %2551 }
 0x3b1   : > { %v2289_v22 = vpack.c.bf16 %v2271_v18, %v2270_v5 }
 0x3b2   : > { %v2587_v55 = vpop.permute.xlu0 %2586 }
 0x3b3   : > { %3326 = vmatmul.msk.bf16.gmra.mxu3 %vm2310_vm10, %v2288_v8 }
 0x3b4   : > { %v4734_v15 = vpop.permute.xlu2 %2596 }
 0x3b8   : > { %v2562_v34 = vpop.permute.xlu1 %2561 }
 0x3ba   : > { %v4738_v10 = vpop.permute.xlu0 %2601 }
 0x3bb   : > { %3324 = vmatmul.msk.bf16.gmra.mxu2 %vm2310_vm10, %v2286_v17 }
 0x3bc   : > { %v4752_v28 = vpop.permute.xlu2 %2611 }
 0x3c0   : > { %v2577_v60 = vpop.permute.xlu1 %2576 }
 0x3c2   : > { %v4756_v30 = vpop.permute.xlu0 %2616 }
 0x3c3   : > { %3327 = vmatmul.msk.bf16.gmra.mxu3 %vm2310_vm10, %v2289_v22 }
 0x3c4   : > { %v4767_v53 = vpop.permute.xlu2 %2626 }
 0x3c8   : > { %v4732_v6 = vpop.permute.xlu1 %2591 }
 0x3ca   : > { %v4772_v63 = vpop.permute.xlu0 %2631 }
 0x3d0   : > { %v4747_v19 = vpop.permute.xlu1 %2606 }
 0x3d8   : > { %v2378_v14 = vpop.f32.mrf.mxu0  ;;  %v4764_v45 = vpop.permute.xlu1 %2621 }
 0x3d9   : > { %v2472_v29 = vsub.f32 %v2378_v14, %v4745_v3 }
 0x3db   : > { %v2724_v35 = vmul.f32 %v2547_v44, %v2472_v29 }
 0x3dd   : > { %v2805_v50 = vmul.f32 %v2724_v35, %v2724_v35 }
 0x3e0   : > { %v2380_v23 = vpop.f32.mrf.mxu0 }
 0x3e1   : > { %v2473_v12 = vsub.f32 %v2380_v23, %v4745_v3 }
 0x3e2   : > { %v4722_v58 = vpop.f32.mrf.mxu1 }
 0x3e3   : > { %v2725_v32 = vmul.f32 %v2552_v39, %v2473_v12 }
 0x3e5   : > { %v2806_v42 = vmul.f32 %v2725_v32, %v2725_v32  ;;  %v2761_v54 = vadd.f32 %v2725_v32, %v2724_v35 }
 0x3e7   : > { %v2841_v61 = vadd.f32 %v2806_v42, %v2805_v50 }
 0x3e8   : > { %v2383_v4 = vpop.f32.mrf.mxu0 }
 0x3e9   : > { %v2474_v21 = vsub.f32 %v2383_v4, %v4745_v3 }
 0x3ea   : > { %v4724_v37 = vpop.f32.mrf.mxu1 }
 0x3eb   : > { %v2726_v36 = vmul.f32 %v2557_v9, %v2474_v21  ;;  %v2483_v32 = vsub.f32 %v4724_v37, %v4745_v3 }
 0x3ed   : > { %v2807_v52 = vmul.f32 %v2726_v36, %v2726_v36  ;;  %v2762_v2 = vadd.f32 %v2761_v54, %v2726_v36  ;;  %v2735_v37 = vmul.f32 %v4738_v10, %v2483_v32 }
 0x3ef   : > { %v2842_v16 = vadd.f32 %v2841_v61, %v2807_v52 }
 0x3f0   : > { %v2385_v46 = vpop.f32.mrf.mxu0 }
 0x3f1   : > { %v2475_v33 = vsub.f32 %v2385_v46, %v4745_v3 }
 0x3f2   : > { %v4726_v20 = vpop.f32.mrf.mxu1 }
 0x3f3   : > { %v2727_v47 = vmul.f32 %v2562_v34, %v2475_v33  ;;  %v4778_v34 = vpop.permute.xlu1 %2636  ;;  %v4788_v33 = vpop.permute.xlu0 %2646 }
 0x3f5   : > { %v2808_v7 = vmul.f32 %v2727_v47, %v2727_v47  ;;  %v2763_v5 = vadd.f32 %v2762_v2, %v2727_v47 }
 0x3f7   : > { %v2843_v39 = vadd.f32 %v2842_v16, %v2808_v7  ;;  %v2816_v16 = vmul.f32 %v2735_v37, %v2735_v37 }
 0x3f8   : > { %v2388_v51 = vpop.f32.mrf.mxu0 }
 0x3f9   : > { %v2476_v40 = vsub.f32 %v2388_v51, %v4745_v3 }
 0x3fa   : > { %v4728_v0 = vpop.f32.mrf.mxu1 }
 0x3fb   : > { %v2728_v56 = vmul.f32 %v2567_v13, %v2476_v40  ;;  %v2484_v40 = vsub.f32 %v4726_v20, %v4745_v3  ;;  %v2485_v52 = vsub.f32 %v4728_v0, %v4745_v3  ;;  %v2652_v7 = vpop.permute.xlu1 %2651 }
 0x3fd   : > { %v2809_v18 = vmul.f32 %v2728_v56, %v2728_v56  ;;  %v2764_v9 = vadd.f32 %v2763_v5, %v2728_v56 }
 0x3fe   : > { %v4730_v48 = vpop.f32.mrf.mxu2 }
 0x3ff   : > { %v2844_v13 = vadd.f32 %v2843_v39, %v2809_v18 }
 0x400   : > { %v2390_v1 = vpop.f32.mrf.mxu0 }
 0x401   : > { %v2477_v49 = vsub.f32 %v2390_v1, %v4745_v3  ;;  %v2482_v1 = vsub.f32 %v4722_v58, %v4745_v3 }
 0x402   : > { %v4736_v57 = vpop.f32.mrf.mxu1 }
 0x403   : > { %v2729_v8 = vmul.f32 %v2572_v27, %v2477_v49  ;;  %v2734_v58 = vmul.f32 %v4734_v15, %v2482_v1  ;;  %v2486_v61 = vsub.f32 %v4736_v57, %v4745_v3  ;;  %v2667_v32 = vpop.permute.xlu1 %2666 }
 0x405   : > { %v2810_v44 = vmul.f32 %v2729_v8, %v2729_v8  ;;  %v2765_v46 = vadd.f32 %v2764_v9, %v2729_v8  ;;  %v2815_v20 = vmul.f32 %v2734_v58, %v2734_v58  ;;  %v2738_v57 = vmul.f32 %v4756_v30, %v2486_v61 }
 0x406   : > { %v4740_v24 = vpop.f32.mrf.mxu2 }
 0x407   : > { %v2845_v12 = vadd.f32 %v2844_v13, %v2810_v44 }
 0x408   : > { %v2393_v25 = vpop.f32.mrf.mxu0 }
 0x409   : > { %v2478_v59 = vsub.f32 %v2393_v25, %v4745_v3 }
 0x40a   : > { %v4750_v26 = vpop.f32.mrf.mxu1 }
 0x40b   : > { %v2730_v22 = vmul.f32 %v2577_v60, %v2478_v59  ;;  %v4784_v60 = vpop.permute.xlu2 %2641  ;;  %v2487_v10 = vsub.f32 %v4750_v26, %v4745_v3 }
 0x40d   : > { %v2811_v27 = vmul.f32 %v2730_v22, %v2730_v22  ;;  %v2766_v29 = vadd.f32 %v2765_v46, %v2730_v22  ;;  %v2662_v22 = vpop.permute.xlu0 %2661  ;;  %v2739_v44 = vmul.f32 %v4764_v45, %v2487_v10 }
 0x40e   : > { %v4758_v31 = vpop.f32.mrf.mxu2 }
 0x40f   : > { %v2846_v35 = vadd.f32 %v2845_v12, %v2811_v27  ;;  %v2819_v27 = vmul.f32 %v2738_v57, %v2738_v57 }
 0x410   : > { %v2395_v38 = vpop.f32.mrf.mxu0 }
 0x411   : > { %v2479_v11 = vsub.f32 %v2395_v38, %v4745_v3 }
 0x412   : > { %v4762_v43 = vpop.f32.mrf.mxu1 }
 0x413   : > { %v2731_v4 = vmul.f32 %v2582_v41, %v2479_v11  ;;  %v2657_v0 = vpop.permute.xlu2 %2656  ;;  %v2488_v39 = vsub.f32 %v4762_v43, %v4745_v3 }
 0x415   : > { %v2812_v21 = vmul.f32 %v2731_v4, %v2731_v4  ;;  %v2767_v36 = vadd.f32 %v2766_v29, %v2731_v4  ;;  %v2740_v30 = vmul.f32 %v4767_v53, %v2488_v39 }
 0x416   : > { %v4770_v62 = vpop.f32.mrf.mxu2 }
 0x417   : > { %v2847_v42 = vadd.f32 %v2846_v35, %v2812_v21  ;;  %v2820_v21 = vmul.f32 %v2739_v44, %v2739_v44 }
 0x418   : > { %v2398_v17 = vpop.f32.mrf.mxu0 }
 0x419   : > { %v2480_v14 = vsub.f32 %v2398_v17, %v4745_v3  ;;  %v2737_v17 = vmul.f32 %v4752_v28, %v2485_v52 }
 0x41a   : > { %v4776_v23 = vpop.f32.mrf.mxu1 }
 0x41b   : > { %v2732_v51 = vmul.f32 %v2587_v55, %v2480_v14  ;;  %v2818_v4 = vmul.f32 %v2737_v17, %v2737_v17  ;;  %v2489_v26 = vsub.f32 %v4776_v23, %v4745_v3 }
 0x41d   : > { %v2813_v38 = vmul.f32 %v2732_v51, %v2732_v51  ;;  %v2768_v47 = vadd.f32 %v2767_v36, %v2732_v51  ;;  %v2741_v45 = vmul.f32 %v4772_v63, %v2489_v26  ;;  %v2492_v36 = vsub.f32 %v4730_v48, %v4745_v3 }
 0x41e   : > { %v4782_v25 = vpop.f32.mrf.mxu2  ;;  %v2494_v48 = vsub.f32 %v4758_v31, %v4745_v3 }
 0x41f   : > { %v2848_v54 = vadd.f32 %v2847_v42, %v2813_v38  ;;  %v2672_v38 = vpop.permute.xlu2 %2671  ;;  %v2493_v42 = vsub.f32 %v4740_v24, %v4745_v3  ;;  %v2744_v52 = vmul.f32 %v4788_v33, %v2492_v36  ;;  %v2495_v24 = vsub.f32 %v4770_v62, %v4745_v3 }
 0x420   : > { %v2400_v41 = vpop.f32.mrf.mxu0  ;;  %v2496_v33 = vsub.f32 %v4782_v25, %v4745_v3 }
 0x421   : > { %v2481_v55 = vsub.f32 %v2400_v41, %v4745_v3  ;;  %v2825_v10 = vmul.f32 %v2744_v52, %v2744_v52 }
 0x422   : > { %v2423_v50 = vpop.f32.mrf.mxu1 }
 0x423   : > { %v2733_v49 = vmul.f32 %v4732_v6, %v2481_v55  ;;  %v2736_v6 = vmul.f32 %v4747_v19, %v2484_v40  ;;  %v2490_v43 = vsub.f32 %v2423_v50, %v4745_v3  ;;  %v2821_v55 = vmul.f32 %v2740_v30, %v2740_v30 }
 0x424   : > { %v2822_v50 = vmul.f32 %v2741_v45, %v2741_v45 }
 0x425   : > { %v2769_v56 = vadd.f32 %v2768_v47, %v2733_v49  ;;  %v2814_v59 = vmul.f32 %v2733_v49, %v2733_v49  ;;  %v2817_v14 = vmul.f32 %v2736_v6, %v2736_v6  ;;  %v2742_v53 = vmul.f32 %v4778_v34, %v2490_v43  ;;  %v2677_v47 = vpop.permute.xlu0 %2676 }
 0x426   : > { %v4800_v15 = vpop.f32.mrf.mxu2  ;;  %v4802_v2 = vpop.f32.mrf.mxu3 }
 0x427   : > { %v2770_v8 = vadd.f32 %v2769_v56, %v2734_v58  ;;  %v2849_v11 = vadd.f32 %v2848_v54, %v2814_v59  ;;  %v2823_v34 = vmul.f32 %v2742_v53, %v2742_v53  ;;  %v2687_v31 = vpop.permute.xlu2 %2686 }
 0x429   : > { %v2771_v5 = vadd.f32 %v2770_v8, %v2735_v37  ;;  %v2850_v18 = vadd.f32 %v2849_v11, %v2815_v20  ;;  %v2745_v20 = vmul.f32 %v2652_v7, %v2493_v42 }
 0x42a   : > { %v2425_v28 = vpop.f32.mrf.mxu1 }
 0x42b   : > { %v2772_v9 = vadd.f32 %v2771_v5, %v2736_v6  ;;  %v2851_v19 = vadd.f32 %v2850_v18, %v2816_v16  ;;  %v2491_v23 = vsub.f32 %v2425_v28, %v4745_v3  ;;  %v2746_v16 = vmul.f32 %v2657_v0, %v2494_v48 }
 0x42c   : > { %v2747_v18 = vmul.f32 %v2662_v22, %v2495_v24 }
 0x42d   : > { %v2852_v13 = vadd.f32 %v2851_v19, %v2817_v14  ;;  %v2773_v46 = vadd.f32 %v2772_v9, %v2737_v17  ;;  %v2743_v37 = vmul.f32 %v4784_v60, %v2491_v23  ;;  %v2682_v60 = vpop.permute.xlu1 %2681  ;;  %v2497_v14 = vsub.f32 %v4800_v15, %v4745_v3  ;;  %v2692_v26 = vpop.permute.xlu0 %2691 }
 0x42e   : > { %v2443_v51 = vpop.f32.mrf.mxu2  ;;  %v4814_v1 = vpop.f32.mrf.mxu3  ;;  %v2828_v25 = vmul.f32 %v2747_v18, %v2747_v18 }
 0x42f   : > { %v2774_v12 = vadd.f32 %v2773_v46, %v2738_v57  ;;  %v2853_v29 = vadd.f32 %v2852_v13, %v2818_v4  ;;  %v2824_v11 = vmul.f32 %v2743_v37, %v2743_v37  ;;  %v2826_v57 = vmul.f32 %v2745_v20, %v2745_v20  ;;  %v2702_v42 = vpop.permute.xlu2 %2701 }
 0x430   : > { %v2498_v7 = vsub.f32 %v2443_v51, %v4745_v3  ;;  %v2748_v4 = vmul.f32 %v2667_v32, %v2496_v33  ;;  %v2749_v46 = vmul.f32 %v2672_v38, %v2497_v14 }
 0x431   : > { %v2775_v41 = vadd.f32 %v2774_v12, %v2739_v44  ;;  %v2854_v35 = vadd.f32 %v2853_v29, %v2819_v27  ;;  %v2827_v44 = vmul.f32 %v2746_v16, %v2746_v16 }
 0x432   : > { %v2829_v12 = vmul.f32 %v2748_v4, %v2748_v4 }
 0x433   : > { %v2776_v58 = vadd.f32 %v2775_v41, %v2740_v30  ;;  %v2855_v40 = vadd.f32 %v2854_v35, %v2820_v21  ;;  %v2750_v30 = vmul.f32 %v2677_v47, %v2498_v7  ;;  %v2830_v21 = vmul.f32 %v2749_v46, %v2749_v46 }
 0x434   : > { %v2502_v35 = vsub.f32 %v4802_v2, %v4745_v3  ;;  %v2503_v47 = vsub.f32 %v4814_v1, %v4745_v3 }
 0x435   : > { %v2777_v49 = vadd.f32 %v2776_v58, %v2741_v45  ;;  %v2856_v63 = vadd.f32 %v2855_v40, %v2821_v55  ;;  %v2697_v51 = vpop.permute.xlu1 %2696  ;;  %v2831_v23 = vmul.f32 %v2750_v30, %v2750_v30 }
 0x436   : > { %v2445_v54 = vpop.f32.mrf.mxu2  ;;  %v4827_v56 = vpop.f32.mrf.mxu3 }
 0x437   : > { %v2857_v59 = vadd.f32 %v2856_v63, %v2822_v50  ;;  %v2778_v61 = vadd.f32 %v2777_v49, %v2742_v53  ;;  %v2499_v22 = vsub.f32 %v2445_v54, %v4745_v3  ;;  %v2754_v54 = vmul.f32 %v2697_v51, %v2502_v35  ;;  %v2717_v14 = vpop.permute.xlu2 %2716 }
 0x438   : > { %v2504_v2 = vsub.f32 %v4827_v56, %v4745_v3 }
 0x439   : > { %v2858_v6 = vadd.f32 %v2857_v59, %v2823_v34  ;;  %v2779_v8 = vadd.f32 %v2778_v61, %v2743_v37  ;;  %v2751_v45 = vmul.f32 %v2682_v60, %v2499_v22  ;;  %v2755_v34 = vmul.f32 %v2702_v42, %v2503_v47 }
 0x43b   : > { %v2780_v17 = vadd.f32 %v2779_v8, %v2744_v52  ;;  %v2859_v5 = vadd.f32 %v2858_v6, %v2824_v11  ;;  %v2832_v50 = vmul.f32 %v2751_v45, %v2751_v45  ;;  %v2707_v52 = vpop.permute.xlu0 %2706  ;;  %v2835_v11 = vmul.f32 %v2754_v54, %v2754_v54 }
 0x43d   : > { %v2781_v39 = vadd.f32 %v2780_v17, %v2745_v20  ;;  %v2860_v62 = vadd.f32 %v2859_v5, %v2825_v10  ;;  %v2756_v10 = vmul.f32 %v2707_v52, %v2504_v2  ;;  %v2712_v17 = vpop.permute.xlu1 %2711  ;;  %v2836_v5 = vmul.f32 %v2755_v34, %v2755_v34 }
 0x43e   : > { %v2448_v9 = vpop.f32.mrf.mxu2  ;;  %v2460_v19 = vpop.f32.mrf.mxu3 }
 0x43f   : > { %v2782_v0 = vadd.f32 %v2781_v39, %v2746_v16  ;;  %v2861_v13 = vadd.f32 %v2860_v62, %v2826_v57  ;;  %v2500_v43 = vsub.f32 %v2448_v9, %v4745_v3  ;;  %v2505_v20 = vsub.f32 %v2460_v19, %v4745_v3 }
 0x440   : > { %v2837_v39 = vmul.f32 %v2756_v10, %v2756_v10 }
 0x441   : > { %v2862_v28 = vadd.f32 %v2861_v13, %v2827_v44  ;;  %v2783_v27 = vadd.f32 %v2782_v0, %v2747_v18  ;;  %v2752_v40 = vmul.f32 %v2687_v31, %v2500_v43  ;;  %v2757_v18 = vmul.f32 %v2712_v17, %v2505_v20 }
 0x443   : > { %v2784_v15 = vadd.f32 %v2783_v27, %v2748_v4  ;;  %v2863_v29 = vadd.f32 %v2862_v28, %v2828_v25  ;;  %v2833_v61 = vmul.f32 %v2752_v40, %v2752_v40  ;;  %v2722_v19 = vpop.permute.xlu0 %2721  ;;  %v2838_v44 = vmul.f32 %v2757_v18, %v2757_v18 }
 0x445   : > { %v2785_v41 = vadd.f32 %v2784_v15, %v2749_v46  ;;  %v2864_v32 = vadd.f32 %v2863_v29, %v2829_v12 }
 0x446   : > { %v2450_v36 = vpop.f32.mrf.mxu2  ;;  %v2463_v38 = vpop.f32.mrf.mxu3 }
 0x447   : > { %v2786_v55 = vadd.f32 %v2785_v41, %v2750_v30  ;;  %v2865_v58 = vadd.f32 %v2864_v32, %v2830_v21  ;;  %v2501_v53 = vsub.f32 %v2450_v36, %v4745_v3  ;;  %v2506_v33 = vsub.f32 %v2463_v38, %v4745_v3  ;;  %v2760_v32 = vld [vmem:[%s4710_s30] sm:$0x1] }
 0x448   : > { %v2804_v36 = vld [vmem:[%s4716_s8] sm:$0x1] }
 0x449   : > { %v2787_v49 = vadd.f32 %v2786_v55, %v2751_v45  ;;  %v2866_v63 = vadd.f32 %v2865_v58, %v2831_v23  ;;  %v2753_v37 = vmul.f32 %v2692_v26, %v2501_v53  ;;  %v2758_v7 = vmul.f32 %v2717_v14, %v2506_v33 }
 0x44b   : > { %v2867_v48 = vadd.f32 %v2866_v63, %v2832_v50  ;;  %v2788_v59 = vadd.f32 %v2787_v49, %v2752_v40  ;;  %v2834_v8 = vmul.f32 %v2753_v37, %v2753_v37  ;;  %v2839_v25 = vmul.f32 %v2758_v7, %v2758_v7 }
 0x44d   : > { %v2868_v24 = vadd.f32 %v2867_v48, %v2833_v61  ;;  %v2789_v6 = vadd.f32 %v2788_v59, %v2753_v37 }
 0x44e   : > { %v2465_v1 = vpop.f32.mrf.mxu3 }
 0x44f   : > { %v2790_v60 = vadd.f32 %v2789_v6, %v2754_v54  ;;  %v2869_v16 = vadd.f32 %v2868_v24, %v2834_v8  ;;  %v2507_v57 = vsub.f32 %v2465_v1, %v4745_v3 }
 0x451   : > { %v2791_v31 = vadd.f32 %v2790_v60, %v2755_v34  ;;  %v2870_v56 = vadd.f32 %v2869_v16, %v2835_v11  ;;  %v2759_v13 = vmul.f32 %v2722_v19, %v2507_v57 }
 0x453   : > { %v2871_v62 = vadd.f32 %v2870_v56, %v2836_v5  ;;  %v2792_v9 = vadd.f32 %v2791_v31, %v2756_v10  ;;  %v2840_v27 = vmul.f32 %v2759_v13, %v2759_v13 }
 0x455   : > { %v2793_v4 = vadd.f32 %v2792_v9, %v2757_v18  ;;  %v2872_v0 = vadd.f32 %v2871_v62, %v2837_v39 }
 0x457   : > { %v2794_v26 = vadd.f32 %v2793_v4, %v2758_v7  ;;  %v2873_v46 = vadd.f32 %v2872_v0, %v2838_v44 }
 0x459   : > { %v2874_v28 = vadd.f32 %v2873_v46, %v2839_v25  ;;  %v2795_v22 = vadd.f32 %v2794_v26, %v2759_v13 }
 0x45b   : > { %v2796_v30 = vrot.slane %v2795_v22, 4  ;;  %v2875_v3 = vadd.f32 %v2874_v28, %v2840_v27 }
 0x45d   : > { %v2797_v12 = vadd.f32 %v2796_v30, %v2795_v22  ;;  %v2876_v15 = vrot.slane %v2875_v3, 4 }
 0x45f   : > { %v2798_v29 = vrot.slane %v2797_v12, 2  ;;  %v2877_v43 = vadd.f32 %v2876_v15, %v2875_v3 }
 0x461   : > { %v2799_v51 = vadd.f32 %v2798_v29, %v2797_v12  ;;  %v2878_v21 = vrot.slane %v2877_v43, 2 }
 0x463   : > { %v2800_v45 = vrot.slane %v2799_v51, 1  ;;  %v2879_v41 = vadd.f32 %v2878_v21, %v2877_v43 }
 0x465   : > { %v2801_v35 = vadd.f32 %v2800_v45, %v2799_v51  ;;  %v2880_v23 = vrot.slane %v2879_v41, 1 }
 0x467   : > { %v2802_v38 = vadd.f32 %v2801_v35, %v2760_v32  ;;  %v2881_v55 = vadd.f32 %v2880_v23, %v2879_v41 }
 0x469   : > { %2803 = vst [vmem:[%s4710_s30] sm:$0x1] %v2802_v38  ;;  %v2882_v58 = vadd.f32 %v2881_v55, %v2804_v36 }
 0x46b   : > { %2883 = vst [vmem:[%s4716_s8] sm:$0x1] %v2882_v58 }
 0x46c PF: > { %s16_s20 = sadd.s32 1, %s3481_s20   ;;  %s4869_s18 = smov %s3477_s19 }
 0x46d   : > { %p13_p5 = scmp.ge.s32.totalorder %s16_s20, 4   ;;  %s4870_s19 = smov %s4872_s21 }
 0x46f   :  { %15 = sbr.rel (!%p13_p5) target bundleno = 2 (0x2), region = 94 }

// kernel: conv_bn_forward.3
= control target key start
LH: loop header
LB: loop body
LE: loop exit
PB: predicated region body
PF: predicated region fallthrough
CT: control target
= control target key end

     0   :  { %s3155_s15 = smov 0   ;;  %s3157_s16 = smov 0   ;;  %s4322_s0 = inlined_call_operand.vmem [shape: bf16[2,256,4], index: 0, kind: input, shape index: {}]   ;;  %s4323_s1 = inlined_call_operand.vmem [shape: bf16[36,128], index: 1, kind: input, shape index: {}]   ;;  %s4324_s2 = inlined_call_operand.vmem [shape: f32[1,128], index: 2, kind: input, shape index: {}]   ;;  %s4325_s3 = inlined_call_operand.vmem [shape: f32[1,128], index: 3, kind: input, shape index: {}]   ;;  %s4326_s4 = inlined_call_operand.vmem [shape: f32[2,288,128], index: 4, kind: output, shape index: {}]  }
   0x1   :  { %s3159_s17 = smov 0  }
   0x2 LB: > { %s26_s18 = sadd.s32 1, %s3115_s16  ;;  %p2650_p0 = scmp.ge.s32.totalorder %s3119_s17, 1  ;;  %s3119_s17 = sphi %s3159_s17, %s14_s17   ;;  %s3115_s16 = sphi %s3157_s16, %s4328_s16   ;;  %s3111_s15 = sphi %s3155_s15, %s4327_s15  }
   0x3   : > { %p28_p1 = scmp.ge.s32.totalorder %s26_s18, 2  ;;  %p176_p2 = scmp.lt.s32.totalorder %s3119_s17, 3 }
   0x5   : > { %s4330_s18 = smov (%p28_p1, %s26_s18), 0  ;;  %p177_p3 = pnand %p2650_p0, %p176_p2 }
   0x6   : > { %s3122_s19 = smov (!%p177_p3), 4   ;;  %p206_p4 = scmp.lt.s32.totalorder (!%p177_p3), %s3111_s15, 1 }
   0x7   : > { %180 = sbr.rel (%p177_p3) target bundleno = 1086 (0x43e), region = 36  ;;  %s3123_s24 = smov (!%p177_p3), 8  }
   0x8   : > { %s3124_s25 = smov (!%p177_p3), 12   ;;  %s3125_s26 = smov (!%p177_p3), 16  }
   0x9   : > { %s3126_s27 = smov (!%p177_p3), 20   ;;  %s3127_s28 = smov (!%p177_p3), 24  }
   0xa   : > { %s3128_s29 = smov (!%p177_p3), 32   ;;  %s3129_s30 = smov (!%p177_p3), 28  }
   0xc   : > { %vm226_vm0 = vcmask 31744   ;;  %v3121_v0 = vmov 0.0   ;;  %s4332_s15 = smov (!%p206_p4, %s3111_s15), 1  ;;  %vm621_vm1 = vcmask 64544   ;;  %vm840_vm2 = vcmask 97344  }
   0xd   : > { %227 = vst.msk [vmem:[#allocation2] sm:$0xff] %vm226_vm0, %v3121_v0  ;;  %s2970_s20 = sshll.u32 %s4332_s15, 7  ;;  %vm1059_vm3 = vcmask 130144   ;;  %vm1278_vm4 = vcmask 162944   ;;  %vm1497_vm5 = vcmask 195744   ;;  %vm1716_vm6 = vcmask 228544  }
   0xe   : > { %228 = vst.msk [vmem:[#allocation2 + $0x8] sm:$0xff] %vm226_vm0, %v3121_v0  ;;  %s3217_s23 = scalar_lea.vmem %s4322_s0, %s2970_s20  ;;  %vm2320_vm7 = vcmask 1041408   ;;  %vm1935_vm8 = vcmask 261344   ;;  %vm2154_vm9 = vcmask 294144   ;;  %vm2265_vm10 = vcmask 293888   ;;  %s3061_s13 = smul.u32 288, %s4332_s15 }
   0xf   : > { %229 = vst.msk [vmem:[#allocation2 + $0x10] sm:$0xff] %vm226_vm0, %v3121_v0  ;;  %v2974_v3 = vld [vmem:[%s3217_s23] sm:$0xff]   ;;  %v3037_v4 = vld [vmem:[%s3217_s23 + $0x8] sm:$0xff]   ;;  %v3038_v5 = vld [vmem:[%s3217_s23 + $0x10] sm:$0xff]  }
  0x10   : > { %230 = vst.msk [vmem:[#allocation2 + $0x18] sm:$0xff] %vm226_vm0, %v3121_v0  ;;  %v2975_v6 = vunpack.c.l.bf16 %v2974_v3  ;;  %v2980_v7 = vunpack.c.h.bf16 %v3037_v4  ;;  %v3039_v8 = vld [vmem:[%s3217_s23 + $0x18] sm:$0xff]   ;;  %v2983_v9 = vunpack.c.l.bf16 %v3038_v5  ;;  %v2976_v10 = vunpack.c.h.bf16 %v2974_v3  ;;  %v3040_v11 = vld [vmem:[%s3217_s23 + $0x20] sm:$0xff]   ;;  %v3041_v16 = vld [vmem:[%s3217_s23 + $0x28] sm:$0xff]   ;;  %s4170_s22 = scalar_lea.vmem %s4326_s4, %s3061_s13 }
  0x11   : > { %231 = vst.msk [vmem:[#allocation2 + $0x20] sm:$0xff] %vm226_vm0, %v3121_v0  ;;  %v2987_v12 = vunpack.c.l.bf16 %v3039_v8  ;;  %v2984_v13 = vunpack.c.h.bf16 %v3038_v5  ;;  %v2991_v14 = vunpack.c.l.bf16 %v3040_v11  ;;  %v2992_v15 = vunpack.c.h.bf16 %v3040_v11  ;;  %v3042_v18 = vld [vmem:[%s3217_s23 + $0x30] sm:$0xff]   ;;  %v3043_v21 = vld [vmem:[%s3217_s23 + $0x38] sm:$0xff]   ;;  %v3044_v29 = vld [vmem:[%s3217_s23 + $0x40] sm:$0xff]  }
  0x12   : > { %232 = vst.msk [vmem:[#allocation2 + $0x28] sm:$0xff] %vm226_vm0, %v3121_v0  ;;  %v2979_v17 = vunpack.c.l.bf16 %v3037_v4  ;;  %v2988_v19 = vunpack.c.h.bf16 %v3039_v8  ;;  %v2996_v20 = vunpack.c.h.bf16 %v3041_v16  ;;  %v2999_v23 = vunpack.c.l.bf16 %v3042_v18  ;;  %v3045_v37 = vld [vmem:[%s3217_s23 + $0x48] sm:$0xff]   ;;  %v3046_v38 = vld [vmem:[%s3217_s23 + $0x50] sm:$0xff]   ;;  %v3047_v45 = vld [vmem:[%s3217_s23 + $0x58] sm:$0xff]  }
  0x13   : > { %233 = vst.msk [vmem:[#allocation2 + $0x30] sm:$0xff] %vm226_vm0, %v3121_v0  ;;  %v2995_v24 = vunpack.c.l.bf16 %v3041_v16  ;;  %v3003_v26 = vunpack.c.l.bf16 %v3043_v21  ;;  %v3000_v27 = vunpack.c.h.bf16 %v3042_v18  ;;  %v3007_v30 = vunpack.c.l.bf16 %v3044_v29  ;;  %v3048_v51 = vld [vmem:[%s3217_s23 + $0x60] sm:$0xff]   ;;  %v3049_v58 = vld [vmem:[%s3217_s23 + $0x68] sm:$0xff]   ;;  %v3050_v59 = vld [vmem:[%s3217_s23 + $0x70] sm:$0xff]  }
  0x14   : > { %234 = vst.msk [vmem:[#allocation2 + $0x38] sm:$0xff] %vm226_vm0, %v3121_v0  ;;  %v3008_v31 = vunpack.c.h.bf16 %v3044_v29  ;;  %v3004_v32 = vunpack.c.h.bf16 %v3043_v21  ;;  %v3012_v39 = vunpack.c.h.bf16 %v3045_v37  ;;  %v3015_v40 = vunpack.c.l.bf16 %v3046_v38 }
  0x15   : > { %v2654_v1 = vld [vmem:[#allocation2 + $0x1] sm:$0xff]  ;;  %235 = vst.msk [vmem:[#allocation2 + $0x40] sm:$0xff] %vm226_vm0, %v3121_v0  ;;  %v3011_v41 = vunpack.c.l.bf16 %v3045_v37  ;;  %v3019_v46 = vunpack.c.l.bf16 %v3047_v45  ;;  %v3016_v47 = vunpack.c.h.bf16 %v3046_v38  ;;  %v3023_v52 = vunpack.c.l.bf16 %v3048_v51 }
  0x16   : > { %513 = vrot.lane.b32.xlu0 %v2654_v1, %s3122_s19  ;;  %236 = vst.msk [vmem:[#allocation2 + $0x48] sm:$0xff] %vm226_vm0, %v3121_v0  ;;  %v2655_v2 = vld [vmem:[#allocation2 + $0x9] sm:$0xff]  ;;  %v3024_v53 = vunpack.c.h.bf16 %v3048_v51  ;;  %v3020_v54 = vunpack.c.h.bf16 %v3047_v45  ;;  %v3028_v60 = vunpack.c.h.bf16 %v3049_v58  ;;  %v3031_v61 = vunpack.c.l.bf16 %v3050_v59 }
  0x17   : > { %237 = vst.msk [vmem:[#allocation2 + $0x50] sm:$0xff] %vm226_vm0, %v3121_v0  ;;  %v3027_v62 = vunpack.c.l.bf16 %v3049_v58  ;;  %v367_v18 = vld [vmem:[#allocation2 + $0x8] sm:$0xff] }
  0x18   : > { %238 = vst.msk [vmem:[#allocation2 + $0x58] sm:$0xff] %vm226_vm0, %v3121_v0 }
  0x19   : > { %239 = vst.msk [vmem:[#allocation2 + $0x60] sm:$0xff] %vm226_vm0, %v3121_v0 }
  0x1a   : > { %240 = vst.msk [vmem:[#allocation2 + $0x68] sm:$0xff] %vm226_vm0, %v3121_v0 }
  0x1b   : > { %241 = vst.msk [vmem:[#allocation2 + $0x70] sm:$0xff] %vm226_vm0, %v3121_v0 }
  0x1c   : > { %242 = vst.msk [vmem:[#allocation2 + $0x78] sm:$0xff] %vm226_vm0, %v3121_v0 }
  0x1d   : > { %243 = vst.msk [vmem:[#allocation2 + $0x80] sm:$0xff] %vm226_vm0, %v3121_v0 }
  0x1e   : > { %244 = vst.msk [vmem:[#allocation2 + $0x88] sm:$0xff] %vm226_vm0, %v3121_v0  ;;  %515 = vrot.lane.b32.xlu0 %v2655_v2, %s3122_s19  ;;  %v3032_v2 = vunpack.c.h.bf16 %v3050_v59 }
  0x1f   : > { %245 = vst.msk [vmem:[#allocation2 + $0x90] sm:$0xff] %vm226_vm0, %v3121_v0 }
  0x20   : > { %246 = vst.msk [vmem:[#allocation2 + $0x98] sm:$0xff] %vm226_vm0, %v3121_v0 }
  0x21   : > { %247 = vst.msk [vmem:[#allocation2 + $0xa0] sm:$0xff] %vm226_vm0, %v3121_v0 }
  0x22   : > { %248 = vst.msk [vmem:[#allocation2 + $0xa8] sm:$0xff] %vm226_vm0, %v3121_v0 }
  0x23   : > { %249 = vst.msk [vmem:[#allocation2 + $0xb0] sm:$0xff] %vm226_vm0, %v3121_v0 }
  0x24   : > { %250 = vst.msk [vmem:[#allocation2 + $0xb8] sm:$0xff] %vm226_vm0, %v3121_v0 }
  0x25   : > { %251 = vst.msk [vmem:[#allocation2 + $0xc0] sm:$0xff] %vm226_vm0, %v3121_v0 }
  0x26   : > { %252 = vst.msk [vmem:[#allocation2 + $0xc8] sm:$0xff] %vm226_vm0, %v3121_v0 }
  0x27   : > { %253 = vst.msk [vmem:[#allocation2 + $0xd0] sm:$0xff] %vm226_vm0, %v3121_v0 }
  0x28   : > { %254 = vst.msk [vmem:[#allocation2 + $0xd8] sm:$0xff] %vm226_vm0, %v3121_v0 }
  0x29   : > { %255 = vst.msk [vmem:[#allocation2 + $0xe0] sm:$0xff] %vm226_vm0, %v3121_v0 }
  0x2a   : > { %256 = vst.msk [vmem:[#allocation2 + $0xe8] sm:$0xff] %vm226_vm0, %v3121_v0 }
  0x2b   : > { %257 = vst.msk [vmem:[#allocation2 + $0xf0] sm:$0xff] %vm226_vm0, %v3121_v0 }
  0x2c   : > { %258 = vst.msk [vmem:[#allocation2 + $0xf8] sm:$0xff] %vm226_vm0, %v3121_v0 }
  0x2d   : > { %259 = vst.msk [vmem:[#allocation2 + $0x100] sm:$0xff] %vm226_vm0, %v3121_v0 }
  0x2e   : > { %260 = vst.msk [vmem:[#allocation2 + $0x108] sm:$0xff] %vm226_vm0, %v3121_v0 }
  0x2f   : > { %261 = vst.msk [vmem:[#allocation2 + $0x110] sm:$0xff] %vm226_vm0, %v3121_v0 }
  0x30   : > { %262 = vst.msk [vmem:[#allocation2 + $0x118] sm:$0xff] %vm226_vm0, %v3121_v0 }
  0x31   : > { %263 = vst.msk [vmem:[#allocation2 + $0x120] sm:$0xff] %vm226_vm0, %v3121_v0 }
  0x32   : > { %264 = vst.msk [vmem:[#allocation2 + $0x128] sm:$0xff] %vm226_vm0, %v3121_v0 }
  0x33   : > { %265 = vst.msk [vmem:[#allocation2 + $0x130] sm:$0xff] %vm226_vm0, %v3121_v0 }
  0x34   : > { %266 = vst.msk [vmem:[#allocation2 + $0x138] sm:$0xff] %vm226_vm0, %v3121_v0 }
  0x35   : > { %267 = vst.msk [vmem:[#allocation2 + $0x140] sm:$0xff] %vm226_vm0, %v3121_v0 }
  0x36   : > { %272 = vst.msk [vmem:[#allocation2 + $0x13] sm:$0xff] %vm226_vm0, %v2975_v6 }
  0x37   : > { %279 = vst.msk [vmem:[#allocation2 + $0x2d] sm:$0xff] %vm226_vm0, %v2980_v7 }
  0x38   : > { %284 = vst.msk [vmem:[#allocation2 + $0x37] sm:$0xff] %vm226_vm0, %v2983_v9 }
  0x39   : > { %273 = vst.msk [vmem:[#allocation2 + $0x1b] sm:$0xff] %vm226_vm0, %v2976_v10 }
  0x3a   : > { %290 = vst.msk [vmem:[#allocation2 + $0x49] sm:$0xff] %vm226_vm0, %v2987_v12 }
  0x3b   : > { %285 = vst.msk [vmem:[#allocation2 + $0x3f] sm:$0xff] %vm226_vm0, %v2984_v13  ;;  %v366_v13 = vld [vmem:[#allocation2] sm:$0xff] }
  0x3c   : > { %296 = vst.msk [vmem:[#allocation2 + $0x5b] sm:$0xff] %vm226_vm0, %v2991_v14 }
  0x3d   : > { %v2656_v22 = vld [vmem:[#allocation2 + $0x11] sm:$0xff]  ;;  %297 = vst.msk [vmem:[#allocation2 + $0x63] sm:$0xff] %vm226_vm0, %v2992_v15 }
  0x3e   : > { %517 = vrot.lane.b32.xlu1 %v2656_v22, %s3122_s19  ;;  %278 = vst.msk [vmem:[#allocation2 + $0x25] sm:$0xff] %vm226_vm0, %v2979_v17  ;;  %v2690_v17 = vld [vmem:[#allocation2 + $0x2] sm:$0xff] }
  0x3f   : > { %v2660_v25 = vld [vmem:[#allocation2 + $0x31] sm:$0xff]  ;;  %291 = vst.msk [vmem:[#allocation2 + $0x51] sm:$0xff] %vm226_vm0, %v2988_v19 }
  0x40   : > { %525 = vrot.lane.b32.xlu0 %v2660_v25, %s3122_s19  ;;  %303 = vst.msk [vmem:[#allocation2 + $0x75] sm:$0xff] %vm226_vm0, %v2996_v20  ;;  %v2657_v28 = vld [vmem:[#allocation2 + $0x19] sm:$0xff]  ;;  %v368_v20 = vld [vmem:[#allocation2 + $0x10] sm:$0xff] }
  0x41   : > { %308 = vst.msk [vmem:[#allocation2 + $0x7f] sm:$0xff] %vm226_vm0, %v2999_v23  ;;  %v2663_v33 = vld [vmem:[#allocation2 + $0x49] sm:$0xff] }
  0x42   : > { %302 = vst.msk [vmem:[#allocation2 + $0x6d] sm:$0xff] %vm226_vm0, %v2995_v24  ;;  %v2661_v35 = vld [vmem:[#allocation2 + $0x39] sm:$0xff]  ;;  %v2662_v44 = vld [vmem:[#allocation2 + $0x41] sm:$0xff]  ;;  %v372_v25 = vld [vmem:[#allocation2 + $0x30] sm:$0xff] }
  0x43   : > { %314 = vst.msk [vmem:[#allocation2 + $0x91] sm:$0xff] %vm226_vm0, %v3003_v26  ;;  %v2665_v50 = vld [vmem:[#allocation2 + $0x59] sm:$0xff] }
  0x44   : > { %309 = vst.msk [vmem:[#allocation2 + $0x87] sm:$0xff] %vm226_vm0, %v3000_v27  ;;  %v2666_v42 = vld [vmem:[#allocation2 + $0x61] sm:$0xff]  ;;  %v369_v27 = vld [vmem:[#allocation2 + $0x18] sm:$0xff] }
  0x45   : > { %v2658_v34 = vld [vmem:[#allocation2 + $0x21] sm:$0xff]  ;;  %320 = vst.msk [vmem:[#allocation2 + $0xa3] sm:$0xff] %vm226_vm0, %v3007_v30  ;;  %v2659_v36 = vld [vmem:[#allocation2 + $0x29] sm:$0xff]  ;;  %v3320_v30 = vld [vmem:[#allocation2 + $0x32] sm:$0xff] }
  0x46   : > { %519 = vrot.lane.b32.xlu1 %v2657_v28, %s3122_s19  ;;  %521 = vrot.lane.b32.xlu2 %v2658_v34, %s3122_s19  ;;  %321 = vst.msk [vmem:[#allocation2 + $0xab] sm:$0xff] %vm226_vm0, %v3008_v31  ;;  %v2664_v43 = vld [vmem:[#allocation2 + $0x51] sm:$0xff]  ;;  %v370_v19 = vld [vmem:[#allocation2 + $0x20] sm:$0xff]  ;;  %v371_v26 = vld [vmem:[#allocation2 + $0x28] sm:$0xff] }
  0x47   : > { %315 = vst.msk [vmem:[#allocation2 + $0x99] sm:$0xff] %vm226_vm0, %v3004_v32  ;;  %v3311_v24 = vld [vmem:[#allocation2 + $0x1a] sm:$0xff]  ;;  %v2691_v28 = vld [vmem:[#allocation2 + $0xa] sm:$0xff]  ;;  %v3362_v51 = vld [vmem:[#allocation2 + $0x52] sm:$0xff] }
  0x48   : > { %531 = vrot.lane.b32.xlu0 %v2663_v33, %s3122_s19  ;;  %327 = vst.msk [vmem:[#allocation2 + $0xbd] sm:$0xff] %vm226_vm0, %v3012_v39  ;;  %v2669_v48 = vld [vmem:[#allocation2 + $0x79] sm:$0xff]  ;;  %v375_v31 = vld [vmem:[#allocation2 + $0x48] sm:$0xff] }
  0x49   : > { %332 = vst.msk [vmem:[#allocation2 + $0xc7] sm:$0xff] %vm226_vm0, %v3015_v40  ;;  %v2667_v49 = vld [vmem:[#allocation2 + $0x69] sm:$0xff]  ;;  %v2668_v57 = vld [vmem:[#allocation2 + $0x71] sm:$0xff]  ;;  %v374_v32 = vld [vmem:[#allocation2 + $0x40] sm:$0xff] }
  0x4a   : > { %326 = vst.msk [vmem:[#allocation2 + $0xb5] sm:$0xff] %vm226_vm0, %v3011_v41  ;;  %v2672_v55 = vld [vmem:[#allocation2 + $0x91] sm:$0xff]  ;;  %v378_v38 = vld [vmem:[#allocation2 + $0x60] sm:$0xff] }
  0x4b   : > { %338 = vst.msk [vmem:[#allocation2 + $0xd9] sm:$0xff] %vm226_vm0, %v3019_v46  ;;  %v2670_v56 = vld [vmem:[#allocation2 + $0x81] sm:$0xff]  ;;  %v2671_v1 = vld [vmem:[#allocation2 + $0x89] sm:$0xff]  ;;  %v373_v33 = vld [vmem:[#allocation2 + $0x38] sm:$0xff] }
  0x4c   : > { %333 = vst.msk [vmem:[#allocation2 + $0xcf] sm:$0xff] %vm226_vm0, %v3016_v47  ;;  %v2674_v5 = vld [vmem:[#allocation2 + $0xa1] sm:$0xff]  ;;  %v3334_v37 = vld [vmem:[#allocation2 + $0x4a] sm:$0xff]  ;;  %v377_v39 = vld [vmem:[#allocation2 + $0x58] sm:$0xff] }
  0x4d   : > { %344 = vst.msk [vmem:[#allocation2 + $0xeb] sm:$0xff] %vm226_vm0, %v3023_v52  ;;  %v2675_v63 = vld [vmem:[#allocation2 + $0xa9] sm:$0xff]  ;;  %v381_v45 = vld [vmem:[#allocation2 + $0x78] sm:$0xff]  ;;  %v382_v58 = vld [vmem:[#allocation2 + $0x80] sm:$0xff] }
  0x4e   : > { %527 = vrot.lane.b32.xlu1 %v2661_v35, %s3122_s19  ;;  %523 = vrot.lane.b32.xlu2 %v2659_v36, %s3122_s19  ;;  %345 = vst.msk [vmem:[#allocation2 + $0xf3] sm:$0xff] %vm226_vm0, %v3024_v53  ;;  %v2673_v0 = vld [vmem:[#allocation2 + $0x99] sm:$0xff]  ;;  %v3330_v35 = vld [vmem:[#allocation2 + $0x22] sm:$0xff]  ;;  %v376_v40 = vld [vmem:[#allocation2 + $0x50] sm:$0xff] }
  0x4f   : > { %339 = vst.msk [vmem:[#allocation2 + $0xe1] sm:$0xff] %vm226_vm0, %v3020_v54  ;;  %v3332_v36 = vld [vmem:[#allocation2 + $0x12] sm:$0xff]  ;;  %v3365_v52 = vld [vmem:[#allocation2 + $0x42] sm:$0xff]  ;;  %v3368_v53 = vld [vmem:[#allocation2 + $0x7a] sm:$0xff] }
  0x50   : > { %537 = vrot.lane.b32.xlu0 %v2666_v42, %s3122_s19  ;;  %351 = vst.msk [vmem:[#allocation2 + $0x105] sm:$0xff] %vm226_vm0, %v3028_v60  ;;  %v2678_v3 = vld [vmem:[#allocation2 + $0xc1] sm:$0xff]  ;;  %v380_v46 = vld [vmem:[#allocation2 + $0x70] sm:$0xff] }
  0x51   : > { %356 = vst.msk [vmem:[#allocation2 + $0x10f] sm:$0xff] %vm226_vm0, %v3031_v61  ;;  %v2676_v4 = vld [vmem:[#allocation2 + $0xb1] sm:$0xff]  ;;  %v2677_v8 = vld [vmem:[#allocation2 + $0xb9] sm:$0xff] }
  0x52   : > { %350 = vst.msk [vmem:[#allocation2 + $0xfd] sm:$0xff] %vm226_vm0, %v3027_v62  ;;  %v2681_v6 = vld [vmem:[#allocation2 + $0xd9] sm:$0xff]  ;;  %v384_v54 = vld [vmem:[#allocation2 + $0x90] sm:$0xff] }
  0x53   : > { %357 = vst.msk [vmem:[#allocation2 + $0x117] sm:$0xff] %vm226_vm0, %v3032_v2  ;;  %v2679_v7 = vld [vmem:[#allocation2 + $0xc9] sm:$0xff]  ;;  %v2680_v11 = vld [vmem:[#allocation2 + $0xd1] sm:$0xff]  ;;  %v3346_v42 = vld [vmem:[#allocation2 + $0x3a] sm:$0xff] }
  0x54   : > { %403 = vst.msk [vmem:[#allocation3] sm:$0xff] %vm226_vm0, %v366_v13  ;;  %v2683_v16 = vld [vmem:[#allocation2 + $0xe9] sm:$0xff]  ;;  %v3383_v61 = vld [vmem:[#allocation2 + $0x5a] sm:$0xff]  ;;  %v3386_v62 = vld [vmem:[#allocation2 + $0x92] sm:$0xff] }
  0x55   : > { %v2684_v9 = vld [vmem:[#allocation2 + $0xf1] sm:$0xff]  ;;  %404 = vst.msk [vmem:[#allocation3 + $0x8] sm:$0xff] %vm226_vm0, %v367_v18 }
  0x56   : > { %533 = vrot.lane.b32.xlu1 %v2664_v43, %s3122_s19  ;;  %529 = vrot.lane.b32.xlu2 %v2662_v44, %s3122_s19  ;;  %v2682_v10 = vld [vmem:[#allocation2 + $0xe1] sm:$0xff]  ;;  %407 = vst.msk [vmem:[#allocation3 + $0x20] sm:$0xff] %vm226_vm0, %v370_v19  ;;  %v3348_v43 = vld [vmem:[#allocation2 + $0x2a] sm:$0xff] }
  0x57   : > { %405 = vst.msk [vmem:[#allocation3 + $0x10] sm:$0xff] %vm226_vm0, %v368_v20  ;;  %v3350_v44 = vld [vmem:[#allocation2 + $0x62] sm:$0xff]  ;;  %v3380_v60 = vld [vmem:[#allocation2 + $0x6a] sm:$0xff] }
  0x58   : > { %543 = vrot.lane.b32.xlu0 %v2669_v48, %s3122_s19  ;;  %v2687_v12 = vld [vmem:[#allocation2 + $0x109] sm:$0xff]  ;;  %409 = vst.msk [vmem:[#allocation3 + $0x30] sm:$0xff] %vm226_vm0, %v372_v25 }
  0x59   : > { %v2685_v15 = vld [vmem:[#allocation2 + $0xf9] sm:$0xff]  ;;  %v2686_v23 = vld [vmem:[#allocation2 + $0x101] sm:$0xff]  ;;  %408 = vst.msk [vmem:[#allocation3 + $0x28] sm:$0xff] %vm226_vm0, %v371_v26  ;;  %v392_v18 = vld [vmem:[#allocation2 + $0xd0] sm:$0xff] }
  0x5a   : > { %v2688_v22 = vld [vmem:[#allocation2 + $0x111] sm:$0xff]  ;;  %406 = vst.msk [vmem:[#allocation3 + $0x18] sm:$0xff] %vm226_vm0, %v369_v27  ;;  %v2689_v29 = vld [vmem:[#allocation2 + $0x119] sm:$0xff]  ;;  %v3437_v25 = vld [vmem:[#allocation2 + $0xa2] sm:$0xff] }
  0x5b   : > { %412 = vst.msk [vmem:[#allocation3 + $0x48] sm:$0xff] %vm226_vm0, %v375_v31  ;;  %v3440_v26 = vld [vmem:[#allocation2 + $0xda] sm:$0xff]  ;;  %v396_v27 = vld [vmem:[#allocation2 + $0xf0] sm:$0xff] }
  0x5c   : > { %411 = vst.msk [vmem:[#allocation3 + $0x40] sm:$0xff] %vm226_vm0, %v374_v32  ;;  %v394_v32 = vld [vmem:[#allocation2 + $0xe0] sm:$0xff] }
  0x5d   : > { %410 = vst.msk [vmem:[#allocation3 + $0x38] sm:$0xff] %vm226_vm0, %v373_v33 }
  0x5e   : > { %539 = vrot.lane.b32.xlu1 %v2667_v49, %s3122_s19  ;;  %535 = vrot.lane.b32.xlu2 %v2665_v50, %s3122_s19  ;;  %415 = vst.msk [vmem:[#allocation3 + $0x60] sm:$0xff] %vm226_vm0, %v378_v38  ;;  %v379_v49 = vld [vmem:[#allocation2 + $0x68] sm:$0xff]  ;;  %v3455_v38 = vld [vmem:[#allocation2 + $0xba] sm:$0xff] }
  0x5f   : > { %414 = vst.msk [vmem:[#allocation3 + $0x58] sm:$0xff] %vm226_vm0, %v377_v39  ;;  %v3458_v39 = vld [vmem:[#allocation2 + $0xf2] sm:$0xff] }
  0x60   : > { %549 = vrot.lane.b32.xlu0 %v2672_v55, %s3122_s19  ;;  %413 = vst.msk [vmem:[#allocation3 + $0x50] sm:$0xff] %vm226_vm0, %v376_v40  ;;  %v383_v55 = vld [vmem:[#allocation2 + $0x88] sm:$0xff] }
  0x61   : > { %418 = vst.msk [vmem:[#allocation3 + $0x78] sm:$0xff] %vm226_vm0, %v381_v45  ;;  %v399_v40 = vld [vmem:[#allocation2 + $0x108] sm:$0xff] }
  0x62   : > { %417 = vst.msk [vmem:[#allocation3 + $0x70] sm:$0xff] %vm226_vm0, %v380_v46 }
  0x63   : > { %416 = vst.msk [vmem:[#allocation3 + $0x68] sm:$0xff] %vm226_vm0, %v379_v49  ;;  %v3470_v49 = vld [vmem:[#allocation2 + $0xe2] sm:$0xff] }
  0x64   : > { %421 = vst.msk [vmem:[#allocation3 + $0x90] sm:$0xff] %vm226_vm0, %v384_v54  ;;  %v3476_v54 = vld [vmem:[%s3217_s23 + $0x78] sm:$0xff]  }
  0x65   : > { %420 = vst.msk [vmem:[#allocation3 + $0x88] sm:$0xff] %vm226_vm0, %v383_v55  ;;  %v3035_v55 = vunpack.c.l.bf16 %v3476_v54 }
  0x66   : > { %545 = vrot.lane.b32.xlu1 %v2670_v56, %s3122_s19  ;;  %541 = vrot.lane.b32.xlu2 %v2668_v57, %s3122_s19  ;;  %419 = vst.msk [vmem:[#allocation3 + $0x80] sm:$0xff] %vm226_vm0, %v382_v58  ;;  %v400_v58 = vld [vmem:[#allocation2 + $0x110] sm:$0xff] }
  0x67   : > { %429 = vst.msk [vmem:[#allocation3 + $0xd0] sm:$0xff] %vm226_vm0, %v392_v18 }
  0x68   : > { %555 = vrot.lane.b32.xlu0 %v2675_v63, %s3122_s19  ;;  %v387_v63 = vld [vmem:[#allocation2 + $0xa8] sm:$0xff]  ;;  %433 = vst.msk [vmem:[#allocation3 + $0xf0] sm:$0xff] %vm226_vm0, %v396_v27 }
  0x69   : > { %424 = vst.msk [vmem:[#allocation3 + $0xa8] sm:$0xff] %vm226_vm0, %v387_v63 }
  0x6a   : > { %431 = vst.msk [vmem:[#allocation3 + $0xe0] sm:$0xff] %vm226_vm0, %v394_v32 }
  0x6b   : > { %436 = vst.msk [vmem:[#allocation3 + $0x108] sm:$0xff] %vm226_vm0, %v399_v40 }
  0x6c   : > { %362 = vst.msk [vmem:[#allocation2 + $0x121] sm:$0xff] %vm226_vm0, %v3035_v55  ;;  %v2766_v55 = vld [vmem:[#allocation2 + $0x33] sm:$0xff] }
  0x6d   : > { %437 = vst.msk [vmem:[#allocation3 + $0x110] sm:$0xff] %vm226_vm0, %v400_v58 }
  0x6e   : > { %551 = vrot.lane.b32.xlu1 %v2673_v0, %s3122_s19  ;;  %547 = vrot.lane.b32.xlu2 %v2671_v1, %s3122_s19  ;;  %v386_v0 = vld [vmem:[#allocation2 + $0xa0] sm:$0xff] }
  0x6f   : > { %423 = vst.msk [vmem:[#allocation3 + $0xa0] sm:$0xff] %vm226_vm0, %v386_v0 }
  0x70   : > { %561 = vrot.lane.b32.xlu0 %v2678_v3, %s3122_s19  ;;  %v385_v3 = vld [vmem:[#allocation2 + $0x98] sm:$0xff] }
  0x71   : > { %422 = vst.msk [vmem:[#allocation3 + $0x98] sm:$0xff] %vm226_vm0, %v385_v3 }
  0x76   : > { %557 = vrot.lane.b32.xlu1 %v2676_v4, %s3122_s19  ;;  %553 = vrot.lane.b32.xlu2 %v2674_v5, %s3122_s19  ;;  %v3398_v5 = vld [vmem:[#allocation2 + $0x82] sm:$0xff] }
  0x78   : > { %567 = vrot.lane.b32.xlu0 %v2681_v6, %s3122_s19  ;;  %v3401_v6 = vld [vmem:[#allocation2 + $0x72] sm:$0xff] }
  0x7e   : > { %563 = vrot.lane.b32.xlu1 %v2679_v7, %s3122_s19  ;;  %559 = vrot.lane.b32.xlu2 %v2677_v8, %s3122_s19  ;;  %v3404_v7 = vld [vmem:[#allocation2 + $0xaa] sm:$0xff]  ;;  %v390_v8 = vld [vmem:[#allocation2 + $0xc0] sm:$0xff] }
  0x7f   : > { %427 = vst.msk [vmem:[#allocation3 + $0xc0] sm:$0xff] %vm226_vm0, %v390_v8 }
  0x80   : > { %573 = vrot.lane.b32.xlu0 %v2684_v9, %s3122_s19  ;;  %v389_v9 = vld [vmem:[#allocation2 + $0xb8] sm:$0xff] }
  0x81   : > { %426 = vst.msk [vmem:[#allocation3 + $0xb8] sm:$0xff] %vm226_vm0, %v389_v9  ;;  %v3506_v9 = vld [vmem:[#allocation2 + $0x112] sm:$0xff] }
  0x86   : > { %569 = vrot.lane.b32.xlu1 %v2682_v10, %s3122_s19  ;;  %565 = vrot.lane.b32.xlu2 %v2680_v11, %s3122_s19 }
  0x88   : > { %579 = vrot.lane.b32.xlu0 %v2687_v12, %s3122_s19  ;;  %v514_v14 = vpop.permute.xlu0 %513  ;;  %v388_v12 = vld [vmem:[#allocation2 + $0xb0] sm:$0xff] }
  0x89   : > { %622 = vst.msk [vmem:[#allocation3] sm:$0xff] %vm621_vm1, %v514_v14  ;;  %v3416_v14 = vld [vmem:[#allocation2 + $0x9a] sm:$0xff] }
  0x8a   : > { %425 = vst.msk [vmem:[#allocation3 + $0xb0] sm:$0xff] %vm226_vm0, %v388_v12 }
  0x8e   : > { %575 = vrot.lane.b32.xlu1 %v2685_v15, %s3122_s19  ;;  %571 = vrot.lane.b32.xlu2 %v2683_v16, %s3122_s19  ;;  %v3419_v15 = vld [vmem:[#allocation2 + $0x8a] sm:$0xff]  ;;  %v3422_v16 = vld [vmem:[#allocation2 + $0xc2] sm:$0xff] }
  0x90   : > { %732 = vrot.lane.b32.xlu0 %v2690_v17, %s3123_s24  ;;  %v516_v21 = vpop.permute.xlu0 %515  ;;  %v393_v17 = vld [vmem:[#allocation2 + $0xd8] sm:$0xff] }
  0x91   : > { %623 = vst.msk [vmem:[#allocation3 + $0x8] sm:$0xff] %vm621_vm1, %v516_v21  ;;  %v391_v21 = vld [vmem:[#allocation2 + $0xc8] sm:$0xff] }
  0x92   : > { %430 = vst.msk [vmem:[#allocation3 + $0xd8] sm:$0xff] %vm226_vm0, %v393_v17 }
  0x93   : > { %428 = vst.msk [vmem:[#allocation3 + $0xc8] sm:$0xff] %vm226_vm0, %v391_v21  ;;  %v3036_v21 = vunpack.c.h.bf16 %v3476_v54 }
  0x95   : > { %363 = vst.msk [vmem:[#allocation2 + $0x129] sm:$0xff] %vm226_vm0, %v3036_v21  ;;  %v2784_v21 = vld [vmem:[#allocation2 + $0xc3] sm:$0xff] }
  0x96   : > { %581 = vrot.lane.b32.xlu1 %v2688_v22, %s3122_s19  ;;  %577 = vrot.lane.b32.xlu2 %v2686_v23, %s3122_s19  ;;  %v3434_v23 = vld [vmem:[#allocation2 + $0xb2] sm:$0xff] }
  0x98   : > { %738 = vrot.lane.b32.xlu0 %v3311_v24, %s3123_s24 }
  0x9e   : > { %734 = vrot.lane.b32.xlu1 %v2691_v28, %s3123_s24  ;;  %583 = vrot.lane.b32.xlu2 %v2689_v29, %s3122_s19  ;;  %v395_v28 = vld [vmem:[#allocation2 + $0xe8] sm:$0xff] }
  0x9f   : > { %432 = vst.msk [vmem:[#allocation3 + $0xe8] sm:$0xff] %vm226_vm0, %v395_v28 }
  0xa0   : > { %744 = vrot.lane.b32.xlu0 %v3320_v30, %s3123_s24  ;;  %v522_v34 = vpop.permute.xlu2 %521 }
  0xa1   : > { %626 = vst.msk [vmem:[#allocation3 + $0x20] sm:$0xff] %vm621_vm1, %v522_v34  ;;  %v3452_v34 = vld [vmem:[#allocation2 + $0xca] sm:$0xff] }
  0xa6   : > { %740 = vrot.lane.b32.xlu1 %v3330_v35, %s3123_s24  ;;  %736 = vrot.lane.b32.xlu2 %v3332_v36, %s3123_s24 }
  0xa8   : > { %750 = vrot.lane.b32.xlu0 %v3334_v37, %s3123_s24  ;;  %v524_v41 = vpop.permute.xlu2 %523 }
  0xa9   : > { %627 = vst.msk [vmem:[#allocation3 + $0x28] sm:$0xff] %vm621_vm1, %v524_v41  ;;  %v398_v41 = vld [vmem:[#allocation2 + $0x100] sm:$0xff] }
  0xaa   : > { %435 = vst.msk [vmem:[#allocation3 + $0x100] sm:$0xff] %vm226_vm0, %v398_v41 }
  0xae   : > { %746 = vrot.lane.b32.xlu1 %v3346_v42, %s3123_s24  ;;  %742 = vrot.lane.b32.xlu2 %v3348_v43, %s3123_s24 }
  0xb0   : > { %v518_v47 = vpop.permute.xlu1 %517  ;;  %756 = vrot.lane.b32.xlu0 %v3350_v44, %s3123_s24  ;;  %v530_v48 = vpop.permute.xlu2 %529 }
  0xb1   : > { %624 = vst.msk [vmem:[#allocation3 + $0x10] sm:$0xff] %vm621_vm1, %v518_v47  ;;  %v397_v47 = vld [vmem:[#allocation2 + $0xf8] sm:$0xff] }
  0xb2   : > { %v526_v50 = vpop.permute.xlu0 %525  ;;  %630 = vst.msk [vmem:[#allocation3 + $0x40] sm:$0xff] %vm621_vm1, %v530_v48 }
  0xb3   : > { %628 = vst.msk [vmem:[#allocation3 + $0x30] sm:$0xff] %vm621_vm1, %v526_v50  ;;  %v3473_v50 = vld [vmem:[#allocation2 + $0xd2] sm:$0xff] }
  0xb4   : > { %434 = vst.msk [vmem:[#allocation3 + $0xf8] sm:$0xff] %vm226_vm0, %v397_v47  ;;  %v2761_v47 = vld [vmem:[#allocation2 + $0x12a] sm:$0xff] }
  0xb6   : > { %752 = vrot.lane.b32.xlu1 %v3362_v51, %s3123_s24  ;;  %748 = vrot.lane.b32.xlu2 %v3365_v52, %s3123_s24 }
  0xb8   : > { %v520_v56 = vpop.permute.xlu1 %519  ;;  %762 = vrot.lane.b32.xlu0 %v3368_v53, %s3123_s24  ;;  %v536_v57 = vpop.permute.xlu2 %535 }
  0xb9   : > { %625 = vst.msk [vmem:[#allocation3 + $0x18] sm:$0xff] %vm621_vm1, %v520_v56  ;;  %v3480_v56 = vld [vmem:[#allocation2 + $0x10a] sm:$0xff] }
  0xba   : > { %v532_v59 = vpop.permute.xlu0 %531  ;;  %633 = vst.msk [vmem:[#allocation3 + $0x58] sm:$0xff] %vm621_vm1, %v536_v57  ;;  %v401_v57 = vld [vmem:[#allocation2 + $0x118] sm:$0xff] }
  0xbb   : > { %631 = vst.msk [vmem:[#allocation3 + $0x48] sm:$0xff] %vm621_vm1, %v532_v59 }
  0xbc   : > { %438 = vst.msk [vmem:[#allocation3 + $0x118] sm:$0xff] %vm226_vm0, %v401_v57  ;;  %v2771_v57 = vld [vmem:[#allocation2 + $0x5b] sm:$0xff] }
  0xbe   : > { %758 = vrot.lane.b32.xlu1 %v3380_v60, %s3123_s24  ;;  %754 = vrot.lane.b32.xlu2 %v3383_v61, %s3123_s24 }
  0xc0   : > { %v528_v1 = vpop.permute.xlu1 %527  ;;  %768 = vrot.lane.b32.xlu0 %v3386_v62, %s3123_s24  ;;  %v542_v2 = vpop.permute.xlu2 %541 }
  0xc1   : > { %629 = vst.msk [vmem:[#allocation3 + $0x38] sm:$0xff] %vm621_vm1, %v528_v1  ;;  %v3493_v1 = vld [vmem:[#allocation2 + $0xfa] sm:$0xff] }
  0xc2   : > { %v538_v4 = vpop.permute.xlu0 %537  ;;  %636 = vst.msk [vmem:[#allocation3 + $0x70] sm:$0xff] %vm621_vm1, %v542_v2  ;;  %v3496_v2 = vld [vmem:[#allocation2 + $0xea] sm:$0xff] }
  0xc3   : > { %634 = vst.msk [vmem:[#allocation3 + $0x60] sm:$0xff] %vm621_vm1, %v538_v4 }
  0xc6   : > { %764 = vrot.lane.b32.xlu1 %v3398_v5, %s3123_s24  ;;  %760 = vrot.lane.b32.xlu2 %v3401_v6, %s3123_s24 }
  0xc8   : > { %v534_v10 = vpop.permute.xlu1 %533  ;;  %774 = vrot.lane.b32.xlu0 %v3404_v7, %s3123_s24  ;;  %v548_v11 = vpop.permute.xlu2 %547 }
  0xc9   : > { %632 = vst.msk [vmem:[#allocation3 + $0x50] sm:$0xff] %vm621_vm1, %v534_v10  ;;  %v3509_v10 = vld [vmem:[#allocation2 + $0x102] sm:$0xff] }
  0xca   : > { %v544_v13 = vpop.permute.xlu0 %543  ;;  %639 = vst.msk [vmem:[#allocation3 + $0x88] sm:$0xff] %vm621_vm1, %v548_v11 }
  0xcb   : > { %637 = vst.msk [vmem:[#allocation3 + $0x78] sm:$0xff] %vm621_vm1, %v544_v13  ;;  %v3520_v13 = vld [vmem:[#allocation2 + $0x11a] sm:$0xff] }
  0xce   : > { %770 = vrot.lane.b32.xlu1 %v3416_v14, %s3123_s24  ;;  %766 = vrot.lane.b32.xlu2 %v3419_v15, %s3123_s24 }
  0xd0   : > { %v540_v19 = vpop.permute.xlu1 %539  ;;  %780 = vrot.lane.b32.xlu0 %v3422_v16, %s3123_s24  ;;  %v554_v20 = vpop.permute.xlu2 %553 }
  0xd1   : > { %635 = vst.msk [vmem:[#allocation3 + $0x68] sm:$0xff] %vm621_vm1, %v540_v19 }
  0xd2   : > { %v550_v22 = vpop.permute.xlu0 %549  ;;  %642 = vst.msk [vmem:[#allocation3 + $0xa0] sm:$0xff] %vm621_vm1, %v554_v20 }
  0xd3   : > { %640 = vst.msk [vmem:[#allocation3 + $0x90] sm:$0xff] %vm621_vm1, %v550_v22 }
  0xd6   : > { %776 = vrot.lane.b32.xlu1 %v3434_v23, %s3123_s24  ;;  %772 = vrot.lane.b32.xlu2 %v3437_v25, %s3123_s24 }
  0xd8   : > { %v546_v29 = vpop.permute.xlu1 %545  ;;  %786 = vrot.lane.b32.xlu0 %v3440_v26, %s3123_s24  ;;  %v560_v31 = vpop.permute.xlu2 %559 }
  0xd9   : > { %638 = vst.msk [vmem:[#allocation3 + $0x80] sm:$0xff] %vm621_vm1, %v546_v29 }
  0xda   : > { %v556_v33 = vpop.permute.xlu0 %555  ;;  %645 = vst.msk [vmem:[#allocation3 + $0xb8] sm:$0xff] %vm621_vm1, %v560_v31  ;;  %v2762_v31 = vld [vmem:[#allocation2 + $0x13] sm:$0xff] }
  0xdb   : > { %643 = vst.msk [vmem:[#allocation3 + $0xa8] sm:$0xff] %vm621_vm1, %v556_v33 }
  0xde   : > { %782 = vrot.lane.b32.xlu1 %v3452_v34, %s3123_s24  ;;  %778 = vrot.lane.b32.xlu2 %v3455_v38, %s3123_s24 }
  0xe0   : > { %v552_v45 = vpop.permute.xlu1 %551  ;;  %792 = vrot.lane.b32.xlu0 %v3458_v39, %s3123_s24  ;;  %v566_v46 = vpop.permute.xlu2 %565 }
  0xe1   : > { %641 = vst.msk [vmem:[#allocation3 + $0x98] sm:$0xff] %vm621_vm1, %v552_v45 }
  0xe2   : > { %v562_v48 = vpop.permute.xlu0 %561  ;;  %648 = vst.msk [vmem:[#allocation3 + $0xd0] sm:$0xff] %vm621_vm1, %v566_v46  ;;  %v2763_v46 = vld [vmem:[#allocation2 + $0x1b] sm:$0xff] }
  0xe3   : > { %646 = vst.msk [vmem:[#allocation3 + $0xc0] sm:$0xff] %vm621_vm1, %v562_v48  ;;  %v2768_v48 = vld [vmem:[#allocation2 + $0x43] sm:$0xff] }
  0xe6   : > { %788 = vrot.lane.b32.xlu1 %v3470_v49, %s3123_s24  ;;  %784 = vrot.lane.b32.xlu2 %v3473_v50, %s3123_s24 }
  0xe8   : > { %v558_v59 = vpop.permute.xlu1 %557  ;;  %798 = vrot.lane.b32.xlu0 %v3480_v56, %s3123_s24  ;;  %v572_v63 = vpop.permute.xlu2 %571 }
  0xe9   : > { %644 = vst.msk [vmem:[#allocation3 + $0xb0] sm:$0xff] %vm621_vm1, %v558_v59 }
  0xea   : > { %v568_v0 = vpop.permute.xlu0 %567  ;;  %651 = vst.msk [vmem:[#allocation3 + $0xe8] sm:$0xff] %vm621_vm1, %v572_v63 }
  0xeb   : > { %649 = vst.msk [vmem:[#allocation3 + $0xd8] sm:$0xff] %vm621_vm1, %v568_v0  ;;  %v2769_v0 = vld [vmem:[#allocation2 + $0x4b] sm:$0xff] }
  0xee   : > { %794 = vrot.lane.b32.xlu1 %v3493_v1, %s3123_s24  ;;  %790 = vrot.lane.b32.xlu2 %v3496_v2, %s3123_s24 }
  0xf0   : > { %v564_v3 = vpop.permute.xlu1 %563  ;;  %951 = vrot.lane.b32.xlu0 %v3332_v36, %s3124_s25  ;;  %v578_v4 = vpop.permute.xlu2 %577 }
  0xf1   : > { %647 = vst.msk [vmem:[#allocation3 + $0xc8] sm:$0xff] %vm621_vm1, %v564_v3 }
  0xf2   : > { %v574_v8 = vpop.permute.xlu0 %573  ;;  %654 = vst.msk [vmem:[#allocation3 + $0x100] sm:$0xff] %vm621_vm1, %v578_v4 }
  0xf3   : > { %652 = vst.msk [vmem:[#allocation3 + $0xf0] sm:$0xff] %vm621_vm1, %v574_v8 }
  0xf6   : > { %800 = vrot.lane.b32.xlu1 %v3506_v9, %s3123_s24  ;;  %796 = vrot.lane.b32.xlu2 %v3509_v10, %s3123_s24 }
  0xf8   : > { %v570_v11 = vpop.permute.xlu1 %569  ;;  %957 = vrot.lane.b32.xlu0 %v3348_v43, %s3124_s25  ;;  %v584_v36 = vpop.permute.xlu2 %583 }
  0xf9   : > { %650 = vst.msk [vmem:[#allocation3 + $0xe0] sm:$0xff] %vm621_vm1, %v570_v11  ;;  %v2777_v11 = vld [vmem:[#allocation2 + $0x8b] sm:$0xff] }
  0xfa   : > { %v580_v12 = vpop.permute.xlu0 %579  ;;  %657 = vst.msk [vmem:[#allocation3 + $0x118] sm:$0xff] %vm621_vm1, %v584_v36 }
  0xfb   : > { %655 = vst.msk [vmem:[#allocation3 + $0x108] sm:$0xff] %vm621_vm1, %v580_v12 }
  0xfe   : > { %953 = vrot.lane.b32.xlu1 %v3311_v24, %s3124_s25  ;;  %802 = vrot.lane.b32.xlu2 %v3520_v13, %s3123_s24 }
 0x100   : > { %v576_v17 = vpop.permute.xlu1 %575  ;;  %963 = vrot.lane.b32.xlu0 %v3365_v52, %s3124_s25  ;;  %v737_v43 = vpop.permute.xlu2 %736 }
 0x101   : > { %653 = vst.msk [vmem:[#allocation3 + $0xf8] sm:$0xff] %vm621_vm1, %v576_v17  ;;  %v2775_v17 = vld [vmem:[#allocation2 + $0x7b] sm:$0xff] }
 0x102   : > { %v733_v18 = vpop.permute.xlu0 %732  ;;  %843 = vst.msk [vmem:[#allocation3 + $0x10] sm:$0xff] %vm840_vm2, %v737_v43  ;;  %v2773_v43 = vld [vmem:[#allocation2 + $0x6b] sm:$0xff] }
 0x103   : > { %841 = vst.msk [vmem:[#allocation3] sm:$0xff] %vm840_vm2, %v733_v18  ;;  %v2780_v18 = vld [vmem:[#allocation2 + $0xa3] sm:$0xff] }
 0x106   : > { %959 = vrot.lane.b32.xlu1 %v3320_v30, %s3124_s25  ;;  %955 = vrot.lane.b32.xlu2 %v3330_v35, %s3124_s25 }
 0x108   : > { %v582_v24 = vpop.permute.xlu1 %581  ;;  %969 = vrot.lane.b32.xlu0 %v3383_v61, %s3124_s25  ;;  %v743_v19 = vpop.permute.xlu2 %742 }
 0x109   : > { %656 = vst.msk [vmem:[#allocation3 + $0x110] sm:$0xff] %vm621_vm1, %v582_v24 }
 0x10a   : > { %v739_v52 = vpop.permute.xlu0 %738  ;;  %846 = vst.msk [vmem:[#allocation3 + $0x28] sm:$0xff] %vm840_vm2, %v743_v19 }
 0x10b   : > { %844 = vst.msk [vmem:[#allocation3 + $0x18] sm:$0xff] %vm840_vm2, %v739_v52 }
 0x10e   : > { %965 = vrot.lane.b32.xlu1 %v3334_v37, %s3124_s25  ;;  %961 = vrot.lane.b32.xlu2 %v3346_v42, %s3124_s25 }
 0x110   : > { %v735_v30 = vpop.permute.xlu1 %734  ;;  %975 = vrot.lane.b32.xlu0 %v3401_v6, %s3124_s25  ;;  %v749_v35 = vpop.permute.xlu2 %748 }
 0x111   : > { %842 = vst.msk [vmem:[#allocation3 + $0x8] sm:$0xff] %vm840_vm2, %v735_v30  ;;  %v2778_v30 = vld [vmem:[#allocation2 + $0x93] sm:$0xff] }
 0x112   : > { %v745_v61 = vpop.permute.xlu0 %744  ;;  %849 = vst.msk [vmem:[#allocation3 + $0x40] sm:$0xff] %vm840_vm2, %v749_v35  ;;  %v2776_v35 = vld [vmem:[#allocation2 + $0x83] sm:$0xff] }
 0x113   : > { %847 = vst.msk [vmem:[#allocation3 + $0x30] sm:$0xff] %vm840_vm2, %v745_v61  ;;  %v2783_v61 = vld [vmem:[#allocation2 + $0xbb] sm:$0xff] }
 0x116   : > { %971 = vrot.lane.b32.xlu1 %v3350_v44, %s3124_s25  ;;  %967 = vrot.lane.b32.xlu2 %v3362_v51, %s3124_s25 }
 0x118   : > { %v741_v37 = vpop.permute.xlu1 %740  ;;  %981 = vrot.lane.b32.xlu0 %v3419_v15, %s3124_s25  ;;  %v755_v42 = vpop.permute.xlu2 %754 }
 0x119   : > { %845 = vst.msk [vmem:[#allocation3 + $0x20] sm:$0xff] %vm840_vm2, %v741_v37 }
 0x11a   : > { %v751_v6 = vpop.permute.xlu0 %750  ;;  %852 = vst.msk [vmem:[#allocation3 + $0x58] sm:$0xff] %vm840_vm2, %v755_v42 }
 0x11b   : > { %850 = vst.msk [vmem:[#allocation3 + $0x48] sm:$0xff] %vm840_vm2, %v751_v6 }
 0x11e   : > { %977 = vrot.lane.b32.xlu1 %v3368_v53, %s3124_s25  ;;  %973 = vrot.lane.b32.xlu2 %v3380_v60, %s3124_s25 }
 0x120   : > { %v747_v44 = vpop.permute.xlu1 %746  ;;  %987 = vrot.lane.b32.xlu0 %v3437_v25, %s3124_s25  ;;  %v761_v51 = vpop.permute.xlu2 %760 }
 0x121   : > { %848 = vst.msk [vmem:[#allocation3 + $0x38] sm:$0xff] %vm840_vm2, %v747_v44  ;;  %v2781_v44 = vld [vmem:[#allocation2 + $0xab] sm:$0xff] }
 0x122   : > { %v757_v15 = vpop.permute.xlu0 %756  ;;  %855 = vst.msk [vmem:[#allocation3 + $0x70] sm:$0xff] %vm840_vm2, %v761_v51  ;;  %v2779_v51 = vld [vmem:[#allocation2 + $0x9b] sm:$0xff] }
 0x123   : > { %853 = vst.msk [vmem:[#allocation3 + $0x60] sm:$0xff] %vm840_vm2, %v757_v15  ;;  %v2786_v15 = vld [vmem:[#allocation2 + $0xd3] sm:$0xff] }
 0x126   : > { %983 = vrot.lane.b32.xlu1 %v3386_v62, %s3124_s25  ;;  %979 = vrot.lane.b32.xlu2 %v3398_v5, %s3124_s25 }
 0x128   : > { %v753_v53 = vpop.permute.xlu1 %752  ;;  %993 = vrot.lane.b32.xlu0 %v3455_v38, %s3124_s25  ;;  %v767_v60 = vpop.permute.xlu2 %766  ;;  %v2760_v38 = vld [vmem:[#allocation2 + $0x122] sm:$0xff] }
 0x129   : > { %851 = vst.msk [vmem:[#allocation3 + $0x50] sm:$0xff] %vm840_vm2, %v753_v53 }
 0x12a   : > { %v763_v20 = vpop.permute.xlu0 %762  ;;  %858 = vst.msk [vmem:[#allocation3 + $0x88] sm:$0xff] %vm840_vm2, %v767_v60 }
 0x12b   : > { %856 = vst.msk [vmem:[#allocation3 + $0x78] sm:$0xff] %vm840_vm2, %v763_v20 }
 0x12e   : > { %989 = vrot.lane.b32.xlu1 %v3404_v7, %s3124_s25  ;;  %985 = vrot.lane.b32.xlu2 %v3416_v14, %s3124_s25 }
 0x130   : > { %v759_v62 = vpop.permute.xlu1 %758  ;;  %999 = vrot.lane.b32.xlu0 %v3473_v50, %s3124_s25  ;;  %v773_v5 = vpop.permute.xlu2 %772 }
 0x131   : > { %854 = vst.msk [vmem:[#allocation3 + $0x68] sm:$0xff] %vm840_vm2, %v759_v62  ;;  %v2782_v62 = vld [vmem:[#allocation2 + $0xb3] sm:$0xff] }
 0x132   : > { %v769_v22 = vpop.permute.xlu0 %768  ;;  %861 = vst.msk [vmem:[#allocation3 + $0xa0] sm:$0xff] %vm840_vm2, %v773_v5  ;;  %v2789_v5 = vld [vmem:[#allocation2 + $0xeb] sm:$0xff] }
 0x133   : > { %859 = vst.msk [vmem:[#allocation3 + $0x90] sm:$0xff] %vm840_vm2, %v769_v22 }
 0x136   : > { %995 = vrot.lane.b32.xlu1 %v3422_v16, %s3124_s25  ;;  %991 = vrot.lane.b32.xlu2 %v3434_v23, %s3124_s25 }
 0x138   : > { %v765_v7 = vpop.permute.xlu1 %764  ;;  %1005 = vrot.lane.b32.xlu0 %v3496_v2, %s3124_s25  ;;  %v779_v14 = vpop.permute.xlu2 %778  ;;  %v2774_v2 = vld [vmem:[#allocation2 + $0x73] sm:$0xff] }
 0x139   : > { %857 = vst.msk [vmem:[#allocation3 + $0x80] sm:$0xff] %vm840_vm2, %v765_v7 }
 0x13a   : > { %v775_v25 = vpop.permute.xlu0 %774  ;;  %864 = vst.msk [vmem:[#allocation3 + $0xb8] sm:$0xff] %vm840_vm2, %v779_v14 }
 0x13b   : > { %862 = vst.msk [vmem:[#allocation3 + $0xa8] sm:$0xff] %vm840_vm2, %v775_v25  ;;  %v2787_v25 = vld [vmem:[#allocation2 + $0xdb] sm:$0xff] }
 0x13e   : > { %1001 = vrot.lane.b32.xlu1 %v3440_v26, %s3124_s25  ;;  %997 = vrot.lane.b32.xlu2 %v3452_v34, %s3124_s25 }
 0x140   : > { %v771_v16 = vpop.permute.xlu1 %770  ;;  %1011 = vrot.lane.b32.xlu0 %v3509_v10, %s3124_s25  ;;  %v785_v23 = vpop.permute.xlu2 %784  ;;  %v2770_v10 = vld [vmem:[#allocation2 + $0x53] sm:$0xff] }
 0x141   : > { %860 = vst.msk [vmem:[#allocation3 + $0x98] sm:$0xff] %vm840_vm2, %v771_v16  ;;  %v2785_v16 = vld [vmem:[#allocation2 + $0xcb] sm:$0xff] }
 0x142   : > { %v781_v27 = vpop.permute.xlu0 %780  ;;  %867 = vst.msk [vmem:[#allocation3 + $0xd0] sm:$0xff] %vm840_vm2, %v785_v23  ;;  %v2792_v23 = vld [vmem:[#allocation2 + $0x103] sm:$0xff] }
 0x143   : > { %865 = vst.msk [vmem:[#allocation3 + $0xc0] sm:$0xff] %vm840_vm2, %v781_v27 }
 0x146   : > { %1007 = vrot.lane.b32.xlu1 %v3458_v39, %s3124_s25  ;;  %1003 = vrot.lane.b32.xlu2 %v3470_v49, %s3124_s25  ;;  %v2765_v39 = vld [vmem:[#allocation2 + $0x2b] sm:$0xff] }
 0x148   : > { %v777_v26 = vpop.permute.xlu1 %776  ;;  %1017 = vrot.lane.b32.xlu0 %v3520_v13, %s3124_s25  ;;  %v791_v28 = vpop.permute.xlu2 %790 }
 0x149   : > { %863 = vst.msk [vmem:[#allocation3 + $0xb0] sm:$0xff] %vm840_vm2, %v777_v26 }
 0x14a   : > { %v787_v29 = vpop.permute.xlu0 %786  ;;  %870 = vst.msk [vmem:[#allocation3 + $0xe8] sm:$0xff] %vm840_vm2, %v791_v28 }
 0x14b   : > { %868 = vst.msk [vmem:[#allocation3 + $0xd8] sm:$0xff] %vm840_vm2, %v787_v29  ;;  %v2790_v29 = vld [vmem:[#allocation2 + $0xf3] sm:$0xff] }
 0x14e   : > { %1013 = vrot.lane.b32.xlu1 %v3480_v56, %s3124_s25  ;;  %1009 = vrot.lane.b32.xlu2 %v3493_v1, %s3124_s25  ;;  %v2764_v56 = vld [vmem:[#allocation2 + $0x23] sm:$0xff]  ;;  %v2767_v1 = vld [vmem:[#allocation2 + $0x3b] sm:$0xff] }
 0x150   : > { %v783_v32 = vpop.permute.xlu1 %782  ;;  %1170 = vrot.lane.b32.xlu0 %v2762_v31, %s3125_s26  ;;  %v797_v33 = vpop.permute.xlu2 %796  ;;  %v2788_v31 = vld [vmem:[#allocation2 + $0xe3] sm:$0xff] }
 0x151   : > { %866 = vst.msk [vmem:[#allocation3 + $0xc8] sm:$0xff] %vm840_vm2, %v783_v32  ;;  %v2795_v32 = vld [vmem:[#allocation2 + $0x11b] sm:$0xff] }
 0x152   : > { %v793_v34 = vpop.permute.xlu0 %792  ;;  %873 = vst.msk [vmem:[#allocation3 + $0x100] sm:$0xff] %vm840_vm2, %v797_v33 }
 0x153   : > { %871 = vst.msk [vmem:[#allocation3 + $0xf0] sm:$0xff] %vm840_vm2, %v793_v34 }
 0x156   : > { %1019 = vrot.lane.b32.xlu1 %v2760_v38, %s3124_s25  ;;  %1015 = vrot.lane.b32.xlu2 %v3506_v9, %s3124_s25  ;;  %v2772_v9 = vld [vmem:[#allocation2 + $0x63] sm:$0xff] }
 0x158   : > { %v789_v40 = vpop.permute.xlu1 %788  ;;  %1176 = vrot.lane.b32.xlu0 %v2765_v39, %s3125_s26  ;;  %v803_v41 = vpop.permute.xlu2 %802  ;;  %v2793_v39 = vld [vmem:[#allocation2 + $0x10b] sm:$0xff] }
 0x159   : > { %869 = vst.msk [vmem:[#allocation3 + $0xe0] sm:$0xff] %vm840_vm2, %v789_v40  ;;  %v2791_v40 = vld [vmem:[#allocation2 + $0xfb] sm:$0xff] }
 0x15a   : > { %v799_v45 = vpop.permute.xlu0 %798  ;;  %876 = vst.msk [vmem:[#allocation3 + $0x118] sm:$0xff] %vm840_vm2, %v803_v41  ;;  %v2798_v41 = vld [vmem:[#allocation2 + $0x14] sm:$0xff] }
 0x15b   : > { %874 = vst.msk [vmem:[#allocation3 + $0x108] sm:$0xff] %vm840_vm2, %v799_v45 }
 0x15e   : > { %1172 = vrot.lane.b32.xlu1 %v2763_v46, %s3125_s26  ;;  %1021 = vrot.lane.b32.xlu2 %v2761_v47, %s3124_s25 }
 0x160   : > { %v795_v49 = vpop.permute.xlu1 %794  ;;  %1182 = vrot.lane.b32.xlu0 %v2768_v48, %s3125_s26  ;;  %v956_v50 = vpop.permute.xlu2 %955  ;;  %v2796_v48 = vld [vmem:[#allocation2 + $0x123] sm:$0xff] }
 0x161   : > { %872 = vst.msk [vmem:[#allocation3 + $0xf8] sm:$0xff] %vm840_vm2, %v795_v49  ;;  %v2794_v49 = vld [vmem:[#allocation2 + $0x113] sm:$0xff] }
 0x162   : > { %v952_v54 = vpop.permute.xlu0 %951  ;;  %1062 = vst.msk [vmem:[#allocation3 + $0x10] sm:$0xff] %vm1059_vm3, %v956_v50  ;;  %v3695_v50 = vld [vmem:[#allocation2 + $0x2c] sm:$0xff] }
 0x163   : > { %1060 = vst.msk [vmem:[#allocation3] sm:$0xff] %vm1059_vm3, %v952_v54 }
 0x166   : > { %1178 = vrot.lane.b32.xlu1 %v2766_v55, %s3125_s26  ;;  %1174 = vrot.lane.b32.xlu2 %v2764_v56, %s3125_s26 }
 0x168   : > { %v801_v58 = vpop.permute.xlu1 %800  ;;  %1188 = vrot.lane.b32.xlu0 %v2771_v57, %s3125_s26  ;;  %v962_v59 = vpop.permute.xlu2 %961  ;;  %v2799_v57 = vld [vmem:[#allocation2 + $0x1c] sm:$0xff] }
 0x169   : > { %875 = vst.msk [vmem:[#allocation3 + $0x110] sm:$0xff] %vm840_vm2, %v801_v58  ;;  %v2797_v58 = vld [vmem:[#allocation2 + $0x12b] sm:$0xff] }
 0x16a   : > { %v958_v63 = vpop.permute.xlu0 %957  ;;  %1065 = vst.msk [vmem:[#allocation3 + $0x28] sm:$0xff] %vm1059_vm3, %v962_v59  ;;  %v3704_v59 = vld [vmem:[#allocation2 + $0x44] sm:$0xff] }
 0x16b   : > { %1063 = vst.msk [vmem:[#allocation3 + $0x18] sm:$0xff] %vm1059_vm3, %v958_v63 }
 0x16e   : > { %1184 = vrot.lane.b32.xlu1 %v2769_v0, %s3125_s26  ;;  %1180 = vrot.lane.b32.xlu2 %v2767_v1, %s3125_s26 }
 0x170   : > { %v954_v3 = vpop.permute.xlu1 %953  ;;  %1194 = vrot.lane.b32.xlu0 %v2774_v2, %s3125_s26  ;;  %v968_v4 = vpop.permute.xlu2 %967  ;;  %v3712_v2 = vld [vmem:[#allocation2 + $0x34] sm:$0xff] }
 0x171   : > { %1061 = vst.msk [vmem:[#allocation3 + $0x8] sm:$0xff] %vm1059_vm3, %v954_v3  ;;  %v3715_v3 = vld [vmem:[#allocation2 + $0x24] sm:$0xff] }
 0x172   : > { %v964_v8 = vpop.permute.xlu0 %963  ;;  %1068 = vst.msk [vmem:[#allocation3 + $0x40] sm:$0xff] %vm1059_vm3, %v968_v4  ;;  %v3717_v4 = vld [vmem:[#allocation2 + $0x5c] sm:$0xff] }
 0x173   : > { %1066 = vst.msk [vmem:[#allocation3 + $0x30] sm:$0xff] %vm1059_vm3, %v964_v8 }
 0x176   : > { %1190 = vrot.lane.b32.xlu1 %v2772_v9, %s3125_s26  ;;  %1186 = vrot.lane.b32.xlu2 %v2770_v10, %s3125_s26 }
 0x178   : > { %v960_v36 = vpop.permute.xlu1 %959  ;;  %1200 = vrot.lane.b32.xlu0 %v2777_v11, %s3125_s26  ;;  %v974_v12 = vpop.permute.xlu2 %973  ;;  %v3727_v11 = vld [vmem:[#allocation2 + $0x4c] sm:$0xff] }
 0x179   : > { %1064 = vst.msk [vmem:[#allocation3 + $0x20] sm:$0xff] %vm1059_vm3, %v960_v36  ;;  %v3730_v36 = vld [vmem:[#allocation2 + $0x3c] sm:$0xff] }
 0x17a   : > { %v970_v13 = vpop.permute.xlu0 %969  ;;  %1071 = vst.msk [vmem:[#allocation3 + $0x58] sm:$0xff] %vm1059_vm3, %v974_v12  ;;  %v3732_v12 = vld [vmem:[#allocation2 + $0x74] sm:$0xff] }
 0x17b   : > { %1069 = vst.msk [vmem:[#allocation3 + $0x48] sm:$0xff] %vm1059_vm3, %v970_v13 }
 0x17e   : > { %1196 = vrot.lane.b32.xlu1 %v2775_v17, %s3125_s26  ;;  %1192 = vrot.lane.b32.xlu2 %v2773_v43, %s3125_s26 }
 0x180   : > { %v966_v24 = vpop.permute.xlu1 %965  ;;  %1206 = vrot.lane.b32.xlu0 %v2780_v18, %s3125_s26  ;;  %v980_v19 = vpop.permute.xlu2 %979  ;;  %v3742_v18 = vld [vmem:[#allocation2 + $0x64] sm:$0xff] }
 0x181   : > { %1067 = vst.msk [vmem:[#allocation3 + $0x38] sm:$0xff] %vm1059_vm3, %v966_v24  ;;  %v3745_v24 = vld [vmem:[#allocation2 + $0x54] sm:$0xff] }
 0x182   : > { %v976_v52 = vpop.permute.xlu0 %975  ;;  %1074 = vst.msk [vmem:[#allocation3 + $0x70] sm:$0xff] %vm1059_vm3, %v980_v19  ;;  %v3747_v19 = vld [vmem:[#allocation2 + $0x8c] sm:$0xff] }
 0x183   : > { %1072 = vst.msk [vmem:[#allocation3 + $0x60] sm:$0xff] %vm1059_vm3, %v976_v52 }
 0x186   : > { %1202 = vrot.lane.b32.xlu1 %v2778_v30, %s3125_s26  ;;  %1198 = vrot.lane.b32.xlu2 %v2776_v35, %s3125_s26 }
 0x188   : > { %v972_v37 = vpop.permute.xlu1 %971  ;;  %1212 = vrot.lane.b32.xlu0 %v2783_v61, %s3125_s26  ;;  %v986_v42 = vpop.permute.xlu2 %985  ;;  %v3757_v61 = vld [vmem:[#allocation2 + $0x7c] sm:$0xff] }
 0x189   : > { %1070 = vst.msk [vmem:[#allocation3 + $0x50] sm:$0xff] %vm1059_vm3, %v972_v37  ;;  %v3760_v37 = vld [vmem:[#allocation2 + $0x6c] sm:$0xff] }
 0x18a   : > { %v982_v6 = vpop.permute.xlu0 %981  ;;  %1077 = vst.msk [vmem:[#allocation3 + $0x88] sm:$0xff] %vm1059_vm3, %v986_v42  ;;  %v3762_v42 = vld [vmem:[#allocation2 + $0xa4] sm:$0xff] }
 0x18b   : > { %1075 = vst.msk [vmem:[#allocation3 + $0x78] sm:$0xff] %vm1059_vm3, %v982_v6 }
 0x18e   : > { %1208 = vrot.lane.b32.xlu1 %v2781_v44, %s3125_s26  ;;  %1204 = vrot.lane.b32.xlu2 %v2779_v51, %s3125_s26 }
 0x190   : > { %v978_v53 = vpop.permute.xlu1 %977  ;;  %1218 = vrot.lane.b32.xlu0 %v2786_v15, %s3125_s26  ;;  %v992_v60 = vpop.permute.xlu2 %991  ;;  %v3772_v15 = vld [vmem:[#allocation2 + $0x94] sm:$0xff] }
 0x191   : > { %1073 = vst.msk [vmem:[#allocation3 + $0x68] sm:$0xff] %vm1059_vm3, %v978_v53  ;;  %v3775_v53 = vld [vmem:[#allocation2 + $0x84] sm:$0xff] }
 0x192   : > { %v988_v20 = vpop.permute.xlu0 %987  ;;  %1080 = vst.msk [vmem:[#allocation3 + $0xa0] sm:$0xff] %vm1059_vm3, %v992_v60  ;;  %v3777_v60 = vld [vmem:[#allocation2 + $0xbc] sm:$0xff] }
 0x193   : > { %1078 = vst.msk [vmem:[#allocation3 + $0x90] sm:$0xff] %vm1059_vm3, %v988_v20 }
 0x196   : > { %1214 = vrot.lane.b32.xlu1 %v2784_v21, %s3125_s26  ;;  %1210 = vrot.lane.b32.xlu2 %v2782_v62, %s3125_s26 }
 0x198   : > { %v984_v22 = vpop.permute.xlu1 %983  ;;  %1224 = vrot.lane.b32.xlu0 %v2789_v5, %s3125_s26  ;;  %v998_v7 = vpop.permute.xlu2 %997  ;;  %v3787_v5 = vld [vmem:[#allocation2 + $0xac] sm:$0xff] }
 0x199   : > { %1076 = vst.msk [vmem:[#allocation3 + $0x80] sm:$0xff] %vm1059_vm3, %v984_v22  ;;  %v3790_v22 = vld [vmem:[#allocation2 + $0x9c] sm:$0xff] }
 0x19a   : > { %v994_v14 = vpop.permute.xlu0 %993  ;;  %1083 = vst.msk [vmem:[#allocation3 + $0xb8] sm:$0xff] %vm1059_vm3, %v998_v7  ;;  %v3792_v7 = vld [vmem:[#allocation2 + $0xd4] sm:$0xff] }
 0x19b   : > { %1081 = vst.msk [vmem:[#allocation3 + $0xa8] sm:$0xff] %vm1059_vm3, %v994_v14 }
 0x19e   : > { %1220 = vrot.lane.b32.xlu1 %v2787_v25, %s3125_s26  ;;  %1216 = vrot.lane.b32.xlu2 %v2785_v16, %s3125_s26 }
 0x1a0   : > { %v990_v27 = vpop.permute.xlu1 %989  ;;  %1230 = vrot.lane.b32.xlu0 %v2792_v23, %s3125_s26  ;;  %v1004_v26 = vpop.permute.xlu2 %1003  ;;  %v3802_v23 = vld [vmem:[#allocation2 + $0xc4] sm:$0xff] }
 0x1a1   : > { %1079 = vst.msk [vmem:[#allocation3 + $0x98] sm:$0xff] %vm1059_vm3, %v990_v27  ;;  %v3805_v27 = vld [vmem:[#allocation2 + $0xb4] sm:$0xff] }
 0x1a2   : > { %v1000_v28 = vpop.permute.xlu0 %999  ;;  %1086 = vst.msk [vmem:[#allocation3 + $0xd0] sm:$0xff] %vm1059_vm3, %v1004_v26  ;;  %v3807_v26 = vld [vmem:[#allocation2 + $0xec] sm:$0xff] }
 0x1a3   : > { %1084 = vst.msk [vmem:[#allocation3 + $0xc0] sm:$0xff] %vm1059_vm3, %v1000_v28 }
 0x1a6   : > { %1226 = vrot.lane.b32.xlu1 %v2790_v29, %s3125_s26  ;;  %1222 = vrot.lane.b32.xlu2 %v2788_v31, %s3125_s26 }
 0x1a8   : > { %v996_v33 = vpop.permute.xlu1 %995  ;;  %1236 = vrot.lane.b32.xlu0 %v2795_v32, %s3125_s26  ;;  %v1010_v34 = vpop.permute.xlu2 %1009  ;;  %v3817_v32 = vld [vmem:[#allocation2 + $0xdc] sm:$0xff] }
 0x1a9   : > { %1082 = vst.msk [vmem:[#allocation3 + $0xb0] sm:$0xff] %vm1059_vm3, %v996_v33  ;;  %v3820_v33 = vld [vmem:[#allocation2 + $0xcc] sm:$0xff] }
 0x1aa   : > { %v1006_v38 = vpop.permute.xlu0 %1005  ;;  %1089 = vst.msk [vmem:[#allocation3 + $0xe8] sm:$0xff] %vm1059_vm3, %v1010_v34  ;;  %v3822_v34 = vld [vmem:[#allocation2 + $0x104] sm:$0xff] }
 0x1ab   : > { %1087 = vst.msk [vmem:[#allocation3 + $0xd8] sm:$0xff] %vm1059_vm3, %v1006_v38 }
 0x1ae   : > { %1232 = vrot.lane.b32.xlu1 %v2793_v39, %s3125_s26  ;;  %1228 = vrot.lane.b32.xlu2 %v2791_v40, %s3125_s26 }
 0x1b0   : > { %v1002_v45 = vpop.permute.xlu1 %1001  ;;  %1389 = vrot.lane.b32.xlu0 %v2798_v41, %s3126_s27  ;;  %v1016_v46 = vpop.permute.xlu2 %1015  ;;  %v3832_v41 = vld [vmem:[#allocation2 + $0xf4] sm:$0xff] }
 0x1b1   : > { %1085 = vst.msk [vmem:[#allocation3 + $0xc8] sm:$0xff] %vm1059_vm3, %v1002_v45  ;;  %v3835_v45 = vld [vmem:[#allocation2 + $0xe4] sm:$0xff] }
 0x1b2   : > { %v1012_v47 = vpop.permute.xlu0 %1011  ;;  %1092 = vst.msk [vmem:[#allocation3 + $0x100] sm:$0xff] %vm1059_vm3, %v1016_v46  ;;  %v3837_v46 = vld [vmem:[#allocation2 + $0x11c] sm:$0xff] }
 0x1b3   : > { %1090 = vst.msk [vmem:[#allocation3 + $0xf0] sm:$0xff] %vm1059_vm3, %v1012_v47 }
 0x1b6   : > { %1238 = vrot.lane.b32.xlu1 %v2796_v48, %s3125_s26  ;;  %1234 = vrot.lane.b32.xlu2 %v2794_v49, %s3125_s26 }
 0x1b8   : > { %v1008_v54 = vpop.permute.xlu1 %1007  ;;  %1395 = vrot.lane.b32.xlu0 %v3695_v50, %s3126_s27  ;;  %v1022_v55 = vpop.permute.xlu2 %1021 }
 0x1b9   : > { %1088 = vst.msk [vmem:[#allocation3 + $0xe0] sm:$0xff] %vm1059_vm3, %v1008_v54  ;;  %v3847_v54 = vld [vmem:[#allocation2 + $0x10c] sm:$0xff] }
 0x1ba   : > { %v1018_v56 = vpop.permute.xlu0 %1017  ;;  %1095 = vst.msk [vmem:[#allocation3 + $0x118] sm:$0xff] %vm1059_vm3, %v1022_v55  ;;  %v3850_v55 = vld [vmem:[#allocation2 + $0xfc] sm:$0xff] }
 0x1bb   : > { %1093 = vst.msk [vmem:[#allocation3 + $0x108] sm:$0xff] %vm1059_vm3, %v1018_v56 }
 0x1be   : > { %1391 = vrot.lane.b32.xlu1 %v2799_v57, %s3126_s27  ;;  %1240 = vrot.lane.b32.xlu2 %v2797_v58, %s3125_s26 }
 0x1c0   : > { %v1014_v63 = vpop.permute.xlu1 %1013  ;;  %1401 = vrot.lane.b32.xlu0 %v3704_v59, %s3126_s27  ;;  %v1175_v0 = vpop.permute.xlu2 %1174 }
 0x1c1   : > { %1091 = vst.msk [vmem:[#allocation3 + $0xf8] sm:$0xff] %vm1059_vm3, %v1014_v63  ;;  %v3860_v63 = vld [vmem:[#allocation2 + $0x124] sm:$0xff] }
 0x1c2   : > { %v1171_v1 = vpop.permute.xlu0 %1170  ;;  %1281 = vst.msk [vmem:[#allocation3 + $0x10] sm:$0xff] %vm1278_vm4, %v1175_v0  ;;  %v3863_v0 = vld [vmem:[#allocation2 + $0x114] sm:$0xff] }
 0x1c3   : > { %1279 = vst.msk [vmem:[#allocation3] sm:$0xff] %vm1278_vm4, %v1171_v1 }
 0x1c6   : > { %1397 = vrot.lane.b32.xlu1 %v3712_v2, %s3126_s27  ;;  %1393 = vrot.lane.b32.xlu2 %v3715_v3, %s3126_s27 }
 0x1c8   : > { %v1020_v8 = vpop.permute.xlu1 %1019  ;;  %1407 = vrot.lane.b32.xlu0 %v3717_v4, %s3126_s27  ;;  %v1181_v9 = vpop.permute.xlu2 %1180 }
 0x1c9   : > { %1094 = vst.msk [vmem:[#allocation3 + $0x110] sm:$0xff] %vm1059_vm3, %v1020_v8 }
 0x1ca   : > { %v1177_v10 = vpop.permute.xlu0 %1176  ;;  %1284 = vst.msk [vmem:[#allocation3 + $0x28] sm:$0xff] %vm1278_vm4, %v1181_v9  ;;  %v3874_v9 = vld [vmem:[#allocation2 + $0x12c] sm:$0xff] }
 0x1cb   : > { %1282 = vst.msk [vmem:[#allocation3 + $0x18] sm:$0xff] %vm1278_vm4, %v1177_v10 }
 0x1ce   : > { %1403 = vrot.lane.b32.xlu1 %v3727_v11, %s3126_s27  ;;  %1399 = vrot.lane.b32.xlu2 %v3730_v36, %s3126_s27 }
 0x1d0   : > { %v1173_v13 = vpop.permute.xlu1 %1172  ;;  %1413 = vrot.lane.b32.xlu0 %v3732_v12, %s3126_s27  ;;  %v1187_v17 = vpop.permute.xlu2 %1186 }
 0x1d1   : > { %1280 = vst.msk [vmem:[#allocation3 + $0x8] sm:$0xff] %vm1278_vm4, %v1173_v13 }
 0x1d2   : > { %v1183_v43 = vpop.permute.xlu0 %1182  ;;  %1287 = vst.msk [vmem:[#allocation3 + $0x40] sm:$0xff] %vm1278_vm4, %v1187_v17 }
 0x1d3   : > { %1285 = vst.msk [vmem:[#allocation3 + $0x30] sm:$0xff] %vm1278_vm4, %v1183_v43 }
 0x1d6   : > { %1409 = vrot.lane.b32.xlu1 %v3742_v18, %s3126_s27  ;;  %1405 = vrot.lane.b32.xlu2 %v3745_v24, %s3126_s27 }
 0x1d8   : > { %v1179_v52 = vpop.permute.xlu1 %1178  ;;  %1419 = vrot.lane.b32.xlu0 %v3747_v19, %s3126_s27  ;;  %v1193_v30 = vpop.permute.xlu2 %1192 }
 0x1d9   : > { %1283 = vst.msk [vmem:[#allocation3 + $0x20] sm:$0xff] %vm1278_vm4, %v1179_v52 }
 0x1da   : > { %v1189_v35 = vpop.permute.xlu0 %1188  ;;  %1290 = vst.msk [vmem:[#allocation3 + $0x58] sm:$0xff] %vm1278_vm4, %v1193_v30 }
 0x1db   : > { %1288 = vst.msk [vmem:[#allocation3 + $0x48] sm:$0xff] %vm1278_vm4, %v1189_v35 }
 0x1de   : > { %1415 = vrot.lane.b32.xlu1 %v3757_v61, %s3126_s27  ;;  %1411 = vrot.lane.b32.xlu2 %v3760_v37, %s3126_s27 }
 0x1e0   : > { %v1185_v6 = vpop.permute.xlu1 %1184  ;;  %1425 = vrot.lane.b32.xlu0 %v3762_v42, %s3126_s27  ;;  %v1199_v44 = vpop.permute.xlu2 %1198 }
 0x1e1   : > { %1286 = vst.msk [vmem:[#allocation3 + $0x38] sm:$0xff] %vm1278_vm4, %v1185_v6 }
 0x1e2   : > { %v1195_v51 = vpop.permute.xlu0 %1194  ;;  %1293 = vst.msk [vmem:[#allocation3 + $0x70] sm:$0xff] %vm1278_vm4, %v1199_v44 }
 0x1e3   : > { %1291 = vst.msk [vmem:[#allocation3 + $0x60] sm:$0xff] %vm1278_vm4, %v1195_v51  ;;  %v2890_v51 = vld [vmem:[#allocation2 + $0xc5] sm:$0xff] }
 0x1e6   : > { %1421 = vrot.lane.b32.xlu1 %v3772_v15, %s3126_s27  ;;  %1417 = vrot.lane.b32.xlu2 %v3775_v53, %s3126_s27 }
 0x1e8   : > { %v1191_v20 = vpop.permute.xlu1 %1190  ;;  %1431 = vrot.lane.b32.xlu0 %v3777_v60, %s3126_s27  ;;  %v1205_v21 = vpop.permute.xlu2 %1204 }
 0x1e9   : > { %1289 = vst.msk [vmem:[#allocation3 + $0x50] sm:$0xff] %vm1278_vm4, %v1191_v20 }
 0x1ea   : > { %v1201_v62 = vpop.permute.xlu0 %1200  ;;  %1296 = vst.msk [vmem:[#allocation3 + $0x88] sm:$0xff] %vm1278_vm4, %v1205_v21  ;;  %v2927_v21 = vld [vmem:[#allocation2 + $0xce] sm:$0xff] }
 0x1eb   : > { %1294 = vst.msk [vmem:[#allocation3 + $0x78] sm:$0xff] %vm1278_vm4, %v1201_v62  ;;  %v2891_v62 = vld [vmem:[#allocation2 + $0xcd] sm:$0xff] }
 0x1ee   : > { %1427 = vrot.lane.b32.xlu1 %v3787_v5, %s3126_s27  ;;  %1423 = vrot.lane.b32.xlu2 %v3790_v22, %s3126_s27 }
 0x1f0   : > { %v1197_v14 = vpop.permute.xlu1 %1196  ;;  %1437 = vrot.lane.b32.xlu0 %v3792_v7, %s3126_s27  ;;  %v1211_v25 = vpop.permute.xlu2 %1210 }
 0x1f1   : > { %1292 = vst.msk [vmem:[#allocation3 + $0x68] sm:$0xff] %vm1278_vm4, %v1197_v14 }
 0x1f2   : > { %v1207_v16 = vpop.permute.xlu0 %1206  ;;  %1299 = vst.msk [vmem:[#allocation3 + $0xa0] sm:$0xff] %vm1278_vm4, %v1211_v25 }
 0x1f3   : > { %1297 = vst.msk [vmem:[#allocation3 + $0x90] sm:$0xff] %vm1278_vm4, %v1207_v16  ;;  %v2880_v16 = vld [vmem:[#allocation2 + $0x75] sm:$0xff] }
 0x1f6   : > { %1433 = vrot.lane.b32.xlu1 %v3802_v23, %s3126_s27  ;;  %1429 = vrot.lane.b32.xlu2 %v3805_v27, %s3126_s27 }
 0x1f8   : > { %v1203_v28 = vpop.permute.xlu1 %1202  ;;  %1443 = vrot.lane.b32.xlu0 %v3807_v26, %s3126_s27  ;;  %v1217_v29 = vpop.permute.xlu2 %1216 }
 0x1f9   : > { %1295 = vst.msk [vmem:[#allocation3 + $0x80] sm:$0xff] %vm1278_vm4, %v1203_v28 }
 0x1fa   : > { %v1213_v31 = vpop.permute.xlu0 %1212  ;;  %1302 = vst.msk [vmem:[#allocation3 + $0xb8] sm:$0xff] %vm1278_vm4, %v1217_v29 }
 0x1fb   : > { %1300 = vst.msk [vmem:[#allocation3 + $0xa8] sm:$0xff] %vm1278_vm4, %v1213_v31 }
 0x1fe   : > { %1439 = vrot.lane.b32.xlu1 %v3817_v32, %s3126_s27  ;;  %1435 = vrot.lane.b32.xlu2 %v3820_v33, %s3126_s27 }
 0x200   : > { %v1209_v38 = vpop.permute.xlu1 %1208  ;;  %1449 = vrot.lane.b32.xlu0 %v3822_v34, %s3126_s27  ;;  %v1223_v39 = vpop.permute.xlu2 %1222 }
 0x201   : > { %1298 = vst.msk [vmem:[#allocation3 + $0x98] sm:$0xff] %vm1278_vm4, %v1209_v38  ;;  %v2881_v38 = vld [vmem:[#allocation2 + $0x7d] sm:$0xff] }
 0x202   : > { %v1219_v40 = vpop.permute.xlu0 %1218  ;;  %1305 = vst.msk [vmem:[#allocation3 + $0xd0] sm:$0xff] %vm1278_vm4, %v1223_v39  ;;  %v2892_v39 = vld [vmem:[#allocation2 + $0xd5] sm:$0xff] }
 0x203   : > { %1303 = vst.msk [vmem:[#allocation3 + $0xc0] sm:$0xff] %vm1278_vm4, %v1219_v40 }
 0x206   : > { %1445 = vrot.lane.b32.xlu1 %v3832_v41, %s3126_s27  ;;  %1441 = vrot.lane.b32.xlu2 %v3835_v45, %s3126_s27 }
 0x208   : > { %v1215_v47 = vpop.permute.xlu1 %1214  ;;  %1455 = vrot.lane.b32.xlu0 %v3837_v46, %s3126_s27  ;;  %v1229_v48 = vpop.permute.xlu2 %1228 }
 0x209   : > { %1301 = vst.msk [vmem:[#allocation3 + $0xb0] sm:$0xff] %vm1278_vm4, %v1215_v47 }
 0x20a   : > { %v1225_v49 = vpop.permute.xlu0 %1224  ;;  %1308 = vst.msk [vmem:[#allocation3 + $0xe8] sm:$0xff] %vm1278_vm4, %v1229_v48 }
 0x20b   : > { %1306 = vst.msk [vmem:[#allocation3 + $0xd8] sm:$0xff] %vm1278_vm4, %v1225_v49  ;;  %v2916_v49 = vld [vmem:[#allocation2 + $0x76] sm:$0xff] }
 0x20e   : > { %1451 = vrot.lane.b32.xlu1 %v3847_v54, %s3126_s27  ;;  %1447 = vrot.lane.b32.xlu2 %v3850_v55, %s3126_s27 }
 0x210   : > { %v1221_v56 = vpop.permute.xlu1 %1220  ;;  %1608 = vrot.lane.b32.xlu0 %v3715_v3, %s3127_s28  ;;  %v1235_v57 = vpop.permute.xlu2 %1234 }
 0x211   : > { %1304 = vst.msk [vmem:[#allocation3 + $0xc8] sm:$0xff] %vm1278_vm4, %v1221_v56  ;;  %v2929_v56 = vld [vmem:[#allocation2 + $0xde] sm:$0xff] }
 0x212   : > { %v1231_v58 = vpop.permute.xlu0 %1230  ;;  %1311 = vst.msk [vmem:[#allocation3 + $0x100] sm:$0xff] %vm1278_vm4, %v1235_v57 }
 0x213   : > { %1309 = vst.msk [vmem:[#allocation3 + $0xf0] sm:$0xff] %vm1278_vm4, %v1231_v58 }
 0x216   : > { %1457 = vrot.lane.b32.xlu1 %v3860_v63, %s3126_s27  ;;  %1453 = vrot.lane.b32.xlu2 %v3863_v0, %s3126_s27 }
 0x218   : > { %v1227_v1 = vpop.permute.xlu1 %1226  ;;  %1614 = vrot.lane.b32.xlu0 %v3730_v36, %s3127_s28  ;;  %v1241_v3 = vpop.permute.xlu2 %1240 }
 0x219   : > { %1307 = vst.msk [vmem:[#allocation3 + $0xe0] sm:$0xff] %vm1278_vm4, %v1227_v1 }
 0x21a   : > { %v1237_v8 = vpop.permute.xlu0 %1236  ;;  %1314 = vst.msk [vmem:[#allocation3 + $0x118] sm:$0xff] %vm1278_vm4, %v1241_v3  ;;  %v2893_v3 = vld [vmem:[#allocation2 + $0xdd] sm:$0xff] }
 0x21b   : > { %1312 = vst.msk [vmem:[#allocation3 + $0x108] sm:$0xff] %vm1278_vm4, %v1237_v8  ;;  %v2882_v8 = vld [vmem:[#allocation2 + $0x85] sm:$0xff] }
 0x21e   : > { %1610 = vrot.lane.b32.xlu1 %v3695_v50, %s3127_s28  ;;  %1459 = vrot.lane.b32.xlu2 %v3874_v9, %s3126_s27 }
 0x220   : > { %v1233_v10 = vpop.permute.xlu1 %1232  ;;  %1620 = vrot.lane.b32.xlu0 %v3745_v24, %s3127_s28  ;;  %v1394_v36 = vpop.permute.xlu2 %1393 }
 0x221   : > { %1310 = vst.msk [vmem:[#allocation3 + $0xf8] sm:$0xff] %vm1278_vm4, %v1233_v10 }
 0x222   : > { %v1390_v13 = vpop.permute.xlu0 %1389  ;;  %1500 = vst.msk [vmem:[#allocation3 + $0x10] sm:$0xff] %vm1497_vm5, %v1394_v36 }
 0x223   : > { %1498 = vst.msk [vmem:[#allocation3] sm:$0xff] %vm1497_vm5, %v1390_v13  ;;  %v2872_v13 = vld [vmem:[#allocation2 + $0x35] sm:$0xff] }
 0x226   : > { %1616 = vrot.lane.b32.xlu1 %v3704_v59, %s3127_s28  ;;  %1612 = vrot.lane.b32.xlu2 %v3712_v2, %s3127_s28 }
 0x228   : > { %v1239_v50 = vpop.permute.xlu1 %1238  ;;  %1626 = vrot.lane.b32.xlu0 %v3760_v37, %s3127_s28  ;;  %v1400_v17 = vpop.permute.xlu2 %1399  ;;  %v2926_v37 = vld [vmem:[#allocation2 + $0xc6] sm:$0xff] }
 0x229   : > { %1313 = vst.msk [vmem:[#allocation3 + $0x110] sm:$0xff] %vm1278_vm4, %v1239_v50  ;;  %v2928_v50 = vld [vmem:[#allocation2 + $0xd6] sm:$0xff] }
 0x22a   : > { %v1396_v43 = vpop.permute.xlu0 %1395  ;;  %1503 = vst.msk [vmem:[#allocation3 + $0x28] sm:$0xff] %vm1497_vm5, %v1400_v17  ;;  %v2909_v17 = vld [vmem:[#allocation2 + $0x3e] sm:$0xff] }
 0x22b   : > { %1501 = vst.msk [vmem:[#allocation3 + $0x18] sm:$0xff] %vm1497_vm5, %v1396_v43 }
 0x22e   : > { %1622 = vrot.lane.b32.xlu1 %v3717_v4, %s3127_s28  ;;  %1618 = vrot.lane.b32.xlu2 %v3727_v11, %s3127_s28 }
 0x230   : > { %v1392_v59 = vpop.permute.xlu1 %1391  ;;  %1632 = vrot.lane.b32.xlu0 %v3775_v53, %s3127_s28  ;;  %v1406_v2 = vpop.permute.xlu2 %1405 }
 0x231   : > { %1499 = vst.msk [vmem:[#allocation3 + $0x8] sm:$0xff] %vm1497_vm5, %v1392_v59 }
 0x232   : > { %v1402_v24 = vpop.permute.xlu0 %1401  ;;  %1506 = vst.msk [vmem:[#allocation3 + $0x40] sm:$0xff] %vm1497_vm5, %v1406_v2  ;;  %v2883_v2 = vld [vmem:[#allocation2 + $0x8d] sm:$0xff] }
 0x233   : > { %1504 = vst.msk [vmem:[#allocation3 + $0x30] sm:$0xff] %vm1497_vm5, %v1402_v24  ;;  %v2873_v24 = vld [vmem:[#allocation2 + $0x3d] sm:$0xff] }
 0x236   : > { %1628 = vrot.lane.b32.xlu1 %v3732_v12, %s3127_s28  ;;  %1624 = vrot.lane.b32.xlu2 %v3742_v18, %s3127_s28 }
 0x238   : > { %v1398_v4 = vpop.permute.xlu1 %1397  ;;  %1638 = vrot.lane.b32.xlu0 %v3790_v22, %s3127_s28  ;;  %v1412_v11 = vpop.permute.xlu2 %1411 }
 0x239   : > { %1502 = vst.msk [vmem:[#allocation3 + $0x20] sm:$0xff] %vm1497_vm5, %v1398_v4 }
 0x23a   : > { %v1408_v52 = vpop.permute.xlu0 %1407  ;;  %1509 = vst.msk [vmem:[#allocation3 + $0x58] sm:$0xff] %vm1497_vm5, %v1412_v11 }
 0x23b   : > { %1507 = vst.msk [vmem:[#allocation3 + $0x48] sm:$0xff] %vm1497_vm5, %v1408_v52 }
 0x23e   : > { %1634 = vrot.lane.b32.xlu1 %v3747_v19, %s3127_s28  ;;  %1630 = vrot.lane.b32.xlu2 %v3757_v61, %s3127_s28 }
 0x240   : > { %v1404_v12 = vpop.permute.xlu1 %1403  ;;  %1644 = vrot.lane.b32.xlu0 %v3805_v27, %s3127_s28  ;;  %v1418_v18 = vpop.permute.xlu2 %1417  ;;  %v2917_v27 = vld [vmem:[#allocation2 + $0x7e] sm:$0xff] }
 0x241   : > { %1505 = vst.msk [vmem:[#allocation3 + $0x38] sm:$0xff] %vm1497_vm5, %v1404_v12  ;;  %v2918_v12 = vld [vmem:[#allocation2 + $0x86] sm:$0xff] }
 0x242   : > { %v1414_v30 = vpop.permute.xlu0 %1413  ;;  %1512 = vst.msk [vmem:[#allocation3 + $0x70] sm:$0xff] %vm1497_vm5, %v1418_v18  ;;  %v2908_v18 = vld [vmem:[#allocation2 + $0x36] sm:$0xff] }
 0x243   : > { %1510 = vst.msk [vmem:[#allocation3 + $0x60] sm:$0xff] %vm1497_vm5, %v1414_v30 }
 0x246   : > { %1640 = vrot.lane.b32.xlu1 %v3762_v42, %s3127_s28  ;;  %1636 = vrot.lane.b32.xlu2 %v3772_v15, %s3127_s28  ;;  %v2871_v15 = vld [vmem:[#allocation2 + $0x2d] sm:$0xff] }
 0x248   : > { %v1410_v19 = vpop.permute.xlu1 %1409  ;;  %1650 = vrot.lane.b32.xlu0 %v3820_v33, %s3127_s28  ;;  %v1424_v35 = vpop.permute.xlu2 %1423  ;;  %v2907_v33 = vld [vmem:[#allocation2 + $0x2e] sm:$0xff] }
 0x249   : > { %1508 = vst.msk [vmem:[#allocation3 + $0x50] sm:$0xff] %vm1497_vm5, %v1410_v19 }
 0x24a   : > { %v1420_v61 = vpop.permute.xlu0 %1419  ;;  %1515 = vst.msk [vmem:[#allocation3 + $0x88] sm:$0xff] %vm1497_vm5, %v1424_v35  ;;  %v2919_v35 = vld [vmem:[#allocation2 + $0x8e] sm:$0xff] }
 0x24b   : > { %1513 = vst.msk [vmem:[#allocation3 + $0x78] sm:$0xff] %vm1497_vm5, %v1420_v61  ;;  %v2900_v61 = vld [vmem:[#allocation2 + $0x115] sm:$0xff] }
 0x24e   : > { %1646 = vrot.lane.b32.xlu1 %v3777_v60, %s3127_s28  ;;  %1642 = vrot.lane.b32.xlu2 %v3787_v5, %s3127_s28  ;;  %v2906_v5 = vld [vmem:[#allocation2 + $0x26] sm:$0xff] }
 0x250   : > { %v1416_v42 = vpop.permute.xlu1 %1415  ;;  %2086 = vrot.lane.b32.xlu0 %v2926_v37, %s3128_s29  ;;  %v1430_v6 = vpop.permute.xlu2 %1429 }
 0x251   : > { %1511 = vst.msk [vmem:[#allocation3 + $0x68] sm:$0xff] %vm1497_vm5, %v1416_v42 }
 0x252   : > { %v1426_v44 = vpop.permute.xlu0 %1425  ;;  %1518 = vst.msk [vmem:[#allocation3 + $0xa0] sm:$0xff] %vm1497_vm5, %v1430_v6  ;;  %v2894_v6 = vld [vmem:[#allocation2 + $0xe5] sm:$0xff] }
 0x253   : > { %1516 = vst.msk [vmem:[#allocation3 + $0x90] sm:$0xff] %vm1497_vm5, %v1426_v44  ;;  %v2931_v44 = vld [vmem:[#allocation2 + $0xee] sm:$0xff] }
 0x256   : > { %1867 = vrot.lane.b32.xlu1 %v2890_v51, %s3129_s30  ;;  %1648 = vrot.lane.b32.xlu2 %v3802_v23, %s3127_s28  ;;  %v2870_v23 = vld [vmem:[#allocation2 + $0x25] sm:$0xff] }
 0x258   : > { %v1422_v53 = vpop.permute.xlu1 %1421  ;;  %1829 = vrot.lane.b32.xlu0 %v2871_v15, %s3129_s30  ;;  %v1436_v60 = vpop.permute.xlu2 %1435 }
 0x259   : > { %1514 = vst.msk [vmem:[#allocation3 + $0x80] sm:$0xff] %vm1497_vm5, %v1422_v53  ;;  %v2249_v53 = vld [vmem:[%s4323_s1 + $0x10] sm:$0x3] }
 0x25a   : > { %v1432_v20 = vpop.permute.xlu0 %1431  ;;  %1521 = vst.msk [vmem:[#allocation3 + $0xb8] sm:$0xff] %vm1497_vm5, %v1436_v60  ;;  %v2901_v60 = vld [vmem:[#allocation2 + $0x11d] sm:$0xff] }
 0x25b   : > { %1519 = vst.msk [vmem:[#allocation3 + $0xa8] sm:$0xff] %vm1497_vm5, %v1432_v20  ;;  %v2895_v20 = vld [vmem:[#allocation2 + $0xed] sm:$0xff] }
 0x25e   : > { %2088 = vrot.lane.b32.xlu1 %v2927_v21, %s3128_s29  ;;  %1869 = vrot.lane.b32.xlu2 %v2891_v62, %s3129_s30  ;;  %v2259_v21 = vunpack.c.l.b16 %v2249_v53  ;;  %v2874_v62 = vld [vmem:[#allocation2 + $0x45] sm:$0xff] }
 0x260   : > { %v1428_v22 = vpop.permute.xlu1 %1427  ;;  %2046 = vrot.lane.b32.xlu0 %v2906_v5, %s3128_s29  ;;  %v1442_v14 = vpop.permute.xlu2 %1441 }
 0x261   : > { %1517 = vst.msk [vmem:[#allocation3 + $0x98] sm:$0xff] %vm1497_vm5, %v1428_v22 }
 0x262   : > { %v1438_v25 = vpop.permute.xlu0 %1437  ;;  %1524 = vst.msk [vmem:[#allocation3 + $0xd0] sm:$0xff] %vm1497_vm5, %v1442_v14 }
 0x263   : > { %1522 = vst.msk [vmem:[#allocation3 + $0xc0] sm:$0xff] %vm1497_vm5, %v1438_v25  ;;  %v2972_v25 = vld [vmem:[%s4323_s1 + $0x8] sm:$0xff] }
 0x266   : > { %1847 = vrot.lane.b32.xlu1 %v2880_v16, %s3129_s30  ;;  %1827 = vrot.lane.b32.xlu2 %v2870_v23, %s3129_s30  ;;  %v2936_v23 = vld [vmem:[#allocation2 + $0x116] sm:$0xff] }
 0x268   : > { %v1434_v28 = vpop.permute.xlu1 %1433  ;;  %2068 = vrot.lane.b32.xlu0 %v2917_v27, %s3128_s29  ;;  %v1448_v29 = vpop.permute.xlu2 %1447  ;;  %v2930_v27 = vld [vmem:[#allocation2 + $0xe6] sm:$0xff] }
 0x269   : > { %1520 = vst.msk [vmem:[#allocation3 + $0xb0] sm:$0xff] %vm1497_vm5, %v1434_v28  ;;  %v2885_v28 = vld [vmem:[#allocation2 + $0x9d] sm:$0xff] }
 0x26a   : > { %v1444_v31 = vpop.permute.xlu0 %1443  ;;  %1527 = vst.msk [vmem:[#allocation3 + $0xe8] sm:$0xff] %vm1497_vm5, %v1448_v29  ;;  %v2971_v29 = vld [vmem:[%s4323_s1] sm:$0xff] }
 0x26b   : > { %1525 = vst.msk [vmem:[#allocation3 + $0xd8] sm:$0xff] %vm1497_vm5, %v1444_v31 }
 0x26e   : > { %2048 = vrot.lane.b32.xlu1 %v2907_v33, %s3128_s29  ;;  %1849 = vrot.lane.b32.xlu2 %v2881_v38, %s3129_s30 }
 0x270   : > { %v1440_v40 = vpop.permute.xlu1 %1439  ;;  %1871 = vrot.lane.b32.xlu0 %v2892_v39, %s3129_s30  ;;  %v1454_v47 = vpop.permute.xlu2 %1453  ;;  %v2875_v39 = vld [vmem:[#allocation2 + $0x4d] sm:$0xff] }
 0x271   : > { %1523 = vst.msk [vmem:[#allocation3 + $0xc8] sm:$0xff] %vm1497_vm5, %v1440_v40  ;;  %v2937_v40 = vld [vmem:[#allocation2 + $0x11e] sm:$0xff] }
 0x272   : > { %v1450_v48 = vpop.permute.xlu0 %1449  ;;  %1530 = vst.msk [vmem:[#allocation3 + $0x100] sm:$0xff] %vm1497_vm5, %v1454_v47  ;;  %v2920_v47 = vld [vmem:[#allocation2 + $0x96] sm:$0xff] }
 0x273   : > { %1528 = vst.msk [vmem:[#allocation3 + $0xf0] sm:$0xff] %vm1497_vm5, %v1450_v48 }
 0x276   : > { %1652 = vrot.lane.b32.xlu1 %v3792_v7, %s3127_s28  ;;  %2066 = vrot.lane.b32.xlu2 %v2916_v49, %s3128_s29 }
 0x278   : > { %v1446_v57 = vpop.permute.xlu1 %1445  ;;  %2092 = vrot.lane.b32.xlu0 %v2929_v56, %s3128_s29  ;;  %v1460_v58 = vpop.permute.xlu2 %1459 }
 0x279   : > { %1526 = vst.msk [vmem:[#allocation3 + $0xe0] sm:$0xff] %vm1497_vm5, %v1446_v57  ;;  %v2910_v57 = vld [vmem:[#allocation2 + $0x46] sm:$0xff] }
 0x27a   : > { %v1456_v1 = vpop.permute.xlu0 %1455  ;;  %1533 = vst.msk [vmem:[#allocation3 + $0x118] sm:$0xff] %vm1497_vm5, %v1460_v58  ;;  %v2884_v58 = vld [vmem:[#allocation2 + $0x95] sm:$0xff] }
 0x27b   : > { %1531 = vst.msk [vmem:[#allocation3 + $0x108] sm:$0xff] %vm1497_vm5, %v1456_v1 }
 0x27e   : > { %1873 = vrot.lane.b32.xlu1 %v2893_v3, %s3129_s30  ;;  %1654 = vrot.lane.b32.xlu2 %v3817_v32, %s3127_s28 }
 0x280   : > { %v1452_v7 = vpop.permute.xlu1 %1451  ;;  %1851 = vrot.lane.b32.xlu0 %v2882_v8, %s3129_s30  ;;  %v1613_v10 = vpop.permute.xlu2 %1612 }
 0x281   : > { %1529 = vst.msk [vmem:[#allocation3 + $0xf8] sm:$0xff] %vm1497_vm5, %v1452_v7  ;;  %v2921_v7 = vld [vmem:[#allocation2 + $0x9e] sm:$0xff] }
 0x282   : > { %v1609_v36 = vpop.permute.xlu0 %1608  ;;  %1719 = vst.msk [vmem:[#allocation3 + $0x10] sm:$0xff] %vm1716_vm6, %v1613_v10  ;;  %v2911_v10 = vld [vmem:[#allocation2 + $0x4e] sm:$0xff] }
 0x283   : > { %1717 = vst.msk [vmem:[#allocation3] sm:$0xff] %vm1716_vm6, %v1609_v36  ;;  %v2896_v36 = vld [vmem:[#allocation2 + $0xf5] sm:$0xff] }
 0x286   : > { %1831 = vrot.lane.b32.xlu1 %v2872_v13, %s3129_s30  ;;  %2090 = vrot.lane.b32.xlu2 %v2928_v50, %s3128_s29 }
 0x288   : > { %v1458_v32 = vpop.permute.xlu1 %1457  ;;  %2052 = vrot.lane.b32.xlu0 %v2909_v17, %s3128_s29  ;;  %v1619_v43 = vpop.permute.xlu2 %1618  ;;  %v2903_v17 = vld [vmem:[#allocation2 + $0x12d] sm:$0xff] }
 0x289   : > { %1532 = vst.msk [vmem:[#allocation3 + $0x110] sm:$0xff] %vm1497_vm5, %v1458_v32 }
 0x28a   : > { %v1615_v59 = vpop.permute.xlu0 %1614  ;;  %1722 = vst.msk [vmem:[#allocation3 + $0x28] sm:$0xff] %vm1716_vm6, %v1619_v43 }
 0x28b   : > { %1720 = vst.msk [vmem:[#allocation3 + $0x18] sm:$0xff] %vm1716_vm6, %v1615_v59 }
 0x28e   : > { %1853 = vrot.lane.b32.xlu1 %v2883_v2, %s3129_s30  ;;  %1833 = vrot.lane.b32.xlu2 %v2873_v24, %s3129_s30 }
 0x290   : > { %v1611_v4 = vpop.permute.xlu1 %1610  ;;  %1656 = vrot.lane.b32.xlu0 %v3835_v45, %s3127_s28  ;;  %v1625_v11 = vpop.permute.xlu2 %1624 }
 0x291   : > { %1718 = vst.msk [vmem:[#allocation3 + $0x8] sm:$0xff] %vm1716_vm6, %v1611_v4 }
 0x292   : > { %v1621_v52 = vpop.permute.xlu0 %1620  ;;  %1725 = vst.msk [vmem:[#allocation3 + $0x40] sm:$0xff] %vm1716_vm6, %v1625_v11  ;;  %v2897_v11 = vld [vmem:[#allocation2 + $0xfd] sm:$0xff] }
 0x293   : > { %1723 = vst.msk [vmem:[#allocation3 + $0x30] sm:$0xff] %vm1716_vm6, %v1621_v52 }
 0x296   : > { %2070 = vrot.lane.b32.xlu1 %v2918_v12, %s3128_s29  ;;  %2050 = vrot.lane.b32.xlu2 %v2908_v18, %s3128_s29 }
 0x298   : > { %v1617_v30 = vpop.permute.xlu1 %1616  ;;  %1670 = vrot.lane.b32.xlu0 %v3837_v46, %s3127_s28  ;;  %v1631_v19 = vpop.permute.xlu2 %1630 }
 0x299   : > { %1721 = vst.msk [vmem:[#allocation3 + $0x20] sm:$0xff] %vm1716_vm6, %v1617_v30 }
 0x29a   : > { %v1627_v45 = vpop.permute.xlu0 %1626  ;;  %1728 = vst.msk [vmem:[#allocation3 + $0x58] sm:$0xff] %vm1716_vm6, %v1631_v19  ;;  %v2932_v19 = vld [vmem:[#allocation2 + $0xf6] sm:$0xff] }
 0x29b   : > { %1726 = vst.msk [vmem:[#allocation3 + $0x48] sm:$0xff] %vm1716_vm6, %v1627_v45 }
 0x29e   : > { %1658 = vrot.lane.b32.xlu1 %v3807_v26, %s3127_s28  ;;  %2072 = vrot.lane.b32.xlu2 %v2919_v35, %s3128_s29  ;;  %v2902_v35 = vld [vmem:[#allocation2 + $0x125] sm:$0xff] }
 0x2a0   : > { %v1623_v37 = vpop.permute.xlu1 %1622  ;;  %1887 = vrot.lane.b32.xlu0 %v2900_v61, %s3129_s30  ;;  %v1637_v42 = vpop.permute.xlu2 %1636  ;;  %v2877_v61 = vld [vmem:[#allocation2 + $0x5d] sm:$0xff] }
 0x2a1   : > { %1724 = vst.msk [vmem:[#allocation3 + $0x38] sm:$0xff] %vm1716_vm6, %v1623_v37 }
 0x2a2   : > { %v1633_v46 = vpop.permute.xlu0 %1632  ;;  %1731 = vst.msk [vmem:[#allocation3 + $0x70] sm:$0xff] %vm1716_vm6, %v1637_v42 }
 0x2a3   : > { %1729 = vst.msk [vmem:[#allocation3 + $0x60] sm:$0xff] %vm1716_vm6, %v1633_v46 }
 0x2a6   : > { %1875 = vrot.lane.b32.xlu1 %v2894_v6, %s3129_s30  ;;  %1668 = vrot.lane.b32.xlu2 %v3863_v0, %s3127_s28  ;;  %v2262_v0 = vpack.c.b16 %v2259_v21, %v2259_v21  ;;  %v2886_v21 = vld [vmem:[#allocation2 + $0xa5] sm:$0xff] }
 0x2a8   : > { %v1629_v26 = vpop.permute.xlu1 %1628  ;;  %2096 = vrot.lane.b32.xlu0 %v2931_v44, %s3128_s29  ;;  %v1643_v51 = vpop.permute.xlu2 %1642  ;;  %v2322_v5 = vsel %vm2320_vm7, %v2262_v0, 0  ;;  %v2923_v0 = vld [vmem:[#allocation2 + $0xae] sm:$0xff] }
 0x2a9   : > { %1727 = vst.msk [vmem:[#allocation3 + $0x50] sm:$0xff] %vm1716_vm6, %v1629_v26  ;;  %3053 = vmatpush.bf16.msra.mxu2 %v2322_v5  ;;  %2329 = vmatpush.bf16.msra.mxu0 %v2322_v5  ;;  %v2939_v26 = vld [vmem:[#allocation2 + $0x12e] sm:$0xff] }
 0x2aa   : > { %v1639_v15 = vpop.permute.xlu0 %1638  ;;  %1734 = vst.msk [vmem:[#allocation3 + $0x88] sm:$0xff] %vm1716_vm6, %v1643_v51  ;;  %3052 = vmatpush.bf16.msra.mxu1 %v2322_v5  ;;  %3054 = vmatpush.bf16.msra.mxu3 %v2322_v5  ;;  %v2933_v51 = vld [vmem:[#allocation2 + $0xfe] sm:$0xff] }
 0x2ab   : > { %1732 = vst.msk [vmem:[#allocation3 + $0x78] sm:$0xff] %vm1716_vm6, %v1639_v15  ;;  %v2912_v15 = vld [vmem:[#allocation2 + $0x56] sm:$0xff] }
 0x2ad   : > { %3056 = vmatpush.bf16.msra.mxu2 %v2972_v25  ;;  %2330 = vmatpush.bf16.msra.mxu0 %v2972_v25 }
 0x2ae   : > { %1889 = vrot.lane.b32.xlu1 %v2901_v60, %s3129_s30  ;;  %1877 = vrot.lane.b32.xlu2 %v2895_v20, %s3129_s30 }
 0x2af   : > { %3055 = vmatpush.bf16.msra.mxu1 %v2972_v25  ;;  %3057 = vmatpush.bf16.msra.mxu3 %v2972_v25 }
 0x2b0   : > { %v1635_v22 = vpop.permute.xlu1 %1634  ;;  %1835 = vrot.lane.b32.xlu0 %v2874_v62, %s3129_s30  ;;  %v1649_v14 = vpop.permute.xlu2 %1648  ;;  %v2876_v62 = vld [vmem:[#allocation2 + $0x55] sm:$0xff] }
 0x2b1   : > { %1730 = vst.msk [vmem:[#allocation3 + $0x68] sm:$0xff] %vm1716_vm6, %v1635_v22  ;;  %3059 = vmatpush.bf16.msra.mxu2 %v2971_v29  ;;  %2331 = vmatpush.bf16.msra.mxu0 %v2971_v29 }
 0x2b2   : > { %v1645_v16 = vpop.permute.xlu0 %1644  ;;  %1737 = vst.msk [vmem:[#allocation3 + $0xa0] sm:$0xff] %vm1716_vm6, %v1649_v14 }
 0x2b3   : > { %1735 = vst.msk [vmem:[#allocation3 + $0x90] sm:$0xff] %vm1716_vm6, %v1645_v16  ;;  %3058 = vmatpush.bf16.msra.mxu1 %v2971_v29  ;;  %3060 = vmatpush.bf16.msra.mxu3 %v2971_v29  ;;  %v2868_v29 = vld [vmem:[#allocation2 + $0x134] sm:$0xff] }
 0x2b6   : > { %2106 = vrot.lane.b32.xlu1 %v2936_v23, %s3128_s29  ;;  %2094 = vrot.lane.b32.xlu2 %v2930_v27, %s3128_s29  ;;  %v2913_v27 = vld [vmem:[#allocation2 + $0x5e] sm:$0xff] }
 0x2b8   : > { %v1641_v31 = vpop.permute.xlu1 %1640  ;;  %1857 = vrot.lane.b32.xlu0 %v2885_v28, %s3129_s30  ;;  %v1870_v33 = vpop.permute.xlu2 %1869  ;;  %v2887_v28 = vld [vmem:[#allocation2 + $0xad] sm:$0xff] }
 0x2b9   : > { %1733 = vst.msk [vmem:[#allocation3 + $0x80] sm:$0xff] %vm1716_vm6, %v1641_v31 }
 0x2ba   : > { %v1651_v38 = vpop.permute.xlu0 %1650 }
 0x2bb   : > { %1738 = vst.msk [vmem:[#allocation3 + $0xa8] sm:$0xff] %vm1716_vm6, %v1651_v38 }
 0x2bc   : > { %1957 = vst.msk [vmem:[#allocation3 + $0xa8] sm:$0xff] %vm1935_vm8, %v1870_v33 }
 0x2be   : > { %1837 = vrot.lane.b32.xlu1 %v2875_v39, %s3129_s30  ;;  %2108 = vrot.lane.b32.xlu2 %v2937_v40, %s3128_s29 }
 0x2c0   : > { %v1647_v48 = vpop.permute.xlu1 %1646  ;;  %2074 = vrot.lane.b32.xlu0 %v2920_v47, %s3128_s29  ;;  %v1828_v49 = vpop.permute.xlu2 %1827 }
 0x2c1   : > { %1736 = vst.msk [vmem:[#allocation3 + $0x98] sm:$0xff] %vm1716_vm6, %v1647_v48  ;;  %v2922_v48 = vld [vmem:[#allocation2 + $0xa6] sm:$0xff] }
 0x2c2   : > { %v2087_v56 = vpop.permute.xlu0 %2086  ;;  %1936 = vst.msk [vmem:[#allocation3] sm:$0xff] %vm1935_vm8, %v1828_v49  ;;  %v2899_v49 = vld [vmem:[#allocation2 + $0x10d] sm:$0xff] }
 0x2c6   : > { %2054 = vrot.lane.b32.xlu1 %v2910_v57, %s3128_s29  ;;  %1855 = vrot.lane.b32.xlu2 %v2884_v58, %s3129_s30 }
 0x2c8   : > { %v1868_v1 = vpop.permute.xlu1 %1867  ;;  %1662 = vrot.lane.b32.xlu0 %v3850_v55, %s3127_s28  ;;  %v1850_v3 = vpop.permute.xlu2 %1849 }
 0x2c9   : > { %1956 = vst.msk [vmem:[#allocation3 + $0xa0] sm:$0xff] %vm1935_vm8, %v1868_v1  ;;  %v2869_v1 = vld [vmem:[#allocation2 + $0x13c] sm:$0xff] }
 0x2ca   : > { %2175 = vst.msk [vmem:[#allocation3 + $0xa0] sm:$0xff] %vm2154_vm9, %v2087_v56  ;;  %v1830_v8 = vpop.permute.xlu0 %1829 }
 0x2cb   : > { %1937 = vst.msk [vmem:[#allocation3 + $0x8] sm:$0xff] %vm1935_vm8, %v1830_v8 }
 0x2cc   : > { %1947 = vst.msk [vmem:[#allocation3 + $0x58] sm:$0xff] %vm1935_vm8, %v1850_v3  ;;  %v2934_v3 = vld [vmem:[#allocation2 + $0x106] sm:$0xff] }
 0x2ce   : > { %2076 = vrot.lane.b32.xlu1 %v2921_v7, %s3128_s29  ;;  %2056 = vrot.lane.b32.xlu2 %v2911_v10, %s3128_s29 }
 0x2d0   : > { %v2089_v13 = vpop.permute.xlu1 %2088  ;;  %1879 = vrot.lane.b32.xlu0 %v2896_v36, %s3129_s30  ;;  %v2067_v55 = vpop.permute.xlu2 %2066 }
 0x2d1   : > { %2176 = vst.msk [vmem:[#allocation3 + $0xa8] sm:$0xff] %vm2154_vm9, %v2089_v13  ;;  %v2211_v32 = vld [vmem:[#allocation3 + $0xa0] sm:$0xff] }
 0x2d2   : > { %v2047_v50 = vpop.permute.xlu0 %2046 }
 0x2d3   : > { %2155 = vst.msk [vmem:[#allocation3] sm:$0xff] %vm2154_vm9, %v2047_v50  ;;  %v2898_v50 = vld [vmem:[#allocation2 + $0x105] sm:$0xff] }
 0x2d6   : > { %1672 = vrot.lane.b32.xlu1 %v3860_v63, %s3127_s28  ;;  %1660 = vrot.lane.b32.xlu2 %v3832_v41, %s3127_s28  ;;  %v2938_v41 = vld [vmem:[#allocation2 + $0x126] sm:$0xff] }
 0x2d8   : > { %v1848_v43 = vpop.permute.xlu1 %1847  ;;  %v2212_v59 = vld [vmem:[#allocation3 + $0xa8] sm:$0xff]  ;;  %1893 = vrot.lane.b32.xlu0 %v2903_v17, %s3129_s30  ;;  %v1655_v2 = vpop.permute.xlu2 %1654  ;;  %v2941_v17 = vld [vmem:[#allocation2 + $0x13e] sm:$0xff] }
 0x2d9   : > { %1946 = vst.msk [vmem:[#allocation3 + $0x50] sm:$0xff] %vm1935_vm8, %v1848_v43  ;;  %v2237_v24 = vpack.c.bf16 %v2212_v59, %v2211_v32  ;;  %v2935_v59 = vld [vmem:[#allocation2 + $0x10e] sm:$0xff] }
 0x2da   : > { %v2069_v4 = vpop.permute.xlu0 %2068  ;;  %2165 = vst.msk [vmem:[#allocation3 + $0x50] sm:$0xff] %vm2154_vm9, %v2067_v55  ;;  %v2191_v37 = vld [vmem:[#allocation3] sm:$0xff]  ;;  %v2904_v55 = vld [vmem:[#allocation2 + $0x135] sm:$0xff] }
 0x2db   : > { %2960 = vmatmul.msk.bf16.vlgmr.msra.gmra.mxu2 %vm2265_vm10, %v2237_v24  ;;  %2166 = vst.msk [vmem:[#allocation3 + $0x58] sm:$0xff] %vm2154_vm9, %v2069_v4  ;;  %v2888_v24 = vld [vmem:[#allocation2 + $0xb5] sm:$0xff] }
 0x2dc   : > { %1740 = vst.msk [vmem:[#allocation3 + $0xb8] sm:$0xff] %vm1716_vm6, %v1655_v2  ;;  %v2905_v2 = vld [vmem:[#allocation2 + $0x13d] sm:$0xff] }
 0x2de   : > { %1881 = vrot.lane.b32.xlu1 %v2897_v11, %s3129_s30  ;;  %1674 = vrot.lane.b32.xlu2 %v3874_v9, %s3127_s28 }
 0x2e0   : > { %v2049_v63 = vpop.permute.xlu1 %2048  ;;  %2110 = vrot.lane.b32.xlu0 %v2938_v41, %s3128_s29  ;;  %v2091_v52 = vpop.permute.xlu2 %2090 }
 0x2e1   : > { %2156 = vst.msk [vmem:[#allocation3 + $0x8] sm:$0xff] %vm2154_vm9, %v2049_v63  ;;  %v2201_v12 = vld [vmem:[#allocation3 + $0x50] sm:$0xff] }
 0x2e2   : > { %v1872_v18 = vpop.permute.xlu0 %1871  ;;  %v2202_v30 = vld [vmem:[#allocation3 + $0x58] sm:$0xff] }
 0x2e3   : > { %v2232_v45 = vpack.c.bf16 %v2202_v30, %v2201_v12  ;;  %v2878_v12 = vld [vmem:[#allocation2 + $0x65] sm:$0xff]  ;;  %v2940_v30 = vld [vmem:[#allocation2 + $0x136] sm:$0xff] }
 0x2e5   : > { %2955 = vmatmul.msk.bf16.vlgmr.msra.gmra.mxu1 %vm2265_vm10, %v2232_v45 }
 0x2e6   : > { %2098 = vrot.lane.b32.xlu1 %v2932_v19, %s3128_s29  ;;  %1891 = vrot.lane.b32.xlu2 %v2902_v35, %s3129_s30  ;;  %v2915_v19 = vld [vmem:[#allocation2 + $0x6e] sm:$0xff] }
 0x2e8   : > { %v1653_v9 = vpop.permute.xlu1 %1652  ;;  %v2192_v42 = vld [vmem:[#allocation3 + $0x8] sm:$0xff]  ;;  %1841 = vrot.lane.b32.xlu0 %v2877_v61, %s3129_s30  ;;  %v1834_v46 = vpop.permute.xlu2 %1833 }
 0x2e9   : > { %1739 = vst.msk [vmem:[#allocation3 + $0xb0] sm:$0xff] %vm1716_vm6, %v1653_v9  ;;  %v2227_v6 = vpack.c.bf16 %v2192_v42, %v2191_v37  ;;  %v2889_v37 = vld [vmem:[#allocation2 + $0xbd] sm:$0xff]  ;;  %v2879_v9 = vld [vmem:[#allocation2 + $0x6d] sm:$0xff] }
 0x2ea   : > { %1958 = vst.msk [vmem:[#allocation3 + $0xb0] sm:$0xff] %vm1935_vm8, %v1872_v18  ;;  %v2093_v44 = vpop.permute.xlu0 %2092 }
 0x2eb   : > { %2950 = vmatmul.msk.bf16.vlgmr.msra.gmra.mxu0 %vm2265_vm10, %v2227_v6  ;;  %2177 = vst.msk [vmem:[#allocation3 + $0xb0] sm:$0xff] %vm2154_vm9, %v2091_v52 }
 0x2ec   : > { %1939 = vst.msk [vmem:[#allocation3 + $0x18] sm:$0xff] %vm1935_vm8, %v1834_v46 }
 0x2ee   : > { %2112 = vrot.lane.b32.xlu1 %v2939_v26, %s3128_s29  ;;  %2100 = vrot.lane.b32.xlu2 %v2933_v51, %s3128_s29 }
 0x2f0   : > { %v1874_v53 = vpop.permute.xlu1 %1873  ;;  %2058 = vrot.lane.b32.xlu0 %v2912_v15, %s3128_s29  ;;  %v2051_v60 = vpop.permute.xlu2 %2050  ;;  %v2924_v15 = vld [vmem:[#allocation2 + $0xb6] sm:$0xff] }
 0x2f1   : > { %1959 = vst.msk [vmem:[#allocation3 + $0xb8] sm:$0xff] %vm1935_vm8, %v1874_v53  ;;  %v2914_v53 = vld [vmem:[#allocation2 + $0x66] sm:$0xff] }
 0x2f2   : > { %2178 = vst.msk [vmem:[#allocation3 + $0xb8] sm:$0xff] %vm2154_vm9, %v2093_v44  ;;  %v1852_v20 = vpop.permute.xlu0 %1851  ;;  %v2213_v5 = vld [vmem:[#allocation3 + $0xb0] sm:$0xff] }
 0x2f3   : > { %1948 = vst.msk [vmem:[#allocation3 + $0x60] sm:$0xff] %vm1935_vm8, %v1852_v20 }
 0x2f6   : > { %1859 = vrot.lane.b32.xlu1 %v2886_v21, %s3129_s30  ;;  %1839 = vrot.lane.b32.xlu2 %v2876_v62, %s3129_s30  ;;  %v2925_v62 = vld [vmem:[#allocation2 + $0xbe] sm:$0xff] }
 0x2f8   : > { %v1832_v22 = vpop.permute.xlu1 %1831  ;;  %2080 = vrot.lane.b32.xlu0 %v2923_v0, %s3128_s29  ;;  %v2073_v14 = vpop.permute.xlu2 %2072 }
 0x2f9   : > { %1938 = vst.msk [vmem:[#allocation3 + $0x10] sm:$0xff] %vm1935_vm8, %v1832_v22  ;;  %v2214_v25 = vld [vmem:[#allocation3 + $0xb8] sm:$0xff] }
 0x2fa   : > { %v2238_v16 = vpack.c.bf16 %v2214_v25, %v2213_v5  ;;  %v2053_v23 = vpop.permute.xlu0 %2052  ;;  %2157 = vst.msk [vmem:[#allocation3 + $0x10] sm:$0xff] %vm2154_vm9, %v2051_v60 }
 0x2fb   : > { %2158 = vst.msk [vmem:[#allocation3 + $0x18] sm:$0xff] %vm2154_vm9, %v2053_v23 }
 0x2fc   : > { %2961 = vmatmul.msk.bf16.gmra.mxu2 %vm2265_vm10, %v2238_v16 }
 0x2fe   : > { %2060 = vrot.lane.b32.xlu1 %v2913_v27, %s3128_s29  ;;  %1861 = vrot.lane.b32.xlu2 %v2887_v28, %s3129_s30 }
 0x300   : > { %v1854_v31 = vpop.permute.xlu1 %1853  ;;  %1676 = vrot.lane.b32.xlu0 %v2868_v29, %s3127_s28  ;;  %v1669_v33 = vpop.permute.xlu2 %1668 }
 0x301   : > { %1949 = vst.msk [vmem:[#allocation3 + $0x68] sm:$0xff] %vm1935_vm8, %v1854_v31  ;;  %v2193_v38 = vld [vmem:[#allocation3 + $0x10] sm:$0xff] }
 0x302   : > { %v1657_v39 = vpop.permute.xlu0 %1656  ;;  %2168 = vst.msk [vmem:[#allocation3 + $0x68] sm:$0xff] %vm2154_vm9, %v2073_v14  ;;  %v2194_v40 = vld [vmem:[#allocation3 + $0x18] sm:$0xff] }
 0x303   : > { %1741 = vst.msk [vmem:[#allocation3 + $0xc0] sm:$0xff] %vm1716_vm6, %v1657_v39  ;;  %v2228_v47 = vpack.c.bf16 %v2194_v40, %v2193_v38 }
 0x304   : > { %1747 = vst.msk [vmem:[#allocation3 + $0xf0] sm:$0xff] %vm1716_vm6, %v1669_v33 }
 0x305   : > { %2951 = vmatmul.msk.bf16.gmra.mxu0 %vm2265_vm10, %v2228_v47 }
 0x306   : > { %1664 = vrot.lane.b32.xlu1 %v3822_v34, %s3127_s28  ;;  %2078 = vrot.lane.b32.xlu2 %v2922_v48, %s3128_s29 }
 0x308   : > { %v2071_v56 = vpop.permute.xlu1 %2070  ;;  %1885 = vrot.lane.b32.xlu0 %v2899_v49, %s3129_s30  ;;  %v1878_v57 = vpop.permute.xlu2 %1877 }
 0x309   : > { %2167 = vst.msk [vmem:[#allocation3 + $0x60] sm:$0xff] %vm2154_vm9, %v2071_v56  ;;  %v2204_v8 = vld [vmem:[#allocation3 + $0x68] sm:$0xff]  ;;  %v4157_v56 = vld [vmem:[%s4324_s2] ss:$0 sm:$0xff] }
 0x30a   : > { %v1671_v58 = vpop.permute.xlu0 %1670 }
 0x30b   : > { %1748 = vst.msk [vmem:[#allocation3 + $0xf8] sm:$0xff] %vm1716_vm6, %v1671_v58 }
 0x30e   : > { %1678 = vrot.lane.b32.xlu1 %v2869_v1, %s3127_s28  ;;  %1666 = vrot.lane.b32.xlu2 %v3847_v54, %s3127_s28 }
 0x310   : > { %v1659_v34 = vpop.permute.xlu1 %1658  ;;  %v2203_v7 = vld [vmem:[#allocation3 + $0x60] sm:$0xff]  ;;  %2102 = vrot.lane.b32.xlu0 %v2934_v3, %s3128_s29  ;;  %v2095_v10 = vpop.permute.xlu2 %2094 }
 0x311   : > { %1742 = vst.msk [vmem:[#allocation3 + $0xc8] sm:$0xff] %vm1716_vm6, %v1659_v34  ;;  %v2233_v36 = vpack.c.bf16 %v2204_v8, %v2203_v7 }
 0x312   : > { %v1888_v13 = vpop.permute.xlu0 %1887  ;;  %1961 = vst.msk [vmem:[#allocation3 + $0xc8] sm:$0xff] %vm1935_vm8, %v1878_v57  ;;  %v4164_v57 = vld [vmem:[%s4325_s3] ss:$0 sm:$0xff] }
 0x313   : > { %2956 = vmatmul.msk.bf16.gmra.mxu1 %vm2265_vm10, %v2233_v36  ;;  %1966 = vst.msk [vmem:[#allocation3 + $0xf0] sm:$0xff] %vm1935_vm8, %v1888_v13 }
 0x316   : > { %1895 = vrot.lane.b32.xlu1 %v2904_v55, %s3129_s30  ;;  %1883 = vrot.lane.b32.xlu2 %v2898_v50, %s3129_s30 }
 0x318   : > { %v1876_v54 = vpop.permute.xlu1 %1875  ;;  %2116 = vrot.lane.b32.xlu0 %v2941_v17, %s3128_s29  ;;  %v2109_v32 = vpop.permute.xlu2 %2108 }
 0x319   : > { %1960 = vst.msk [vmem:[#allocation3 + $0xc0] sm:$0xff] %vm1935_vm8, %v1876_v54 }
 0x31a   : > { %v2097_v43 = vpop.permute.xlu0 %2096  ;;  %2179 = vst.msk [vmem:[#allocation3 + $0xc0] sm:$0xff] %vm2154_vm9, %v2095_v10 }
 0x31b   : > { %2180 = vst.msk [vmem:[#allocation3 + $0xc8] sm:$0xff] %vm2154_vm9, %v2097_v43 }
 0x31e   : > { %2104 = vrot.lane.b32.xlu1 %v2935_v59, %s3128_s29  ;;  %1897 = vrot.lane.b32.xlu2 %v2905_v2, %s3129_s30 }
 0x320   : > { %v1890_v4 = vpop.permute.xlu1 %1889  ;;  %1863 = vrot.lane.b32.xlu0 %v2888_v24, %s3129_s30  ;;  %v1856_v11 = vpop.permute.xlu2 %1855 }
 0x321   : > { %1967 = vst.msk [vmem:[#allocation3 + $0xf8] sm:$0xff] %vm1935_vm8, %v1890_v4  ;;  %v2215_v41 = vld [vmem:[#allocation3 + $0xc0] sm:$0xff] }
 0x322   : > { %v1836_v63 = vpop.permute.xlu0 %1835  ;;  %2186 = vst.msk [vmem:[#allocation3 + $0xf8] sm:$0xff] %vm2154_vm9, %v2109_v32  ;;  %v2216_v52 = vld [vmem:[#allocation3 + $0xc8] sm:$0xff] }
 0x323   : > { %1940 = vst.msk [vmem:[#allocation3 + $0x20] sm:$0xff] %vm1935_vm8, %v1836_v63  ;;  %v2239_v18 = vpack.c.bf16 %v2216_v52, %v2215_v41 }
 0x324   : > { %1950 = vst.msk [vmem:[#allocation3 + $0x70] sm:$0xff] %vm1935_vm8, %v1856_v11 }
 0x325   : > { %2962 = vmatmul.msk.bf16.gmra.mxu2 %vm2265_vm10, %v2239_v18 }
 0x326   : > { %1843 = vrot.lane.b32.xlu1 %v2878_v12, %s3129_s30  ;;  %2114 = vrot.lane.b32.xlu2 %v2940_v30, %s3128_s29 }
 0x328   : > { %v2107_v45 = vpop.permute.xlu1 %2106  ;;  %2064 = vrot.lane.b32.xlu0 %v2915_v19, %s3128_s29  ;;  %v2057_v35 = vpop.permute.xlu2 %2056 }
 0x329   : > { %2185 = vst.msk [vmem:[#allocation3 + $0xf0] sm:$0xff] %vm2154_vm9, %v2107_v45  ;;  %v2222_v42 = vld [vmem:[#allocation3 + $0xf8] sm:$0xff] }
 0x32a   : > { %v1858_v61 = vpop.permute.xlu0 %1857 }
 0x32b   : > { %1951 = vst.msk [vmem:[#allocation3 + $0x78] sm:$0xff] %vm1935_vm8, %v1858_v61 }
 0x32e   : > { %1865 = vrot.lane.b32.xlu1 %v2889_v37, %s3129_s30  ;;  %1845 = vrot.lane.b32.xlu2 %v2879_v9, %s3129_s30 }
 0x330   : > { %v1838_v46 = vpop.permute.xlu1 %1837  ;;  %v2221_v6 = vld [vmem:[#allocation3 + $0xf0] sm:$0xff]  ;;  %v1661_v44 = vpop.permute.xlu2 %1660 }
 0x331   : > { %1941 = vst.msk [vmem:[#allocation3 + $0x28] sm:$0xff] %vm1935_vm8, %v1838_v46  ;;  %v2242_v26 = vpack.c.bf16 %v2222_v42, %v2221_v6 }
 0x332   : > { %v2075_v51 = vpop.permute.xlu0 %2074  ;;  %2160 = vst.msk [vmem:[#allocation3 + $0x28] sm:$0xff] %vm2154_vm9, %v2057_v35 }
 0x333   : > { %2965 = vmatmul.msk.bf16.vlgmr.msra.gmra.mxu3 %vm2265_vm10, %v2242_v26  ;;  %2169 = vst.msk [vmem:[#allocation3 + $0x70] sm:$0xff] %vm2154_vm9, %v2075_v51 }
 0x334   : > { %1743 = vst.msk [vmem:[#allocation3 + $0xd0] sm:$0xff] %vm1716_vm6, %v1661_v44 }
 0x336   : > { %2082 = vrot.lane.b32.xlu1 %v2924_v15, %s3128_s29  ;;  %2062 = vrot.lane.b32.xlu2 %v2914_v53, %s3128_s29 }
 0x338   : > { %v2055_v60 = vpop.permute.xlu1 %2054  ;;  %v1675_v20 = vpop.permute.xlu2 %1674 }
 0x339   : > { %2159 = vst.msk [vmem:[#allocation3 + $0x20] sm:$0xff] %vm2154_vm9, %v2055_v60  ;;  %v2196_v0 = vld [vmem:[#allocation3 + $0x28] sm:$0xff] }
 0x33a   : > { %v1663_v21 = vpop.permute.xlu0 %1662  ;;  %1750 = vst.msk [vmem:[#allocation3 + $0x108] sm:$0xff] %vm1716_vm6, %v1675_v20  ;;  %v2205_v23 = vld [vmem:[#allocation3 + $0x70] sm:$0xff] }
 0x33b   : > { %1744 = vst.msk [vmem:[#allocation3 + $0xd8] sm:$0xff] %vm1716_vm6, %v1663_v21 }
 0x33e   : > { %2084 = vrot.lane.b32.xlu2 %v2925_v62, %s3128_s29 }
 0x340   : > { %v2077_v5 = vpop.permute.xlu1 %2076  ;;  %v2195_v22 = vld [vmem:[#allocation3 + $0x20] sm:$0xff]  ;;  %v1892_v14 = vpop.permute.xlu2 %1891 }
 0x341   : > { %2170 = vst.msk [vmem:[#allocation3 + $0x78] sm:$0xff] %vm2154_vm9, %v2077_v5  ;;  %v2229_v25 = vpack.c.bf16 %v2196_v0, %v2195_v22 }
 0x342   : > { %v1880_v16 = vpop.permute.xlu0 %1879 }
 0x343   : > { %2952 = vmatmul.msk.bf16.gmra.mxu0 %vm2265_vm10, %v2229_v25  ;;  %1962 = vst.msk [vmem:[#allocation3 + $0xd0] sm:$0xff] %vm1935_vm8, %v1880_v16 }
 0x348   : > { %v1673_v27 = vpop.permute.xlu1 %1672  ;;  %v2206_v28 = vld [vmem:[#allocation3 + $0x78] sm:$0xff]  ;;  %v2101_v29 = vpop.permute.xlu2 %2100 }
 0x349   : > { %1749 = vst.msk [vmem:[#allocation3 + $0x100] sm:$0xff] %vm1716_vm6, %v1673_v27  ;;  %v2234_v31 = vpack.c.bf16 %v2206_v28, %v2205_v23 }
 0x34a   : > { %v1894_v33 = vpop.permute.xlu0 %1893  ;;  %1968 = vst.msk [vmem:[#allocation3 + $0x100] sm:$0xff] %vm1935_vm8, %v1892_v14 }
 0x34b   : > { %2957 = vmatmul.msk.bf16.gmra.mxu1 %vm2265_vm10, %v2234_v31  ;;  %1969 = vst.msk [vmem:[#allocation3 + $0x108] sm:$0xff] %vm1935_vm8, %v1894_v33 }
 0x350   : > { %v1882_v38 = vpop.permute.xlu1 %1881  ;;  %v1840_v39 = vpop.permute.xlu2 %1839 }
 0x351   : > { %1963 = vst.msk [vmem:[#allocation3 + $0xd8] sm:$0xff] %vm1935_vm8, %v1882_v38 }
 0x352   : > { %v2111_v40 = vpop.permute.xlu0 %2110  ;;  %2182 = vst.msk [vmem:[#allocation3 + $0xd8] sm:$0xff] %vm2154_vm9, %v2101_v29 }
 0x353   : > { %2187 = vst.msk [vmem:[#allocation3 + $0x100] sm:$0xff] %vm2154_vm9, %v2111_v40 }
 0x354   : > { %1942 = vst.msk [vmem:[#allocation3 + $0x30] sm:$0xff] %vm1935_vm8, %v1840_v39 }
 0x358   : > { %v2099_v47 = vpop.permute.xlu1 %2098  ;;  %v1862_v48 = vpop.permute.xlu2 %1861 }
 0x359   : > { %2181 = vst.msk [vmem:[#allocation3 + $0xd0] sm:$0xff] %vm2154_vm9, %v2099_v47  ;;  %v2218_v1 = vld [vmem:[#allocation3 + $0xd8] sm:$0xff] }
 0x35a   : > { %v1842_v49 = vpop.permute.xlu0 %1841  ;;  %1953 = vst.msk [vmem:[#allocation3 + $0x88] sm:$0xff] %vm1935_vm8, %v1862_v48  ;;  %v2223_v32 = vld [vmem:[#allocation3 + $0x100] sm:$0xff] }
 0x35b   : > { %1943 = vst.msk [vmem:[#allocation3 + $0x38] sm:$0xff] %vm1935_vm8, %v1842_v49 }
 0x35e   : > { %v2383_v58 = vpop.f32.mrf.mxu2 }
 0x35f   : > { %v2447_v3 = vmul.f32 %v4157_v56, %v2383_v58 }
 0x360   : > { %v2113_v8 = vpop.permute.xlu1 %2112  ;;  %v2217_v34 = vld [vmem:[#allocation3 + $0xd0] sm:$0xff]  ;;  %v2079_v7 = vpop.permute.xlu2 %2078 }
 0x361   : > { %v2487_v10 = vadd.f32 %v4164_v57, %v2447_v3  ;;  %2188 = vst.msk [vmem:[#allocation3 + $0x108] sm:$0xff] %vm2154_vm9, %v2113_v8  ;;  %v2240_v36 = vpack.c.bf16 %v2218_v1, %v2217_v34 }
 0x362   : > { %v2059_v13 = vpop.permute.xlu0 %2058  ;;  %v2358_v55 = vpop.f32.mrf.mxu1 }
 0x363   : > { %2523 = vst [vmem:[%s4170_s22 + $0xa0] sm:$0xff] %v2487_v10  ;;  %2963 = vmatmul.msk.bf16.gmra.mxu2 %vm2265_vm10, %v2240_v36  ;;  %v2437_v50 = vmul.f32 %v4157_v56, %v2358_v55 }
 0x364   : > { %2161 = vst.msk [vmem:[#allocation3 + $0x30] sm:$0xff] %vm2154_vm9, %v2059_v13 }
 0x365   : > { %v2477_v17 = vadd.f32 %v4164_v57, %v2437_v50 }
 0x366   : > { %v2385_v54 = vpop.f32.mrf.mxu2 }
 0x367   : > { %v2448_v43 = vmul.f32 %v4157_v56, %v2385_v54  ;;  %2513 = vst [vmem:[%s4170_s22 + $0x50] sm:$0xff] %v2477_v17 }
 0x368   : > { %v2333_v59 = vpop.f32.mrf.mxu0  ;;  %v1860_v2 = vpop.permute.xlu1 %1859  ;;  %v2224_v24 = vld [vmem:[#allocation3 + $0x108] sm:$0xff] }
 0x369   : > { %v2488_v4 = vadd.f32 %v4164_v57, %v2448_v43  ;;  %v2427_v11 = vmul.f32 %v4157_v56, %v2333_v59  ;;  %1952 = vst.msk [vmem:[#allocation3 + $0x80] sm:$0xff] %vm1935_vm8, %v1860_v2  ;;  %v2243_v41 = vpack.c.bf16 %v2224_v24, %v2223_v32  ;;  %v1667_v63 = vpop.permute.xlu2 %1666 }
 0x36a   : > { %v2081_v52 = vpop.permute.xlu0 %2080  ;;  %2171 = vst.msk [vmem:[#allocation3 + $0x80] sm:$0xff] %vm2154_vm9, %v2079_v7  ;;  %v2360_v12 = vpop.f32.mrf.mxu1 }
 0x36b   : > { %2524 = vst [vmem:[%s4170_s22 + $0xa8] sm:$0xff] %v2488_v4  ;;  %v2467_v18 = vadd.f32 %v4164_v57, %v2427_v11  ;;  %2966 = vmatmul.msk.bf16.gmra.mxu3 %vm2265_vm10, %v2243_v41  ;;  %v2438_v30 = vmul.f32 %v4157_v56, %v2360_v12  ;;  %v2197_v26 = vld [vmem:[#allocation3 + $0x30] sm:$0xff] }
 0x36c   : > { %2172 = vst.msk [vmem:[#allocation3 + $0x88] sm:$0xff] %vm2154_vm9, %v2081_v52 }
 0x36d   : > { %2503 = vst [vmem:[%s4170_s22] sm:$0xff] %v2467_v18  ;;  %v2478_v19 = vadd.f32 %v4164_v57, %v2438_v30 }
 0x36e   : > { %1746 = vst.msk [vmem:[#allocation3 + $0xe8] sm:$0xff] %vm1716_vm6, %v1667_v63 }
 0x36f   : > { %2514 = vst [vmem:[%s4170_s22 + $0x58] sm:$0xff] %v2478_v19 }
 0x370   : > { %v2335_v45 = vpop.f32.mrf.mxu0  ;;  %v2061_v35 = vpop.permute.xlu1 %2060 }
 0x371   : > { %v2428_v61 = vmul.f32 %v4157_v56, %v2335_v45  ;;  %2162 = vst.msk [vmem:[#allocation3 + $0x38] sm:$0xff] %vm2154_vm9, %v2061_v35  ;;  %v2207_v37 = vld [vmem:[#allocation3 + $0x80] sm:$0xff]  ;;  %v1884_v9 = vpop.permute.xlu2 %1883 }
 0x372   : > { %v1677_v42 = vpop.permute.xlu0 %1676 }
 0x373   : > { %v2468_v46 = vadd.f32 %v4164_v57, %v2428_v61  ;;  %1751 = vst.msk [vmem:[#allocation3 + $0x110] sm:$0xff] %vm1716_vm6, %v1677_v42  ;;  %v2208_v6 = vld [vmem:[#allocation3 + $0x88] sm:$0xff] }
 0x374   : > { %v2235_v44 = vpack.c.bf16 %v2208_v6, %v2207_v37 }
 0x375   : > { %2504 = vst [vmem:[%s4170_s22 + $0x8] sm:$0xff] %v2468_v46 }
 0x376   : > { %2958 = vmatmul.msk.bf16.gmra.mxu1 %vm2265_vm10, %v2235_v44 }
 0x378   : > { %v1665_v51 = vpop.permute.xlu1 %1664  ;;  %v2198_v15 = vld [vmem:[#allocation3 + $0x38] sm:$0xff] }
 0x379   : > { %1745 = vst.msk [vmem:[#allocation3 + $0xe0] sm:$0xff] %vm1716_vm6, %v1665_v51  ;;  %v2230_v53 = vpack.c.bf16 %v2198_v15, %v2197_v26  ;;  %v1898_v60 = vpop.permute.xlu2 %1897 }
 0x37a   : > { %v1886_v20 = vpop.permute.xlu0 %1885  ;;  %1964 = vst.msk [vmem:[#allocation3 + $0xe0] sm:$0xff] %vm1935_vm8, %v1884_v9 }
 0x37b   : > { %2953 = vmatmul.msk.bf16.gmra.mxu0 %vm2265_vm10, %v2230_v53  ;;  %1965 = vst.msk [vmem:[#allocation3 + $0xe8] sm:$0xff] %vm1935_vm8, %v1886_v20 }
 0x37f   : > { %v2388_v21 = vpop.f32.mrf.mxu2 }
 0x380   : > { %v2449_v62 = vmul.f32 %v4157_v56, %v2388_v21  ;;  %v1679_v0 = vpop.permute.xlu1 %1678 }
 0x381   : > { %1752 = vst.msk [vmem:[#allocation3 + $0x118] sm:$0xff] %vm1716_vm6, %v1679_v0  ;;  %v2115_v5 = vpop.permute.xlu2 %2114 }
 0x382   : > { %v2489_v22 = vadd.f32 %v4164_v57, %v2449_v62  ;;  %v2103_v14 = vpop.permute.xlu0 %2102  ;;  %1971 = vst.msk [vmem:[#allocation3 + $0x118] sm:$0xff] %vm1935_vm8, %v1898_v60  ;;  %v2338_v25 = vpop.f32.mrf.mxu0 }
 0x383   : > { %2183 = vst.msk [vmem:[#allocation3 + $0xe0] sm:$0xff] %vm2154_vm9, %v2103_v14  ;;  %v2429_v16 = vmul.f32 %v4157_v56, %v2338_v25 }
 0x384   : > { %2525 = vst [vmem:[%s4170_s22 + $0xb0] sm:$0xff] %v2489_v22 }
 0x385   : > { %v2469_v23 = vadd.f32 %v4164_v57, %v2429_v16 }
 0x387   : > { %v2390_v27 = vpop.f32.mrf.mxu2  ;;  %2505 = vst [vmem:[%s4170_s22 + $0x10] sm:$0xff] %v2469_v23 }
 0x388   : > { %v2450_v28 = vmul.f32 %v4157_v56, %v2390_v27  ;;  %v1896_v29 = vpop.permute.xlu1 %1895 }
 0x389   : > { %1970 = vst.msk [vmem:[#allocation3 + $0x110] sm:$0xff] %vm1935_vm8, %v1896_v29  ;;  %v1846_v31 = vpop.permute.xlu2 %1845 }
 0x38a   : > { %v2490_v33 = vadd.f32 %v4164_v57, %v2450_v28  ;;  %v2117_v38 = vpop.permute.xlu0 %2116  ;;  %2189 = vst.msk [vmem:[#allocation3 + $0x110] sm:$0xff] %vm2154_vm9, %v2115_v5  ;;  %v2340_v39 = vpop.f32.mrf.mxu0  ;;  %v2219_v36 = vld [vmem:[#allocation3 + $0xe0] sm:$0xff] }
 0x38b   : > { %2190 = vst.msk [vmem:[#allocation3 + $0x118] sm:$0xff] %vm2154_vm9, %v2117_v38  ;;  %v2430_v40 = vmul.f32 %v4157_v56, %v2340_v39 }
 0x38c   : > { %2526 = vst [vmem:[%s4170_s22 + $0xb8] sm:$0xff] %v2490_v33 }
 0x38d   : > { %v2470_v47 = vadd.f32 %v4164_v57, %v2430_v40  ;;  %1945 = vst.msk [vmem:[#allocation3 + $0x48] sm:$0xff] %vm1935_vm8, %v1846_v31 }
 0x38f   : > { %2506 = vst [vmem:[%s4170_s22 + $0x18] sm:$0xff] %v2470_v47 }
 0x390   : > { %v2363_v48 = vpop.f32.mrf.mxu1  ;;  %v2105_v49 = vpop.permute.xlu1 %2104 }
 0x391   : > { %v2439_v58 = vmul.f32 %v4157_v56, %v2363_v48  ;;  %2184 = vst.msk [vmem:[#allocation3 + $0xe8] sm:$0xff] %vm2154_vm9, %v2105_v49  ;;  %v2225_v1 = vld [vmem:[#allocation3 + $0x110] sm:$0xff]  ;;  %v2063_v10 = vpop.permute.xlu2 %2062 }
 0x392   : > { %v1864_v3 = vpop.permute.xlu0 %1863  ;;  %v2226_v8 = vld [vmem:[#allocation3 + $0x118] sm:$0xff] }
 0x393   : > { %v2479_v34 = vadd.f32 %v4164_v57, %v2439_v58  ;;  %1954 = vst.msk [vmem:[#allocation3 + $0x90] sm:$0xff] %vm1935_vm8, %v1864_v3  ;;  %v2244_v7 = vpack.c.bf16 %v2226_v8, %v2225_v1 }
 0x395   : > { %2515 = vst [vmem:[%s4170_s22 + $0x60] sm:$0xff] %v2479_v34  ;;  %2967 = vmatmul.msk.bf16.gmra.mxu3 %vm2265_vm10, %v2244_v7 }
 0x398   : > { %v2365_v13 = vpop.f32.mrf.mxu1  ;;  %v1844_v55 = vpop.permute.xlu1 %1843  ;;  %v2220_v50 = vld [vmem:[#allocation3 + $0xe8] sm:$0xff] }
 0x399   : > { %v2440_v17 = vmul.f32 %v4157_v56, %v2365_v13  ;;  %1944 = vst.msk [vmem:[#allocation3 + $0x40] sm:$0xff] %vm1935_vm8, %v1844_v55  ;;  %v2241_v54 = vpack.c.bf16 %v2220_v50, %v2219_v36  ;;  %v2085_v59 = vpop.permute.xlu2 %2084 }
 0x39a   : > { %v2065_v32 = vpop.permute.xlu0 %2064  ;;  %2163 = vst.msk [vmem:[#allocation3 + $0x40] sm:$0xff] %vm2154_vm9, %v2063_v10 }
 0x39b   : > { %v2480_v43 = vadd.f32 %v4164_v57, %v2440_v17  ;;  %2964 = vmatmul.msk.bf16.gmra.mxu2 %vm2265_vm10, %v2241_v54  ;;  %2164 = vst.msk [vmem:[#allocation3 + $0x48] sm:$0xff] %vm2154_vm9, %v2065_v32 }
 0x39d   : > { %2516 = vst [vmem:[%s4170_s22 + $0x68] sm:$0xff] %v2480_v43 }
 0x3a0   : > { %v1866_v2 = vpop.permute.xlu1 %1865 }
 0x3a1   : > { %1955 = vst.msk [vmem:[#allocation3 + $0x98] sm:$0xff] %vm1935_vm8, %v1866_v2  ;;  %v2199_v24 = vld [vmem:[#allocation3 + $0x40] sm:$0xff] }
 0x3a2   : > { %2174 = vst.msk [vmem:[#allocation3 + $0x98] sm:$0xff] %vm2154_vm9, %v2085_v59  ;;  %v2200_v4 = vld [vmem:[#allocation3 + $0x48] sm:$0xff] }
 0x3a3   : > { %v2231_v11 = vpack.c.bf16 %v2200_v4, %v2199_v24 }
 0x3a5   : > { %2954 = vmatmul.msk.bf16.gmra.mxu0 %vm2265_vm10, %v2231_v11 }
 0x3a8   : > { %v2083_v41 = vpop.permute.xlu1 %2082  ;;  %v2393_v63 = vpop.f32.mrf.mxu2 }
 0x3a9   : > { %2173 = vst.msk [vmem:[#allocation3 + $0x90] sm:$0xff] %vm2154_vm9, %v2083_v41  ;;  %v2451_v52 = vmul.f32 %v4157_v56, %v2393_v63  ;;  %v2210_v18 = vld [vmem:[#allocation3 + $0x98] sm:$0xff] }
 0x3ab   : > { %v2491_v12 = vadd.f32 %v4164_v57, %v2451_v52 }
 0x3ad   : > { %2527 = vst [vmem:[%s4170_s22 + $0xc0] sm:$0xff] %v2491_v12 }
 0x3b0   : > { %v2209_v30 = vld [vmem:[#allocation3 + $0x90] sm:$0xff]  ;;  %v2395_v19 = vpop.f32.mrf.mxu2 }
 0x3b1   : > { %v2236_v45 = vpack.c.bf16 %v2210_v18, %v2209_v30  ;;  %v2452_v35 = vmul.f32 %v4157_v56, %v2395_v19 }
 0x3b3   : > { %2959 = vmatmul.msk.bf16.gmra.mxu1 %vm2265_vm10, %v2236_v45  ;;  %v2492_v61 = vadd.f32 %v4164_v57, %v2452_v35 }
 0x3b5   : > { %2528 = vst [vmem:[%s4170_s22 + $0xc8] sm:$0xff] %v2492_v61 }
 0x3b6   : > { %v2408_v37 = vpop.f32.mrf.mxu3 }
 0x3b7   : > { %v2457_v9 = vmul.f32 %v4157_v56, %v2408_v37 }
 0x3b9   : > { %v2497_v42 = vadd.f32 %v4164_v57, %v2457_v9 }
 0x3bb   : > { %2533 = vst [vmem:[%s4170_s22 + $0xf0] sm:$0xff] %v2497_v42 }
 0x3be   : > { %v2410_v46 = vpop.f32.mrf.mxu3 }
 0x3bf   : > { %v2458_v6 = vmul.f32 %v4157_v56, %v2410_v46 }
 0x3c0   : > { %v2343_v44 = vpop.f32.mrf.mxu0 }
 0x3c1   : > { %v2498_v26 = vadd.f32 %v4164_v57, %v2458_v6  ;;  %v2431_v51 = vmul.f32 %v4157_v56, %v2343_v44 }
 0x3c3   : > { %2534 = vst [vmem:[%s4170_s22 + $0xf8] sm:$0xff] %v2498_v26  ;;  %v2471_v15 = vadd.f32 %v4164_v57, %v2431_v51 }
 0x3c5   : > { %2507 = vst [vmem:[%s4170_s22 + $0x20] sm:$0xff] %v2471_v15 }
 0x3c8   : > { %v2345_v53 = vpop.f32.mrf.mxu0  ;;  %v2368_v60 = vpop.f32.mrf.mxu1 }
 0x3c9   : > { %v2432_v20 = vmul.f32 %v4157_v56, %v2345_v53  ;;  %v2441_v21 = vmul.f32 %v4157_v56, %v2368_v60 }
 0x3cb   : > { %v2472_v62 = vadd.f32 %v4164_v57, %v2432_v20  ;;  %v2481_v0 = vadd.f32 %v4164_v57, %v2441_v21 }
 0x3cd   : > { %2508 = vst [vmem:[%s4170_s22 + $0x28] sm:$0xff] %v2472_v62 }
 0x3ce   : > { %2517 = vst [vmem:[%s4170_s22 + $0x70] sm:$0xff] %v2481_v0 }
 0x3d0   : > { %v2370_v5 = vpop.f32.mrf.mxu1 }
 0x3d1   : > { %v2442_v22 = vmul.f32 %v4157_v56, %v2370_v5 }
 0x3d3   : > { %v2482_v14 = vadd.f32 %v4164_v57, %v2442_v22 }
 0x3d5   : > { %2518 = vst [vmem:[%s4170_s22 + $0x78] sm:$0xff] %v2482_v14 }
 0x3e6   : > { %v2398_v25 = vpop.f32.mrf.mxu2 }
 0x3e7   : > { %v2453_v16 = vmul.f32 %v4157_v56, %v2398_v25 }
 0x3e9   : > { %v2493_v23 = vadd.f32 %v4164_v57, %v2453_v16 }
 0x3eb   : > { %2529 = vst [vmem:[%s4170_s22 + $0xd0] sm:$0xff] %v2493_v23 }
 0x3ee   : > { %v2400_v27 = vpop.f32.mrf.mxu2  ;;  %v2413_v28 = vpop.f32.mrf.mxu3 }
 0x3ef   : > { %v2454_v29 = vmul.f32 %v4157_v56, %v2400_v27  ;;  %v2459_v31 = vmul.f32 %v4157_v56, %v2413_v28 }
 0x3f1   : > { %v2494_v33 = vadd.f32 %v4164_v57, %v2454_v29  ;;  %v2499_v38 = vadd.f32 %v4164_v57, %v2459_v31 }
 0x3f3   : > { %2530 = vst [vmem:[%s4170_s22 + $0xd8] sm:$0xff] %v2494_v33  ;;  %v2373_v39 = vpop.f32.mrf.mxu1 }
 0x3f4   : > { %2535 = vst [vmem:[%s4170_s22 + $0x100] sm:$0xff] %v2499_v38  ;;  %v2443_v40 = vmul.f32 %v4157_v56, %v2373_v39 }
 0x3f6   : > { %v2415_v47 = vpop.f32.mrf.mxu3  ;;  %v2483_v48 = vadd.f32 %v4164_v57, %v2443_v40 }
 0x3f7   : > { %v2460_v49 = vmul.f32 %v4157_v56, %v2415_v47 }
 0x3f8   : > { %v2348_v58 = vpop.f32.mrf.mxu0  ;;  %2519 = vst [vmem:[%s4170_s22 + $0x80] sm:$0xff] %v2483_v48 }
 0x3f9   : > { %v2500_v1 = vadd.f32 %v4164_v57, %v2460_v49  ;;  %v2433_v3 = vmul.f32 %v4157_v56, %v2348_v58 }
 0x3fb   : > { %2536 = vst [vmem:[%s4170_s22 + $0x108] sm:$0xff] %v2500_v1  ;;  %v2473_v8 = vadd.f32 %v4164_v57, %v2433_v3  ;;  %v2375_v34 = vpop.f32.mrf.mxu1 }
 0x3fc   : > { %v2444_v7 = vmul.f32 %v4157_v56, %v2375_v34 }
 0x3fd   : > { %2509 = vst [vmem:[%s4170_s22 + $0x30] sm:$0xff] %v2473_v8 }
 0x3fe   : > { %v2484_v10 = vadd.f32 %v4164_v57, %v2444_v7 }
 0x400   : > { %v2350_v36 = vpop.f32.mrf.mxu0  ;;  %2520 = vst [vmem:[%s4170_s22 + $0x88] sm:$0xff] %v2484_v10 }
 0x401   : > { %v2434_v13 = vmul.f32 %v4157_v56, %v2350_v36 }
 0x403   : > { %v2474_v55 = vadd.f32 %v4164_v57, %v2434_v13 }
 0x405   : > { %2510 = vst [vmem:[%s4170_s22 + $0x38] sm:$0xff] %v2474_v55 }
 0x418   : > { %v2418_v50 = vpop.f32.mrf.mxu3 }
 0x419   : > { %v2461_v17 = vmul.f32 %v4157_v56, %v2418_v50 }
 0x41b   : > { %v2501_v54 = vadd.f32 %v4164_v57, %v2461_v17 }
 0x41d   : > { %2537 = vst [vmem:[%s4170_s22 + $0x110] sm:$0xff] %v2501_v54 }
 0x41e   : > { %v2403_v32 = vpop.f32.mrf.mxu2 }
 0x41f   : > { %v2455_v43 = vmul.f32 %v4157_v56, %v2403_v32 }
 0x420   : > { %v2420_v59 = vpop.f32.mrf.mxu3 }
 0x421   : > { %v2495_v2 = vadd.f32 %v4164_v57, %v2455_v43  ;;  %v2462_v24 = vmul.f32 %v4157_v56, %v2420_v59 }
 0x422   : > { %v2353_v4 = vpop.f32.mrf.mxu0 }
 0x423   : > { %2531 = vst [vmem:[%s4170_s22 + $0xe0] sm:$0xff] %v2495_v2  ;;  %v2502_v11 = vadd.f32 %v4164_v57, %v2462_v24  ;;  %v2435_v41 = vmul.f32 %v4157_v56, %v2353_v4 }
 0x425   : > { %2538 = vst [vmem:[%s4170_s22 + $0x118] sm:$0xff] %v2502_v11  ;;  %v2475_v63 = vadd.f32 %v4164_v57, %v2435_v41 }
 0x426   : > { %v2405_v52 = vpop.f32.mrf.mxu2 }
 0x427   : > { %v2456_v12 = vmul.f32 %v4157_v56, %v2405_v52  ;;  %2511 = vst [vmem:[%s4170_s22 + $0x40] sm:$0xff] %v2475_v63 }
 0x429   : > { %v2496_v18 = vadd.f32 %v4164_v57, %v2456_v12 }
 0x42a   : > { %v2355_v30 = vpop.f32.mrf.mxu0 }
 0x42b   : > { %2532 = vst [vmem:[%s4170_s22 + $0xe8] sm:$0xff] %v2496_v18  ;;  %v2436_v19 = vmul.f32 %v4157_v56, %v2355_v30 }
 0x42d   : > { %v2476_v45 = vadd.f32 %v4164_v57, %v2436_v19 }
 0x42f   : > { %2512 = vst [vmem:[%s4170_s22 + $0x48] sm:$0xff] %v2476_v45 }
 0x430   : > { %v2378_v35 = vpop.f32.mrf.mxu1 }
 0x431   : > { %v2445_v61 = vmul.f32 %v4157_v56, %v2378_v35 }
 0x433   : > { %v2485_v37 = vadd.f32 %v4164_v57, %v2445_v61 }
 0x435   : > { %2521 = vst [vmem:[%s4170_s22 + $0x90] sm:$0xff] %v2485_v37 }
 0x438   : > { %v2380_v9 = vpop.f32.mrf.mxu1 }
 0x439   : > { %v2446_v42 = vmul.f32 %v4157_v56, %v2380_v9 }
 0x43b   : > { %v2486_v46 = vadd.f32 %v4164_v57, %v2446_v42 }
 0x43d   : > { %2522 = vst [vmem:[%s4170_s22 + $0x98] sm:$0xff] %v2486_v46 }
 0x43e PF: > { %s14_s17 = sadd.s32 1, %s3119_s17   ;;  %s4327_s15 = smov %s3115_s16 }
 0x43f   : > { %p11_p5 = scmp.ge.s32.totalorder %s14_s17, 4   ;;  %s4328_s16 = smov %s4330_s18 }
 0x441   :  { %13 = sbr.rel (!%p11_p5) target bundleno = 2 (0x2), region = 79 }

</bundles_post_ra>
